<compile_context>
chip_gen: v5e
topology: v5e:2x2
jax: 0.10.0
libtpu: 0.0.40
codegen_flags: <defaults>
</compile_context>

<pallas_src>
import functools

import jax
import jax.numpy as jnp
from jax.experimental import pallas as pl
from jax.experimental.pallas import tpu as pltpu

_EPS = 1e-4
_PARALLEL = pltpu.CompilerParams(dimension_semantics=("parallel",))


# ----------------------------------------------------------------------------
# In-kernel helpers (pure 2-D MXU matmuls, f32 accumulation)
# ----------------------------------------------------------------------------
def _bilinear(wt, w, x):
    """W^T X W with the weight pre-transposed so both matmuls are MXU-natural."""
    wtx = jnp.dot(wt, x, preferred_element_type=jnp.float32)      # (m, n)
    return jnp.dot(wtx, w, preferred_element_type=jnp.float32)    # (m, m)


def _eig_recon(v, f):
    """V diag(f) V^T for eigenvector columns v (n, n) and eigenvalue row f (1, n)."""
    return jax.lax.dot_general(
        v * f, v, (((1,), (1,)), ((), ())), preferred_element_type=jnp.float32)


# ----------------------------------------------------------------------------
# Pallas kernels (one batch element per grid step, batch axis marked parallel)
# ----------------------------------------------------------------------------
def _transform_kernel(x_ref, wt_ref, w_ref, o_ref):
    """layer_1 SPDTransform: o = W^T X W."""
    o_ref[0] = _bilinear(wt_ref[...], w_ref[...], x_ref[0])


def _rect_transform_kernel(v_ref, s_ref, wt_ref, w_ref, e_ref, t_ref, *, eps):
    """ReEig reconstruction of the previous layer fused with the next SPDTransform."""
    f = jnp.maximum(s_ref[0], eps)                 # (1, n)
    e = _eig_recon(v_ref[0], f)                    # ReEig: V max(S, eps) V^T
    e_ref[0] = e
    t_ref[0] = _bilinear(wt_ref[...], w_ref[...], e)


def _rect_transform2_kernel(v_ref, s_ref, w3t_ref, w3_ref, wcot_ref, wco_ref,
                            e_ref, t3_ref, tco_ref, *, eps):
    """ReEig recon (layer_2) + layer_3 transform + co_disentangle transform."""
    f = jnp.maximum(s_ref[0], eps)
    e = _eig_recon(v_ref[0], f)                    # embed_stage_2 (post-ReEig)
    e_ref[0] = e
    t3 = _bilinear(w3t_ref[...], w3_ref[...], e)   # embed_stage_3
    t3_ref[0] = t3
    tco_ref[0] = _bilinear(wcot_ref[...], wco_ref[...], t3)


def _rect_log_fc_kernel(v_ref, s_ref, w1r_ref, b1_ref, w2_ref, b2_ref,
                        co_ref, out_ref, *, eps, n):
    """ReEig recon (co_feature) + LogEig + Flatten + fc_layers (eval: Dropout = id)."""
    v = v_ref[0]                                   # (n, n)
    f = jnp.maximum(s_ref[0], eps)                 # (1, n)
    co_ref[0] = _eig_recon(v, f)                   # co_feature
    # co = V diag(f) V^T  =>  log(co) = V diag(log f) V^T : LogEig without a second eigh.
    logm = _eig_recon(v, jnp.log(f))               # (n, n)

    # Flatten-free FC1: row-major flatten gives h[o] = sum_{i,j} logm[i,j] * W1[i*n+j, o],
    # and W1 is pre-reshaped on the host to (n, n, 256); accumulate per row i so only
    # plain 2-D MXU matmuls are used (no in-kernel lane reshuffle to 676 lanes).
    h = b1_ref[...]                                # (1, 256), start from the bias
    for i in range(n):
        h = h + jnp.dot(logm[i:i + 1, :], w1r_ref[i],
                        preferred_element_type=jnp.float32)
    h = jnp.where(h > 0, h, jnp.float32(0.01) * h)  # LeakyReLU(0.01)
    out_ref[0] = jnp.dot(h, w2_ref[...],
                         preferred_element_type=jnp.float32) + b2_ref[...]


# ----------------------------------------------------------------------------
# Pallas wrappers
# ----------------------------------------------------------------------------
def spd_transform_first(x, wt, w):
    """x: (B, n, n) -> (B, m, m) = W^T X W."""
    B, n, _ = x.shape
    m = w.shape[1]
    return pl.pallas_call(
        _transform_kernel,
        out_shape=jax.ShapeDtypeStruct((B, m, m), jnp.float32),
        grid=(B,),
        in_specs=[
            pl.BlockSpec((1, n, n), lambda b: (b, 0, 0)),
            pl.BlockSpec((m, n), lambda b: (0, 0)),
            pl.BlockSpec((n, m), lambda b: (0, 0)),
        ],
        out_specs=pl.BlockSpec((1, m, m), lambda b: (b, 0, 0)),
        compiler_params=_PARALLEL,
    )(x, wt, w)


def rect_and_transform(v, s, wt, w, eps=_EPS):
    """ReEig recon of (v, s) -> e (B, n, n), then t = W^T e W -> (B, m, m)."""
    B, n, _ = v.shape
    m = w.shape[1]
    kernel = functools.partial(_rect_transform_kernel, eps=eps)
    return pl.pallas_call(
        kernel,
        out_shape=(jax.ShapeDtypeStruct((B, n, n), jnp.float32),
                   jax.ShapeDtypeStruct((B, m, m), jnp.float32)),
        grid=(B,),
        in_specs=[
            pl.BlockSpec((1, n, n), lambda b: (b, 0, 0)),
            pl.BlockSpec((1, 1, n), lambda b: (b, 0, 0)),
            pl.BlockSpec((m, n), lambda b: (0, 0)),
            pl.BlockSpec((n, m), lambda b: (0, 0)),
        ],
        out_specs=(pl.BlockSpec((1, n, n), lambda b: (b, 0, 0)),
                   pl.BlockSpec((1, m, m), lambda b: (b, 0, 0))),
        compiler_params=_PARALLEL,
    )(v, s, wt, w)


def rect_and_two_transforms(v, s, w3t, w3, wcot, wco, eps=_EPS):
    """ReEig recon -> e2; layer_3 transform -> e3; co_disentangle transform -> t_co."""
    B, n, _ = v.shape          # 66
    m = w3.shape[1]            # 26
    p = wco.shape[1]           # 26
    kernel = functools.partial(_rect_transform2_kernel, eps=eps)
    return pl.pallas_call(
        kernel,
        out_shape=(jax.ShapeDtypeStruct((B, n, n), jnp.float32),
                   jax.ShapeDtypeStruct((B, m, m), jnp.float32),
                   jax.ShapeDtypeStruct((B, p, p), jnp.float32)),
        grid=(B,),
        in_specs=[
            pl.BlockSpec((1, n, n), lambda b: (b, 0, 0)),
            pl.BlockSpec((1, 1, n), lambda b: (b, 0, 0)),
            pl.BlockSpec((m, n), lambda b: (0, 0)),
            pl.BlockSpec((n, m), lambda b: (0, 0)),
            pl.BlockSpec((p, m), lambda b: (0, 0)),
            pl.BlockSpec((m, p), lambda b: (0, 0)),
        ],
        out_specs=(pl.BlockSpec((1, n, n), lambda b: (b, 0, 0)),
                   pl.BlockSpec((1, m, m), lambda b: (b, 0, 0)),
                   pl.BlockSpec((1, p, p), lambda b: (b, 0, 0))),
        compiler_params=_PARALLEL,
    )(v, s, w3t, w3, wcot, wco)


def rect_log_and_fc(v, s, w1r, b1, w2, b2, eps=_EPS):
    """ReEig recon -> co (B, n, n); LogEig + Flatten + fc_layers -> logits (B, 2)."""
    B, n, _ = v.shape          # 26
    hdim = w1r.shape[2]        # 256
    c = w2.shape[1]            # 2
    kernel = functools.partial(_rect_log_fc_kernel, eps=eps, n=n)
    co, out3 = pl.pallas_call(
        kernel,
        out_shape=(jax.ShapeDtypeStruct((B, n, n), jnp.float32),
                   jax.ShapeDtypeStruct((B, 1, c), jnp.float32)),
        grid=(B,),
        in_specs=[
            pl.BlockSpec((1, n, n), lambda b: (b, 0, 0)),
            pl.BlockSpec((1, 1, n), lambda b: (b, 0, 0)),
            pl.BlockSpec((n, n, hdim), lambda b: (0, 0, 0)),
            pl.BlockSpec((1, hdim), lambda b: (0, 0)),
            pl.BlockSpec((hdim, c), lambda b: (0, 0)),
            pl.BlockSpec((1, c), lambda b: (0, 0)),
        ],
        out_specs=(pl.BlockSpec((1, n, n), lambda b: (b, 0, 0)),
                   pl.BlockSpec((1, 1, c), lambda b: (b, 0, 0))),
        compiler_params=_PARALLEL,
    )(v, s, w1r, b1, w2, b2)
    return co, out3[:, 0, :]


# ----------------------------------------------------------------------------
# JAX glue: symmetric eigendecomposition (no clean Pallas equivalent)
# ----------------------------------------------------------------------------
def _eigh_vs(x):
    # TODO(synk): symmetric eigh has no clean Pallas equivalent; done with jnp.linalg.eigh.
    s, v = jnp.linalg.eigh(x)                      # s: (B, n), v columns = eigenvectors
    B, n = s.shape
    return v.astype(jnp.float32), s.reshape(B, 1, n).astype(jnp.float32)


# ----------------------------------------------------------------------------
# Parameter initialization (deterministic, mirrors the module's __init__ shapes)
# ----------------------------------------------------------------------------
def _stiefel(key, n_in, n_out):
    """Orthonormal-column weight, like SPDTransform's StiefelParameter."""
    a = jax.random.normal(key, (n_in, n_out), dtype=jnp.float32)
    q, _ = jnp.linalg.qr(a)
    return q.astype(jnp.float32)                   # (n_in, n_out)


def _kaiming_uniform_fan_out_t(key, out_f, in_f, a=0.01):
    gain = jnp.sqrt(2.0 / (1.0 + a * a))
    bound = gain * jnp.sqrt(3.0 / out_f)           # mode='fan_out'
    w = jax.random.uniform(key, (out_f, in_f), jnp.float32, -bound, bound)
    return w.T                                     # pre-transposed: (in_f, out_f)


def init_params(key):
    ks = jax.random.split(key, 6)
    w1 = _stiefel(ks[0], 116, 96)                  # layer_1 SPDTransform(116, 96)
    w2 = _stiefel(ks[1], 96, 66)                   # layer_2 SPDTransform(96, 66)
    w3 = _stiefel(ks[2], 66, 26)                   # layer_3 SPDTransform(66, 26)
    wco = _stiefel(ks[3], 26, 26)                  # co_disentangle SPDTransform(26, 26)
    fc1_w = _kaiming_uniform_fan_out_t(ks[4], 256, 676)   # (676, 256)
    fc2_w = _kaiming_uniform_fan_out_t(ks[5], 2, 256)     # (256, 2)
    return {
        "w1": w1, "w1t": w1.T,
        "w2": w2, "w2t": w2.T,
        "w3": w3, "w3t": w3.T,
        "wco": wco, "wcot": wco.T,
        # row-major reshape matches Flatten: fc1_w3d[i, j, o] == fc1_w[i*26 + j, o]
        "fc1_w3d": fc1_w.reshape(26, 26, 256),
        "fc1_b": jnp.zeros((1, 256), jnp.float32),
        "fc2_w": fc2_w,
        "fc2_b": jnp.zeros((1, 2), jnp.float32),
    }


# ----------------------------------------------------------------------------
# Forward (eval mode)
# ----------------------------------------------------------------------------
def rm_drl_forward(params, x):
    """x: (B, 116, 116) SPD matrices.  Returns (logits (B, 2), features list)."""
    xin = x.astype(jnp.float32)

    # layer_1: SPDTransform(116, 96); ReEig is deferred into the next fused kernel.
    t1 = spd_transform_first(xin, params["w1t"], params["w1"])
    v1, s1 = _eigh_vs(t1)
    # fused: ReEig recon (embed_stage_1) + layer_2 SPDTransform(96, 66)
    e1, t2 = rect_and_transform(v1, s1, params["w2t"], params["w2"])
    v2, s2 = _eigh_vs(t2)
    # fused: ReEig recon (embed_stage_2) + layer_3 SPDTransform(66, 26)
    #        + co_disentangle SPDTransform(26, 26)
    e2, e3, tco = rect_and_two_transforms(
        v2, s2, params["w3t"], params["w3"], params["wcot"], params["wco"])
    vco, sco = _eigh_vs(tco)
    # fused: ReEig recon (co_feature) + LogEig + Flatten + fc_layers (eval: Dropout = id)
    co, logits = rect_log_and_fc(
        vco, sco, params["fc1_w3d"], params["fc1_b"], params["fc2_w"], params["fc2_b"])

    # TODO(synk): training-only branch (sp_disentangle, block-diag spd_recon, Dropout)
    # omitted; this implements the eval-mode forward.
    features = [a[:, None, :, :] for a in (e1, e2, e3, co, xin)]
    return logits, features


# ----------------------------------------------------------------------------
# Main
# ----------------------------------------------------------------------------
if __name__ == "__main__":
    key = jax.random.PRNGKey(0)
    k_param, k_data = jax.random.split(key)

    params = init_params(k_param)

    # Deterministic small SPD input batch: (B, 116, 116), B = 2.
    B, N = 2, 116
    a = jax.random.normal(k_data, (B, N, N), dtype=jnp.float32)
    x = jnp.einsum("bij,bkj->bik", a, a) / N + 1e-3 * jnp.eye(N, dtype=jnp.float32)

    fwd = jax.jit(rm_drl_forward)
    out, features = fwd(params, x)
    out = jax.block_until_ready(out)

    assert out.shape == (B, 2) and out.dtype == jnp.float32
    assert features[-1].shape == (B, 1, N, N)
    assert bool(jnp.all(jnp.isfinite(out)))
    print("KERNEL_OK")
</pallas_src>

<mosaic_0001>
module attributes {stable_mosaic.version = 11 : i64} {
  func.func @_transform_kernel(%arg0: i32, %arg1: memref<1x116x116xf32, #tpu.memory_space<vmem>>, %arg2: memref<96x116xf32, #tpu.memory_space<vmem>>, %arg3: memref<116x96xf32, #tpu.memory_space<vmem>>, %arg4: memref<1x96x96xf32, #tpu.memory_space<vmem>>) attributes {dimension_semantics = [#tpu.dimension_semantics<parallel>], iteration_bounds = array<i64: 2>, scalar_prefetch = 0 : i64, scratch_operands = 0 : i64, tpu.core_type = #tpu.core_type<tc>, window_params = [{transform_indices = @transform_0, window_bounds = array<i64: 1, 116, 116>}, {pipeline_mode = #tpu.pipeline_mode<synchronous>, transform_indices = @transform_1, window_bounds = array<i64: 96, 116>}, {pipeline_mode = #tpu.pipeline_mode<synchronous>, transform_indices = @transform_2, window_bounds = array<i64: 116, 96>}, {transform_indices = @transform_3, window_bounds = array<i64: 1, 96, 96>}]} {
    %c0 = arith.constant 0 : index
    %c0_0 = arith.constant 0 : index
    %0 = vector.load %arg2[%c0, %c0_0] : memref<96x116xf32, #tpu.memory_space<vmem>>, vector<96x116xf32>
    %c0_1 = arith.constant 0 : index
    %c0_2 = arith.constant 0 : index
    %1 = vector.load %arg3[%c0_1, %c0_2] : memref<116x96xf32, #tpu.memory_space<vmem>>, vector<116x96xf32>
    %c0_3 = arith.constant 0 : index
    %c0_4 = arith.constant 0 : index
    %c0_5 = arith.constant 0 : index
    %2 = vector.load %arg1[%c0_3, %c0_4, %c0_5] : memref<1x116x116xf32, #tpu.memory_space<vmem>>, vector<1x116x116xf32>
    %3 = vector.shape_cast %2 : vector<1x116x116xf32> to vector<116x116xf32>
    %cst = arith.constant dense<0.000000e+00> : vector<96x116xf32>
    %4 = tpu.matmul %0, %3, %cst {dimension_numbers = #tpu.dot_dimension_numbers<[1], [0], [0], [1], [0, 0, 1, 1], [], []>} : vector<96x116xf32>, vector<116x116xf32>, vector<96x116xf32> -> vector<96x116xf32>
    %cst_6 = arith.constant dense<0.000000e+00> : vector<96x96xf32>
    %5 = tpu.matmul %4, %1, %cst_6 {dimension_numbers = #tpu.dot_dimension_numbers<[1], [0], [0], [1], [0, 0, 1, 1], [], []>} : vector<96x116xf32>, vector<116x96xf32>, vector<96x96xf32> -> vector<96x96xf32>
    %c0_7 = arith.constant 0 : index
    %c0_8 = arith.constant 0 : index
    %c0_9 = arith.constant 0 : index
    %6 = vector.load %arg4[%c0_7, %c0_8, %c0_9] : memref<1x96x96xf32, #tpu.memory_space<vmem>>, vector<1x96x96xf32>
    %7 = vector.shape_cast %6 : vector<1x96x96xf32> to vector<96x96xf32>
    %8 = vector.shape_cast %5 : vector<96x96xf32> to vector<1x96x96xf32>
    tpu.vector_store %arg4[%c0_7, %c0_8, %c0_9], %8 {strides = array<i32>} : memref<1x96x96xf32, #tpu.memory_space<vmem>>, vector<1x96x96xf32>,
    return
  }
  func.func @transform_0(%arg0: i32) -> (i32, i32, i32) {
    %c0_i32 = arith.constant 0 : i32
    %c0_i32_0 = arith.constant 0 : i32
    %c0_i32_1 = arith.constant 0 : i32
    return %arg0, %c0_i32, %c0_i32_0 : i32, i32, i32
  }
  func.func @transform_1(%arg0: i32) -> (i32, i32) {
    %c0_i32 = arith.constant 0 : i32
    %c0_i32_0 = arith.constant 0 : i32
    %c0_i32_1 = arith.constant 0 : i32
    return %c0_i32, %c0_i32_0 : i32, i32
  }
  func.func @transform_2(%arg0: i32) -> (i32, i32) {
    %c0_i32 = arith.constant 0 : i32
    %c0_i32_0 = arith.constant 0 : i32
    %c0_i32_1 = arith.constant 0 : i32
    return %c0_i32, %c0_i32_0 : i32, i32
  }
  func.func @transform_3(%arg0: i32) -> (i32, i32, i32) {
    %c0_i32 = arith.constant 0 : i32
    %c0_i32_0 = arith.constant 0 : i32
    %c0_i32_1 = arith.constant 0 : i32
    return %arg0, %c0_i32, %c0_i32_0 : i32, i32, i32
  }
}

module attributes {stable_mosaic.version = 11 : i64} {
  func.func @_rect_transform_kernel(%arg0: i32, %arg1: memref<1x96x96xf32, #tpu.memory_space<vmem>>, %arg2: memref<1x1x96xf32, #tpu.memory_space<vmem>>, %arg3: memref<66x96xf32, #tpu.memory_space<vmem>>, %arg4: memref<96x66xf32, #tpu.memory_space<vmem>>, %arg5: memref<1x96x96xf32, #tpu.memory_space<vmem>>, %arg6: memref<1x66x66xf32, #tpu.memory_space<vmem>>) attributes {dimension_semantics = [#tpu.dimension_semantics<parallel>], iteration_bounds = array<i64: 2>, scalar_prefetch = 0 : i64, scratch_operands = 0 : i64, tpu.core_type = #tpu.core_type<tc>, window_params = [{transform_indices = @transform_0, window_bounds = array<i64: 1, 96, 96>}, {transform_indices = @transform_1, window_bounds = array<i64: 1, 1, 96>}, {pipeline_mode = #tpu.pipeline_mode<synchronous>, transform_indices = @transform_2, window_bounds = array<i64: 66, 96>}, {pipeline_mode = #tpu.pipeline_mode<synchronous>, transform_indices = @transform_3, window_bounds = array<i64: 96, 66>}, {transform_indices = @transform_4, window_bounds = array<i64: 1, 96, 96>}, {transform_indices = @transform_5, window_bounds = array<i64: 1, 66, 66>}]} {
    %c0 = arith.constant 0 : index
    %c0_0 = arith.constant 0 : index
    %c0_1 = arith.constant 0 : index
    %0 = vector.load %arg2[%c0, %c0_0, %c0_1] : memref<1x1x96xf32, #tpu.memory_space<vmem>>, vector<1x1x96xf32>
    %1 = vector.shape_cast %0 : vector<1x1x96xf32> to vector<1x96xf32>
    %cst = arith.constant 9.99999974E-5 : f32
    %2 = vector.broadcast %cst : f32 to vector<1x96xf32>
    %3 = arith.maximumf %1, %2 : vector<1x96xf32>
    %c0_2 = arith.constant 0 : index
    %c0_3 = arith.constant 0 : index
    %c0_4 = arith.constant 0 : index
    %4 = vector.load %arg1[%c0_2, %c0_3, %c0_4] : memref<1x96x96xf32, #tpu.memory_space<vmem>>, vector<1x96x96xf32>
    %5 = vector.shape_cast %4 : vector<1x96x96xf32> to vector<96x96xf32>
    %6 = vector.broadcast %3 : vector<1x96xf32> to vector<96x96xf32>
    %7 = arith.mulf %5, %6 : vector<96x96xf32>
    %cst_5 = arith.constant dense<0.000000e+00> : vector<96x96xf32>
    %8 = tpu.matmul %7, %5, %cst_5 {dimension_numbers = #tpu.dot_dimension_numbers<[1], [1], [0], [0], [0, 0, 1, 0], [], []>} : vector<96x96xf32>, vector<96x96xf32>, vector<96x96xf32> -> vector<96x96xf32>
    %c0_6 = arith.constant 0 : index
    %c0_7 = arith.constant 0 : index
    %c0_8 = arith.constant 0 : index
    %9 = vector.load %arg5[%c0_6, %c0_7, %c0_8] : memref<1x96x96xf32, #tpu.memory_space<vmem>>, vector<1x96x96xf32>
    %10 = vector.shape_cast %9 : vector<1x96x96xf32> to vector<96x96xf32>
    %11 = vector.shape_cast %8 : vector<96x96xf32> to vector<1x96x96xf32>
    tpu.vector_store %arg5[%c0_6, %c0_7, %c0_8], %11 {strides = array<i32>} : memref<1x96x96xf32, #tpu.memory_space<vmem>>, vector<1x96x96xf32>,
    %c0_9 = arith.constant 0 : index
    %c0_10 = arith.constant 0 : index
    %12 = vector.load %arg3[%c0_9, %c0_10] : memref<66x96xf32, #tpu.memory_space<vmem>>, vector<66x96xf32>
    %c0_11 = arith.constant 0 : index
    %c0_12 = arith.constant 0 : index
    %13 = vector.load %arg4[%c0_11, %c0_12] : memref<96x66xf32, #tpu.memory_space<vmem>>, vector<96x66xf32>
    %cst_13 = arith.constant dense<0.000000e+00> : vector<66x96xf32>
    %14 = tpu.matmul %12, %8, %cst_13 {dimension_numbers = #tpu.dot_dimension_numbers<[1], [0], [0], [1], [0, 0, 1, 1], [], []>} : vector<66x96xf32>, vector<96x96xf32>, vector<66x96xf32> -> vector<66x96xf32>
    %cst_14 = arith.constant dense<0.000000e+00> : vector<66x66xf32>
    %15 = tpu.matmul %14, %13, %cst_14 {dimension_numbers = #tpu.dot_dimension_numbers<[1], [0], [0], [1], [0, 0, 1, 1], [], []>} : vector<66x96xf32>, vector<96x66xf32>, vector<66x66xf32> -> vector<66x66xf32>
    %c0_15 = arith.constant 0 : index
    %c0_16 = arith.constant 0 : index
    %c0_17 = arith.constant 0 : index
    %16 = vector.load %arg6[%c0_15, %c0_16, %c0_17] : memref<1x66x66xf32, #tpu.memory_space<vmem>>, vector<1x66x66xf32>
    %17 = vector.shape_cast %16 : vector<1x66x66xf32> to vector<66x66xf32>
    %18 = vector.shape_cast %15 : vector<66x66xf32> to vector<1x66x66xf32>
    tpu.vector_store %arg6[%c0_15, %c0_16, %c0_17], %18 {strides = array<i32>} : memref<1x66x66xf32, #tpu.memory_space<vmem>>, vector<1x66x66xf32>,
    return
  }
  func.func @transform_0(%arg0: i32) -> (i32, i32, i32) {
    %c0_i32 = arith.constant 0 : i32
    %c0_i32_0 = arith.constant 0 : i32
    %c0_i32_1 = arith.constant 0 : i32
    return %arg0, %c0_i32, %c0_i32_0 : i32, i32, i32
  }
  func.func @transform_1(%arg0: i32) -> (i32, i32, i32) {
    %c0_i32 = arith.constant 0 : i32
    %c0_i32_0 = arith.constant 0 : i32
    %c0_i32_1 = arith.constant 0 : i32
    return %arg0, %c0_i32, %c0_i32_0 : i32, i32, i32
  }
  func.func @transform_2(%arg0: i32) -> (i32, i32) {
    %c0_i32 = arith.constant 0 : i32
    %c0_i32_0 = arith.constant 0 : i32
    %c0_i32_1 = arith.constant 0 : i32
    return %c0_i32, %c0_i32_0 : i32, i32
  }
  func.func @transform_3(%arg0: i32) -> (i32, i32) {
    %c0_i32 = arith.constant 0 : i32
    %c0_i32_0 = arith.constant 0 : i32
    %c0_i32_1 = arith.constant 0 : i32
    return %c0_i32, %c0_i32_0 : i32, i32
  }
  func.func @transform_4(%arg0: i32) -> (i32, i32, i32) {
    %c0_i32 = arith.constant 0 : i32
    %c0_i32_0 = arith.constant 0 : i32
    %c0_i32_1 = arith.constant 0 : i32
    return %arg0, %c0_i32, %c0_i32_0 : i32, i32, i32
  }
  func.func @transform_5(%arg0: i32) -> (i32, i32, i32) {
    %c0_i32 = arith.constant 0 : i32
    %c0_i32_0 = arith.constant 0 : i32
    %c0_i32_1 = arith.constant 0 : i32
    return %arg0, %c0_i32, %c0_i32_0 : i32, i32, i32
  }
}

module attributes {stable_mosaic.version = 11 : i64} {
  func.func @_rect_transform2_kernel(%arg0: i32, %arg1: memref<1x66x66xf32, #tpu.memory_space<vmem>>, %arg2: memref<1x1x66xf32, #tpu.memory_space<vmem>>, %arg3: memref<26x66xf32, #tpu.memory_space<vmem>>, %arg4: memref<66x26xf32, #tpu.memory_space<vmem>>, %arg5: memref<26x26xf32, #tpu.memory_space<vmem>>, %arg6: memref<26x26xf32, #tpu.memory_space<vmem>>, %arg7: memref<1x66x66xf32, #tpu.memory_space<vmem>>, %arg8: memref<1x26x26xf32, #tpu.memory_space<vmem>>, %arg9: memref<1x26x26xf32, #tpu.memory_space<vmem>>) attributes {dimension_semantics = [#tpu.dimension_semantics<parallel>], iteration_bounds = array<i64: 2>, scalar_prefetch = 0 : i64, scratch_operands = 0 : i64, tpu.core_type = #tpu.core_type<tc>, window_params = [{transform_indices = @transform_0, window_bounds = array<i64: 1, 66, 66>}, {transform_indices = @transform_1, window_bounds = array<i64: 1, 1, 66>}, {pipeline_mode = #tpu.pipeline_mode<synchronous>, transform_indices = @transform_2, window_bounds = array<i64: 26, 66>}, {pipeline_mode = #tpu.pipeline_mode<synchronous>, transform_indices = @transform_3, window_bounds = array<i64: 66, 26>}, {pipeline_mode = #tpu.pipeline_mode<synchronous>, transform_indices = @transform_4, window_bounds = array<i64: 26, 26>}, {pipeline_mode = #tpu.pipeline_mode<synchronous>, transform_indices = @transform_5, window_bounds = array<i64: 26, 26>}, {transform_indices = @transform_6, window_bounds = array<i64: 1, 66, 66>}, {transform_indices = @transform_7, window_bounds = array<i64: 1, 26, 26>}, {transform_indices = @transform_8, window_bounds = array<i64: 1, 26, 26>}]} {
    %c0 = arith.constant 0 : index
    %c0_0 = arith.constant 0 : index
    %c0_1 = arith.constant 0 : index
    %0 = vector.load %arg2[%c0, %c0_0, %c0_1] : memref<1x1x66xf32, #tpu.memory_space<vmem>>, vector<1x1x66xf32>
    %1 = vector.shape_cast %0 : vector<1x1x66xf32> to vector<1x66xf32>
    %cst = arith.constant 9.99999974E-5 : f32
    %2 = vector.broadcast %cst : f32 to vector<1x66xf32>
    %3 = arith.maximumf %1, %2 : vector<1x66xf32>
    %c0_2 = arith.constant 0 : index
    %c0_3 = arith.constant 0 : index
    %c0_4 = arith.constant 0 : index
    %4 = vector.load %arg1[%c0_2, %c0_3, %c0_4] : memref<1x66x66xf32, #tpu.memory_space<vmem>>, vector<1x66x66xf32>
    %5 = vector.shape_cast %4 : vector<1x66x66xf32> to vector<66x66xf32>
    %6 = vector.broadcast %3 : vector<1x66xf32> to vector<66x66xf32>
    %7 = arith.mulf %5, %6 : vector<66x66xf32>
    %cst_5 = arith.constant dense<0.000000e+00> : vector<66x66xf32>
    %8 = tpu.matmul %7, %5, %cst_5 {dimension_numbers = #tpu.dot_dimension_numbers<[1], [1], [0], [0], [0, 0, 1, 0], [], []>} : vector<66x66xf32>, vector<66x66xf32>, vector<66x66xf32> -> vector<66x66xf32>
    %c0_6 = arith.constant 0 : index
    %c0_7 = arith.constant 0 : index
    %c0_8 = arith.constant 0 : index
    %9 = vector.load %arg7[%c0_6, %c0_7, %c0_8] : memref<1x66x66xf32, #tpu.memory_space<vmem>>, vector<1x66x66xf32>
    %10 = vector.shape_cast %9 : vector<1x66x66xf32> to vector<66x66xf32>
    %11 = vector.shape_cast %8 : vector<66x66xf32> to vector<1x66x66xf32>
    tpu.vector_store %arg7[%c0_6, %c0_7, %c0_8], %11 {strides = array<i32>} : memref<1x66x66xf32, #tpu.memory_space<vmem>>, vector<1x66x66xf32>,
    %c0_9 = arith.constant 0 : index
    %c0_10 = arith.constant 0 : index
    %12 = vector.load %arg3[%c0_9, %c0_10] : memref<26x66xf32, #tpu.memory_space<vmem>>, vector<26x66xf32>
    %c0_11 = arith.constant 0 : index
    %c0_12 = arith.constant 0 : index
    %13 = vector.load %arg4[%c0_11, %c0_12] : memref<66x26xf32, #tpu.memory_space<vmem>>, vector<66x26xf32>
    %cst_13 = arith.constant dense<0.000000e+00> : vector<26x66xf32>
    %14 = tpu.matmul %12, %8, %cst_13 {dimension_numbers = #tpu.dot_dimension_numbers<[1], [0], [0], [1], [0, 0, 1, 1], [], []>} : vector<26x66xf32>, vector<66x66xf32>, vector<26x66xf32> -> vector<26x66xf32>
    %cst_14 = arith.constant dense<0.000000e+00> : vector<26x26xf32>
    %15 = tpu.matmul %14, %13, %cst_14 {dimension_numbers = #tpu.dot_dimension_numbers<[1], [0], [0], [1], [0, 0, 1, 1], [], []>} : vector<26x66xf32>, vector<66x26xf32>, vector<26x26xf32> -> vector<26x26xf32>
    %c0_15 = arith.constant 0 : index
    %c0_16 = arith.constant 0 : index
    %c0_17 = arith.constant 0 : index
    %16 = vector.load %arg8[%c0_15, %c0_16, %c0_17] : memref<1x26x26xf32, #tpu.memory_space<vmem>>, vector<1x26x26xf32>
    %17 = vector.shape_cast %16 : vector<1x26x26xf32> to vector<26x26xf32>
    %18 = vector.shape_cast %15 : vector<26x26xf32> to vector<1x26x26xf32>
    tpu.vector_store %arg8[%c0_15, %c0_16, %c0_17], %18 {strides = array<i32>} : memref<1x26x26xf32, #tpu.memory_space<vmem>>, vector<1x26x26xf32>,
    %c0_18 = arith.constant 0 : index
    %c0_19 = arith.constant 0 : index
    %19 = vector.load %arg5[%c0_18, %c0_19] : memref<26x26xf32, #tpu.memory_space<vmem>>, vector<26x26xf32>
    %c0_20 = arith.constant 0 : index
    %c0_21 = arith.constant 0 : index
    %20 = vector.load %arg6[%c0_20, %c0_21] : memref<26x26xf32, #tpu.memory_space<vmem>>, vector<26x26xf32>
    %cst_22 = arith.constant dense<0.000000e+00> : vector<26x26xf32>
    %21 = tpu.matmul %19, %15, %cst_22 {dimension_numbers = #tpu.dot_dimension_numbers<[1], [0], [0], [1], [0, 0, 1, 1], [], []>} : vector<26x26xf32>, vector<26x26xf32>, vector<26x26xf32> -> vector<26x26xf32>
    %cst_23 = arith.constant dense<0.000000e+00> : vector<26x26xf32>
    %22 = tpu.matmul %21, %20, %cst_23 {dimension_numbers = #tpu.dot_dimension_numbers<[1], [0], [0], [1], [0, 0, 1, 1], [], []>} : vector<26x26xf32>, vector<26x26xf32>, vector<26x26xf32> -> vector<26x26xf32>
    %c0_24 = arith.constant 0 : index
    %c0_25 = arith.constant 0 : index
    %c0_26 = arith.constant 0 : index
    %23 = vector.load %arg9[%c0_24, %c0_25, %c0_26] : memref<1x26x26xf32, #tpu.memory_space<vmem>>, vector<1x26x26xf32>
    %24 = vector.shape_cast %23 : vector<1x26x26xf32> to vector<26x26xf32>
    %25 = vector.shape_cast %22 : vector<26x26xf32> to vector<1x26x26xf32>
    tpu.vector_store %arg9[%c0_24, %c0_25, %c0_26], %25 {strides = array<i32>} : memref<1x26x26xf32, #tpu.memory_space<vmem>>, vector<1x26x26xf32>,
    return
  }
  func.func @transform_0(%arg0: i32) -> (i32, i32, i32) {
    %c0_i32 = arith.constant 0 : i32
    %c0_i32_0 = arith.constant 0 : i32
    %c0_i32_1 = arith.constant 0 : i32
    return %arg0, %c0_i32, %c0_i32_0 : i32, i32, i32
  }
  func.func @transform_1(%arg0: i32) -> (i32, i32, i32) {
    %c0_i32 = arith.constant 0 : i32
    %c0_i32_0 = arith.constant 0 : i32
    %c0_i32_1 = arith.constant 0 : i32
    return %arg0, %c0_i32, %c0_i32_0 : i32, i32, i32
  }
  func.func @transform_2(%arg0: i32) -> (i32, i32) {
    %c0_i32 = arith.constant 0 : i32
    %c0_i32_0 = arith.constant 0 : i32
    %c0_i32_1 = arith.constant 0 : i32
    return %c0_i32, %c0_i32_0 : i32, i32
  }
  func.func @transform_3(%arg0: i32) -> (i32, i32) {
    %c0_i32 = arith.constant 0 : i32
    %c0_i32_0 = arith.constant 0 : i32
    %c0_i32_1 = arith.constant 0 : i32
    return %c0_i32, %c0_i32_0 : i32, i32
  }
  func.func @transform_4(%arg0: i32) -> (i32, i32) {
    %c0_i32 = arith.constant 0 : i32
    %c0_i32_0 = arith.constant 0 : i32
    %c0_i32_1 = arith.constant 0 : i32
    return %c0_i32, %c0_i32_0 : i32, i32
  }
  func.func @transform_5(%arg0: i32) -> (i32, i32) {
    %c0_i32 = arith.constant 0 : i32
    %c0_i32_0 = arith.constant 0 : i32
    %c0_i32_1 = arith.constant 0 : i32
    return %c0_i32, %c0_i32_0 : i32, i32
  }
  func.func @transform_6(%arg0: i32) -> (i32, i32, i32) {
    %c0_i32 = arith.constant 0 : i32
    %c0_i32_0 = arith.constant 0 : i32
    %c0_i32_1 = arith.constant 0 : i32
    return %arg0, %c0_i32, %c0_i32_0 : i32, i32, i32
  }
  func.func @transform_7(%arg0: i32) -> (i32, i32, i32) {
    %c0_i32 = arith.constant 0 : i32
    %c0_i32_0 = arith.constant 0 : i32
    %c0_i32_1 = arith.constant 0 : i32
    return %arg0, %c0_i32, %c0_i32_0 : i32, i32, i32
  }
  func.func @transform_8(%arg0: i32) -> (i32, i32, i32) {
    %c0_i32 = arith.constant 0 : i32
    %c0_i32_0 = arith.constant 0 : i32
    %c0_i32_1 = arith.constant 0 : i32
    return %arg0, %c0_i32, %c0_i32_0 : i32, i32, i32
  }
}

module attributes {stable_mosaic.version = 11 : i64} {
  func.func @_rect_log_fc_kernel(%arg0: i32, %arg1: memref<1x26x26xf32, #tpu.memory_space<vmem>>, %arg2: memref<1x1x26xf32, #tpu.memory_space<vmem>>, %arg3: memref<26x26x256xf32, #tpu.memory_space<vmem>>, %arg4: memref<1x256xf32, #tpu.memory_space<vmem>>, %arg5: memref<256x2xf32, #tpu.memory_space<vmem>>, %arg6: memref<1x2xf32, #tpu.memory_space<vmem>>, %arg7: memref<1x26x26xf32, #tpu.memory_space<vmem>>, %arg8: memref<1x1x2xf32, #tpu.memory_space<vmem>>) attributes {dimension_semantics = [#tpu.dimension_semantics<parallel>], iteration_bounds = array<i64: 2>, scalar_prefetch = 0 : i64, scratch_operands = 0 : i64, tpu.core_type = #tpu.core_type<tc>, window_params = [{transform_indices = @transform_0, window_bounds = array<i64: 1, 26, 26>}, {transform_indices = @transform_1, window_bounds = array<i64: 1, 1, 26>}, {pipeline_mode = #tpu.pipeline_mode<synchronous>, transform_indices = @transform_2, window_bounds = array<i64: 26, 26, 256>}, {pipeline_mode = #tpu.pipeline_mode<synchronous>, transform_indices = @transform_3, window_bounds = array<i64: 1, 256>}, {pipeline_mode = #tpu.pipeline_mode<synchronous>, transform_indices = @transform_4, window_bounds = array<i64: 256, 2>}, {pipeline_mode = #tpu.pipeline_mode<synchronous>, transform_indices = @transform_5, window_bounds = array<i64: 1, 2>}, {transform_indices = @transform_6, window_bounds = array<i64: 1, 26, 26>}, {transform_indices = @transform_7, window_bounds = array<i64: 1, 1, 2>}]} {
    %c0 = arith.constant 0 : index
    %c0_0 = arith.constant 0 : index
    %c0_1 = arith.constant 0 : index
    %0 = vector.load %arg1[%c0, %c0_0, %c0_1] : memref<1x26x26xf32, #tpu.memory_space<vmem>>, vector<1x26x26xf32>
    %1 = vector.shape_cast %0 : vector<1x26x26xf32> to vector<26x26xf32>
    %c0_2 = arith.constant 0 : index
    %c0_3 = arith.constant 0 : index
    %c0_4 = arith.constant 0 : index
    %2 = vector.load %arg2[%c0_2, %c0_3, %c0_4] : memref<1x1x26xf32, #tpu.memory_space<vmem>>, vector<1x1x26xf32>
    %3 = vector.shape_cast %2 : vector<1x1x26xf32> to vector<1x26xf32>
    %cst = arith.constant 9.99999974E-5 : f32
    %4 = vector.broadcast %cst : f32 to vector<1x26xf32>
    %5 = arith.maximumf %3, %4 : vector<1x26xf32>
    %6 = vector.broadcast %5 : vector<1x26xf32> to vector<26x26xf32>
    %7 = arith.mulf %1, %6 : vector<26x26xf32>
    %cst_5 = arith.constant dense<0.000000e+00> : vector<26x26xf32>
    %8 = tpu.matmul %7, %1, %cst_5 {dimension_numbers = #tpu.dot_dimension_numbers<[1], [1], [0], [0], [0, 0, 1, 0], [], []>} : vector<26x26xf32>, vector<26x26xf32>, vector<26x26xf32> -> vector<26x26xf32>
    %c0_6 = arith.constant 0 : index
    %c0_7 = arith.constant 0 : index
    %c0_8 = arith.constant 0 : index
    %9 = vector.load %arg7[%c0_6, %c0_7, %c0_8] : memref<1x26x26xf32, #tpu.memory_space<vmem>>, vector<1x26x26xf32>
    %10 = vector.shape_cast %9 : vector<1x26x26xf32> to vector<26x26xf32>
    %11 = vector.shape_cast %8 : vector<26x26xf32> to vector<1x26x26xf32>
    tpu.vector_store %arg7[%c0_6, %c0_7, %c0_8], %11 {strides = array<i32>} : memref<1x26x26xf32, #tpu.memory_space<vmem>>, vector<1x26x26xf32>,
    %12 = math.log %5 : vector<1x26xf32>
    %13 = vector.broadcast %12 : vector<1x26xf32> to vector<26x26xf32>
    %14 = arith.mulf %1, %13 : vector<26x26xf32>
    %cst_9 = arith.constant dense<0.000000e+00> : vector<26x26xf32>
    %15 = tpu.matmul %14, %1, %cst_9 {dimension_numbers = #tpu.dot_dimension_numbers<[1], [1], [0], [0], [0, 0, 1, 0], [], []>} : vector<26x26xf32>, vector<26x26xf32>, vector<26x26xf32> -> vector<26x26xf32>
    %c0_10 = arith.constant 0 : index
    %c0_11 = arith.constant 0 : index
    %16 = vector.load %arg4[%c0_10, %c0_11] : memref<1x256xf32, #tpu.memory_space<vmem>>, vector<1x256xf32>
    %17 = vector.extract_strided_slice %15 {offsets = [0, 0], sizes = [1, 26], strides = [1, 1]} : vector<26x26xf32> to vector<1x26xf32>
    %c0_12 = arith.constant 0 : index
    %c0_13 = arith.constant 0 : index
    %c0_14 = arith.constant 0 : index
    %18 = vector.load %arg3[%c0_12, %c0_13, %c0_14] : memref<26x26x256xf32, #tpu.memory_space<vmem>>, vector<1x26x256xf32>
    %19 = vector.shape_cast %18 : vector<1x26x256xf32> to vector<26x256xf32>
    %cst_15 = arith.constant dense<0.000000e+00> : vector<1x256xf32>
    %20 = tpu.matmul %17, %19, %cst_15 {dimension_numbers = #tpu.dot_dimension_numbers<[1], [0], [0], [1], [0, 0, 1, 1], [], []>} : vector<1x26xf32>, vector<26x256xf32>, vector<1x256xf32> -> vector<1x256xf32>
    %21 = arith.addf %16, %20 : vector<1x256xf32>
    %22 = vector.extract_strided_slice %15 {offsets = [1, 0], sizes = [1, 26], strides = [1, 1]} : vector<26x26xf32> to vector<1x26xf32>
    %c1 = arith.constant 1 : index
    %c0_16 = arith.constant 0 : index
    %c0_17 = arith.constant 0 : index
    %23 = vector.load %arg3[%c1, %c0_16, %c0_17] : memref<26x26x256xf32, #tpu.memory_space<vmem>>, vector<1x26x256xf32>
    %24 = vector.shape_cast %23 : vector<1x26x256xf32> to vector<26x256xf32>
    %cst_18 = arith.constant dense<0.000000e+00> : vector<1x256xf32>
    %25 = tpu.matmul %22, %24, %cst_18 {dimension_numbers = #tpu.dot_dimension_numbers<[1], [0], [0], [1], [0, 0, 1, 1], [], []>} : vector<1x26xf32>, vector<26x256xf32>, vector<1x256xf32> -> vector<1x256xf32>
    %26 = arith.addf %21, %25 : vector<1x256xf32>
    %27 = vector.extract_strided_slice %15 {offsets = [2, 0], sizes = [1, 26], strides = [1, 1]} : vector<26x26xf32> to vector<1x26xf32>
    %c2 = arith.constant 2 : index
    %c0_19 = arith.constant 0 : index
    %c0_20 = arith.constant 0 : index
    %28 = vector.load %arg3[%c2, %c0_19, %c0_20] : memref<26x26x256xf32, #tpu.memory_space<vmem>>, vector<1x26x256xf32>
    %29 = vector.shape_cast %28 : vector<1x26x256xf32> to vector<26x256xf32>
    %cst_21 = arith.constant dense<0.000000e+00> : vector<1x256xf32>
    %30 = tpu.matmul %27, %29, %cst_21 {dimension_numbers = #tpu.dot_dimension_numbers<[1], [0], [0], [1], [0, 0, 1, 1], [], []>} : vector<1x26xf32>, vector<26x256xf32>, vector<1x256xf32> -> vector<1x256xf32>
    %31 = arith.addf %26, %30 : vector<1x256xf32>
    %32 = vector.extract_strided_slice %15 {offsets = [3, 0], sizes = [1, 26], strides = [1, 1]} : vector<26x26xf32> to vector<1x26xf32>
    %c3 = arith.constant 3 : index
    %c0_22 = arith.constant 0 : index
    %c0_23 = arith.constant 0 : index
    %33 = vector.load %arg3[%c3, %c0_22, %c0_23] : memref<26x26x256xf32, #tpu.memory_space<vmem>>, vector<1x26x256xf32>
    %34 = vector.shape_cast %33 : vector<1x26x256xf32> to vector<26x256xf32>
    %cst_24 = arith.constant dense<0.000000e+00> : vector<1x256xf32>
    %35 = tpu.matmul %32, %34, %cst_24 {dimension_numbers = #tpu.dot_dimension_numbers<[1], [0], [0], [1], [0, 0, 1, 1], [], []>} : vector<1x26xf32>, vector<26x256xf32>, vector<1x256xf32> -> vector<1x256xf32>
    %36 = arith.addf %31, %35 : vector<1x256xf32>
    %37 = vector.extract_strided_slice %15 {offsets = [4, 0], sizes = [1, 26], strides = [1, 1]} : vector<26x26xf32> to vector<1x26xf32>
    %c4 = arith.constant 4 : index
    %c0_25 = arith.constant 0 : index
    %c0_26 = arith.constant 0 : index
    %38 = vector.load %arg3[%c4, %c0_25, %c0_26] : memref<26x26x256xf32, #tpu.memory_space<vmem>>, vector<1x26x256xf32>
    %39 = vector.shape_cast %38 : vector<1x26x256xf32> to vector<26x256xf32>
    %cst_27 = arith.constant dense<0.000000e+00> : vector<1x256xf32>
    %40 = tpu.matmul %37, %39, %cst_27 {dimension_numbers = #tpu.dot_dimension_numbers<[1], [0], [0], [1], [0, 0, 1, 1], [], []>} : vector<1x26xf32>, vector<26x256xf32>, vector<1x256xf32> -> vector<1x256xf32>
    %41 = arith.addf %36, %40 : vector<1x256xf32>
    %42 = vector.extract_strided_slice %15 {offsets = [5, 0], sizes = [1, 26], strides = [1, 1]} : vector<26x26xf32> to vector<1x26xf32>
    %c5 = arith.constant 5 : index
    %c0_28 = arith.constant 0 : index
    %c0_29 = arith.constant 0 : index
    %43 = vector.load %arg3[%c5, %c0_28, %c0_29] : memref<26x26x256xf32, #tpu.memory_space<vmem>>, vector<1x26x256xf32>
    %44 = vector.shape_cast %43 : vector<1x26x256xf32> to vector<26x256xf32>
    %cst_30 = arith.constant dense<0.000000e+00> : vector<1x256xf32>
    %45 = tpu.matmul %42, %44, %cst_30 {dimension_numbers = #tpu.dot_dimension_numbers<[1], [0], [0], [1], [0, 0, 1, 1], [], []>} : vector<1x26xf32>, vector<26x256xf32>, vector<1x256xf32> -> vector<1x256xf32>
    %46 = arith.addf %41, %45 : vector<1x256xf32>
    %47 = vector.extract_strided_slice %15 {offsets = [6, 0], sizes = [1, 26], strides = [1, 1]} : vector<26x26xf32> to vector<1x26xf32>
    %c6 = arith.constant 6 : index
    %c0_31 = arith.constant 0 : index
    %c0_32 = arith.constant 0 : index
    %48 = vector.load %arg3[%c6, %c0_31, %c0_32] : memref<26x26x256xf32, #tpu.memory_space<vmem>>, vector<1x26x256xf32>
    %49 = vector.shape_cast %48 : vector<1x26x256xf32> to vector<26x256xf32>
    %cst_33 = arith.constant dense<0.000000e+00> : vector<1x256xf32>
    %50 = tpu.matmul %47, %49, %cst_33 {dimension_numbers = #tpu.dot_dimension_numbers<[1], [0], [0], [1], [0, 0, 1, 1], [], []>} : vector<1x26xf32>, vector<26x256xf32>, vector<1x256xf32> -> vector<1x256xf32>
    %51 = arith.addf %46, %50 : vector<1x256xf32>
    %52 = vector.extract_strided_slice %15 {offsets = [7, 0], sizes = [1, 26], strides = [1, 1]} : vector<26x26xf32> to vector<1x26xf32>
    %c7 = arith.constant 7 : index
    %c0_34 = arith.constant 0 : index
    %c0_35 = arith.constant 0 : index
    %53 = vector.load %arg3[%c7, %c0_34, %c0_35] : memref<26x26x256xf32, #tpu.memory_space<vmem>>, vector<1x26x256xf32>
    %54 = vector.shape_cast %53 : vector<1x26x256xf32> to vector<26x256xf32>
    %cst_36 = arith.constant dense<0.000000e+00> : vector<1x256xf32>
    %55 = tpu.matmul %52, %54, %cst_36 {dimension_numbers = #tpu.dot_dimension_numbers<[1], [0], [0], [1], [0, 0, 1, 1], [], []>} : vector<1x26xf32>, vector<26x256xf32>, vector<1x256xf32> -> vector<1x256xf32>
    %56 = arith.addf %51, %55 : vector<1x256xf32>
    %57 = vector.extract_strided_slice %15 {offsets = [8, 0], sizes = [1, 26], strides = [1, 1]} : vector<26x26xf32> to vector<1x26xf32>
    %c8 = arith.constant 8 : index
    %c0_37 = arith.constant 0 : index
    %c0_38 = arith.constant 0 : index
    %58 = vector.load %arg3[%c8, %c0_37, %c0_38] : memref<26x26x256xf32, #tpu.memory_space<vmem>>, vector<1x26x256xf32>
    %59 = vector.shape_cast %58 : vector<1x26x256xf32> to vector<26x256xf32>
    %cst_39 = arith.constant dense<0.000000e+00> : vector<1x256xf32>
    %60 = tpu.matmul %57, %59, %cst_39 {dimension_numbers = #tpu.dot_dimension_numbers<[1], [0], [0], [1], [0, 0, 1, 1], [], []>} : vector<1x26xf32>, vector<26x256xf32>, vector<1x256xf32> -> vector<1x256xf32>
    %61 = arith.addf %56, %60 : vector<1x256xf32>
    %62 = vector.extract_strided_slice %15 {offsets = [9, 0], sizes = [1, 26], strides = [1, 1]} : vector<26x26xf32> to vector<1x26xf32>
    %c9 = arith.constant 9 : index
    %c0_40 = arith.constant 0 : index
    %c0_41 = arith.constant 0 : index
    %63 = vector.load %arg3[%c9, %c0_40, %c0_41] : memref<26x26x256xf32, #tpu.memory_space<vmem>>, vector<1x26x256xf32>
    %64 = vector.shape_cast %63 : vector<1x26x256xf32> to vector<26x256xf32>
    %cst_42 = arith.constant dense<0.000000e+00> : vector<1x256xf32>
    %65 = tpu.matmul %62, %64, %cst_42 {dimension_numbers = #tpu.dot_dimension_numbers<[1], [0], [0], [1], [0, 0, 1, 1], [], []>} : vector<1x26xf32>, vector<26x256xf32>, vector<1x256xf32> -> vector<1x256xf32>
    %66 = arith.addf %61, %65 : vector<1x256xf32>
    %67 = vector.extract_strided_slice %15 {offsets = [10, 0], sizes = [1, 26], strides = [1, 1]} : vector<26x26xf32> to vector<1x26xf32>
    %c10 = arith.constant 10 : index
    %c0_43 = arith.constant 0 : index
    %c0_44 = arith.constant 0 : index
    %68 = vector.load %arg3[%c10, %c0_43, %c0_44] : memref<26x26x256xf32, #tpu.memory_space<vmem>>, vector<1x26x256xf32>
    %69 = vector.shape_cast %68 : vector<1x26x256xf32> to vector<26x256xf32>
    %cst_45 = arith.constant dense<0.000000e+00> : vector<1x256xf32>
    %70 = tpu.matmul %67, %69, %cst_45 {dimension_numbers = #tpu.dot_dimension_numbers<[1], [0], [0], [1], [0, 0, 1, 1], [], []>} : vector<1x26xf32>, vector<26x256xf32>, vector<1x256xf32> -> vector<1x256xf32>
    %71 = arith.addf %66, %70 : vector<1x256xf32>
    %72 = vector.extract_strided_slice %15 {offsets = [11, 0], sizes = [1, 26], strides = [1, 1]} : vector<26x26xf32> to vector<1x26xf32>
    %c11 = arith.constant 11 : index
    %c0_46 = arith.constant 0 : index
    %c0_47 = arith.constant 0 : index
    %73 = vector.load %arg3[%c11, %c0_46, %c0_47] : memref<26x26x256xf32, #tpu.memory_space<vmem>>, vector<1x26x256xf32>
    %74 = vector.shape_cast %73 : vector<1x26x256xf32> to vector<26x256xf32>
    %cst_48 = arith.constant dense<0.000000e+00> : vector<1x256xf32>
    %75 = tpu.matmul %72, %74, %cst_48 {dimension_numbers = #tpu.dot_dimension_numbers<[1], [0], [0], [1], [0, 0, 1, 1], [], []>} : vector<1x26xf32>, vector<26x256xf32>, vector<1x256xf32> -> vector<1x256xf32>
    %76 = arith.addf %71, %75 : vector<1x256xf32>
    %77 = vector.extract_strided_slice %15 {offsets = [12, 0], sizes = [1, 26], strides = [1, 1]} : vector<26x26xf32> to vector<1x26xf32>
    %c12 = arith.constant 12 : index
    %c0_49 = arith.constant 0 : index
    %c0_50 = arith.constant 0 : index
    %78 = vector.load %arg3[%c12, %c0_49, %c0_50] : memref<26x26x256xf32, #tpu.memory_space<vmem>>, vector<1x26x256xf32>
    %79 = vector.shape_cast %78 : vector<1x26x256xf32> to vector<26x256xf32>
    %cst_51 = arith.constant dense<0.000000e+00> : vector<1x256xf32>
    %80 = tpu.matmul %77, %79, %cst_51 {dimension_numbers = #tpu.dot_dimension_numbers<[1], [0], [0], [1], [0, 0, 1, 1], [], []>} : vector<1x26xf32>, vector<26x256xf32>, vector<1x256xf32> -> vector<1x256xf32>
    %81 = arith.addf %76, %80 : vector<1x256xf32>
    %82 = vector.extract_strided_slice %15 {offsets = [13, 0], sizes = [1, 26], strides = [1, 1]} : vector<26x26xf32> to vector<1x26xf32>
    %c13 = arith.constant 13 : index
    %c0_52 = arith.constant 0 : index
    %c0_53 = arith.constant 0 : index
    %83 = vector.load %arg3[%c13, %c0_52, %c0_53] : memref<26x26x256xf32, #tpu.memory_space<vmem>>, vector<1x26x256xf32>
    %84 = vector.shape_cast %83 : vector<1x26x256xf32> to vector<26x256xf32>
    %cst_54 = arith.constant dense<0.000000e+00> : vector<1x256xf32>
    %85 = tpu.matmul %82, %84, %cst_54 {dimension_numbers = #tpu.dot_dimension_numbers<[1], [0], [0], [1], [0, 0, 1, 1], [], []>} : vector<1x26xf32>, vector<26x256xf32>, vector<1x256xf32> -> vector<1x256xf32>
    %86 = arith.addf %81, %85 : vector<1x256xf32>
    %87 = vector.extract_strided_slice %15 {offsets = [14, 0], sizes = [1, 26], strides = [1, 1]} : vector<26x26xf32> to vector<1x26xf32>
    %c14 = arith.constant 14 : index
    %c0_55 = arith.constant 0 : index
    %c0_56 = arith.constant 0 : index
    %88 = vector.load %arg3[%c14, %c0_55, %c0_56] : memref<26x26x256xf32, #tpu.memory_space<vmem>>, vector<1x26x256xf32>
    %89 = vector.shape_cast %88 : vector<1x26x256xf32> to vector<26x256xf32>
    %cst_57 = arith.constant dense<0.000000e+00> : vector<1x256xf32>
    %90 = tpu.matmul %87, %89, %cst_57 {dimension_numbers = #tpu.dot_dimension_numbers<[1], [0], [0], [1], [0, 0, 1, 1], [], []>} : vector<1x26xf32>, vector<26x256xf32>, vector<1x256xf32> -> vector<1x256xf32>
    %91 = arith.addf %86, %90 : vector<1x256xf32>
    %92 = vector.extract_strided_slice %15 {offsets = [15, 0], sizes = [1, 26], strides = [1, 1]} : vector<26x26xf32> to vector<1x26xf32>
    %c15 = arith.constant 15 : index
    %c0_58 = arith.constant 0 : index
    %c0_59 = arith.constant 0 : index
    %93 = vector.load %arg3[%c15, %c0_58, %c0_59] : memref<26x26x256xf32, #tpu.memory_space<vmem>>, vector<1x26x256xf32>
    %94 = vector.shape_cast %93 : vector<1x26x256xf32> to vector<26x256xf32>
    %cst_60 = arith.constant dense<0.000000e+00> : vector<1x256xf32>
    %95 = tpu.matmul %92, %94, %cst_60 {dimension_numbers = #tpu.dot_dimension_numbers<[1], [0], [0], [1], [0, 0, 1, 1], [], []>} : vector<1x26xf32>, vector<26x256xf32>, vector<1x256xf32> -> vector<1x256xf32>
    %96 = arith.addf %91, %95 : vector<1x256xf32>
    %97 = vector.extract_strided_slice %15 {offsets = [16, 0], sizes = [1, 26], strides = [1, 1]} : vector<26x26xf32> to vector<1x26xf32>
    %c16 = arith.constant 16 : index
    %c0_61 = arith.constant 0 : index
    %c0_62 = arith.constant 0 : index
    %98 = vector.load %arg3[%c16, %c0_61, %c0_62] : memref<26x26x256xf32, #tpu.memory_space<vmem>>, vector<1x26x256xf32>
    %99 = vector.shape_cast %98 : vector<1x26x256xf32> to vector<26x256xf32>
    %cst_63 = arith.constant dense<0.000000e+00> : vector<1x256xf32>
    %100 = tpu.matmul %97, %99, %cst_63 {dimension_numbers = #tpu.dot_dimension_numbers<[1], [0], [0], [1], [0, 0, 1, 1], [], []>} : vector<1x26xf32>, vector<26x256xf32>, vector<1x256xf32> -> vector<1x256xf32>
    %101 = arith.addf %96, %100 : vector<1x256xf32>
    %102 = vector.extract_strided_slice %15 {offsets = [17, 0], sizes = [1, 26], strides = [1, 1]} : vector<26x26xf32> to vector<1x26xf32>
    %c17 = arith.constant 17 : index
    %c0_64 = arith.constant 0 : index
    %c0_65 = arith.constant 0 : index
    %103 = vector.load %arg3[%c17, %c0_64, %c0_65] : memref<26x26x256xf32, #tpu.memory_space<vmem>>, vector<1x26x256xf32>
    %104 = vector.shape_cast %103 : vector<1x26x256xf32> to vector<26x256xf32>
    %cst_66 = arith.constant dense<0.000000e+00> : vector<1x256xf32>
    %105 = tpu.matmul %102, %104, %cst_66 {dimension_numbers = #tpu.dot_dimension_numbers<[1], [0], [0], [1], [0, 0, 1, 1], [], []>} : vector<1x26xf32>, vector<26x256xf32>, vector<1x256xf32> -> vector<1x256xf32>
    %106 = arith.addf %101, %105 : vector<1x256xf32>
    %107 = vector.extract_strided_slice %15 {offsets = [18, 0], sizes = [1, 26], strides = [1, 1]} : vector<26x26xf32> to vector<1x26xf32>
    %c18 = arith.constant 18 : index
    %c0_67 = arith.constant 0 : index
    %c0_68 = arith.constant 0 : index
    %108 = vector.load %arg3[%c18, %c0_67, %c0_68] : memref<26x26x256xf32, #tpu.memory_space<vmem>>, vector<1x26x256xf32>
    %109 = vector.shape_cast %108 : vector<1x26x256xf32> to vector<26x256xf32>
    %cst_69 = arith.constant dense<0.000000e+00> : vector<1x256xf32>
    %110 = tpu.matmul %107, %109, %cst_69 {dimension_numbers = #tpu.dot_dimension_numbers<[1], [0], [0], [1], [0, 0, 1, 1], [], []>} : vector<1x26xf32>, vector<26x256xf32>, vector<1x256xf32> -> vector<1x256xf32>
    %111 = arith.addf %106, %110 : vector<1x256xf32>
    %112 = vector.extract_strided_slice %15 {offsets = [19, 0], sizes = [1, 26], strides = [1, 1]} : vector<26x26xf32> to vector<1x26xf32>
    %c19 = arith.constant 19 : index
    %c0_70 = arith.constant 0 : index
    %c0_71 = arith.constant 0 : index
    %113 = vector.load %arg3[%c19, %c0_70, %c0_71] : memref<26x26x256xf32, #tpu.memory_space<vmem>>, vector<1x26x256xf32>
    %114 = vector.shape_cast %113 : vector<1x26x256xf32> to vector<26x256xf32>
    %cst_72 = arith.constant dense<0.000000e+00> : vector<1x256xf32>
    %115 = tpu.matmul %112, %114, %cst_72 {dimension_numbers = #tpu.dot_dimension_numbers<[1], [0], [0], [1], [0, 0, 1, 1], [], []>} : vector<1x26xf32>, vector<26x256xf32>, vector<1x256xf32> -> vector<1x256xf32>
    %116 = arith.addf %111, %115 : vector<1x256xf32>
    %117 = vector.extract_strided_slice %15 {offsets = [20, 0], sizes = [1, 26], strides = [1, 1]} : vector<26x26xf32> to vector<1x26xf32>
    %c20 = arith.constant 20 : index
    %c0_73 = arith.constant 0 : index
    %c0_74 = arith.constant 0 : index
    %118 = vector.load %arg3[%c20, %c0_73, %c0_74] : memref<26x26x256xf32, #tpu.memory_space<vmem>>, vector<1x26x256xf32>
    %119 = vector.shape_cast %118 : vector<1x26x256xf32> to vector<26x256xf32>
    %cst_75 = arith.constant dense<0.000000e+00> : vector<1x256xf32>
    %120 = tpu.matmul %117, %119, %cst_75 {dimension_numbers = #tpu.dot_dimension_numbers<[1], [0], [0], [1], [0, 0, 1, 1], [], []>} : vector<1x26xf32>, vector<26x256xf32>, vector<1x256xf32> -> vector<1x256xf32>
    %121 = arith.addf %116, %120 : vector<1x256xf32>
    %122 = vector.extract_strided_slice %15 {offsets = [21, 0], sizes = [1, 26], strides = [1, 1]} : vector<26x26xf32> to vector<1x26xf32>
    %c21 = arith.constant 21 : index
    %c0_76 = arith.constant 0 : index
    %c0_77 = arith.constant 0 : index
    %123 = vector.load %arg3[%c21, %c0_76, %c0_77] : memref<26x26x256xf32, #tpu.memory_space<vmem>>, vector<1x26x256xf32>
    %124 = vector.shape_cast %123 : vector<1x26x256xf32> to vector<26x256xf32>
    %cst_78 = arith.constant dense<0.000000e+00> : vector<1x256xf32>
    %125 = tpu.matmul %122, %124, %cst_78 {dimension_numbers = #tpu.dot_dimension_numbers<[1], [0], [0], [1], [0, 0, 1, 1], [], []>} : vector<1x26xf32>, vector<26x256xf32>, vector<1x256xf32> -> vector<1x256xf32>
    %126 = arith.addf %121, %125 : vector<1x256xf32>
    %127 = vector.extract_strided_slice %15 {offsets = [22, 0], sizes = [1, 26], strides = [1, 1]} : vector<26x26xf32> to vector<1x26xf32>
    %c22 = arith.constant 22 : index
    %c0_79 = arith.constant 0 : index
    %c0_80 = arith.constant 0 : index
    %128 = vector.load %arg3[%c22, %c0_79, %c0_80] : memref<26x26x256xf32, #tpu.memory_space<vmem>>, vector<1x26x256xf32>
    %129 = vector.shape_cast %128 : vector<1x26x256xf32> to vector<26x256xf32>
    %cst_81 = arith.constant dense<0.000000e+00> : vector<1x256xf32>
    %130 = tpu.matmul %127, %129, %cst_81 {dimension_numbers = #tpu.dot_dimension_numbers<[1], [0], [0], [1], [0, 0, 1, 1], [], []>} : vector<1x26xf32>, vector<26x256xf32>, vector<1x256xf32> -> vector<1x256xf32>
    %131 = arith.addf %126, %130 : vector<1x256xf32>
    %132 = vector.extract_strided_slice %15 {offsets = [23, 0], sizes = [1, 26], strides = [1, 1]} : vector<26x26xf32> to vector<1x26xf32>
    %c23 = arith.constant 23 : index
    %c0_82 = arith.constant 0 : index
    %c0_83 = arith.constant 0 : index
    %133 = vector.load %arg3[%c23, %c0_82, %c0_83] : memref<26x26x256xf32, #tpu.memory_space<vmem>>, vector<1x26x256xf32>
    %134 = vector.shape_cast %133 : vector<1x26x256xf32> to vector<26x256xf32>
    %cst_84 = arith.constant dense<0.000000e+00> : vector<1x256xf32>
    %135 = tpu.matmul %132, %134, %cst_84 {dimension_numbers = #tpu.dot_dimension_numbers<[1], [0], [0], [1], [0, 0, 1, 1], [], []>} : vector<1x26xf32>, vector<26x256xf32>, vector<1x256xf32> -> vector<1x256xf32>
    %136 = arith.addf %131, %135 : vector<1x256xf32>
    %137 = vector.extract_strided_slice %15 {offsets = [24, 0], sizes = [1, 26], strides = [1, 1]} : vector<26x26xf32> to vector<1x26xf32>
    %c24 = arith.constant 24 : index
    %c0_85 = arith.constant 0 : index
    %c0_86 = arith.constant 0 : index
    %138 = vector.load %arg3[%c24, %c0_85, %c0_86] : memref<26x26x256xf32, #tpu.memory_space<vmem>>, vector<1x26x256xf32>
    %139 = vector.shape_cast %138 : vector<1x26x256xf32> to vector<26x256xf32>
    %cst_87 = arith.constant dense<0.000000e+00> : vector<1x256xf32>
    %140 = tpu.matmul %137, %139, %cst_87 {dimension_numbers = #tpu.dot_dimension_numbers<[1], [0], [0], [1], [0, 0, 1, 1], [], []>} : vector<1x26xf32>, vector<26x256xf32>, vector<1x256xf32> -> vector<1x256xf32>
    %141 = arith.addf %136, %140 : vector<1x256xf32>
    %142 = vector.extract_strided_slice %15 {offsets = [25, 0], sizes = [1, 26], strides = [1, 1]} : vector<26x26xf32> to vector<1x26xf32>
    %c25 = arith.constant 25 : index
    %c0_88 = arith.constant 0 : index
    %c0_89 = arith.constant 0 : index
    %143 = vector.load %arg3[%c25, %c0_88, %c0_89] : memref<26x26x256xf32, #tpu.memory_space<vmem>>, vector<1x26x256xf32>
    %144 = vector.shape_cast %143 : vector<1x26x256xf32> to vector<26x256xf32>
    %cst_90 = arith.constant dense<0.000000e+00> : vector<1x256xf32>
    %145 = tpu.matmul %142, %144, %cst_90 {dimension_numbers = #tpu.dot_dimension_numbers<[1], [0], [0], [1], [0, 0, 1, 1], [], []>} : vector<1x26xf32>, vector<26x256xf32>, vector<1x256xf32> -> vector<1x256xf32>
    %146 = arith.addf %141, %145 : vector<1x256xf32>
    %cst_91 = arith.constant 0.000000e+00 : f32
    %147 = vector.broadcast %cst_91 : f32 to vector<1x256xf32>
    %148 = arith.cmpf ogt, %146, %147 : vector<1x256xf32>
    %cst_92 = arith.constant 0.00999999977 : f32
    %149 = vector.broadcast %cst_92 : f32 to vector<1x256xf32>
    %150 = arith.mulf %149, %146 : vector<1x256xf32>
    %151 = arith.select %148, %146, %150 : vector<1x256xi1>, vector<1x256xf32>
    %c0_93 = arith.constant 0 : index
    %c0_94 = arith.constant 0 : index
    %152 = vector.load %arg5[%c0_93, %c0_94] : memref<256x2xf32, #tpu.memory_space<vmem>>, vector<256x2xf32>
    %cst_95 = arith.constant dense<0.000000e+00> : vector<1x2xf32>
    %153 = tpu.matmul %151, %152, %cst_95 {dimension_numbers = #tpu.dot_dimension_numbers<[1], [0], [0], [1], [0, 0, 1, 1], [], []>} : vector<1x256xf32>, vector<256x2xf32>, vector<1x2xf32> -> vector<1x2xf32>
    %c0_96 = arith.constant 0 : index
    %c0_97 = arith.constant 0 : index
    %154 = vector.load %arg6[%c0_96, %c0_97] : memref<1x2xf32, #tpu.memory_space<vmem>>, vector<1x2xf32>
    %155 = arith.addf %153, %154 : vector<1x2xf32>
    %c0_98 = arith.constant 0 : index
    %c0_99 = arith.constant 0 : index
    %c0_100 = arith.constant 0 : index
    %156 = vector.load %arg8[%c0_98, %c0_99, %c0_100] : memref<1x1x2xf32, #tpu.memory_space<vmem>>, vector<1x1x2xf32>
    %157 = vector.shape_cast %156 : vector<1x1x2xf32> to vector<1x2xf32>
    %158 = vector.shape_cast %155 : vector<1x2xf32> to vector<1x1x2xf32>
    tpu.vector_store %arg8[%c0_98, %c0_99, %c0_100], %158 {strides = array<i32>} : memref<1x1x2xf32, #tpu.memory_space<vmem>>, vector<1x1x2xf32>,
    return
  }
  func.func @transform_0(%arg0: i32) -> (i32, i32, i32) {
    %c0_i32 = arith.constant 0 : i32
    %c0_i32_0 = arith.constant 0 : i32
    %c0_i32_1 = arith.constant 0 : i32
    return %arg0, %c0_i32, %c0_i32_0 : i32, i32, i32
  }
  func.func @transform_1(%arg0: i32) -> (i32, i32, i32) {
    %c0_i32 = arith.constant 0 : i32
    %c0_i32_0 = arith.constant 0 : i32
    %c0_i32_1 = arith.constant 0 : i32
    return %arg0, %c0_i32, %c0_i32_0 : i32, i32, i32
  }
  func.func @transform_2(%arg0: i32) -> (i32, i32, i32) {
    %c0_i32 = arith.constant 0 : i32
    %c0_i32_0 = arith.constant 0 : i32
    %c0_i32_1 = arith.constant 0 : i32
    %c0_i32_2 = arith.constant 0 : i32
    return %c0_i32, %c0_i32_0, %c0_i32_1 : i32, i32, i32
  }
  func.func @transform_3(%arg0: i32) -> (i32, i32) {
    %c0_i32 = arith.constant 0 : i32
    %c0_i32_0 = arith.constant 0 : i32
    %c0_i32_1 = arith.constant 0 : i32
    return %c0_i32, %c0_i32_0 : i32, i32
  }
  func.func @transform_4(%arg0: i32) -> (i32, i32) {
    %c0_i32 = arith.constant 0 : i32
    %c0_i32_0 = arith.constant 0 : i32
    %c0_i32_1 = arith.constant 0 : i32
    return %c0_i32, %c0_i32_0 : i32, i32
  }
  func.func @transform_5(%arg0: i32) -> (i32, i32) {
    %c0_i32 = arith.constant 0 : i32
    %c0_i32_0 = arith.constant 0 : i32
    %c0_i32_1 = arith.constant 0 : i32
    return %c0_i32, %c0_i32_0 : i32, i32
  }
  func.func @transform_6(%arg0: i32) -> (i32, i32, i32) {
    %c0_i32 = arith.constant 0 : i32
    %c0_i32_0 = arith.constant 0 : i32
    %c0_i32_1 = arith.constant 0 : i32
    return %arg0, %c0_i32, %c0_i32_0 : i32, i32, i32
  }
  func.func @transform_7(%arg0: i32) -> (i32, i32, i32) {
    %c0_i32 = arith.constant 0 : i32
    %c0_i32_0 = arith.constant 0 : i32
    %c0_i32_1 = arith.constant 0 : i32
    return %arg0, %c0_i32, %c0_i32_0 : i32, i32, i32
  }
}

</mosaic_0001>

<bundles_post_ra>
// kernel: custom-call.6
= control target key start
LH: loop header
LB: loop body
LE: loop exit
PB: predicated region body
PF: predicated region fallthrough
CT: control target
= control target key end

     0   :  { %s5811_s0 = inlined_call_operand.vmem [shape: f32[2,48,48], index: 0, kind: input, shape index: {}]   ;;  %s5812_s1 = inlined_call_operand.vmem [shape: f32[2,48,48], index: 1, kind: input, shape index: {}]   ;;  %s5813_s2 = inlined_call_operand.vmem [shape: f32[2,48,48], index: 2, kind: input, shape index: {}]   ;;  %s5814_s3 = inlined_call_operand.vmem [shape: f32[2,48,48], index: 3, kind: input, shape index: {}]   ;;  %s5815_s4 = inlined_call_operand.vmem [shape: f32[2,48], index: 4, kind: output, shape index: {0}]   ;;  %s5816_s5 = inlined_call_operand.vmem [shape: f32[2,48], index: 5, kind: output, shape index: {1}]   ;;  %s5817_s6 = inlined_call_operand.vmem [shape: f32[2,48,48], index: 6, kind: output, shape index: {2}]   ;;  %s5818_s7 = inlined_call_operand.vmem [shape: f32[2,48,48], index: 7, kind: output, shape index: {3}]   ;;  %s5819_s8 = inlined_call_operand.vmem [shape: f32[2,48,48], index: 8, kind: output, shape index: {4}]   ;;  %s5820_s9 = inlined_call_operand.vmem [shape: f32[2,48,48], index: 9, kind: output, shape index: {5}]  }
   0x1   :  { %5836 = sst [smem:[#allocation32_spill]] %s5811_s0 }
   0x2   :  { %5837 = sst [smem:[#allocation33_spill]] %s5812_s1 }
   0x3   :  { %5838 = sst [smem:[#allocation34_spill]] %s5813_s2 }
   0x4   :  { %5839 = sst [smem:[#allocation35_spill]] %s5814_s3 }
   0x5   :  { %5840 = sst [smem:[#allocation36_spill]] %s5815_s4 }
   0x6   :  { %5841 = sst [smem:[#allocation37_spill]] %s5816_s5 }
   0x7   :  { %5842 = sst [smem:[#allocation38_spill]] %s5817_s6 }
   0x8   :  { %5843 = sst [smem:[#allocation39_spill]] %s5818_s7 }
   0x9   :  { %5844 = sst [smem:[#allocation40_spill]] %s5819_s8 }
   0xa   :  { %5845 = sst [smem:[#allocation41_spill]] %s5820_s9 }
   0xb   :  { %s4411_s30 = smov 0   ;;  %s4413_s10 = smov 0  }
   0xc   :  { %s4415_s11 = smov 0  }
   0xd LB: > { %5846 = sst [smem:[#allocation25_spill]] %s4344_s10  ;;  %s4427_s12 = sadd.s32 4294967295, %s4348_s11   ;;  %s4348_s11 = sphi %s4415_s11, %s5877_s11   ;;  %s4344_s10 = sphi %s4413_s10, %s5879_s10   ;;  %s4340_s30 = sphi %s4411_s30, %s5878_s30  }
   0xe   : > { %s4430_s13 = sadd.s32 1, %s4348_s11   ;;  %s20_s14 = sshrl.u32 %s4348_s11, 3 }
   0xf   : > { %5847 = sst [smem:[#allocation26_spill]] %s4430_s13  ;;  %s21_s15 = sshrl.u32 %s4430_s13, 3 }
  0x10   : > { %s22_s16 = ssub.s32 %s20_s14, %s21_s15  ;;  %s25_s17 = sadd.s32 1, %s4344_s10 }
  0x11   : > { %p23_p0 = scmp.eq.s32.totalorder %s22_s16, 0  ;;  %p35_p1 = scmp.ne.s32.totalorder %s4344_s10, %s4340_s30 }
  0x12   : > { %p36_p2 = scmp.eq.s32.totalorder %s4427_s12, 1  ;;  %p3714_p4 = scmp.ge.s32.totalorder %s4348_s11, 2 }
  0x13   : > { %s4439_s18 = scalar_select %p23_p0, %s4344_s10, %s25_s17  }
  0x14   : > { %p4441_p3 = por %p36_p2, %p35_p1  ;;  %86 = sbr.rel (%p3714_p4) target bundleno = 54 (0x36), region = 16 }
  0x15   : > { %5848 = sst [smem:[#allocation27_spill]] %s4439_s18  ;;  %s88_s20 = sand.u32 (!%p3714_p4), 1, %s4348_s11  }
  0x16   : > { %s4448_s21 = smul.u32 (!%p3714_p4), 48, %s4348_s11  ;;  %s5850_s0 = sld [smem:[#allocation32_spill]] (!%p3714_p4) }
  0x17   : > { %s4450_s22 = smul.u32 (!%p3714_p4), 48, %s88_s20  ;;  %s5851_s1 = sld [smem:[#allocation33_spill]] (!%p3714_p4) }
  0x18   : > { %s5852_s2 = sld [smem:[#allocation34_spill]] (!%p3714_p4) }
  0x19   : > { %s90_s26 = scalar_lea.vmem [#allocation0], %s4450_s22  ;;  %s123_s14 = scalar_lea.vmem [#allocation1], %s4450_s22 }
  0x1a   : > { %s156_s20 = scalar_lea.vmem [#allocation2], %s4450_s22  ;;  %s5853_s3 = sld [smem:[#allocation35_spill]] }
  0x1c   : > { %s92_s25 = scalar_lea.vmem %s5850_s0, %s4448_s21 }
  0x1d   : > { %v105_v0 = vld [vmem:[%s92_s25] sm:$0xff]  ;;  %v107_v1 = vld [vmem:[%s92_s25 + $0x8] sm:$0xff]  ;;  %v109_v2 = vld [vmem:[%s92_s25 + $0x10] sm:$0xff]  ;;  %s125_s29 = scalar_lea.vmem %s5851_s1, %s4448_s21 }
  0x1e   : > { %106 = vst [vmem:[%s90_s26] sm:$0xff] %v105_v0  ;;  %v111_v3 = vld [vmem:[%s92_s25 + $0x18] sm:$0xff]  ;;  %v113_v4 = vld [vmem:[%s92_s25 + $0x20] sm:$0xff]  ;;  %v115_v5 = vld [vmem:[%s92_s25 + $0x28] sm:$0xff]  ;;  %s158_s17 = scalar_lea.vmem %s5852_s2, %s4448_s21 }
  0x1f   : > { %108 = vst [vmem:[%s90_s26 + $0x8] sm:$0xff] %v107_v1  ;;  %v138_v6 = vld [vmem:[%s125_s29] sm:$0xff]  ;;  %v140_v7 = vld [vmem:[%s125_s29 + $0x8] sm:$0xff]  ;;  %v142_v8 = vld [vmem:[%s125_s29 + $0x10] sm:$0xff] }
  0x20   : > { %110 = vst [vmem:[%s90_s26 + $0x10] sm:$0xff] %v109_v2  ;;  %v144_v9 = vld [vmem:[%s125_s29 + $0x18] sm:$0xff]  ;;  %v146_v10 = vld [vmem:[%s125_s29 + $0x20] sm:$0xff]  ;;  %v148_v11 = vld [vmem:[%s125_s29 + $0x28] sm:$0xff]  ;;  %s191_s25 = scalar_lea.vmem %s5853_s3, %s4448_s21 }
  0x21   : > { %112 = vst [vmem:[%s90_s26 + $0x18] sm:$0xff] %v111_v3  ;;  %v171_v12 = vld [vmem:[%s158_s17] sm:$0xff]  ;;  %v173_v13 = vld [vmem:[%s158_s17 + $0x8] sm:$0xff]  ;;  %v175_v14 = vld [vmem:[%s158_s17 + $0x10] sm:$0xff] }
  0x22   : > { %114 = vst [vmem:[%s90_s26 + $0x20] sm:$0xff] %v113_v4  ;;  %v177_v15 = vld [vmem:[%s158_s17 + $0x18] sm:$0xff]  ;;  %v179_v16 = vld [vmem:[%s158_s17 + $0x20] sm:$0xff]  ;;  %v181_v17 = vld [vmem:[%s158_s17 + $0x28] sm:$0xff] }
  0x23   : > { %116 = vst [vmem:[%s90_s26 + $0x28] sm:$0xff] %v115_v5  ;;  %v204_v18 = vld [vmem:[%s191_s25] sm:$0xff]  ;;  %v206_v19 = vld [vmem:[%s191_s25 + $0x8] sm:$0xff]  ;;  %v208_v20 = vld [vmem:[%s191_s25 + $0x10] sm:$0xff]  ;;  %s189_s26 = scalar_lea.vmem [#allocation3], %s4450_s22 }
  0x24   : > { %139 = vst [vmem:[%s123_s14] sm:$0xff] %v138_v6  ;;  %v210_v21 = vld [vmem:[%s191_s25 + $0x18] sm:$0xff]  ;;  %v212_v22 = vld [vmem:[%s191_s25 + $0x20] sm:$0xff]  ;;  %v214_v23 = vld [vmem:[%s191_s25 + $0x28] sm:$0xff] }
  0x25   : > { %141 = vst [vmem:[%s123_s14 + $0x8] sm:$0xff] %v140_v7 }
  0x26   : > { %143 = vst [vmem:[%s123_s14 + $0x10] sm:$0xff] %v142_v8 }
  0x27   : > { %145 = vst [vmem:[%s123_s14 + $0x18] sm:$0xff] %v144_v9 }
  0x28   : > { %147 = vst [vmem:[%s123_s14 + $0x20] sm:$0xff] %v146_v10 }
  0x29   : > { %149 = vst [vmem:[%s123_s14 + $0x28] sm:$0xff] %v148_v11 }
  0x2a   : > { %172 = vst [vmem:[%s156_s20] sm:$0xff] %v171_v12 }
  0x2b   : > { %174 = vst [vmem:[%s156_s20 + $0x8] sm:$0xff] %v173_v13 }
  0x2c   : > { %176 = vst [vmem:[%s156_s20 + $0x10] sm:$0xff] %v175_v14 }
  0x2d   : > { %178 = vst [vmem:[%s156_s20 + $0x18] sm:$0xff] %v177_v15 }
  0x2e   : > { %180 = vst [vmem:[%s156_s20 + $0x20] sm:$0xff] %v179_v16 }
  0x2f   : > { %182 = vst [vmem:[%s156_s20 + $0x28] sm:$0xff] %v181_v17 }
  0x30   : > { %205 = vst [vmem:[%s189_s26] sm:$0xff] %v204_v18 }
  0x31   : > { %207 = vst [vmem:[%s189_s26 + $0x8] sm:$0xff] %v206_v19 }
  0x32   : > { %209 = vst [vmem:[%s189_s26 + $0x10] sm:$0xff] %v208_v20 }
  0x33   : > { %211 = vst [vmem:[%s189_s26 + $0x18] sm:$0xff] %v210_v21 }
  0x34   : > { %213 = vst [vmem:[%s189_s26 + $0x20] sm:$0xff] %v212_v22 }
  0x35   : > { %215 = vst [vmem:[%s189_s26 + $0x28] sm:$0xff] %v214_v23 }
  0x36 PF: > { %p3715_p5 = scmp.ge.s32.totalorder %s4348_s11, 1  ;;  %p220_p6 = scmp.lt.s32.totalorder %s4348_s11, 3 }
  0x38   : > { %p221_p7 = pnand %p3715_p5, %p220_p6 }
  0x3a   : > { %224 = sbr.rel (%p221_p7) target bundleno = 1398 (0x576), region = 96 }
  0x3f   : > { %s227_s21 = sand.u32 1, %s4427_s12   ;;  %s261_s22 = sand.u32 1, %s4340_s30   ;;  %v4358_v26 = vmov 0.0   ;;  %v425_v49 = vlaneseq }
  0x40   : > { %s4476_s27 = smul.u32 48, %s227_s21  ;;  %s4478_s28 = sshll.u32 %s261_s22, 1 }
  0x41   : > { %s288_s11 = smov [#allocation12]  ;;  %s311_s30 = smov [#allocation13]  ;;  %v4508_v50 = vshrl.u32 %v425_v49, 7  ;;  %v4516_v51 = vand.u32 127, %v425_v49 }
  0x42   : > { %s229_s29 = scalar_lea.vmem [#allocation0], %s4476_s27  ;;  %s4482_s14 = scalar_lea.vmem [#allocation8], %s4476_s27 }
  0x43   : > { %v289_v24 = vld [vmem:[%s229_s29] sm:$0xff]  ;;  %v3718_v25 = vld [vmem:[%s229_s29 + $0x8] sm:$0xff]  ;;  %5854 = sst [smem:[#allocation28_spill]] %s4482_s14  ;;  %380 = vst [vmem:[%s4482_s14] sm:$0xff] %v4358_v26  ;;  %v3720_v27 = vld [vmem:[%s229_s29 + $0x10] sm:$0xff]  ;;  %s233_s15 = scalar_lea.vmem [#allocation1], %s4476_s27  ;;  %v430_v50 = vmov %v4508_v50  ;;  %v427_v51 = vmov %v4516_v51  ;;  %vm3453_vm12 = vcmp.lt.s32.totalorder %v4516_v51, 48 }
  0x44   : > { %3758 = vst [vmem:[%s4482_s14 + $0x8] sm:$0xff] %v4358_v26  ;;  %v3722_v28 = vld [vmem:[%s229_s29 + $0x18] sm:$0xff]  ;;  %v3724_v29 = vld [vmem:[%s229_s29 + $0x20] sm:$0xff]  ;;  %v3726_v30 = vld [vmem:[%s229_s29 + $0x28] sm:$0xff]  ;;  %s334_s16 = smov [#allocation14]  ;;  %s237_s17 = scalar_lea.vmem [#allocation2], %s4476_s27  ;;  %vm434_vm0 = vcmp.eq.s32.totalorder %v430_v50, %v427_v51 }
  0x45   : > { %290 = vst [vmem:[%s288_s11] sm:$0xff] %v289_v24  ;;  %v312_v31 = vld [vmem:[%s233_s15] sm:$0xff]  ;;  %v3728_v32 = vld [vmem:[%s233_s15 + $0x8] sm:$0xff]  ;;  %v3730_v33 = vld [vmem:[%s233_s15 + $0x10] sm:$0xff]  ;;  %s357_s20 = smov [#allocation15]  ;;  %s241_s23 = scalar_lea.vmem [#allocation3], %s4476_s27  ;;  %v440_v52 = vadd.s32 8, %v430_v50 }
  0x46   : > { %3719 = vst [vmem:[%s288_s11 + $0x8] sm:$0xff] %v3718_v25  ;;  %v3732_v34 = vld [vmem:[%s233_s15 + $0x18] sm:$0xff]  ;;  %v3734_v35 = vld [vmem:[%s233_s15 + $0x20] sm:$0xff]  ;;  %v3736_v36 = vld [vmem:[%s233_s15 + $0x28] sm:$0xff]  ;;  %s4500_s24 = scalar_lea.vmem [#allocation9], %s4476_s27  ;;  %s4519_s25 = scalar_lea.vmem [#allocation10], %s4476_s27 }
  0x47   : > { %3721 = vst [vmem:[%s288_s11 + $0x10] sm:$0xff] %v3720_v27  ;;  %v335_v37 = vld [vmem:[%s237_s17] sm:$0xff]  ;;  %v3738_v38 = vld [vmem:[%s237_s17 + $0x8] sm:$0xff]  ;;  %v3740_v39 = vld [vmem:[%s237_s17 + $0x10] sm:$0xff]  ;;  %5855 = sst [smem:[#allocation29_spill]] %s4500_s24  ;;  %v447_v53 = vadd.s32 16, %v430_v50  ;;  %vm441_vm1 = vcmp.eq.s32.totalorder %v440_v52, %v427_v51 }
  0x48   : > { %3723 = vst [vmem:[%s288_s11 + $0x18] sm:$0xff] %v3722_v28  ;;  %v3742_v40 = vld [vmem:[%s237_s17 + $0x18] sm:$0xff]  ;;  %v3744_v41 = vld [vmem:[%s237_s17 + $0x20] sm:$0xff]  ;;  %v3746_v42 = vld [vmem:[%s237_s17 + $0x28] sm:$0xff]  ;;  %5856 = sst [smem:[#allocation30_spill]] %s4519_s25  ;;  %v454_v54 = vadd.s32 24, %v430_v50 }
  0x49   : > { %3725 = vst [vmem:[%s288_s11 + $0x20] sm:$0xff] %v3724_v29  ;;  %v358_v43 = vld [vmem:[%s241_s23] sm:$0xff]  ;;  %v3748_v44 = vld [vmem:[%s241_s23 + $0x8] sm:$0xff]  ;;  %v3750_v45 = vld [vmem:[%s241_s23 + $0x10] sm:$0xff]  ;;  %s4539_s26 = scalar_lea.vmem [#allocation11], %s4476_s27  ;;  %v461_v56 = vadd.s32 32, %v430_v50  ;;  %vm448_vm2 = vcmp.eq.s32.totalorder %v447_v53, %v427_v51 }
  0x4a   : > { %3727 = vst [vmem:[%s288_s11 + $0x28] sm:$0xff] %v3726_v30  ;;  %v3752_v46 = vld [vmem:[%s241_s23 + $0x18] sm:$0xff]  ;;  %v3754_v47 = vld [vmem:[%s241_s23 + $0x20] sm:$0xff]  ;;  %v3756_v48 = vld [vmem:[%s241_s23 + $0x28] sm:$0xff]  ;;  %5857 = sst [smem:[#allocation31_spill]] %s4539_s26  ;;  %v468_v58 = vadd.s32 40, %v430_v50  ;;  %vm455_vm3 = vcmp.eq.s32.totalorder %v454_v54, %v427_v51  ;;  %v478_v50 = vmov %v4508_v50 }
  0x4b   : > { %313 = vst [vmem:[%s311_s30] sm:$0xff] %v312_v31  ;;  %vm462_vm4 = vcmp.eq.s32.totalorder %v461_v56, %v427_v51  ;;  %v488_v3 = vadd.s32 8, %v478_v50  ;;  %v495_v4 = vadd.s32 16, %v478_v50  ;;  %v502_v6 = vadd.s32 24, %v478_v50  ;;  %s3449_s27 = smov [#allocation12]  ;;  %s4580_s29 = smov [#allocation13] }
  0x4c   : > { %3729 = vst [vmem:[%s311_s30 + $0x8] sm:$0xff] %v3728_v32  ;;  %vm469_vm5 = vcmp.eq.s32.totalorder %v468_v58, %v427_v51  ;;  %v475_v51 = vmov %v4516_v51  ;;  %v509_v8 = vadd.s32 32, %v478_v50  ;;  %v516_v9 = vadd.s32 40, %v478_v50  ;;  %s4607_s11 = smov [#allocation14] }
  0x4d   : > { %3731 = vst [vmem:[%s311_s30 + $0x10] sm:$0xff] %v3730_v33  ;;  %vm482_vm6 = vcmp.eq.s32.totalorder %v478_v50, %v475_v51  ;;  %vm489_vm7 = vcmp.eq.s32.totalorder %v488_v3, %v475_v51  ;;  %vm496_vm8 = vcmp.eq.s32.totalorder %v495_v4, %v475_v51  ;;  %vm503_vm9 = vcmp.eq.s32.totalorder %v502_v6, %v475_v51 }
  0x4e   : > { %3733 = vst [vmem:[%s311_s30 + $0x18] sm:$0xff] %v3732_v34  ;;  %vm510_vm10 = vcmp.eq.s32.totalorder %v509_v8, %v475_v51  ;;  %vm517_vm11 = vcmp.eq.s32.totalorder %v516_v9, %v475_v51  ;;  %v3507_v51 = vmov %v4516_v51  ;;  %v3510_v50 = vmov %v4508_v50 }
  0x4f   : > { %3735 = vst [vmem:[%s311_s30 + $0x20] sm:$0xff] %v3734_v35  ;;  %v3554_v51 = vmov %v4516_v51  ;;  %v3557_v50 = vmov %v4508_v50 }
  0x50   : > { %3737 = vst [vmem:[%s311_s30 + $0x28] sm:$0xff] %v3736_v36  ;;  %v3445_v51 = vmov %v4516_v51  ;;  %v3448_v50 = vmov %v4508_v50  ;;  %s4624_s30 = smov [#allocation15] }
  0x51   : > { %336 = vst [vmem:[%s334_s16] sm:$0xff] %v335_v37  ;;  %v3455_v22 = vld [vmem:[%s3449_s27] sm:$0xff]  ;;  %v3798_v23 = vld [vmem:[%s3449_s27 + $0x8] sm:$0xff]  ;;  %v3799_v24 = vld [vmem:[%s3449_s27 + $0x10] sm:$0xff]  ;;  %vm3458_vm13 = vcmp.eq.s32.totalorder %v3448_v50, %v3445_v51  ;;  %v3464_v56 = vadd.s32 8, %v3448_v50  ;;  %v3491_v3 = vadd.s32 32, %v3448_v50  ;;  %v3500_v8 = vadd.s32 40, %v3448_v50 }
  0x52   : > { %3739 = vst [vmem:[%s334_s16 + $0x8] sm:$0xff] %v3738_v38  ;;  %v3456_v25 = vsel %vm3453_vm12, %v3455_v22, 0.0  ;;  %v3471_v27 = vsel %vm3453_vm12, %v3799_v24, 0.0  ;;  %v3800_v28 = vld [vmem:[%s3449_s27 + $0x18] sm:$0xff]  ;;  %v3801_v29 = vld [vmem:[%s3449_s27 + $0x20] sm:$0xff]  ;;  %v3802_v34 = vld [vmem:[%s3449_s27 + $0x28] sm:$0xff] }
  0x53   : > { %3741 = vst [vmem:[%s334_s16 + $0x10] sm:$0xff] %v3740_v39  ;;  %v3457_v30 = vmul.f32 %v3456_v25, %v3456_v25  ;;  %v3472_v32 = vmul.f32 %v3471_v27, %v3471_v27  ;;  %v3480_v33 = vsel %vm3453_vm12, %v3800_v28, 0.0  ;;  %v3489_v35 = vsel %vm3453_vm12, %v3801_v29, 0.0 }
  0x54   : > { %3743 = vst [vmem:[%s334_s16 + $0x18] sm:$0xff] %v3742_v40  ;;  %v3481_v37 = vmul.f32 %v3480_v33, %v3480_v33  ;;  %v3498_v39 = vsel %vm3453_vm12, %v3802_v34, 0.0  ;;  %vm3465_vm14 = vcmp.eq.s32.totalorder %v3464_v56, %v3445_v51 }
  0x55   : > { %3745 = vst [vmem:[%s334_s16 + $0x20] sm:$0xff] %v3744_v41  ;;  %v3490_v41 = vmul.f32 %v3489_v35, %v3489_v35 }
  0x56   : > { %3747 = vst [vmem:[%s334_s16 + $0x28] sm:$0xff] %v3746_v42 }
  0x57   : > { %359 = vst [vmem:[%s357_s20] sm:$0xff] %v358_v43  ;;  %v3517_v38 = vld [vmem:[%s4580_s29] sm:$0xff]  ;;  %v3803_v42 = vld [vmem:[%s4580_s29 + $0x8] sm:$0xff] }
  0x58   : > { %3749 = vst [vmem:[%s357_s20 + $0x8] sm:$0xff] %v3748_v44  ;;  %v3518_v43 = vsel %vm3453_vm12, %v3517_v38, 0.0  ;;  %v3806_v53 = vld [vmem:[%s4580_s29 + $0x20] sm:$0xff] }
  0x59   : > { %3751 = vst [vmem:[%s357_s20 + $0x10] sm:$0xff] %v3750_v45  ;;  %v3499_v45 = vmul.f32 %v3498_v39, %v3498_v39  ;;  %v3519_v52 = vmul.f32 %v3518_v43, %v3518_v43 }
  0x5a   : > { %3753 = vst [vmem:[%s357_s20 + $0x18] sm:$0xff] %v3752_v46  ;;  %v3804_v46 = vld [vmem:[%s4580_s29 + $0x10] sm:$0xff] }
  0x5b   : > { %3755 = vst [vmem:[%s357_s20 + $0x20] sm:$0xff] %v3754_v47  ;;  %v3805_v47 = vld [vmem:[%s4580_s29 + $0x18] sm:$0xff]  ;;  %v3530_v54 = vsel %vm3453_vm12, %v3804_v46, 0.0 }
  0x5c   : > { %3757 = vst [vmem:[%s357_s20 + $0x28] sm:$0xff] %v3756_v48  ;;  %v3524_v48 = vsel %vm3453_vm12, %v3803_v42, 0.0 }
  0x5d   : > { %3759 = vst [vmem:[%s4482_s14 + $0x10] sm:$0xff] %v4358_v26  ;;  %v3525_v58 = vmul.f32 %v3524_v48, %v3524_v48  ;;  %v3564_v6 = vld [vmem:[%s4607_s11] sm:$0xff]  ;;  %v3810_v25 = vld [vmem:[%s4607_s11 + $0x18] sm:$0xff] }
  0x5e   : > { %3760 = vst [vmem:[%s4482_s14 + $0x18] sm:$0xff] %v4358_v26 }
  0x5f   : > { %3761 = vst [vmem:[%s4482_s14 + $0x20] sm:$0xff] %v4358_v26 }
  0x60   : > { %3762 = vst [vmem:[%s4482_s14 + $0x28] sm:$0xff] %v4358_v26  ;;  %s4531_s14 = smov %s4482_s14 }
  0x61   : > { %391 = vst [vmem:[%s4500_s24] sm:$0xff] %v4358_v26 }
  0x62   : > { %3763 = vst [vmem:[%s4500_s24 + $0x8] sm:$0xff] %v4358_v26 }
  0x63   : > { %3764 = vst [vmem:[%s4500_s24 + $0x10] sm:$0xff] %v4358_v26  ;;  %v3813_v46 = vld [vmem:[%s4624_s30 + $0x8] sm:$0xff] }
  0x64   : > { %3765 = vst [vmem:[%s4500_s24 + $0x18] sm:$0xff] %v4358_v26 }
  0x65   : > { %3766 = vst [vmem:[%s4500_s24 + $0x20] sm:$0xff] %v4358_v26 }
  0x66   : > { %3767 = vst [vmem:[%s4500_s24 + $0x28] sm:$0xff] %v4358_v26 }
  0x67   : > { %402 = vst [vmem:[%s4519_s25] sm:$0xff] %v4358_v26  ;;  %v431_v55 = vld [vmem:[%s4531_s14] sm:$0xff]  ;;  %v3778_v57 = vld [vmem:[%s4531_s14 + $0x8] sm:$0xff]  ;;  %v3780_v59 = vld [vmem:[%s4531_s14 + $0x10] sm:$0xff] }
  0x68   : > { %3768 = vst [vmem:[%s4519_s25 + $0x8] sm:$0xff] %v4358_v26  ;;  %v435_v60 = vsel %vm434_vm0, 1.0, %v431_v55  ;;  %v3782_v61 = vld [vmem:[%s4531_s14 + $0x18] sm:$0xff]  ;;  %v442_v62 = vsel %vm441_vm1, 1.0, %v3778_v57  ;;  %v3784_v63 = vld [vmem:[%s4531_s14 + $0x20] sm:$0xff]  ;;  %v449_v0 = vsel %vm448_vm2, 1.0, %v3780_v59  ;;  %vm3492_vm1 = vcmp.eq.s32.totalorder %v3491_v3, %v3445_v51 }
  0x69   : > { %3769 = vst [vmem:[%s4519_s25 + $0x10] sm:$0xff] %v4358_v26  ;;  %v3786_v1 = vld [vmem:[%s4531_s14 + $0x28] sm:$0xff]  ;;  %v456_v2 = vsel %vm455_vm3, 1.0, %v3782_v61  ;;  %v463_v5 = vsel %vm462_vm4, 1.0, %v3784_v63  ;;  %v3536_v55 = vsel %vm3453_vm12, %v3805_v47, 0.0  ;;  %v3542_v59 = vsel %vm3453_vm12, %v3806_v53, 0.0 }
  0x6a   : > { %3770 = vst [vmem:[%s4519_s25 + $0x18] sm:$0xff] %v4358_v26  ;;  %v470_v7 = vsel %vm469_vm5, 1.0, %v3786_v1  ;;  %v3537_v63 = vmul.f32 %v3536_v55, %v3536_v55  ;;  %v3473_v1 = vadd.s32 16, %v3448_v50  ;;  %vm3501_vm2 = vcmp.eq.s32.totalorder %v3500_v8, %v3445_v51 }
  0x6b   : > { %3771 = vst [vmem:[%s4519_s25 + $0x20] sm:$0xff] %v4358_v26 }
  0x6c   : > { %3772 = vst [vmem:[%s4519_s25 + $0x28] sm:$0xff] %v4358_v26  ;;  %vm3474_vm15 = vcmp.eq.s32.totalorder %v3473_v1, %v3445_v51  ;;  %v3816_v1 = vld [vmem:[%s4624_s30 + $0x20] sm:$0xff] }
  0x6d   : > { %413 = vst [vmem:[%s4539_s26] sm:$0xff] %v4358_v26 }
  0x6e   : > { %3773 = vst [vmem:[%s4539_s26 + $0x8] sm:$0xff] %v4358_v26 }
  0x6f   : > { %3774 = vst [vmem:[%s4539_s26 + $0x10] sm:$0xff] %v4358_v26 }
  0x70   : > { %3775 = vst [vmem:[%s4539_s26 + $0x18] sm:$0xff] %v4358_v26 }
  0x71   : > { %3776 = vst [vmem:[%s4539_s26 + $0x20] sm:$0xff] %v4358_v26 }
  0x72   : > { %3777 = vst [vmem:[%s4539_s26 + $0x28] sm:$0xff] %v4358_v26  ;;  %s472_s26 = smov %s4539_s26  ;;  %v3462_v26 = vsel %vm3453_vm12, %v3798_v23, 0.0 }
  0x73   : > { %436 = vst [vmem:[%s4531_s14] sm:$0xff] %v435_v60  ;;  %v3463_v31 = vmul.f32 %v3462_v26, %v3462_v26  ;;  %v3807_v60 = vld [vmem:[%s4580_s29 + $0x28] sm:$0xff]  ;;  %v3502_v26 = vsel %vm3501_vm2, 0.0, %v3499_v45 }
  0x74   : > { %3779 = vst [vmem:[%s4531_s14 + $0x8] sm:$0xff] %v442_v62  ;;  %v3531_v62 = vmul.f32 %v3530_v54, %v3530_v54  ;;  %v3620_v54 = vsel %vm3453_vm12, %v3813_v46, 0.0 }
  0x75   : > { %3781 = vst [vmem:[%s4531_s14 + $0x10] sm:$0xff] %v449_v0  ;;  %v3468_v36 = vadd.f32 %v3463_v31, %v3457_v30  ;;  %v3459_v0 = vsel %vm3458_vm13, 0.0, %v3457_v30 }
  0x76   : > { %3783 = vst [vmem:[%s4531_s14 + $0x18] sm:$0xff] %v456_v2  ;;  %v3482_v2 = vadd.s32 24, %v3448_v50  ;;  %v3604_v50 = vmov %v4508_v50 }
  0x77   : > { %3785 = vst [vmem:[%s4531_s14 + $0x20] sm:$0xff] %v463_v5  ;;  %v3477_v40 = vadd.f32 %v3472_v32, %v3468_v36  ;;  %v3548_v5 = vsel %vm3453_vm12, %v3807_v60, 0.0  ;;  %v3812_v36 = vld [vmem:[%s4607_s11 + $0x28] sm:$0xff] }
  0x78   : > { %3787 = vst [vmem:[%s4531_s14 + $0x28] sm:$0xff] %v470_v7  ;;  %v3466_v7 = vsel %vm3465_vm14, 0.0, %v3463_v31  ;;  %vm3483_vm0 = vcmp.eq.s32.totalorder %v3482_v2, %v3445_v51  ;;  %v3811_v31 = vld [vmem:[%s4607_s11 + $0x20] sm:$0xff]  ;;  %v3595_v42 = vsel %vm3453_vm12, %v3812_v36, 0.0  ;;  %v3601_v51 = vmov %v4516_v51 }
  0x79   : > { %v479_v10 = vld [vmem:[%s472_s26] sm:$0xff]  ;;  %v3788_v11 = vld [vmem:[%s472_s26 + $0x8] sm:$0xff]  ;;  %v3790_v12 = vld [vmem:[%s472_s26 + $0x10] sm:$0xff]  ;;  %v3486_v44 = vadd.f32 %v3481_v37, %v3477_v40  ;;  %v3467_v9 = vadd.f32 %v3466_v7, %v3459_v0  ;;  %v3596_v53 = vmul.f32 %v3595_v42, %v3595_v42  ;;  %v3621_v0 = vmul.f32 %v3620_v54, %v3620_v54 }
  0x7a   : > { %v483_v13 = vsel %vm482_vm6, 1.0, %v479_v10  ;;  %v490_v14 = vsel %vm489_vm7, 1.0, %v3788_v11  ;;  %v497_v15 = vsel %vm496_vm8, 1.0, %v3790_v12  ;;  %v3792_v16 = vld [vmem:[%s472_s26 + $0x18] sm:$0xff]  ;;  %v3794_v17 = vld [vmem:[%s472_s26 + $0x20] sm:$0xff]  ;;  %v3796_v18 = vld [vmem:[%s472_s26 + $0x28] sm:$0xff]  ;;  %v3543_v11 = vmul.f32 %v3542_v59, %v3542_v59 }
  0x7b   : > { %484 = vst [vmem:[%s472_s26] sm:$0xff] %v483_v13  ;;  %v504_v19 = vsel %vm503_vm9, 1.0, %v3792_v16  ;;  %v511_v20 = vsel %vm510_vm10, 1.0, %v3794_v17  ;;  %v518_v21 = vsel %vm517_vm11, 1.0, %v3796_v18  ;;  %v3495_v49 = vadd.f32 %v3490_v41, %v3486_v44  ;;  %v3808_v12 = vld [vmem:[%s4607_s11 + $0x8] sm:$0xff]  ;;  %v3815_v59 = vld [vmem:[%s4624_s30 + $0x18] sm:$0xff] }
  0x7c   : > { %3789 = vst [vmem:[%s472_s26 + $0x8] sm:$0xff] %v490_v14  ;;  %v3475_v13 = vsel %vm3474_vm15, 0.0, %v3472_v32  ;;  %v3484_v14 = vsel %vm3483_vm0, 0.0, %v3481_v37  ;;  %v3549_v18 = vmul.f32 %v3548_v5, %v3548_v5  ;;  %v3583_v32 = vsel %vm3453_vm12, %v3810_v25, 0.0  ;;  %v3817_v5 = vld [vmem:[%s4624_s30 + $0x28] sm:$0xff] }
  0x7d   : > { %3791 = vst [vmem:[%s472_s26 + $0x10] sm:$0xff] %v497_v15  ;;  %v3504_v57 = vadd.f32 %v3499_v45, %v3495_v49  ;;  %v3565_v15 = vsel %vm3453_vm12, %v3564_v6, 0.0  ;;  %v3476_v16 = vadd.f32 %v3475_v13, %v3467_v9  ;;  %v3589_v37 = vsel %vm3453_vm12, %v3811_v31, 0.0 }
  0x7e   : > { %3793 = vst [vmem:[%s472_s26 + $0x18] sm:$0xff] %v504_v19  ;;  %v3809_v19 = vld [vmem:[%s4607_s11 + $0x10] sm:$0xff]  ;;  %v3566_v24 = vmul.f32 %v3565_v15, %v3565_v15  ;;  %v3584_v40 = vmul.f32 %v3583_v32, %v3583_v32  ;;  %v3590_v45 = vmul.f32 %v3589_v37, %v3589_v37  ;;  %v3656_v9 = vsel %vm3453_vm12, %v3817_v5, 0.0 }
  0x7f   : > { %3795 = vst [vmem:[%s472_s26 + $0x20] sm:$0xff] %v511_v20  ;;  %v3521_v61 = vadd.f32 %v3519_v52, %v3504_v57  ;;  %v3493_v20 = vsel %vm3492_vm1, 0.0, %v3490_v41  ;;  %v3485_v22 = vadd.f32 %v3484_v14, %v3476_v16  ;;  %v3577_v27 = vsel %vm3453_vm12, %v3809_v19, 0.0  ;;  %v3611_v41 = vld [vmem:[%s4624_s30] sm:$0xff] }
  0x80   : > { %3797 = vst [vmem:[%s472_s26 + $0x28] sm:$0xff] %v518_v21  ;;  %v3571_v21 = vsel %vm3453_vm12, %v3808_v12, 0.0  ;;  %v3578_v35 = vmul.f32 %v3577_v27, %v3577_v27  ;;  %v3612_v47 = vsel %vm3453_vm12, %v3611_v41, 0.0  ;;  %v3622_v14 = vadd.s32 8, %v3604_v50 }
  0x81   : > { %v3527_v4 = vadd.f32 %v3525_v58, %v3521_v61  ;;  %v3494_v28 = vadd.f32 %v3493_v20, %v3485_v22  ;;  %v3572_v30 = vmul.f32 %v3571_v21, %v3571_v21  ;;  %v3613_v57 = vmul.f32 %v3612_v47, %v3612_v47 }
  0x82   : > { %v3657_v16 = vmul.f32 %v3656_v9, %v3656_v9  ;;  %vm3614_vm3 = vcmp.eq.s32.totalorder %v3604_v50, %v3601_v51  ;;  %vm3623_vm4 = vcmp.eq.s32.totalorder %v3622_v14, %v3601_v51  ;;  %v3640_v21 = vadd.s32 24, %v3604_v50 }
  0x83   : > { %v3533_v10 = vadd.f32 %v3531_v62, %v3527_v4  ;;  %v3503_v33 = vadd.f32 %v3502_v26, %v3494_v28  ;;  %v3649_v25 = vadd.s32 32, %v3604_v50  ;;  %v3624_v26 = vsel %vm3623_vm4, 0.0, %v3621_v0 }
  0x84   : > { %vm3641_vm6 = vcmp.eq.s32.totalorder %v3640_v21, %v3601_v51  ;;  %v3658_v28 = vadd.s32 40, %v3604_v50 }
  0x85   : > { %v3539_v17 = vadd.f32 %v3537_v63, %v3533_v10  ;;  %v3520_v38 = vadd.f32 %v3519_v52, %v3503_v33  ;;  %v3814_v52 = vld [vmem:[%s4624_s30 + $0x10] sm:$0xff]  ;;  %vm3650_vm7 = vcmp.eq.s32.totalorder %v3649_v25, %v3601_v51 }
  0x86   : > { %vm3659_vm8 = vcmp.eq.s32.totalorder %v3658_v28, %v3601_v51 }
  0x87   : > { %v3545_v23 = vadd.f32 %v3543_v11, %v3539_v17  ;;  %v3526_v43 = vadd.f32 %v3525_v58, %v3520_v38  ;;  %v3629_v58 = vsel %vm3453_vm12, %v3814_v52, 0.0 }
  0x88   : > { %v3630_v4 = vmul.f32 %v3629_v58, %v3629_v58 }
  0x89   : > { %v3551_v29 = vadd.f32 %v3549_v18, %v3545_v23  ;;  %v3532_v48 = vadd.f32 %v3531_v62, %v3526_v43  ;;  %v3638_v62 = vsel %vm3453_vm12, %v3815_v59, 0.0  ;;  %v3615_v23 = vsel %vm3614_vm3, 0.0, %v3613_v57 }
  0x8a   : > { %v3639_v8 = vmul.f32 %v3638_v62, %v3638_v62 }
  0x8b   : > { %v3568_v34 = vadd.f32 %v3566_v24, %v3551_v29  ;;  %v3538_v55 = vadd.f32 %v3537_v63, %v3532_v48  ;;  %v3647_v63 = vsel %vm3453_vm12, %v3816_v1, 0.0 }
  0x8c   : > { %v3648_v12 = vmul.f32 %v3647_v63, %v3647_v63  ;;  %v3642_v31 = vsel %vm3641_vm6, 0.0, %v3639_v8 }
  0x8d   : > { %v3574_v39 = vadd.f32 %v3572_v30, %v3568_v34  ;;  %v3544_v60 = vadd.f32 %v3543_v11, %v3538_v55 }
  0x8e   : > { %v3651_v33 = vsel %vm3650_vm7, 0.0, %v3648_v12 }
  0x8f   : > { %v3580_v44 = vadd.f32 %v3578_v35, %v3574_v39  ;;  %v3550_v2 = vadd.f32 %v3549_v18, %v3544_v60  ;;  %v3631_v18 = vadd.s32 16, %v3604_v50 }
  0x91   : > { %v3586_v49 = vadd.f32 %v3584_v40, %v3580_v44  ;;  %v3567_v6 = vadd.f32 %v3566_v24, %v3550_v2  ;;  %vm3632_vm5 = vcmp.eq.s32.totalorder %v3631_v18, %v3601_v51 }
  0x92   : > { %v3633_v29 = vsel %vm3632_vm5, 0.0, %v3630_v4 }
  0x93   : > { %v3592_v56 = vadd.f32 %v3590_v45, %v3586_v49  ;;  %v3573_v10 = vadd.f32 %v3572_v30, %v3567_v6 }
  0x95   : > { %v3598_v61 = vadd.f32 %v3596_v53, %v3592_v56  ;;  %v3579_v13 = vadd.f32 %v3578_v35, %v3573_v10  ;;  %v3660_v35 = vsel %vm3659_vm8, 0.0, %v3657_v16 }
  0x97   : > { %v3617_v3 = vadd.f32 %v3613_v57, %v3598_v61  ;;  %v3585_v17 = vadd.f32 %v3584_v40, %v3579_v13 }
  0x99   : > { %v3626_v7 = vadd.f32 %v3621_v0, %v3617_v3  ;;  %v3591_v20 = vadd.f32 %v3590_v45, %v3585_v17 }
  0x9b   : > { %v3635_v11 = vadd.f32 %v3630_v4, %v3626_v7  ;;  %v3597_v24 = vadd.f32 %v3596_v53, %v3591_v20 }
  0x9d   : > { %v3644_v15 = vadd.f32 %v3639_v8, %v3635_v11  ;;  %v3616_v27 = vadd.f32 %v3615_v23, %v3597_v24 }
  0x9f   : > { %v3653_v19 = vadd.f32 %v3648_v12, %v3644_v15  ;;  %v3625_v30 = vadd.f32 %v3624_v26, %v3616_v27 }
  0xa1   : > { %v3662_v22 = vadd.f32 %v3657_v16, %v3653_v19  ;;  %v3634_v32 = vadd.f32 %v3633_v29, %v3625_v30 }
  0xa3   : > { %3663 = vadd.xlane.f32.xlu0 %v3662_v22  ;;  %v3643_v34 = vadd.f32 %v3642_v31, %v3634_v32 }
  0xa5   : > { %v3652_v36 = vadd.f32 %v3651_v33, %v3643_v34 }
  0xa7   : > { %v3661_v37 = vadd.f32 %v3660_v35, %v3652_v36 }
  0xab   : > { %3671 = vadd.xlane.f32.xlu0 %v3661_v37 }
 0x116   : > { %v3664_v38 = vpop.xlane.xlu0 %3663 }
 0x117   : > { %v3665_v39 = vrot.slane %v3664_v38, 4 }
 0x119   : > { %v3666_v40 = vadd.f32 %v3665_v39, %v3664_v38 }
 0x11b   : > { %v3667_v41 = vrot.slane %v3666_v40, 2 }
 0x11d   : > { %v3668_v45 = vadd.f32 %v3667_v41, %v3666_v40 }
 0x11e   : > { %v3672_v42 = vpop.xlane.xlu0 %3671 }
 0x11f   : > { %v3673_v43 = vrot.slane %v3672_v42, 4  ;;  %v3669_v48 = vrot.slane %v3668_v45, 1 }
 0x121   : > { %v3674_v44 = vadd.f32 %v3673_v43, %v3672_v42  ;;  %v3670_v52 = vadd.f32 %v3669_v48, %v3668_v45 }
 0x123   : > { %v3675_v46 = vrot.slane %v3674_v44, 2 }
 0x125   : > { %v3676_v47 = vadd.f32 %v3675_v46, %v3674_v44 }
 0x127   : > { %v3677_v49 = vrot.slane %v3676_v47, 1 }
 0x129   : > { %v3678_v53 = vadd.f32 %v3677_v49, %v3676_v47 }
 0x12b   : > { %4258 = vpush %v3678_v53 }
 0x12c   : > { %4260 = vpush %v3670_v52 }
 0x15c   : > { %s4259_s15 = spop %4258 }
 0x15d   : > { %s4261_s16 = spop %4260 }
 0x15e   : > { %s3681_s17 = smul.f32 1e-10, %s4261_s16 }
 0x160   : > { %p3682_p8 = scmp.le.f32.partialorder %s4259_s15, %s3681_s17 }
 0x161   : > { %s4651_s20 = smov (!%p3682_p8), 0  }
 0x162   : > { %3685 = sbr.rel (%p3682_p8) target bundleno = 1317 (0x525), region = 724 }
 0x167 LB: >> { %s4656_s23 = smov 0   ;;  %s4352_s20 = sphi %s4651_s20, %s5862_s20  }
 0x168 LB: >>> { %s5858_s14 = sld [smem:[#allocation28_spill]]  ;;  %s4356_s23 = sphi %s4656_s23, %s783_s23  }
 0x169   : >>> { %s5859_s24 = sld [smem:[#allocation29_spill]] }
 0x16a   : >>> { %s5860_s25 = sld [smem:[#allocation30_spill]] }
 0x16b   : >>> { %s5861_s26 = sld [smem:[#allocation31_spill]] }
 0x16c   : >>> { %s4661_s27 = smov [#allocation12]  ;;  %v788_v51 = vmov %v4516_v51  ;;  %v791_v50 = vmov %v4508_v50  ;;  %s834_s29 = smov [#allocation13] }
 0x16d   : >>> { %v838_v51 = vmov %v4516_v51  ;;  %v841_v50 = vmov %v4508_v50  ;;  %v792_v54 = vld [vmem:[%s4661_s27] sm:$0xff]  ;;  %vm795_vm9 = vcmp.eq.s32.totalorder %v791_v50, %v788_v51  ;;  %v3818_v55 = vld [vmem:[%s4661_s27 + $0x8] sm:$0xff]  ;;  %v800_v56 = vadd.s32 8, %v791_v50  ;;  %v3819_v60 = vld [vmem:[%s4661_s27 + $0x10] sm:$0xff]  ;;  %s4674_s11 = smov [#allocation15]  ;;  %s785_s30 = smov [#allocation16] }
 0x16e   : >>> { %v806_v57 = vadd.s32 16, %v791_v50  ;;  %v812_v59 = vadd.s32 24, %v791_v50  ;;  %v796_v58 = vsel %vm795_vm9, %v792_v54, 0.0  ;;  %v818_v61 = vadd.s32 32, %v791_v50  ;;  %v3820_v1 = vld [vmem:[%s4661_s27 + $0x18] sm:$0xff]  ;;  %v3821_v62 = vld [vmem:[%s4661_s27 + $0x20] sm:$0xff]  ;;  %s4727_s14 = smov %s5858_s14 }
 0x16f   : >>> { %v824_v0 = vadd.s32 40, %v791_v50  ;;  %vm845_vm10 = vcmp.eq.s32.totalorder %v841_v50, %v838_v51  ;;  %vm801_vm11 = vcmp.eq.s32.totalorder %v800_v56, %v788_v51  ;;  %v850_v2 = vadd.s32 8, %v841_v50  ;;  %v842_v4 = vld [vmem:[%s834_s29] sm:$0xff]  ;;  %v3823_v5 = vld [vmem:[%s834_s29 + $0x8] sm:$0xff]  ;;  %v3824_v63 = vld [vmem:[%s834_s29 + $0x10] sm:$0xff]  ;;  %s835_s15 = smov [#allocation17]  ;;  %s4730_s24 = smov %s5859_s24 }
 0x170   : >>> { %vm807_vm13 = vcmp.eq.s32.totalorder %v806_v57, %v788_v51  ;;  %vm813_vm14 = vcmp.eq.s32.totalorder %v812_v59, %v788_v51  ;;  %v802_v3 = vsel %vm801_vm11, %v3818_v55, %v796_v58  ;;  %vm819_vm15 = vcmp.eq.s32.totalorder %v818_v61, %v788_v51  ;;  %v3822_v8 = vld [vmem:[%s4661_s27 + $0x28] sm:$0xff]  ;;  %v3825_v10 = vld [vmem:[%s834_s29 + $0x18] sm:$0xff]  ;;  %v3826_v14 = vld [vmem:[%s834_s29 + $0x20] sm:$0xff]  ;;  %s885_s16 = smov [#allocation18]  ;;  %s938_s17 = smov [#allocation17] }
 0x171   : >>> { %vm825_vm0 = vcmp.eq.s32.totalorder %v824_v0, %v788_v51  ;;  %v856_v6 = vadd.s32 16, %v841_v50  ;;  %v808_v7 = vsel %vm807_vm13, %v3819_v60, %v802_v3  ;;  %v846_v9 = vsel %vm845_vm10, %v842_v4, 0.0  ;;  %v3827_v18 = vld [vmem:[%s834_s29 + $0x28] sm:$0xff]  ;;  %v892_v22 = vld [vmem:[%s4674_s11] sm:$0xff]  ;;  %v3829_v32 = vld [vmem:[%s4674_s11 + $0x10] sm:$0xff]  ;;  %s936_s27 = smov [#allocation16]  ;;  %s4735_s25 = smov %s5860_s25 }
 0x172   : >>> { %vm851_vm1 = vcmp.eq.s32.totalorder %v850_v2, %v838_v51  ;;  %v862_v11 = vadd.s32 24, %v841_v50  ;;  %v814_v12 = vsel %vm813_vm14, %v3820_v1, %v808_v7  ;;  %v868_v15 = vadd.s32 32, %v841_v50  ;;  %v3828_v26 = vld [vmem:[%s4674_s11 + $0x8] sm:$0xff]  ;;  %v3830_v34 = vld [vmem:[%s4674_s11 + $0x18] sm:$0xff]  ;;  %v3831_v40 = vld [vmem:[%s4674_s11 + $0x20] sm:$0xff]  ;;  %s940_s29 = smov [#allocation18]  ;;  %s4738_s26 = smov %s5861_s26 }
 0x173   : >>> { %v852_v13 = vsel %vm851_vm1, %v3823_v5, %v846_v9  ;;  %vm857_vm2 = vcmp.eq.s32.totalorder %v856_v6, %v838_v51  ;;  %v820_v16 = vsel %vm819_vm15, %v3821_v62, %v814_v12  ;;  %v874_v19 = vadd.s32 40, %v841_v50  ;;  %v3832_v42 = vld [vmem:[%s4674_s11 + $0x28] sm:$0xff]  ;;  %s1015_s11 = smov [#allocation19]  ;;  %s1162_s22 = smov [#allocation24] }
 0x174   : >>> { %v858_v17 = vsel %vm857_vm2, %v3824_v63, %v852_v13  ;;  %vm863_vm3 = vcmp.eq.s32.totalorder %v862_v11, %v838_v51  ;;  %v826_v20 = vsel %vm825_vm0, %v3822_v8, %v820_v16  ;;  %vm869_vm4 = vcmp.eq.s32.totalorder %v868_v15, %v838_v51  ;;  %s1178_s21 = smov [#allocation24]  ;;  %s5245_s0 = smov [#allocation13] }
 0x175   : >>> { %v864_v21 = vsel %vm863_vm3, %v3825_v10, %v858_v17  ;;  %v888_v51 = vmov %v4516_v51  ;;  %v827_v23 = vrot.slane %v826_v20, 4  ;;  %vm875_vm5 = vcmp.eq.s32.totalorder %v874_v19, %v838_v51  ;;  %s5247_s1 = smov [#allocation12]  ;;  %s5259_s2 = smov [#allocation12] }
 0x176   : >>> { %v870_v24 = vsel %vm869_vm4, %v3826_v14, %v864_v21  ;;  %v891_v50 = vmov %v4508_v50  ;;  %s5269_s3 = smov [#allocation13]  ;;  %s5271_s18 = smov [#allocation12] }
 0x177   : >>> { %v876_v25 = vsel %vm875_vm5, %v3827_v18, %v870_v24  ;;  %vm895_vm6 = vcmp.eq.s32.totalorder %v891_v50, %v888_v51  ;;  %v900_v27 = vadd.s32 8, %v891_v50  ;;  %v906_v28 = vadd.s32 16, %v891_v50  ;;  %s5281_s10 = smov [#allocation14]  ;;  %s5283_s13 = smov [#allocation15] }
 0x178   : >>> { %v828_v29 = vadd.f32 %v827_v23, %v826_v20  ;;  %v877_v30 = vrot.slane %v876_v25, 4  ;;  %v896_v31 = vsel %vm895_vm6, %v892_v22, 0.0  ;;  %v912_v33 = vadd.s32 24, %v891_v50  ;;  %s5293_s9 = smov [#allocation14]  ;;  %s5295_s8 = smov [#allocation15] }
 0x179   : >>> { %vm901_vm7 = vcmp.eq.s32.totalorder %v900_v27, %v888_v51  ;;  %vm907_vm8 = vcmp.eq.s32.totalorder %v906_v28, %v888_v51  ;;  %v918_v35 = vadd.s32 32, %v891_v50  ;;  %v924_v36 = vadd.s32 40, %v891_v50  ;;  %s5307_s7 = smov [#allocation15]  ;;  %s5319_s6 = smov [#allocation15] }
 0x17a   : >>> { %v829_v37 = vrot.slane %v828_v29, 2  ;;  %v878_v38 = vadd.f32 %v877_v30, %v876_v25  ;;  %v902_v39 = vsel %vm901_vm7, %v3828_v26, %v896_v31  ;;  %vm913_vm9 = vcmp.eq.s32.totalorder %v912_v33, %v888_v51  ;;  %s5341_s5 = smov [#allocation14]  ;;  %s5343_s4 = smov [#allocation15] }
 0x17b   : >>> { %v908_v41 = vsel %vm907_vm8, %v3829_v32, %v902_v39  ;;  %vm919_vm10 = vcmp.eq.s32.totalorder %v918_v35, %v888_v51  ;;  %vm925_vm11 = vcmp.eq.s32.totalorder %v924_v36, %v888_v51  ;;  %v1045_v50 = vmov %v4508_v50  ;;  %s783_s23 = sadd.s32 1, %s4356_s23  }
 0x17c   : >>> { %v830_v43 = vadd.f32 %v829_v37, %v828_v29  ;;  %v879_v44 = vrot.slane %v878_v38, 2  ;;  %v914_v45 = vsel %vm913_vm9, %v3830_v34, %v908_v41  ;;  %v1061_v50 = vmov %v4508_v50  ;;  %p780_p9 = scmp.ge.s32.totalorder %s783_s23, 95  }
 0x17d   : >>> { %v920_v46 = vsel %vm919_vm10, %v3831_v40, %v914_v45  ;;  %v1042_v51 = vmov %v4516_v51 }
 0x17e   : >>> { %v831_v47 = vrot.slane %v830_v43, 1  ;;  %v880_v48 = vadd.f32 %v879_v44, %v878_v38  ;;  %v926_v49 = vsel %vm925_vm11, %v3832_v42, %v920_v46  ;;  %v1027_v51 = vmov %v4516_v51 }
 0x17f   : >>> { %v927_v53 = vrot.slane %v926_v49, 4  ;;  %v1058_v51 = vmov %v4516_v51 }
 0x180   : >>> { %v832_v52 = vadd.f32 %v831_v47, %v830_v43  ;;  %v881_v54 = vrot.slane %v880_v48, 1 }
 0x181   : >>> { %v928_v55 = vadd.f32 %v927_v53, %v926_v49 }
 0x182   : >>> { %833 = vst [vmem:[%s785_s30] sm:$0x1] %v832_v52  ;;  %v882_v56 = vadd.f32 %v881_v54, %v880_v48  ;;  %s1017_s30 = smov [#allocation20] }
 0x183   : >>> { %v929_v57 = vrot.slane %v928_v55, 2 }
 0x184   : >>> { %883 = vst [vmem:[%s835_s15] sm:$0x1] %v882_v56  ;;  %s934_s15 = smov [#allocation21] }
 0x185   : >>> { %v930_v59 = vadd.f32 %v929_v57, %v928_v55  ;;  %s1019_s15 = smov %s934_s15 }
 0x187   : >>> { %v931_v58 = vrot.slane %v930_v59, 1 }
 0x189   : >>> { %v932_v60 = vadd.f32 %v931_v58, %v930_v59  ;;  %v937_v5 = vld [vmem:[%s936_s27] sm:$0xff]  ;;  %v1046_v58 = vadd.s32 8, %v1045_v50  ;;  %v1030_v50 = vmov %v4508_v50  ;;  %s1023_s27 = smov [#allocation21] }
 0x18a   : >>> { %v991_v28 = vand.u32 2147483647, %v937_v5 }
 0x18b   : >>> { %933 = vst [vmem:[%s885_s16] sm:$0x1] %v932_v60  ;;  %v4687_v61 = vld [vmem:[%s938_s17] sm:$0xff]  ;;  %s935_s16 = smov [#allocation22]  ;;  %v1062_v60 = vadd.s32 16, %v1061_v50  ;;  %s1038_s17 = smov [#allocation21]  ;;  %v1077_v50 = vmov %v4508_v50 }
 0x18c   : >>> { %v943_v0 = vmul.f32 2.0, %v4687_v61  ;;  %v992_v36 = vand.u32 2147483647, %v4687_v61  ;;  %s1021_s16 = smov %s935_s16  ;;  %v1140_v50 = vmov %v4508_v50 }
 0x18e   : >>> { %4310 = vrcp.f32 %v943_v0  ;;  %v955_v2 = vand.u32 2147483648, %v943_v0  ;;  %vm949_vm13 = vweird.f32 %v943_v0  ;;  %v953_v4 = vand.u32 2147483647, %v943_v0 }
 0x190   : >>> { %v956_v7 = vor.u32 1.1754944e-38, %v955_v2  ;;  %vm954_vm0 = vcmp.eq.f32.partialorder %v953_v4, 8.507059e+37 }
 0x192   : >>> { %v941_v63 = vld [vmem:[%s940_s29] sm:$0xff]  ;;  %s1054_s29 = smov [#allocation21] }
 0x193   : >>> { %v942_v8 = vsub.f32 %v941_v63, %v937_v5  ;;  %v993_v29 = vand.u32 2147483647, %v941_v63 }
 0x194   : >>> { %v4311_v1 = vpop.eup %4310 }
 0x195   : >>> { %v945_v62 = vmul.f32 %v4311_v1, %v943_v0  ;;  %vm950_vm14 = vweird.f32 %v4311_v1  ;;  %v994_v31 = vmin.f32 %v991_v28, %v993_v29 }
 0x196   : >>> { %vm951_vm15 = vmor %vm949_vm13, %vm950_vm14  ;;  %vm1047_vm13 = vcmp.eq.s32.totalorder %v1046_v58, %v1042_v51  ;;  %vm1032_vm14 = vcmp.eq.s32.totalorder %v1030_v50, %v1027_v51  ;;  %v1093_v50 = vmov %v4508_v50 }
 0x197   : >>> { %v946_v3 = vsub.f32 1.0, %v945_v62  ;;  %v995_v37 = vmul.f32 1.1920929e-08, %v994_v31  ;;  %v1141_v62 = vadd.s32 8, %v1140_v50 }
 0x199   : >>> { %v947_v6 = vmul.f32 %v4311_v1, %v946_v3  ;;  %vm996_vm8 = vcmp.le.f32.partialorder %v992_v36, %v995_v37 }
 0x19b   : >>> { %v948_v9 = vadd.f32 %v4311_v1, %v947_v6 }
 0x19d   : >>> { %v952_v10 = vsel %vm951_vm15, %v4311_v1, %v948_v9  ;;  %vm1063_vm15 = vcmp.eq.s32.totalorder %v1062_v60, %v1058_v51  ;;  %v1074_v51 = vmov %v4516_v51  ;;  %v1078_v1 = vadd.s32 24, %v1077_v50 }
 0x19e   : >>> { %v957_v11 = vsel %vm954_vm0, %v956_v7, %v952_v10  ;;  %v1137_v51 = vmov %v4516_v51 }
 0x19f   : >>> { %v958_v12 = vmul.f32 %v957_v11, %v942_v8  ;;  %v1090_v51 = vmov %v4516_v51  ;;  %vm1079_vm0 = vcmp.eq.s32.totalorder %v1078_v1, %v1074_v51 }
 0x1a1   : >>> { %v960_v13 = vmul.f32 %v958_v12, %v958_v12  ;;  %vm959_vm3 = vcmp.ge.f32.partialorder %v958_v12, 0.0 }
 0x1a3   : >>> { %v961_v14 = vadd.f32 1.0, %v960_v13 }
 0x1a5   : >>> { %4312 = vrsqrt.f32 %v961_v14  ;;  %vm969_vm1 = vcmp.eq.f32.partialorder %v961_v14, inf  ;;  %v972_v21 = vand.u32 2147483648, %v961_v14  ;;  %vm971_vm2 = vcmp.eq.f32.partialorder %v961_v14, 0.0 }
 0x1ab   : >>> { %v4313_v15 = vpop.eup %4312 }
 0x1ac   : >>> { %v963_v16 = vmul.f32 %v4313_v15, %v961_v14 }
 0x1ae   : >>> { %v964_v17 = vmul.f32 %v4313_v15, %v963_v16 }
 0x1b0   : >>> { %v965_v18 = vmul.f32 0.5, %v964_v17 }
 0x1b2   : >>> { %v966_v19 = vsub.f32 1.5, %v965_v18 }
 0x1b4   : >>> { %v967_v20 = vmul.f32 %v4313_v15, %v966_v19 }
 0x1b6   : >>> { %v968_v22 = vmul.f32 %v967_v20, %v961_v14 }
 0x1b8   : >>> { %v970_v23 = vsel %vm969_vm1, %v961_v14, %v968_v22  ;;  %vm1142_vm1 = vcmp.eq.s32.totalorder %v1141_v62, %v1137_v51 }
 0x1b9   : >>> { %v973_v24 = vsel %vm971_vm2, %v972_v21, %v970_v23 }
 0x1ba   : >>> { %v974_v25 = vxor.u32 2147483648, %v973_v24 }
 0x1bc   : >>> { %v975_v26 = vsel %vm959_vm3, %v973_v24, %v974_v25 }
 0x1bd   : >>> { %v976_v27 = vadd.f32 %v975_v26, %v958_v12 }
 0x1bf   : >>> { %4314 = vrcp.f32 %v976_v27  ;;  %v988_v33 = vand.u32 2147483648, %v976_v27  ;;  %vm982_vm4 = vweird.f32 %v976_v27  ;;  %v986_v35 = vand.u32 2147483647, %v976_v27 }
 0x1c1   : >>> { %v989_v39 = vor.u32 1.1754944e-38, %v988_v33  ;;  %vm987_vm7 = vcmp.eq.f32.partialorder %v986_v35, 8.507059e+37 }
 0x1c5   : >>> { %v4315_v30 = vpop.eup %4314 }
 0x1c6   : >>> { %v978_v32 = vmul.f32 %v4315_v30, %v976_v27  ;;  %vm983_vm5 = vweird.f32 %v4315_v30 }
 0x1c7   : >>> { %vm984_vm6 = vmor %vm982_vm4, %vm983_vm5 }
 0x1c8   : >>> { %v979_v34 = vsub.f32 1.0, %v978_v32 }
 0x1ca   : >>> { %v980_v38 = vmul.f32 %v4315_v30, %v979_v34 }
 0x1cc   : >>> { %v981_v40 = vadd.f32 %v4315_v30, %v980_v38 }
 0x1ce   : >>> { %v985_v41 = vsel %vm984_vm6, %v4315_v30, %v981_v40 }
 0x1cf   : >>> { %v990_v42 = vsel %vm987_vm7, %v989_v39, %v985_v41 }
 0x1d0   : >>> { %v997_v43 = vsel %vm996_vm8, 0.0, %v990_v42 }
 0x1d1   : >>> { %v998_v44 = vmul.f32 %v997_v43, %v997_v43  ;;  %v1011_v45 = vmul.f32 %v997_v43, %v4687_v61 }
 0x1d3   : >>> { %v999_v46 = vadd.f32 1.0, %v998_v44  ;;  %v1012_v47 = vsub.f32 %v937_v5, %v1011_v45  ;;  %v1014_v48 = vadd.f32 %v1011_v45, %v941_v63  ;;  %v1094_v5 = vadd.s32 32, %v1093_v50 }
 0x1d4   : >>> { %v1172_v50 = vmov %v4508_v50 }
 0x1d5   : >>> { %4316 = vrsqrt.f32 %v999_v46  ;;  %1016 = vst [vmem:[%s1015_s11] sm:$0xff] %v1012_v47  ;;  %vm1006_vm9 = vweird.f32 %v999_v46  ;;  %s1070_s11 = smov [#allocation21]  ;;  %vm1095_vm2 = vcmp.eq.s32.totalorder %v1094_v5, %v1090_v51  ;;  %v1156_v50 = vmov %v4508_v50  ;;  %v2446_v47 = vld [vmem:[%s4730_s24] sm:$0xff] }
 0x1d6   : >>> { %1018 = vst [vmem:[%s1017_s30] sm:$0xff] %v1014_v48  ;;  %s1133_s30 = smov [#allocation22]  ;;  %v1173_v12 = vadd.s32 24, %v1172_v50  ;;  %v1169_v51 = vmov %v4516_v51  ;;  %v1125_v50 = vmov %v4508_v50  ;;  %v1157_v13 = vadd.s32 16, %v1156_v50  ;;  %v2447_v48 = vld [vmem:[%s4735_s25] sm:$0xff] }
 0x1d7   : >>> { %v1122_v51 = vmov %v4516_v51 }
 0x1d8   : >>> { %v1153_v51 = vmov %v4516_v51  ;;  %vm1174_vm3 = vcmp.eq.s32.totalorder %v1173_v12, %v1169_v51  ;;  %vm1127_vm4 = vcmp.eq.s32.totalorder %v1125_v50, %v1122_v51  ;;  %v1109_v50 = vmov %v4508_v50 }
 0x1d9   : >>> { %vm1158_vm5 = vcmp.eq.s32.totalorder %v1157_v13, %v1153_v51  ;;  %v1188_v50 = vmov %v4508_v50  ;;  %v1110_v20 = vadd.s32 40, %v1109_v50  ;;  %v1106_v51 = vmov %v4516_v51 }
 0x1da   : >>> { %v1204_v50 = vmov %v4508_v50  ;;  %v1189_v21 = vadd.s32 32, %v1188_v50  ;;  %v1185_v51 = vmov %v4516_v51 }
 0x1db   : >>> { %v4317_v49 = vpop.eup %4316  ;;  %v1205_v22 = vadd.s32 40, %v1204_v50  ;;  %v1201_v51 = vmov %v4516_v51  ;;  %vm1111_vm6 = vcmp.eq.s32.totalorder %v1110_v20, %v1106_v51 }
 0x1dc   : >>> { %v1001_v53 = vmul.f32 %v4317_v49, %v999_v46  ;;  %vm1007_vm10 = vweird.f32 %v4317_v49  ;;  %vm1190_vm7 = vcmp.eq.s32.totalorder %v1189_v21, %v1185_v51  ;;  %v2445_v46 = vld [vmem:[%s4727_s14] sm:$0xff] }
 0x1dd   : >>> { %vm1008_vm11 = vmor %vm1006_vm9, %vm1007_vm10  ;;  %vm1206_vm8 = vcmp.eq.s32.totalorder %v1205_v22, %v1201_v51  ;;  %vm2197_vm9 = vcmp.eq.s32.totalorder %v4508_v50, 0  ;;  %vm2265_vm10 = vcmp.eq.s32.totalorder %v4508_v50, 7  ;;  %v1640_v50 = vmov %v4508_v50 }
 0x1de   : >>> { %v1002_v52 = vmul.f32 %v4317_v49, %v1001_v53  ;;  %v1637_v51 = vmov %v4516_v51 }
 0x1e0   : >>> { %v1003_v54 = vmul.f32 0.5, %v1002_v52 }
 0x1e2   : >>> { %v1004_v55 = vsub.f32 1.5, %v1003_v54 }
 0x1e4   : >>> { %v1005_v56 = vmul.f32 %v4317_v49, %v1004_v55 }
 0x1e6   : >>> { %v1009_v57 = vsel %vm1008_vm11, %v4317_v49, %v1005_v56  ;;  %v2448_v49 = vld [vmem:[%s4738_s26] sm:$0xff]  ;;  %vm1644_vm11 = vcmp.eq.s32.totalorder %v1640_v50, %v1637_v51 }
 0x1e7   : >>> { %1020 = vst [vmem:[%s1019_s15] sm:$0xff] %v1009_v57  ;;  %v1010_v59 = vmul.f32 %v1009_v57, %v997_v43  ;;  %s1086_s15 = smov [#allocation21] }
 0x1e9   : >>> { %1022 = vst [vmem:[%s1021_s16] sm:$0xff] %v1010_v59  ;;  %s1165_s16 = smov [#allocation22] }
 0x1ee   : >>> { %v1039_v61 = vld [vmem:[%s1038_s17] ss:$0 sm:$0xff]  ;;  %s1118_s17 = smov [#allocation22] }
 0x1ef   : >>> { %v1024_v0 = vld [vmem:[%s1023_s27] ss:$0 sm:$0xff]  ;;  %v1048_v2 = vsel %vm1047_vm13, %v1039_v61, 0.0  ;;  %s1149_s27 = smov [#allocation22] }
 0x1f0   : >>> { %v1033_v3 = vsel %vm1032_vm14, %v1024_v0, 0.0  ;;  %v1055_v4 = vld [vmem:[%s1054_s29] ss:$0 sm:$0xff]  ;;  %1049 = vadd.xlane.f32.xlu1 %v1048_v2  ;;  %s1102_s29 = smov [#allocation21] }
 0x1f1   : >>> { %1034 = vadd.xlane.f32.xlu0 %v1033_v3  ;;  %v1064_v63 = vsel %vm1063_vm15, %v1055_v4, 0.0  ;;  %v1071_v6 = vld [vmem:[%s1070_s11] ss:$0 sm:$0xff]  ;;  %s1181_s11 = smov [#allocation22] }
 0x1f2   : >>> { %1065 = vadd.xlane.f32.xlu2 %v1064_v63  ;;  %v1134_v7 = vld [vmem:[%s1133_s30] ss:$0 sm:$0xff]  ;;  %v1080_v9 = vsel %vm1079_vm0, %v1071_v6, 0.0  ;;  %s1197_s30 = smov [#allocation22] }
 0x1f3   : >>> { %v1087_v8 = vld [vmem:[%s1086_s15] ss:$0 sm:$0xff]  ;;  %v1143_v10 = vsel %vm1142_vm1, %v1134_v7, 0.0  ;;  %s1036_s15 = smov [#allocation23] }
 0x1f4   : >>> { %v1096_v11 = vsel %vm1095_vm2, %v1087_v8, 0.0  ;;  %v1166_v14 = vld [vmem:[%s1165_s16] ss:$0 sm:$0xff]  ;;  %s1051_s16 = smov [#allocation23] }
 0x1f5   : >>> { %v1119_v15 = vld [vmem:[%s1118_s17] ss:$0 sm:$0xff]  ;;  %v1175_v17 = vsel %vm1174_vm3, %v1166_v14, 0.0  ;;  %s1067_s17 = smov [#allocation23] }
 0x1f6   : >>> { %v1150_v16 = vld [vmem:[%s1149_s27] ss:$0 sm:$0xff]  ;;  %v1128_v18 = vsel %vm1127_vm4, %v1119_v15, 0.0  ;;  %s1083_s27 = smov [#allocation23] }
 0x1f7   : >>> { %v1159_v19 = vsel %vm1158_vm5, %v1150_v16, 0.0  ;;  %v1103_v23 = vld [vmem:[%s1102_s29] ss:$0 sm:$0xff]  ;;  %s1099_s29 = smov [#allocation23] }
 0x1f8   : >>> { %1144 = vadd.xlane.f32.xlu1 %v1143_v10  ;;  %v1182_v24 = vld [vmem:[%s1181_s11] ss:$0 sm:$0xff]  ;;  %v1112_v26 = vsel %vm1111_vm6, %v1103_v23, 0.0  ;;  %s1131_s11 = smov [#allocation24] }
 0x1f9   : >>> { %1081 = vadd.xlane.f32.xlu0 %v1080_v9  ;;  %v1198_v25 = vld [vmem:[%s1197_s30] ss:$0 sm:$0xff]  ;;  %v1191_v27 = vsel %vm1190_vm7, %v1182_v24, 0.0  ;;  %s1146_s30 = smov [#allocation24] }
 0x1fa   : >>> { %1097 = vadd.xlane.f32.xlu2 %v1096_v11  ;;  %v1207_v28 = vsel %vm1206_vm8, %v1198_v25, 0.0 }
 0x200   : >>> { %1176 = vadd.xlane.f32.xlu1 %v1175_v17 }
 0x201   : >>> { %1129 = vadd.xlane.f32.xlu0 %v1128_v18 }
 0x202   : >>> { %1160 = vadd.xlane.f32.xlu2 %v1159_v19 }
 0x208   : >>> { %1113 = vadd.xlane.f32.xlu1 %v1112_v26 }
 0x209   : >>> { %1192 = vadd.xlane.f32.xlu0 %v1191_v27 }
 0x20a   : >>> { %1208 = vadd.xlane.f32.xlu2 %v1207_v28 }
 0x263   : >>> { %v1050_v29 = vpop.xlane.xlu1 %1049 }
 0x264   : >>> { %v1035_v30 = vpop.xlane.xlu0 %1034 }
 0x265   : >>> { %1037 = vst [vmem:[%s1036_s15] sm:$0xff] %v1035_v30  ;;  %v1066_v31 = vpop.xlane.xlu2 %1065  ;;  %s1115_s15 = smov [#allocation23] }
 0x266   : >>> { %3833 = vst [vmem:[%s1051_s16 + $0x8] sm:$0xff] %v1050_v29  ;;  %s1194_s16 = smov [#allocation24] }
 0x267   : >>> { %3834 = vst [vmem:[%s1067_s17 + $0x10] sm:$0xff] %v1066_v31  ;;  %s1210_s17 = smov [#allocation24] }
 0x26b   : >>> { %v1145_v33 = vpop.xlane.xlu1 %1144 }
 0x26c   : >>> { %v1082_v32 = vpop.xlane.xlu0 %1081 }
 0x26d   : >>> { %3835 = vst [vmem:[%s1083_s27 + $0x18] sm:$0xff] %v1082_v32  ;;  %v1098_v34 = vpop.xlane.xlu2 %1097  ;;  %s1213_s27 = smov [#allocation23] }
 0x26e   : >>> { %3836 = vst [vmem:[%s1099_s29 + $0x20] sm:$0xff] %v1098_v34  ;;  %s4716_s29 = smov [#allocation12] }
 0x26f   : >>> { %v1221_v41 = vld [vmem:[%s4716_s29] sm:$0xff] }
 0x273   : >>> { %v1177_v35 = vpop.xlane.xlu1 %1176 }
 0x274   : >>> { %v1130_v36 = vpop.xlane.xlu0 %1129 }
 0x275   : >>> { %1132 = vst [vmem:[%s1131_s11] sm:$0xff] %v1130_v36  ;;  %v1161_v37 = vpop.xlane.xlu2 %1160  ;;  %s4718_s11 = smov [#allocation13] }
 0x276   : >>> { %3838 = vst [vmem:[%s1146_s30 + $0x8] sm:$0xff] %v1145_v33  ;;  %s2437_s30 = smov [#allocation23]  ;;  %v1222_v42 = vld [vmem:[%s4718_s11] sm:$0xff] }
 0x277   : >>> { %3839 = vst [vmem:[%s1162_s22 + $0x10] sm:$0xff] %v1161_v37  ;;  %s4722_s22 = smov [#allocation15] }
 0x278   : >>> { %3840 = vst [vmem:[%s1178_s21 + $0x18] sm:$0xff] %v1177_v35  ;;  %s4720_s21 = smov [#allocation14]  ;;  %v1224_v44 = vld [vmem:[%s4722_s22] sm:$0xff] }
 0x279   : >>> { %v1223_v43 = vld [vmem:[%s4720_s21] sm:$0xff] }
 0x27b   : >>> { %v1114_v38 = vpop.xlane.xlu1 %1113 }
 0x27c   : >>> { %v1193_v39 = vpop.xlane.xlu0 %1192  ;;  %3837 = vst [vmem:[%s1115_s15 + $0x28] sm:$0xff] %v1114_v38  ;;  %s1215_s15 = smov [#allocation24] }
 0x27d   : >>> { %v1209_v40 = vpop.xlane.xlu2 %1208  ;;  %3841 = vst [vmem:[%s1194_s16 + $0x20] sm:$0xff] %v1193_v39  ;;  %s2439_s16 = smov [#allocation24] }
 0x27e   : >>> { %3842 = vst [vmem:[%s1210_s17 + $0x28] sm:$0xff] %v1209_v40  ;;  %s1241_s17 = smov [#allocation23] }
 0x283   : >>> { %v1214_v45 = vld [vmem:[%s1213_s27] sm:$0xff]  ;;  %s4748_s27 = smov [#allocation12]  ;;  %v3843_v15 = vld [vmem:[%s1241_s17 + $0x8] sm:$0xff]  ;;  %s4784_s17 = smov [#allocation12] }
 0x284   : >>> { %v1225_v53 = vmul.f32 %v1221_v41, %v1214_v45  ;;  %v1228_v52 = vmul.f32 %v1222_v42, %v1214_v45  ;;  %v1232_v54 = vmul.f32 %v1223_v43, %v1214_v45  ;;  %v1235_v55 = vmul.f32 %v1224_v44, %v1214_v45  ;;  %v2438_v56 = vld [vmem:[%s2437_s30] sm:$0xff]  ;;  %s1244_s30 = smov [#allocation24] }
 0x285   : >>> { %v1216_v57 = vld [vmem:[%s1215_s15] sm:$0xff]  ;;  %v2449_v0 = vmul.f32 %v2445_v46, %v2438_v56  ;;  %v2452_v1 = vmul.f32 %v2446_v47, %v2438_v56  ;;  %v2456_v62 = vmul.f32 %v2447_v48, %v2438_v56  ;;  %v2459_v2 = vmul.f32 %v2448_v49, %v2438_v56  ;;  %s4751_s15 = smov [#allocation13]  ;;  %v3844_v16 = vld [vmem:[%s1244_s30 + $0x8] sm:$0xff]  ;;  %s4787_s30 = smov [#allocation13] }
 0x286   : >>> { %v1226_v59 = vmul.f32 %v1223_v43, %v1216_v57  ;;  %v1229_v58 = vmul.f32 %v1224_v44, %v1216_v57  ;;  %v1231_v60 = vmul.f32 %v1221_v41, %v1216_v57  ;;  %v1234_v61 = vmul.f32 %v1222_v42, %v1216_v57  ;;  %v2440_v3 = vld [vmem:[%s2439_s16] sm:$0xff]  ;;  %s1275_s16 = smov [#allocation23] }
 0x287   : >>> { %v2450_v7 = vmul.f32 %v2447_v48, %v2440_v3  ;;  %v2453_v8 = vmul.f32 %v2448_v49, %v2440_v3  ;;  %v2455_v9 = vmul.f32 %v2445_v46, %v2440_v3  ;;  %v2458_v10 = vmul.f32 %v2446_v47, %v2440_v3 }
 0x288   : >>> { %v1227_v4 = vsub.f32 %v1225_v53, %v1226_v59  ;;  %v1230_v5 = vsub.f32 %v1228_v52, %v1229_v58  ;;  %v1233_v63 = vadd.f32 %v1232_v54, %v1231_v60  ;;  %v1236_v6 = vadd.f32 %v1235_v55, %v1234_v61  ;;  %v3853_v52 = vld [vmem:[%s1275_s16 + $0x10] sm:$0xff]  ;;  %s4820_s16 = smov [#allocation12] }
 0x289   : >>> { %v2451_v11 = vsub.f32 %v2449_v0, %v2450_v7  ;;  %v2454_v12 = vsub.f32 %v2452_v1, %v2453_v8  ;;  %v2457_v13 = vadd.f32 %v2456_v62, %v2455_v9  ;;  %v2460_v14 = vadd.f32 %v2459_v2, %v2458_v10 }
 0x28a   : >>> { %1237 = vst [vmem:[%s4716_s29] sm:$0xff] %v1227_v4  ;;  %s4754_s29 = smov [#allocation14] }
 0x28b   : >>> { %1238 = vst [vmem:[%s4718_s11] sm:$0xff] %v1230_v5  ;;  %s4757_s11 = smov [#allocation15] }
 0x28c   : >>> { %1239 = vst [vmem:[%s4720_s21] sm:$0xff] %v1233_v63  ;;  %s2465_s21 = smov [#allocation23] }
 0x28d   : >>> { %1240 = vst [vmem:[%s4722_s22] sm:$0xff] %v1236_v6  ;;  %s2468_s22 = smov [#allocation24]  ;;  %v4101_v27 = vld [vmem:[%s2465_s21 + $0x8] sm:$0xff]  ;;  %s2502_s21 = smov [#allocation24] }
 0x28e   : >>> { %2461 = vst [vmem:[%s4727_s14] sm:$0xff] %v2451_v11  ;;  %s4762_s14 = smov %s5858_s14  ;;  %v4102_v30 = vld [vmem:[%s2468_s22 + $0x8] sm:$0xff]  ;;  %v4112_v5 = vld [vmem:[%s2502_s21 + $0x10] sm:$0xff]  ;;  %s1309_s22 = smov [#allocation23] }
 0x28f   : >>> { %2462 = vst [vmem:[%s4730_s24] sm:$0xff] %v2454_v12  ;;  %s4766_s24 = smov %s5859_s24  ;;  %s1343_s21 = smov [#allocation23] }
 0x290   : >>> { %2463 = vst [vmem:[%s4735_s25] sm:$0xff] %v2457_v13  ;;  %s4770_s25 = smov %s5860_s25 }
 0x291   : >>> { %v3845_v17 = vld [vmem:[%s4748_s27 + $0x8] sm:$0xff]  ;;  %2464 = vst [vmem:[%s4738_s26] sm:$0xff] %v2460_v14  ;;  %s4774_s26 = smov %s5861_s26 }
 0x292   : >>> { %v3846_v18 = vld [vmem:[%s4751_s15 + $0x8] sm:$0xff]  ;;  %v1259_v19 = vmul.f32 %v3845_v17, %v3843_v15  ;;  %v1265_v20 = vmul.f32 %v3845_v17, %v3844_v16 }
 0x293   : >>> { %v3847_v21 = vld [vmem:[%s4754_s29 + $0x8] sm:$0xff]  ;;  %v1262_v22 = vmul.f32 %v3846_v18, %v3843_v15  ;;  %v1268_v23 = vmul.f32 %v3846_v18, %v3844_v16 }
 0x294   : >>> { %v3848_v24 = vld [vmem:[%s4757_s11 + $0x8] sm:$0xff]  ;;  %v1260_v25 = vmul.f32 %v3847_v21, %v3844_v16  ;;  %v1266_v26 = vmul.f32 %v3847_v21, %v3843_v15 }
 0x295   : >>> { %v1263_v28 = vmul.f32 %v3848_v24, %v3844_v16  ;;  %v1269_v29 = vmul.f32 %v3848_v24, %v3843_v15  ;;  %v4103_v31 = vld [vmem:[%s4762_s14 + $0x8] sm:$0xff] }
 0x296   : >>> { %v1261_v32 = vsub.f32 %v1259_v19, %v1260_v25  ;;  %v1267_v33 = vadd.f32 %v1266_v26, %v1265_v20  ;;  %v4104_v34 = vld [vmem:[%s4766_s24 + $0x8] sm:$0xff]  ;;  %v2483_v35 = vmul.f32 %v4103_v31, %v4101_v27  ;;  %v2489_v36 = vmul.f32 %v4103_v31, %v4102_v30  ;;  %v3863_v25 = vld [vmem:[%s1309_s22 + $0x18] sm:$0xff]  ;;  %s4856_s22 = smov [#allocation12] }
 0x297   : >>> { %v1264_v37 = vsub.f32 %v1262_v22, %v1263_v28  ;;  %v1270_v38 = vadd.f32 %v1269_v29, %v1268_v23  ;;  %v4105_v39 = vld [vmem:[%s4770_s25 + $0x8] sm:$0xff]  ;;  %v2486_v40 = vmul.f32 %v4104_v34, %v4101_v27  ;;  %v2492_v41 = vmul.f32 %v4104_v34, %v4102_v30 }
 0x298   : >>> { %3849 = vst [vmem:[%s4748_s27 + $0x8] sm:$0xff] %v1261_v32  ;;  %v4106_v42 = vld [vmem:[%s4774_s26 + $0x8] sm:$0xff]  ;;  %v2484_v43 = vmul.f32 %v4105_v39, %v4102_v30  ;;  %v2490_v44 = vmul.f32 %v4105_v39, %v4101_v27  ;;  %s1278_s27 = smov [#allocation24] }
 0x299   : >>> { %3850 = vst [vmem:[%s4751_s15 + $0x8] sm:$0xff] %v1264_v37  ;;  %v2487_v45 = vmul.f32 %v4106_v42, %v4102_v30  ;;  %v2493_v46 = vmul.f32 %v4106_v42, %v4101_v27  ;;  %s4790_s15 = smov [#allocation14]  ;;  %v3854_v54 = vld [vmem:[%s1278_s27 + $0x10] sm:$0xff]  ;;  %s4823_s27 = smov [#allocation13] }
 0x29a   : >>> { %3851 = vst [vmem:[%s4754_s29 + $0x8] sm:$0xff] %v1267_v33  ;;  %v2485_v47 = vsub.f32 %v2483_v35, %v2484_v43  ;;  %v2491_v48 = vadd.f32 %v2490_v44, %v2489_v36  ;;  %s4793_s29 = smov [#allocation15] }
 0x29b   : >>> { %3852 = vst [vmem:[%s4757_s11 + $0x8] sm:$0xff] %v1270_v38  ;;  %v2488_v49 = vsub.f32 %v2486_v40, %v2487_v45  ;;  %v2494_v53 = vadd.f32 %v2493_v46, %v2492_v41  ;;  %s2499_s11 = smov [#allocation23] }
 0x29c   : >>> { %4107 = vst [vmem:[%s4762_s14 + $0x8] sm:$0xff] %v2485_v47  ;;  %s4798_s14 = smov %s5858_s14  ;;  %v4111_v2 = vld [vmem:[%s2499_s11 + $0x10] sm:$0xff]  ;;  %s2536_s11 = smov [#allocation24] }
 0x29d   : >>> { %4108 = vst [vmem:[%s4766_s24 + $0x8] sm:$0xff] %v2488_v49  ;;  %s4802_s24 = smov %s5859_s24  ;;  %v4122_v40 = vld [vmem:[%s2536_s11 + $0x18] sm:$0xff]  ;;  %s1377_s11 = smov [#allocation23] }
 0x29e   : >>> { %4109 = vst [vmem:[%s4770_s25 + $0x8] sm:$0xff] %v2491_v48  ;;  %s4806_s25 = smov %s5860_s25 }
 0x29f   : >>> { %v3855_v55 = vld [vmem:[%s4784_s17 + $0x10] sm:$0xff]  ;;  %4110 = vst [vmem:[%s4774_s26 + $0x8] sm:$0xff] %v2494_v53  ;;  %s4810_s26 = smov %s5861_s26 }
 0x2a0   : >>> { %v3856_v56 = vld [vmem:[%s4787_s30 + $0x10] sm:$0xff]  ;;  %v1293_v57 = vmul.f32 %v3855_v55, %v3853_v52  ;;  %v1299_v59 = vmul.f32 %v3855_v55, %v3854_v54 }
 0x2a1   : >>> { %v3857_v58 = vld [vmem:[%s4790_s15 + $0x10] sm:$0xff]  ;;  %v1296_v60 = vmul.f32 %v3856_v56, %v3853_v52  ;;  %v1302_v61 = vmul.f32 %v3856_v56, %v3854_v54 }
 0x2a2   : >>> { %v3858_v0 = vld [vmem:[%s4793_s29 + $0x10] sm:$0xff]  ;;  %v1294_v1 = vmul.f32 %v3857_v58, %v3854_v54  ;;  %v1300_v62 = vmul.f32 %v3857_v58, %v3853_v52 }
 0x2a3   : >>> { %v1297_v3 = vmul.f32 %v3858_v0, %v3854_v54  ;;  %v1303_v4 = vmul.f32 %v3858_v0, %v3853_v52  ;;  %v4113_v63 = vld [vmem:[%s4798_s14 + $0x10] sm:$0xff] }
 0x2a4   : >>> { %v1295_v6 = vsub.f32 %v1293_v57, %v1294_v1  ;;  %v1301_v7 = vadd.f32 %v1300_v62, %v1299_v59  ;;  %v4114_v8 = vld [vmem:[%s4802_s24 + $0x10] sm:$0xff]  ;;  %v2517_v9 = vmul.f32 %v4113_v63, %v4111_v2  ;;  %v2523_v10 = vmul.f32 %v4113_v63, %v4112_v5  ;;  %v3873_v1 = vld [vmem:[%s1343_s21 + $0x20] sm:$0xff]  ;;  %s4892_s21 = smov [#allocation12] }
 0x2a5   : >>> { %v1298_v11 = vsub.f32 %v1296_v60, %v1297_v3  ;;  %v1304_v12 = vadd.f32 %v1303_v4, %v1302_v61  ;;  %v4115_v13 = vld [vmem:[%s4806_s25 + $0x10] sm:$0xff]  ;;  %v2520_v14 = vmul.f32 %v4114_v8, %v4111_v2  ;;  %v2526_v15 = vmul.f32 %v4114_v8, %v4112_v5 }
 0x2a6   : >>> { %3859 = vst [vmem:[%s4784_s17 + $0x10] sm:$0xff] %v1295_v6  ;;  %v4116_v16 = vld [vmem:[%s4810_s26 + $0x10] sm:$0xff]  ;;  %v2518_v17 = vmul.f32 %v4115_v13, %v4112_v5  ;;  %v2524_v18 = vmul.f32 %v4115_v13, %v4111_v2  ;;  %s1312_s17 = smov [#allocation24] }
 0x2a7   : >>> { %3860 = vst [vmem:[%s4787_s30 + $0x10] sm:$0xff] %v1298_v11  ;;  %v2521_v19 = vmul.f32 %v4116_v16, %v4112_v5  ;;  %v2527_v20 = vmul.f32 %v4116_v16, %v4111_v2  ;;  %s4826_s30 = smov [#allocation14]  ;;  %v3864_v26 = vld [vmem:[%s1312_s17 + $0x18] sm:$0xff]  ;;  %s4859_s17 = smov [#allocation13] }
 0x2a8   : >>> { %3861 = vst [vmem:[%s4790_s15 + $0x10] sm:$0xff] %v1301_v7  ;;  %v2519_v21 = vsub.f32 %v2517_v9, %v2518_v17  ;;  %v2525_v22 = vadd.f32 %v2524_v18, %v2523_v10  ;;  %s4829_s15 = smov [#allocation15] }
 0x2a9   : >>> { %3862 = vst [vmem:[%s4793_s29 + $0x10] sm:$0xff] %v1304_v12  ;;  %v2522_v23 = vsub.f32 %v2520_v14, %v2521_v19  ;;  %v2528_v24 = vadd.f32 %v2527_v20, %v2526_v15  ;;  %s2533_s29 = smov [#allocation23] }
 0x2aa   : >>> { %4117 = vst [vmem:[%s4798_s14 + $0x10] sm:$0xff] %v2519_v21  ;;  %s4834_s14 = smov %s5858_s14  ;;  %v4121_v37 = vld [vmem:[%s2533_s29 + $0x18] sm:$0xff]  ;;  %s2570_s29 = smov [#allocation24] }
 0x2ab   : >>> { %4118 = vst [vmem:[%s4802_s24 + $0x10] sm:$0xff] %v2522_v23  ;;  %s4838_s24 = smov %s5859_s24  ;;  %v4132_v14 = vld [vmem:[%s2570_s29 + $0x20] sm:$0xff]  ;;  %s4989_s29 = smov [#allocation21] }
 0x2ac   : >>> { %4119 = vst [vmem:[%s4806_s25 + $0x10] sm:$0xff] %v2525_v22  ;;  %s4842_s25 = smov %s5860_s25 }
 0x2ad   : >>> { %v3865_v27 = vld [vmem:[%s4820_s16 + $0x18] sm:$0xff]  ;;  %4120 = vst [vmem:[%s4810_s26 + $0x10] sm:$0xff] %v2528_v24  ;;  %s4846_s26 = smov %s5861_s26 }
 0x2ae   : >>> { %v3866_v28 = vld [vmem:[%s4823_s27 + $0x18] sm:$0xff]  ;;  %v1327_v29 = vmul.f32 %v3865_v27, %v3863_v25  ;;  %v1333_v30 = vmul.f32 %v3865_v27, %v3864_v26 }
 0x2af   : >>> { %v3867_v31 = vld [vmem:[%s4826_s30 + $0x18] sm:$0xff]  ;;  %v1330_v32 = vmul.f32 %v3866_v28, %v3863_v25  ;;  %v1336_v33 = vmul.f32 %v3866_v28, %v3864_v26 }
 0x2b0   : >>> { %v3868_v34 = vld [vmem:[%s4829_s15 + $0x18] sm:$0xff]  ;;  %v1328_v35 = vmul.f32 %v3867_v31, %v3864_v26  ;;  %v1334_v36 = vmul.f32 %v3867_v31, %v3863_v25 }
 0x2b1   : >>> { %v1331_v38 = vmul.f32 %v3868_v34, %v3864_v26  ;;  %v1337_v39 = vmul.f32 %v3868_v34, %v3863_v25  ;;  %v4123_v41 = vld [vmem:[%s4834_s14 + $0x18] sm:$0xff] }
 0x2b2   : >>> { %v1329_v42 = vsub.f32 %v1327_v29, %v1328_v35  ;;  %v1335_v43 = vadd.f32 %v1334_v36, %v1333_v30  ;;  %v4124_v44 = vld [vmem:[%s4838_s24 + $0x18] sm:$0xff]  ;;  %v2551_v45 = vmul.f32 %v4123_v41, %v4121_v37  ;;  %v2557_v46 = vmul.f32 %v4123_v41, %v4122_v40  ;;  %v3883_v35 = vld [vmem:[%s1377_s11 + $0x28] sm:$0xff]  ;;  %s1413_s11 = smov [#allocation22] }
 0x2b3   : >>> { %v1332_v47 = vsub.f32 %v1330_v32, %v1331_v38  ;;  %v1338_v48 = vadd.f32 %v1337_v39, %v1336_v33  ;;  %v4125_v49 = vld [vmem:[%s4842_s25 + $0x18] sm:$0xff]  ;;  %v2554_v53 = vmul.f32 %v4124_v44, %v4121_v37  ;;  %v2560_v52 = vmul.f32 %v4124_v44, %v4122_v40 }
 0x2b4   : >>> { %3869 = vst [vmem:[%s4820_s16 + $0x18] sm:$0xff] %v1329_v42  ;;  %v4126_v54 = vld [vmem:[%s4846_s26 + $0x18] sm:$0xff]  ;;  %v2552_v55 = vmul.f32 %v4125_v49, %v4122_v40  ;;  %v2558_v56 = vmul.f32 %v4125_v49, %v4121_v37  ;;  %s1346_s16 = smov [#allocation24] }
 0x2b5   : >>> { %3870 = vst [vmem:[%s4823_s27 + $0x18] sm:$0xff] %v1332_v47  ;;  %v2555_v57 = vmul.f32 %v4126_v54, %v4122_v40  ;;  %v2561_v59 = vmul.f32 %v4126_v54, %v4121_v37  ;;  %s4862_s27 = smov [#allocation14]  ;;  %v3874_v62 = vld [vmem:[%s1346_s16 + $0x20] sm:$0xff]  ;;  %s4895_s16 = smov [#allocation13] }
 0x2b6   : >>> { %3871 = vst [vmem:[%s4826_s30 + $0x18] sm:$0xff] %v1335_v43  ;;  %v2553_v58 = vsub.f32 %v2551_v45, %v2552_v55  ;;  %v2559_v60 = vadd.f32 %v2558_v56, %v2557_v46  ;;  %s4865_s30 = smov [#allocation15] }
 0x2b7   : >>> { %3872 = vst [vmem:[%s4829_s15 + $0x18] sm:$0xff] %v1338_v48  ;;  %v2556_v61 = vsub.f32 %v2554_v53, %v2555_v57  ;;  %v2562_v0 = vadd.f32 %v2561_v59, %v2560_v52  ;;  %s2567_s15 = smov [#allocation23] }
 0x2b8   : >>> { %4127 = vst [vmem:[%s4834_s14 + $0x18] sm:$0xff] %v2553_v58  ;;  %s4870_s14 = smov %s5858_s14  ;;  %v4131_v11 = vld [vmem:[%s2567_s15 + $0x20] sm:$0xff]  ;;  %s2604_s15 = smov [#allocation24] }
 0x2b9   : >>> { %4128 = vst [vmem:[%s4838_s24 + $0x18] sm:$0xff] %v2556_v61  ;;  %s4874_s24 = smov %s5859_s24  ;;  %v4142_v53 = vld [vmem:[%s2604_s15 + $0x28] sm:$0xff]  ;;  %s1443_s15 = smov [#allocation14] }
 0x2ba   : >>> { %4129 = vst [vmem:[%s4842_s25 + $0x18] sm:$0xff] %v2559_v60  ;;  %s4878_s25 = smov %s5860_s25 }
 0x2bb   : >>> { %v3875_v2 = vld [vmem:[%s4856_s22 + $0x20] sm:$0xff]  ;;  %4130 = vst [vmem:[%s4846_s26 + $0x18] sm:$0xff] %v2562_v0  ;;  %s4882_s26 = smov %s5861_s26 }
 0x2bc   : >>> { %v3876_v3 = vld [vmem:[%s4859_s17 + $0x20] sm:$0xff]  ;;  %v1361_v4 = vmul.f32 %v3875_v2, %v3873_v1  ;;  %v1367_v5 = vmul.f32 %v3875_v2, %v3874_v62 }
 0x2bd   : >>> { %v3877_v63 = vld [vmem:[%s4862_s27 + $0x20] sm:$0xff]  ;;  %v1364_v6 = vmul.f32 %v3876_v3, %v3873_v1  ;;  %v1370_v7 = vmul.f32 %v3876_v3, %v3874_v62 }
 0x2be   : >>> { %v3878_v8 = vld [vmem:[%s4865_s30 + $0x20] sm:$0xff]  ;;  %v1362_v9 = vmul.f32 %v3877_v63, %v3874_v62  ;;  %v1368_v10 = vmul.f32 %v3877_v63, %v3873_v1 }
 0x2bf   : >>> { %v1365_v12 = vmul.f32 %v3878_v8, %v3874_v62  ;;  %v1371_v13 = vmul.f32 %v3878_v8, %v3873_v1  ;;  %v4133_v15 = vld [vmem:[%s4870_s14 + $0x20] sm:$0xff] }
 0x2c0   : >>> { %v1363_v16 = vsub.f32 %v1361_v4, %v1362_v9  ;;  %v1369_v17 = vadd.f32 %v1368_v10, %v1367_v5  ;;  %v4134_v18 = vld [vmem:[%s4874_s24 + $0x20] sm:$0xff]  ;;  %v2585_v19 = vmul.f32 %v4133_v15, %v4131_v11  ;;  %v2591_v20 = vmul.f32 %v4133_v15, %v4132_v14 }
 0x2c1   : >>> { %v1366_v21 = vsub.f32 %v1364_v6, %v1365_v12  ;;  %v1372_v22 = vadd.f32 %v1371_v13, %v1370_v7  ;;  %v4135_v23 = vld [vmem:[%s4878_s25 + $0x20] sm:$0xff]  ;;  %v2588_v24 = vmul.f32 %v4134_v18, %v4131_v11  ;;  %v2594_v25 = vmul.f32 %v4134_v18, %v4132_v14 }
 0x2c2   : >>> { %3879 = vst [vmem:[%s4856_s22 + $0x20] sm:$0xff] %v1363_v16  ;;  %v4136_v26 = vld [vmem:[%s4882_s26 + $0x20] sm:$0xff]  ;;  %v2586_v27 = vmul.f32 %v4135_v23, %v4132_v14  ;;  %v2592_v28 = vmul.f32 %v4135_v23, %v4131_v11  ;;  %s1380_s22 = smov [#allocation24] }
 0x2c3   : >>> { %3880 = vst [vmem:[%s4859_s17 + $0x20] sm:$0xff] %v1366_v21  ;;  %v2589_v29 = vmul.f32 %v4136_v26, %v4132_v14  ;;  %v2595_v30 = vmul.f32 %v4136_v26, %v4131_v11  ;;  %s4898_s17 = smov [#allocation14]  ;;  %v3884_v36 = vld [vmem:[%s1380_s22 + $0x28] sm:$0xff]  ;;  %s5013_s22 = smov [#allocation13] }
 0x2c4   : >>> { %3881 = vst [vmem:[%s4862_s27 + $0x20] sm:$0xff] %v1369_v17  ;;  %v2587_v31 = vsub.f32 %v2585_v19, %v2586_v27  ;;  %v2593_v32 = vadd.f32 %v2592_v28, %v2591_v20  ;;  %s4901_s27 = smov [#allocation15] }
 0x2c5   : >>> { %3882 = vst [vmem:[%s4865_s30 + $0x20] sm:$0xff] %v1372_v22  ;;  %v2590_v33 = vsub.f32 %v2588_v24, %v2589_v29  ;;  %v2596_v34 = vadd.f32 %v2595_v30, %v2594_v25  ;;  %s2601_s30 = smov [#allocation23] }
 0x2c6   : >>> { %4137 = vst [vmem:[%s4870_s14 + $0x20] sm:$0xff] %v2587_v31  ;;  %s4906_s14 = smov %s5858_s14  ;;  %v4141_v47 = vld [vmem:[%s2601_s30 + $0x28] sm:$0xff]  ;;  %s1441_s30 = smov [#allocation13] }
 0x2c7   : >>> { %4138 = vst [vmem:[%s4874_s24 + $0x20] sm:$0xff] %v2590_v33  ;;  %s4910_s24 = smov %s5859_s24 }
 0x2c8   : >>> { %4139 = vst [vmem:[%s4878_s25 + $0x20] sm:$0xff] %v2593_v32  ;;  %s4914_s25 = smov %s5860_s25 }
 0x2c9   : >>> { %v3885_v37 = vld [vmem:[%s4892_s21 + $0x28] sm:$0xff]  ;;  %4140 = vst [vmem:[%s4882_s26 + $0x20] sm:$0xff] %v2596_v34  ;;  %s4918_s26 = smov %s5861_s26 }
 0x2ca   : >>> { %v3886_v38 = vld [vmem:[%s4895_s16 + $0x28] sm:$0xff]  ;;  %v1395_v39 = vmul.f32 %v3885_v37, %v3883_v35  ;;  %v1401_v40 = vmul.f32 %v3885_v37, %v3884_v36 }
 0x2cb   : >>> { %v3887_v41 = vld [vmem:[%s4898_s17 + $0x28] sm:$0xff]  ;;  %v1398_v42 = vmul.f32 %v3886_v38, %v3883_v35  ;;  %v1404_v43 = vmul.f32 %v3886_v38, %v3884_v36 }
 0x2cc   : >>> { %v3888_v44 = vld [vmem:[%s4901_s27 + $0x28] sm:$0xff]  ;;  %v1396_v45 = vmul.f32 %v3887_v41, %v3884_v36  ;;  %v1402_v46 = vmul.f32 %v3887_v41, %v3883_v35 }
 0x2cd   : >>> { %v1399_v48 = vmul.f32 %v3888_v44, %v3884_v36  ;;  %v1405_v49 = vmul.f32 %v3888_v44, %v3883_v35  ;;  %v4143_v52 = vld [vmem:[%s4906_s14 + $0x28] sm:$0xff] }
 0x2ce   : >>> { %v1397_v54 = vsub.f32 %v1395_v39, %v1396_v45  ;;  %v1403_v55 = vadd.f32 %v1402_v46, %v1401_v40  ;;  %v4144_v56 = vld [vmem:[%s4910_s24 + $0x28] sm:$0xff]  ;;  %v2619_v57 = vmul.f32 %v4143_v52, %v4141_v47  ;;  %v2625_v59 = vmul.f32 %v4143_v52, %v4142_v53 }
 0x2cf   : >>> { %v1400_v58 = vsub.f32 %v1398_v42, %v1399_v48  ;;  %v1406_v60 = vadd.f32 %v1405_v49, %v1404_v43  ;;  %v4145_v61 = vld [vmem:[%s4914_s25 + $0x28] sm:$0xff]  ;;  %v2622_v0 = vmul.f32 %v4144_v56, %v4141_v47  ;;  %v2628_v1 = vmul.f32 %v4144_v56, %v4142_v53 }
 0x2d0   : >>> { %v4146_v62 = vld [vmem:[%s4918_s26 + $0x28] sm:$0xff]  ;;  %v2620_v2 = vmul.f32 %v4145_v61, %v4142_v53  ;;  %v2626_v3 = vmul.f32 %v4145_v61, %v4141_v47  ;;  %3889 = vst [vmem:[%s4892_s21 + $0x28] sm:$0xff] %v1397_v54  ;;  %s5006_s21 = smov [#allocation12]  ;;  %v5034_v61 = vld [vmem:[%s1413_s11] ss:$0 sm:$0xff]  ;;  %s1467_s11 = smov [#allocation12] }
 0x2d1   : >>> { %v2623_v4 = vmul.f32 %v4146_v62, %v4142_v53  ;;  %v2629_v5 = vmul.f32 %v4146_v62, %v4141_v47  ;;  %3890 = vst [vmem:[%s4895_s16 + $0x28] sm:$0xff] %v1400_v58  ;;  %s5020_s16 = smov [#allocation14] }
 0x2d2   : >>> { %v2621_v63 = vsub.f32 %v2619_v57, %v2620_v2  ;;  %v2627_v6 = vadd.f32 %v2626_v3, %v2625_v59  ;;  %3891 = vst [vmem:[%s4898_s17 + $0x28] sm:$0xff] %v1403_v55  ;;  %s5047_s17 = smov [#allocation15] }
 0x2d3   : >>> { %v2624_v7 = vsub.f32 %v2622_v0, %v2623_v4  ;;  %v2630_v8 = vadd.f32 %v2629_v5, %v2628_v1  ;;  %3892 = vst [vmem:[%s4901_s27 + $0x28] sm:$0xff] %v1406_v60  ;;  %v5032_v60 = vld [vmem:[%s4989_s29] ss:$0 sm:$0xff]  ;;  %s1439_s27 = smov [#allocation12]  ;;  %s1445_s29 = smov [#allocation15] }
 0x2d4   : >>> { %4147 = vst [vmem:[%s4906_s14 + $0x28] sm:$0xff] %v2621_v63  ;;  %s4933_s14 = smov %s5858_s14 }
 0x2d5   : >>> { %4148 = vst [vmem:[%s4910_s24 + $0x28] sm:$0xff] %v2624_v7  ;;  %s4982_s24 = smov %s5859_s24 }
 0x2d6   : >>> { %4149 = vst [vmem:[%s4914_s25 + $0x28] sm:$0xff] %v2627_v6  ;;  %s4945_s25 = smov %s5860_s25 }
 0x2d7   : >>> { %4150 = vst [vmem:[%s4918_s26 + $0x28] sm:$0xff] %v2630_v8  ;;  %s5023_s26 = smov %s5861_s26  ;;  %v1419_v5 = vld [vmem:[%s5006_s21] sm:$0xff] }
 0x2d8   : >>> { %v1420_v8 = vld [vmem:[%s5013_s22] sm:$0xff] }
 0x2db   : >>> { %v2637_v9 = vld [vmem:[%s4933_s14] ss:$0 sm:$0xff]  ;;  %v4152_v11 = vld [vmem:[%s4933_s14 + $0x7] ss:$0 sm:$0xff]  ;;  %v4153_v13 = vld [vmem:[%s4933_s14 + $0x7] sm:$0xfe] }
 0x2dc   : >>> { %v4151_v10 = vld [vmem:[%s4933_s14 - $0x1] sm:$0xfe]  ;;  %v4154_v14 = vld [vmem:[%s4933_s14 + $0xf] ss:$0 sm:$0xff]  ;;  %v4156_v15 = vld [vmem:[%s4933_s14 + $0xf] sm:$0xfe]  ;;  %v2655_v16 = vsel %vm2197_vm9, %v4152_v11, %v4153_v13 }
 0x2dd   : >>> { %v2644_v12 = vsel %vm2197_vm9, %v2637_v9, %v4151_v10  ;;  %v2666_v17 = vsel %vm2197_vm9, %v4154_v14, %v4156_v15  ;;  %v4157_v18 = vld [vmem:[%s4933_s14 + $0x17] ss:$0 sm:$0xff]  ;;  %v4159_v19 = vld [vmem:[%s4933_s14 + $0x17] sm:$0xfe]  ;;  %v4160_v20 = vld [vmem:[%s4933_s14 + $0x1f] ss:$0 sm:$0xff] }
 0x2de   : >>> { %2647 = vst [vmem:[%s4933_s14] sm:$0xff] %v2644_v12  ;;  %v2677_v21 = vsel %vm2197_vm9, %v4157_v18, %v4159_v19  ;;  %v4162_v22 = vld [vmem:[%s4933_s14 + $0x1f] sm:$0xfe]  ;;  %v4163_v23 = vld [vmem:[%s4933_s14 + $0x27] ss:$0 sm:$0xff]  ;;  %v4165_v25 = vld [vmem:[%s4933_s14 + $0x27] sm:$0xfe] }
 0x2df   : >>> { %4155 = vst [vmem:[%s4933_s14 + $0x8] sm:$0xff] %v2655_v16  ;;  %v2688_v24 = vsel %vm2197_vm9, %v4160_v20, %v4162_v22  ;;  %v4166_v26 = vld [vmem:[%s4933_s14 + $0x2f] ss:$0 sm:$0xff]  ;;  %v2699_v27 = vsel %vm2197_vm9, %v4163_v23, %v4165_v25  ;;  %v2703_v28 = vld [vmem:[%s4945_s25] ss:$0 sm:$0xff]  ;;  %v1423_v20 = vmul.f32 %v1419_v5, %v5032_v60  ;;  %v1426_v25 = vmul.f32 %v1419_v5, %v5034_v61 }
 0x2e0   : >>> { %4158 = vst [vmem:[%s4933_s14 + $0x10] sm:$0xff] %v2666_v17  ;;  %v4169_v29 = vld [vmem:[%s4945_s25 + $0x29] sm:$0x7f]  ;;  %v4170_v31 = vld [vmem:[%s4945_s25 + $0x28] ss:$0 sm:$0xff]  ;;  %v1421_v12 = vld [vmem:[%s5020_s16] sm:$0xff] }
 0x2e1   : >>> { %4161 = vst [vmem:[%s4933_s14 + $0x18] sm:$0xff] %v2677_v21  ;;  %v2712_v30 = vsel %vm2265_vm10, %v4166_v26, %v4169_v29  ;;  %v4172_v32 = vld [vmem:[%s4945_s25 + $0x21] sm:$0x7f]  ;;  %v4173_v34 = vld [vmem:[%s4945_s25 + $0x20] ss:$0 sm:$0xff]  ;;  %v1424_v21 = vmul.f32 %v1420_v8, %v5034_v61  ;;  %v1427_v26 = vmul.f32 %v1420_v8, %v5032_v60  ;;  %v1429_v29 = vmul.f32 %v1421_v12, %v5032_v60 }
 0x2e2   : >>> { %4164 = vst [vmem:[%s4933_s14 + $0x20] sm:$0xff] %v2688_v24  ;;  %v2721_v33 = vsel %vm2265_vm10, %v4170_v31, %v4172_v32  ;;  %v4175_v35 = vld [vmem:[%s4945_s25 + $0x19] sm:$0x7f]  ;;  %v4176_v37 = vld [vmem:[%s4945_s25 + $0x18] ss:$0 sm:$0xff]  ;;  %v1422_v16 = vld [vmem:[%s5047_s17] sm:$0xff]  ;;  %v1432_v32 = vmul.f32 %v1421_v12, %v5034_v61 }
 0x2e3   : >>> { %4167 = vst [vmem:[%s4933_s14 + $0x28] sm:$0xff] %v2699_v27  ;;  %v2730_v36 = vsel %vm2265_vm10, %v4173_v34, %v4175_v35  ;;  %v4178_v38 = vld [vmem:[%s4945_s25 + $0x11] sm:$0x7f]  ;;  %v4179_v40 = vld [vmem:[%s4945_s25 + $0x10] ss:$0 sm:$0xff]  ;;  %v1425_v35 = vsub.f32 %v1423_v20, %v1424_v21 }
 0x2e4   : >>> { %4168 = vst [vmem:[%s4933_s14 + $0x1] sm:$0x1] %v2703_v28  ;;  %v2739_v39 = vsel %vm2265_vm10, %v4176_v37, %v4178_v38  ;;  %v4181_v41 = vld [vmem:[%s4945_s25 + $0x9] sm:$0x7f]  ;;  %v4182_v43 = vld [vmem:[%s4945_s25 + $0x8] ss:$0 sm:$0xff] }
 0x2e5   : >>> { %4171 = vst [vmem:[%s4945_s25 + $0x28] sm:$0xff] %v2712_v30  ;;  %v2748_v42 = vsel %vm2265_vm10, %v4179_v40, %v4181_v41  ;;  %v4184_v44 = vld [vmem:[%s4945_s25 + $0x1] sm:$0x7f]  ;;  %v2761_v46 = vld [vmem:[%s4982_s24] ss:$0 sm:$0xff]  ;;  %v1430_v30 = vmul.f32 %v1422_v16, %v5034_v61  ;;  %s5331_s14 = smov [#allocation15] }
 0x2e6   : >>> { %4174 = vst [vmem:[%s4945_s25 + $0x20] sm:$0xff] %v2721_v33  ;;  %v2756_v45 = vsel %vm2265_vm10, %v4182_v43, %v4184_v44  ;;  %v4185_v47 = vld [vmem:[%s4982_s24 - $0x1] sm:$0xfe]  ;;  %v4186_v49 = vld [vmem:[%s4982_s24 + $0x7] ss:$0 sm:$0xff]  ;;  %v1433_v33 = vmul.f32 %v1422_v16, %v5032_v60 }
 0x2e7   : >>> { %4177 = vst [vmem:[%s4945_s25 + $0x18] sm:$0xff] %v2730_v36  ;;  %v2768_v48 = vsel %vm2197_vm9, %v2761_v46, %v4185_v47  ;;  %v4187_v53 = vld [vmem:[%s4982_s24 + $0x7] sm:$0xfe]  ;;  %v4188_v54 = vld [vmem:[%s4982_s24 + $0xf] ss:$0 sm:$0xff]  ;;  %v1428_v36 = vadd.f32 %v1427_v26, %v1426_v25  ;;  %v1431_v37 = vsub.f32 %v1429_v29, %v1430_v30 }
 0x2e8   : >>> { %4180 = vst [vmem:[%s4945_s25 + $0x10] sm:$0xff] %v2739_v39  ;;  %v2779_v52 = vsel %vm2197_vm9, %v4186_v49, %v4187_v53  ;;  %v4190_v55 = vld [vmem:[%s4982_s24 + $0xf] sm:$0xfe]  ;;  %v4191_v57 = vld [vmem:[%s4982_s24 + $0x17] ss:$0 sm:$0xff]  ;;  %v1434_v38 = vadd.f32 %v1433_v33, %v1432_v32 }
 0x2e9   : >>> { %4183 = vst [vmem:[%s4945_s25 + $0x8] sm:$0xff] %v2748_v42  ;;  %v2790_v56 = vsel %vm2197_vm9, %v4188_v54, %v4190_v55  ;;  %v4193_v59 = vld [vmem:[%s4982_s24 + $0x17] sm:$0xfe]  ;;  %v4194_v58 = vld [vmem:[%s4982_s24 + $0x1f] ss:$0 sm:$0xff] }
 0x2ea   : >>> { %2758 = vst [vmem:[%s4945_s25] sm:$0xff] %v2756_v45  ;;  %v2801_v0 = vsel %vm2197_vm9, %v4191_v57, %v4193_v59  ;;  %v4196_v1 = vld [vmem:[%s4982_s24 + $0x1f] sm:$0xfe]  ;;  %v4197_v62 = vld [vmem:[%s4982_s24 + $0x27] ss:$0 sm:$0xff]  ;;  %v4199_v2 = vld [vmem:[%s4982_s24 + $0x27] sm:$0xfe] }
 0x2eb   : >>> { %2771 = vst [vmem:[%s4982_s24] sm:$0xff] %v2768_v48  ;;  %v2812_v3 = vsel %vm2197_vm9, %v4194_v58, %v4196_v1  ;;  %v4200_v4 = vld [vmem:[%s4982_s24 + $0x2f] ss:$0 sm:$0xff]  ;;  %v2823_v63 = vsel %vm2197_vm9, %v4197_v62, %v4199_v2  ;;  %v4204_v7 = vld [vmem:[%s5023_s26 + $0x28] ss:$0 sm:$0xff]  ;;  %v2827_v9 = vld [vmem:[%s5023_s26] ss:$0 sm:$0xff] }
 0x2ec   : >>> { %4189 = vst [vmem:[%s4982_s24 + $0x8] sm:$0xff] %v2779_v52  ;;  %v4203_v6 = vld [vmem:[%s5023_s26 + $0x29] sm:$0x7f]  ;;  %v4206_v10 = vld [vmem:[%s5023_s26 + $0x21] sm:$0x7f]  ;;  %s5317_s25 = smov [#allocation14] }
 0x2ed   : >>> { %4192 = vst [vmem:[%s4982_s24 + $0x10] sm:$0xff] %v2790_v56  ;;  %v4207_v11 = vld [vmem:[%s5023_s26 + $0x20] ss:$0 sm:$0xff]  ;;  %v2836_v13 = vsel %vm2265_vm10, %v4200_v4, %v4203_v6  ;;  %v4209_v14 = vld [vmem:[%s5023_s26 + $0x19] sm:$0x7f]  ;;  %v2845_v17 = vsel %vm2265_vm10, %v4204_v7, %v4206_v10 }
 0x2ee   : >>> { %4195 = vst [vmem:[%s4982_s24 + $0x18] sm:$0xff] %v2801_v0  ;;  %v4210_v15 = vld [vmem:[%s5023_s26 + $0x18] ss:$0 sm:$0xff]  ;;  %v4212_v18 = vld [vmem:[%s5023_s26 + $0x11] sm:$0x7f]  ;;  %v2854_v22 = vsel %vm2265_vm10, %v4207_v11, %v4209_v14 }
 0x2ef   : >>> { %4198 = vst [vmem:[%s4982_s24 + $0x20] sm:$0xff] %v2812_v3  ;;  %v4213_v19 = vld [vmem:[%s5023_s26 + $0x10] ss:$0 sm:$0xff]  ;;  %v4215_v23 = vld [vmem:[%s5023_s26 + $0x9] sm:$0x7f]  ;;  %v2863_v27 = vsel %vm2265_vm10, %v4210_v15, %v4212_v18 }
 0x2f0   : >>> { %4201 = vst [vmem:[%s4982_s24 + $0x28] sm:$0xff] %v2823_v63  ;;  %v4216_v24 = vld [vmem:[%s5023_s26 + $0x8] ss:$0 sm:$0xff]  ;;  %v4218_v28 = vld [vmem:[%s5023_s26 + $0x1] sm:$0x7f]  ;;  %v2872_v31 = vsel %vm2265_vm10, %v4213_v19, %v4215_v23 }
 0x2f1   : >>> { %4202 = vst [vmem:[%s4982_s24 + $0x1] sm:$0x1] %v2827_v9  ;;  %v2880_v34 = vsel %vm2265_vm10, %v4216_v24, %v4218_v28  ;;  %s5329_s24 = smov [#allocation14] }
 0x2f2   : >>> { %4205 = vst [vmem:[%s5023_s26 + $0x28] sm:$0xff] %v2836_v13 }
 0x2f3   : >>> { %4208 = vst [vmem:[%s5023_s26 + $0x20] sm:$0xff] %v2845_v17 }
 0x2f4   : >>> { %4211 = vst [vmem:[%s5023_s26 + $0x18] sm:$0xff] %v2854_v22 }
 0x2f5   : >>> { %4214 = vst [vmem:[%s5023_s26 + $0x10] sm:$0xff] %v2863_v27 }
 0x2f6   : >>> { %4217 = vst [vmem:[%s5023_s26 + $0x8] sm:$0xff] %v2872_v31 }
 0x2f7   : >>> { %2882 = vst [vmem:[%s5023_s26] sm:$0xff] %v2880_v34  ;;  %s5305_s26 = smov [#allocation14] }
 0x2f8   : >>> { %1435 = vst [vmem:[%s5006_s21] sm:$0xff] %v1425_v35  ;;  %s1469_s21 = smov [#allocation13] }
 0x2f9   : >>> { %1436 = vst [vmem:[%s5013_s22] sm:$0xff] %v1428_v36  ;;  %s1471_s22 = smov [#allocation14] }
 0x2fa   : >>> { %1437 = vst [vmem:[%s5020_s16] sm:$0xff] %v1431_v37  ;;  %s1473_s16 = smov [#allocation15] }
 0x2fb   : >>> { %1438 = vst [vmem:[%s5047_s17] sm:$0xff] %v1434_v38  ;;  %s1495_s17 = smov [#allocation12] }
 0x2ff   : >>> { %v3893_v39 = vld [vmem:[%s1439_s27 + $0x8] sm:$0xff] }
 0x300   : >>> { %v3894_v40 = vld [vmem:[%s1441_s30 + $0x8] sm:$0xff]  ;;  %v1451_v41 = vmul.f32 %v3893_v39, %v5032_v60  ;;  %v1454_v42 = vmul.f32 %v3893_v39, %v5034_v61 }
 0x301   : >>> { %v1452_v43 = vmul.f32 %v3894_v40, %v5034_v61  ;;  %v1455_v44 = vmul.f32 %v3894_v40, %v5032_v60  ;;  %v3895_v45 = vld [vmem:[%s1443_s15 + $0x8] sm:$0xff] }
 0x302   : >>> { %v3896_v46 = vld [vmem:[%s1445_s29 + $0x8] sm:$0xff]  ;;  %v1457_v47 = vmul.f32 %v3895_v45, %v5032_v60  ;;  %v1460_v48 = vmul.f32 %v3895_v45, %v5034_v61 }
 0x303   : >>> { %v1453_v49 = vsub.f32 %v1451_v41, %v1452_v43  ;;  %v1456_v53 = vadd.f32 %v1455_v44, %v1454_v42  ;;  %v1458_v52 = vmul.f32 %v3896_v46, %v5034_v61  ;;  %v1461_v54 = vmul.f32 %v3896_v46, %v5032_v60 }
 0x305   : >>> { %3897 = vst [vmem:[%s1439_s27 + $0x8] sm:$0xff] %v1453_v49  ;;  %v1459_v55 = vsub.f32 %v1457_v47, %v1458_v52  ;;  %v1462_v56 = vadd.f32 %v1461_v54, %v1460_v48  ;;  %s1497_s27 = smov [#allocation13] }
 0x306   : >>> { %3898 = vst [vmem:[%s1441_s30 + $0x8] sm:$0xff] %v1456_v53  ;;  %s1499_s30 = smov [#allocation14] }
 0x307   : >>> { %3899 = vst [vmem:[%s1443_s15 + $0x8] sm:$0xff] %v1459_v55  ;;  %s1501_s15 = smov [#allocation15] }
 0x308   : >>> { %3900 = vst [vmem:[%s1445_s29 + $0x8] sm:$0xff] %v1462_v56  ;;  %s1523_s29 = smov [#allocation12] }
 0x30c   : >>> { %v3901_v57 = vld [vmem:[%s1467_s11 + $0x10] sm:$0xff] }
 0x30d   : >>> { %v3902_v59 = vld [vmem:[%s1469_s21 + $0x10] sm:$0xff]  ;;  %v1479_v58 = vmul.f32 %v3901_v57, %v5032_v60  ;;  %v1482_v0 = vmul.f32 %v3901_v57, %v5034_v61 }
 0x30e   : >>> { %v1480_v1 = vmul.f32 %v3902_v59, %v5034_v61  ;;  %v1483_v62 = vmul.f32 %v3902_v59, %v5032_v60  ;;  %v3903_v2 = vld [vmem:[%s1471_s22 + $0x10] sm:$0xff] }
 0x30f   : >>> { %v3904_v3 = vld [vmem:[%s1473_s16 + $0x10] sm:$0xff]  ;;  %v1485_v4 = vmul.f32 %v3903_v2, %v5032_v60  ;;  %v1488_v5 = vmul.f32 %v3903_v2, %v5034_v61  ;;  %v1664_v2 = vadd.s32 24, %v1640_v50 }
 0x310   : >>> { %v1481_v63 = vsub.f32 %v1479_v58, %v1480_v1  ;;  %v1484_v6 = vadd.f32 %v1483_v62, %v1482_v0  ;;  %v1486_v7 = vmul.f32 %v3904_v3, %v5034_v61  ;;  %v1489_v8 = vmul.f32 %v3904_v3, %v5032_v60 }
 0x311   : >>> { %v1650_v1 = vadd.s32 8, %v1640_v50  ;;  %v1657_v62 = vadd.s32 16, %v1640_v50  ;;  %v1671_v3 = vadd.s32 32, %v1640_v50  ;;  %v1586_v50 = vmov %v4508_v50 }
 0x312   : >>> { %3905 = vst [vmem:[%s1467_s11 + $0x10] sm:$0xff] %v1481_v63  ;;  %v1487_v9 = vsub.f32 %v1485_v4, %v1486_v7  ;;  %v1490_v10 = vadd.f32 %v1489_v8, %v1488_v5  ;;  %s1525_s11 = smov [#allocation13]  ;;  %vm1665_vm15 = vcmp.eq.s32.totalorder %v1664_v2, %v1637_v51  ;;  %v1614_v7 = vadd.s32 24, %v1586_v50 }
 0x313   : >>> { %3906 = vst [vmem:[%s1469_s21 + $0x10] sm:$0xff] %v1484_v6  ;;  %s1527_s21 = smov [#allocation14]  ;;  %vm1651_vm13 = vcmp.eq.s32.totalorder %v1650_v1, %v1637_v51  ;;  %vm1658_vm14 = vcmp.eq.s32.totalorder %v1657_v62, %v1637_v51  ;;  %v1583_v51 = vmov %v4516_v51  ;;  %vm1672_vm0 = vcmp.eq.s32.totalorder %v1671_v3, %v1637_v51 }
 0x314   : >>> { %3907 = vst [vmem:[%s1471_s22 + $0x10] sm:$0xff] %v1487_v9  ;;  %s1529_s22 = smov [#allocation15]  ;;  %v1606_v6 = vadd.s32 16, %v1586_v50  ;;  %vm1591_vm2 = vcmp.eq.s32.totalorder %v1586_v50, %v1583_v51  ;;  %vm1615_vm5 = vcmp.eq.s32.totalorder %v1614_v7, %v1583_v51 }
 0x315   : >>> { %3908 = vst [vmem:[%s1473_s16 + $0x10] sm:$0xff] %v1490_v10  ;;  %s1551_s16 = smov [#allocation12] }
 0x316   : >>> { %vm1607_vm4 = vcmp.eq.s32.totalorder %v1606_v6, %v1583_v51 }
 0x319   : >>> { %v3909_v11 = vld [vmem:[%s1495_s17 + $0x18] sm:$0xff] }
 0x31a   : >>> { %v3910_v12 = vld [vmem:[%s1497_s27 + $0x18] sm:$0xff]  ;;  %v1507_v13 = vmul.f32 %v3909_v11, %v5032_v60  ;;  %v1510_v14 = vmul.f32 %v3909_v11, %v5034_v61 }
 0x31b   : >>> { %v1508_v15 = vmul.f32 %v3910_v12, %v5034_v61  ;;  %v1511_v16 = vmul.f32 %v3910_v12, %v5032_v60  ;;  %v3911_v17 = vld [vmem:[%s1499_s30 + $0x18] sm:$0xff] }
 0x31c   : >>> { %v3912_v18 = vld [vmem:[%s1501_s15 + $0x18] sm:$0xff]  ;;  %v1513_v19 = vmul.f32 %v3911_v17, %v5032_v60  ;;  %v1516_v20 = vmul.f32 %v3911_v17, %v5034_v61  ;;  %v1622_v17 = vadd.s32 32, %v1586_v50 }
 0x31d   : >>> { %v1509_v21 = vsub.f32 %v1507_v13, %v1508_v15  ;;  %v1512_v22 = vadd.f32 %v1511_v16, %v1510_v14  ;;  %v1514_v23 = vmul.f32 %v3912_v18, %v5034_v61  ;;  %v1517_v24 = vmul.f32 %v3912_v18, %v5032_v60 }
 0x31e   : >>> { %vm1623_vm6 = vcmp.eq.s32.totalorder %v1622_v17, %v1583_v51 }
 0x31f   : >>> { %3913 = vst [vmem:[%s1495_s17 + $0x18] sm:$0xff] %v1509_v21  ;;  %v1515_v25 = vsub.f32 %v1513_v19, %v1514_v23  ;;  %v1518_v26 = vadd.f32 %v1517_v24, %v1516_v20  ;;  %s1553_s17 = smov [#allocation13]  ;;  %v1630_v20 = vadd.s32 40, %v1586_v50 }
 0x320   : >>> { %3914 = vst [vmem:[%s1497_s27 + $0x18] sm:$0xff] %v1512_v22  ;;  %s1555_s27 = smov [#allocation14] }
 0x321   : >>> { %3915 = vst [vmem:[%s1499_s30 + $0x18] sm:$0xff] %v1515_v25  ;;  %s1557_s30 = smov [#allocation15]  ;;  %vm1631_vm7 = vcmp.eq.s32.totalorder %v1630_v20, %v1583_v51 }
 0x322   : >>> { %3916 = vst [vmem:[%s1501_s15 + $0x18] sm:$0xff] %v1518_v26  ;;  %s5144_s15 = smov [#allocation13] }
 0x326   : >>> { %v3917_v27 = vld [vmem:[%s1523_s29 + $0x20] sm:$0xff] }
 0x327   : >>> { %v3918_v28 = vld [vmem:[%s1525_s11 + $0x20] sm:$0xff]  ;;  %v1535_v29 = vmul.f32 %v3917_v27, %v5032_v60  ;;  %v1538_v30 = vmul.f32 %v3917_v27, %v5034_v61 }
 0x328   : >>> { %v1536_v31 = vmul.f32 %v3918_v28, %v5034_v61  ;;  %v1539_v32 = vmul.f32 %v3918_v28, %v5032_v60  ;;  %v3919_v33 = vld [vmem:[%s1527_s21 + $0x20] sm:$0xff] }
 0x329   : >>> { %v3920_v34 = vld [vmem:[%s1529_s22 + $0x20] sm:$0xff]  ;;  %v1541_v35 = vmul.f32 %v3919_v33, %v5032_v60  ;;  %v1544_v36 = vmul.f32 %v3919_v33, %v5034_v61 }
 0x32a   : >>> { %v1537_v37 = vsub.f32 %v1535_v29, %v1536_v31  ;;  %v1540_v38 = vadd.f32 %v1539_v32, %v1538_v30  ;;  %v1542_v39 = vmul.f32 %v3920_v34, %v5034_v61  ;;  %v1545_v40 = vmul.f32 %v3920_v34, %v5032_v60 }
 0x32c   : >>> { %3921 = vst [vmem:[%s1523_s29 + $0x20] sm:$0xff] %v1537_v37  ;;  %v1543_v41 = vsub.f32 %v1541_v35, %v1542_v39  ;;  %v1546_v42 = vadd.f32 %v1545_v40, %v1544_v36  ;;  %s1580_s29 = smov [#allocation19] }
 0x32d   : >>> { %3922 = vst [vmem:[%s1525_s11 + $0x20] sm:$0xff] %v1540_v38  ;;  %s5146_s11 = smov [#allocation12]  ;;  %v1587_v14 = vld [vmem:[%s1580_s29] ss:$0 sm:$0xff]  ;;  %s5206_s29 = smov [#allocation13] }
 0x32e   : >>> { %3923 = vst [vmem:[%s1527_s21 + $0x20] sm:$0xff] %v1543_v41  ;;  %s5166_s21 = smov [#allocation14] }
 0x32f   : >>> { %3924 = vst [vmem:[%s1529_s22 + $0x20] sm:$0xff] %v1546_v42  ;;  %s5179_s22 = smov [#allocation13] }
 0x333   : >>> { %v3925_v43 = vld [vmem:[%s1551_s16 + $0x28] sm:$0xff] }
 0x334   : >>> { %v3926_v44 = vld [vmem:[%s1553_s17 + $0x28] sm:$0xff]  ;;  %v1566_v45 = vmul.f32 %v3925_v43, %v5034_v61  ;;  %v1563_v46 = vmul.f32 %v3925_v43, %v5032_v60 }
 0x335   : >>> { %v1564_v47 = vmul.f32 %v3926_v44, %v5034_v61  ;;  %v1567_v48 = vmul.f32 %v3926_v44, %v5032_v60  ;;  %v3927_v49 = vld [vmem:[%s1555_s27 + $0x28] sm:$0xff] }
 0x336   : >>> { %v3928_v53 = vld [vmem:[%s1557_s30 + $0x28] sm:$0xff]  ;;  %v1569_v52 = vmul.f32 %v3927_v49, %v5032_v60  ;;  %v1572_v54 = vmul.f32 %v3927_v49, %v5034_v61 }
 0x337   : >>> { %v1568_v55 = vadd.f32 %v1567_v48, %v1566_v45  ;;  %v1565_v56 = vsub.f32 %v1563_v46, %v1564_v47  ;;  %v1570_v57 = vmul.f32 %v3928_v53, %v5034_v61  ;;  %v1573_v59 = vmul.f32 %v3928_v53, %v5032_v60 }
 0x338   : >>> { %v1678_v60 = vadd.s32 40, %v1640_v50  ;;  %v1598_v61 = vadd.s32 8, %v1586_v50  ;;  %v1688_v50 = vmov %v4508_v50 }
 0x339   : >>> { %3930 = vst [vmem:[%s1553_s17 + $0x28] sm:$0xff] %v1568_v55  ;;  %v1571_v58 = vsub.f32 %v1569_v52, %v1570_v57  ;;  %v1574_v0 = vadd.f32 %v1573_v59, %v1572_v54  ;;  %v1698_v27 = vadd.s32 8, %v1688_v50  ;;  %v1705_v30 = vadd.s32 16, %v1688_v50  ;;  %s1731_s17 = smov [#allocation20] }
 0x33a   : >>> { %3929 = vst [vmem:[%s1551_s16 + $0x28] sm:$0xff] %v1565_v56  ;;  %vm1679_vm1 = vcmp.eq.s32.totalorder %v1678_v60, %v1637_v51  ;;  %vm1599_vm3 = vcmp.eq.s32.totalorder %v1598_v61, %v1583_v51  ;;  %v1685_v51 = vmov %v4516_v51  ;;  %v1712_v33 = vadd.s32 24, %v1688_v50  ;;  %s5187_s16 = smov [#allocation15]  ;;  %v1738_v54 = vld [vmem:[%s1731_s17] ss:$0 sm:$0xff]  ;;  %s5234_s17 = smov [#allocation12] }
 0x33b   : >>> { %3931 = vst [vmem:[%s1555_s27 + $0x28] sm:$0xff] %v1571_v58  ;;  %vm1692_vm8 = vcmp.eq.s32.totalorder %v1688_v50, %v1685_v51  ;;  %v1719_v35 = vadd.s32 32, %v1688_v50  ;;  %v1726_v38 = vadd.s32 40, %v1688_v50  ;;  %v1737_v50 = vmov %v4508_v50  ;;  %s4359_s27 = smov 127  }
 0x33c   : >>> { %3932 = vst [vmem:[%s1557_s30 + $0x28] sm:$0xff] %v1574_v0  ;;  %v1749_v44 = vadd.s32 8, %v1737_v50  ;;  %v1757_v48 = vadd.s32 16, %v1737_v50  ;;  %s4360_s30 = smov 1   ;;  %v1765_v53 = vadd.s32 24, %v1737_v50  ;;  %v1773_v56 = vadd.s32 32, %v1737_v50 }
 0x33d   : >>> { %v1781_v58 = vadd.s32 40, %v1737_v50 }
 0x340   : >>> { %v1641_v4 = vld [vmem:[%s5144_s15] sm:$0xff]  ;;  %v3943_v5 = vld [vmem:[%s5144_s15 + $0x8] sm:$0xff]  ;;  %v3945_v63 = vld [vmem:[%s5144_s15 + $0x10] sm:$0xff] }
 0x341   : >>> { %v1645_v8 = vsel %vm1644_vm11, 0.0, %v1641_v4  ;;  %v1652_v9 = vsel %vm1651_vm13, 0.0, %v3943_v5  ;;  %v1659_v10 = vsel %vm1658_vm14, 0.0, %v3945_v63  ;;  %v3947_v11 = vld [vmem:[%s5144_s15 + $0x18] sm:$0xff]  ;;  %v3949_v12 = vld [vmem:[%s5144_s15 + $0x20] sm:$0xff]  ;;  %v3951_v13 = vld [vmem:[%s5144_s15 + $0x28] sm:$0xff]  ;;  %vm1699_vm11 = vcmp.eq.s32.totalorder %v1698_v27, %v1685_v51 }
 0x342   : >>> { %1646 = vst [vmem:[%s5144_s15] sm:$0xff] %v1645_v8  ;;  %v1666_v15 = vsel %vm1665_vm15, 0.0, %v3947_v11  ;;  %v1588_v16 = vld [vmem:[%s5146_s11] sm:$0xff]  ;;  %v1673_v18 = vsel %vm1672_vm0, 0.0, %v3949_v12  ;;  %v3933_v19 = vld [vmem:[%s5146_s11 + $0x8] sm:$0xff]  ;;  %v1680_v21 = vsel %vm1679_vm1, 0.0, %v3951_v13  ;;  %v3935_v22 = vld [vmem:[%s5146_s11 + $0x10] sm:$0xff]  ;;  %vm1706_vm13 = vcmp.eq.s32.totalorder %v1705_v30, %v1685_v51 }
 0x343   : >>> { %3944 = vst [vmem:[%s5144_s15 + $0x8] sm:$0xff] %v1652_v9  ;;  %v1592_v23 = vsel %vm1591_vm2, %v1587_v14, %v1588_v16  ;;  %v3937_v24 = vld [vmem:[%s5146_s11 + $0x18] sm:$0xff]  ;;  %v1600_v25 = vsel %vm1599_vm3, %v1587_v14, %v3933_v19  ;;  %v3939_v26 = vld [vmem:[%s5146_s11 + $0x20] sm:$0xff]  ;;  %v1608_v28 = vsel %vm1607_vm4, %v1587_v14, %v3935_v22  ;;  %v3941_v29 = vld [vmem:[%s5146_s11 + $0x28] sm:$0xff]  ;;  %vm1713_vm14 = vcmp.eq.s32.totalorder %v1712_v33, %v1685_v51 }
 0x344   : >>> { %3946 = vst [vmem:[%s5144_s15 + $0x10] sm:$0xff] %v1659_v10  ;;  %v1616_v31 = vsel %vm1615_vm5, %v1587_v14, %v3937_v24  ;;  %v1689_v32 = vld [vmem:[%s5166_s21] sm:$0xff]  ;;  %v1624_v34 = vsel %vm1623_vm6, %v1587_v14, %v3939_v26  ;;  %v1632_v36 = vsel %vm1631_vm7, %v1587_v14, %v3941_v29  ;;  %v3953_v37 = vld [vmem:[%s5166_s21 + $0x8] sm:$0xff]  ;;  %v3955_v40 = vld [vmem:[%s5166_s21 + $0x10] sm:$0xff]  ;;  %vm1720_vm15 = vcmp.eq.s32.totalorder %v1719_v35, %v1685_v51 }
 0x345   : >>> { %3948 = vst [vmem:[%s5144_s15 + $0x18] sm:$0xff] %v1666_v15  ;;  %v1693_v39 = vsel %vm1692_vm8, 0.0, %v1689_v32  ;;  %v3957_v41 = vld [vmem:[%s5166_s21 + $0x18] sm:$0xff]  ;;  %v1700_v42 = vsel %vm1699_vm11, 0.0, %v3953_v37  ;;  %v3959_v43 = vld [vmem:[%s5166_s21 + $0x20] sm:$0xff]  ;;  %v1734_v51 = vmov %v4516_v51  ;;  %v1707_v46 = vsel %vm1706_vm13, 0.0, %v3955_v40 }
 0x346   : >>> { %3950 = vst [vmem:[%s5144_s15 + $0x20] sm:$0xff] %v1673_v18  ;;  %v3961_v47 = vld [vmem:[%s5166_s21 + $0x28] sm:$0xff]  ;;  %vm1727_vm0 = vcmp.eq.s32.totalorder %v1726_v38, %v1685_v51  ;;  %v1714_v49 = vsel %vm1713_vm14, 0.0, %v3957_v41  ;;  %v1721_v52 = vsel %vm1720_vm15, 0.0, %v3959_v43  ;;  %v1739_v55 = vld [vmem:[%s5187_s16] sm:$0xff]  ;;  %vm1742_vm1 = vcmp.eq.s32.totalorder %v1737_v50, %v1734_v51  ;;  %v3965_v0 = vld [vmem:[%s5187_s16 + $0x10] sm:$0xff] }
 0x347   : >>> { %3952 = vst [vmem:[%s5144_s15 + $0x28] sm:$0xff] %v1680_v21  ;;  %s5199_s15 = smov [#allocation12]  ;;  %v1728_v57 = vsel %vm1727_vm0, 0.0, %v3961_v47  ;;  %v3963_v59 = vld [vmem:[%s5187_s16 + $0x8] sm:$0xff]  ;;  %vm1750_vm2 = vcmp.eq.s32.totalorder %v1749_v44, %v1734_v51  ;;  %vm1758_vm3 = vcmp.eq.s32.totalorder %v1757_v48, %v1734_v51  ;;  %v1743_v1 = vsel %vm1742_vm1, %v1738_v54, %v1739_v55  ;;  %v3967_v62 = vld [vmem:[%s5187_s16 + $0x18] sm:$0xff]  ;;  %v3969_v60 = vld [vmem:[%s5187_s16 + $0x20] sm:$0xff] }
 0x348   : >>> { %1593 = vst [vmem:[%s5146_s11] sm:$0xff] %v1592_v23  ;;  %vm1766_vm4 = vcmp.eq.s32.totalorder %v1765_v53, %v1734_v51  ;;  %v1751_v3 = vsel %vm1750_vm2, %v1738_v54, %v3963_v59  ;;  %vm1774_vm5 = vcmp.eq.s32.totalorder %v1773_v56, %v1734_v51  ;;  %v1759_v61 = vsel %vm1758_vm3, %v1738_v54, %v3965_v0  ;;  %v3971_v4 = vld [vmem:[%s5187_s16 + $0x28] sm:$0xff] }
 0x349   : >>> { %3934 = vst [vmem:[%s5146_s11 + $0x8] sm:$0xff] %v1600_v25  ;;  %vm1782_vm6 = vcmp.eq.s32.totalorder %v1781_v58, %v1734_v51  ;;  %v1767_v6 = vsel %vm1766_vm4, %v1738_v54, %v3967_v62  ;;  %v1775_v7 = vsel %vm1774_vm5, %v1738_v54, %v3969_v60  ;;  %vm1813_vm7 = vcmp.eq.s32.totalorder %v4516_v51, 47 }
 0x34a   : >>> { %3936 = vst [vmem:[%s5146_s11 + $0x10] sm:$0xff] %v1608_v28  ;;  %v1783_v8 = vsel %vm1782_vm6, %v1738_v54, %v3971_v4  ;;  %vm1796_vm8 = vcmp.eq.s32.totalorder %v4516_v51, 0  ;;  %vm1800_vm11 = vcmp.eq.s32.totalorder %v4516_v51, 1  ;;  %v593_v51 = vmov (%p780_p9), %v4516_v51 }
 0x34b   : >>> { %3938 = vst [vmem:[%s5146_s11 + $0x18] sm:$0xff] %v1616_v31  ;;  %v596_v50 = vmov (%p780_p9), %v4508_v50  ;;  %v640_v51 = vmov (%p780_p9), %v4516_v51 }
 0x34c   : >>> { %3940 = vst [vmem:[%s5146_s11 + $0x20] sm:$0xff] %v1624_v34  ;;  %v643_v50 = vmov (%p780_p9), %v4508_v50  ;;  %v524_v51 = vmov (%p780_p9), %v4516_v51 }
 0x34d   : >>> { %3942 = vst [vmem:[%s5146_s11 + $0x28] sm:$0xff] %v1632_v36  ;;  %s5208_s11 = smov [#allocation12]  ;;  %v527_v50 = vmov (%p780_p9), %v4508_v50 }
 0x34e   : >>> { %v1808_v45 = vld [vmem:[%s5179_s22] sm:$0xff]  ;;  %1694 = vst [vmem:[%s5166_s21] sm:$0xff] %v1693_v39  ;;  %v3973_v5 = vld [vmem:[%s5206_s29 + $0x8] sm:$0xff]  ;;  %v3981_v11 = vld [vmem:[%s5245_s0 + $0x18] sm:$0xff] }
 0x34f   : >>> { %1809 = vrot.lane.b32.xlu2 %v1808_v45, %s4359_s27  ;;  %1788 = vrot.lane.b32.xlu0 %v1808_v45, %s4360_s30  ;;  %3954 = vst [vmem:[%s5166_s21 + $0x8] sm:$0xff] %v1700_v42  ;;  %v3989_v15 = vld [vmem:[%s5269_s3 + $0x28] sm:$0xff] }
 0x350   : >>> { %3956 = vst [vmem:[%s5166_s21 + $0x10] sm:$0xff] %v1707_v46 }
 0x351   : >>> { %3958 = vst [vmem:[%s5166_s21 + $0x18] sm:$0xff] %v1714_v49 }
 0x352   : >>> { %3960 = vst [vmem:[%s5166_s21 + $0x20] sm:$0xff] %v1721_v52 }
 0x353   : >>> { %3962 = vst [vmem:[%s5166_s21 + $0x28] sm:$0xff] %v1728_v57  ;;  %s5232_s21 = smov [#allocation13] }
 0x354   : >>> { %v5213_v2 = vld [vmem:[%s5199_s15] sm:$0xff]  ;;  %v5222_v63 = vld [vmem:[%s5208_s11 + $0x8] sm:$0xff]  ;;  %1744 = vst [vmem:[%s5187_s16] sm:$0xff] %v1743_v1  ;;  %v3977_v9 = vld [vmem:[%s5232_s21 + $0x10] sm:$0xff] }
 0x355   : >>> { %1792 = vrot.lane.b32.xlu1 %v5213_v2, %s4360_s30  ;;  %3964 = vst [vmem:[%s5187_s16 + $0x8] sm:$0xff] %v1751_v3  ;;  %v5240_v10 = vld [vmem:[%s5234_s17 + $0x10] sm:$0xff]  ;;  %v5252_v12 = vld [vmem:[%s5247_s1 + $0x18] sm:$0xff] }
 0x356   : >>> { %3966 = vst [vmem:[%s5187_s16 + $0x10] sm:$0xff] %v1759_v61  ;;  %v5264_v14 = vld [vmem:[%s5259_s2 + $0x20] sm:$0xff]  ;;  %v5276_v16 = vld [vmem:[%s5271_s18 + $0x28] sm:$0xff] }
 0x357   : >>> { %1820 = vrot.lane.b32.xlu0 %v3973_v5, %s4360_s30  ;;  %1824 = vrot.lane.b32.xlu2 %v5222_v63, %s4360_s30  ;;  %3968 = vst [vmem:[%s5187_s16 + $0x18] sm:$0xff] %v1767_v6 }
 0x358   : >>> { %3970 = vst [vmem:[%s5187_s16 + $0x20] sm:$0xff] %v1775_v7 }
 0x359   : >>> { %3972 = vst [vmem:[%s5187_s16 + $0x28] sm:$0xff] %v1783_v8  ;;  %s5257_s16 = smov [#allocation13] }
 0x35a   : >>> { %v3985_v13 = vld [vmem:[%s5257_s16 + $0x20] sm:$0xff]  ;;  %v5298_v19 = vld [vmem:[%s5293_s9 + $0x8] sm:$0xff]  ;;  %v5310_v21 = vld [vmem:[%s5305_s26 + $0x10] sm:$0xff] }
 0x35b   : >>> { %v5287_v17 = vld [vmem:[%s5281_s10] sm:$0xff]  ;;  %v5322_v23 = vld [vmem:[%s5317_s25 + $0x18] sm:$0xff]  ;;  %v5346_v27 = vld [vmem:[%s5341_s5 + $0x28] sm:$0xff] }
 0x35c   : >>> { %v5334_v25 = vld [vmem:[%s5329_s24 + $0x20] sm:$0xff] }
 0x35d   : >>> { %1841 = vrot.lane.b32.xlu1 %v3973_v5, %s4359_s27 }
 0x35f   : >>> { %1852 = vrot.lane.b32.xlu0 %v3977_v9, %s4360_s30  ;;  %1856 = vrot.lane.b32.xlu2 %v5240_v10, %s4360_s30 }
 0x360   : >>> { %v1989_v18 = vld [vmem:[%s5283_s13] sm:$0xff]  ;;  %v4003_v20 = vld [vmem:[%s5295_s8 + $0x8] sm:$0xff]  ;;  %v4007_v22 = vld [vmem:[%s5307_s7 + $0x10] sm:$0xff] }
 0x361   : >>> { %v4011_v24 = vld [vmem:[%s5319_s6 + $0x18] sm:$0xff]  ;;  %v4015_v26 = vld [vmem:[%s5331_s14 + $0x20] sm:$0xff]  ;;  %v4019_v28 = vld [vmem:[%s5343_s4 + $0x28] sm:$0xff] }
 0x365   : >>> { %1873 = vrot.lane.b32.xlu1 %v3977_v9, %s4359_s27 }
 0x367   : >>> { %1884 = vrot.lane.b32.xlu0 %v3981_v11, %s4360_s30  ;;  %1888 = vrot.lane.b32.xlu2 %v5252_v12, %s4360_s30 }
 0x36d   : >>> { %1905 = vrot.lane.b32.xlu1 %v3981_v11, %s4359_s27 }
 0x36f   : >>> { %1916 = vrot.lane.b32.xlu0 %v3985_v13, %s4360_s30  ;;  %1920 = vrot.lane.b32.xlu2 %v5264_v14, %s4360_s30 }
 0x375   : >>> { %1937 = vrot.lane.b32.xlu1 %v3985_v13, %s4359_s27 }
 0x377   : >>> { %1948 = vrot.lane.b32.xlu0 %v3989_v15, %s4360_s30  ;;  %1952 = vrot.lane.b32.xlu2 %v5276_v16, %s4360_s30 }
 0x37d   : >>> { %1969 = vrot.lane.b32.xlu1 %v3989_v15, %s4359_s27 }
 0x37f   : >>> { %1994 = vrot.lane.b32.xlu0 %v5287_v17, %s4360_s30  ;;  %1990 = vrot.lane.b32.xlu2 %v1989_v18, %s4360_s30 }
 0x385   : >>> { %2026 = vrot.lane.b32.xlu1 %v5298_v19, %s4360_s30 }
 0x387   : >>> { %2011 = vrot.lane.b32.xlu0 %v1989_v18, %s4359_s27  ;;  %2022 = vrot.lane.b32.xlu2 %v4003_v20, %s4360_s30 }
 0x38d   : >>> { %2058 = vrot.lane.b32.xlu1 %v5310_v21, %s4360_s30 }
 0x38f   : >>> { %2043 = vrot.lane.b32.xlu0 %v4003_v20, %s4359_s27  ;;  %2054 = vrot.lane.b32.xlu2 %v4007_v22, %s4360_s30 }
 0x395   : >>> { %2090 = vrot.lane.b32.xlu1 %v5322_v23, %s4360_s30 }
 0x397   : >>> { %2075 = vrot.lane.b32.xlu0 %v4007_v22, %s4359_s27  ;;  %2086 = vrot.lane.b32.xlu2 %v4011_v24, %s4360_s30 }
 0x39d   : >>> { %2122 = vrot.lane.b32.xlu1 %v5334_v25, %s4360_s30 }
 0x39f   : >>> { %2107 = vrot.lane.b32.xlu0 %v4011_v24, %s4359_s27  ;;  %2118 = vrot.lane.b32.xlu2 %v4015_v26, %s4360_s30 }
 0x3a5   : >>> { %2154 = vrot.lane.b32.xlu1 %v5346_v27, %s4360_s30 }
 0x3a7   : >>> { %2139 = vrot.lane.b32.xlu0 %v4015_v26, %s4359_s27  ;;  %2150 = vrot.lane.b32.xlu2 %v4019_v28, %s4360_s30 }
 0x3a9   : >>> { %v1810_v29 = vpop.permute.xlu2 %1809 }
 0x3aa   : >>> { %v1814_v30 = vsel %vm1813_vm7, %v5213_v2, %v1810_v29 }
 0x3ab   : >>> { %1976 = vst [vmem:[%s5179_s22] sm:$0xff] %v1814_v30 }
 0x3ad   : >>> { %2171 = vrot.lane.b32.xlu1 %v4019_v28, %s4359_s27 }
 0x3b1   : >>> { %v1825_v31 = vpop.permute.xlu2 %1824 }
 0x3b2   : >>> { %v1829_v37 = vsel %vm1796_vm8, %v5222_v63, %v1825_v31 }
 0x3b9   : >>> { %v1857_v32 = vpop.permute.xlu2 %1856 }
 0x3ba   : >>> { %v1861_v45 = vsel %vm1796_vm8, %v5240_v10, %v1857_v32 }
 0x3c1   : >>> { %v1789_v33 = vpop.permute.xlu0 %1788  ;;  %v1889_v35 = vpop.permute.xlu2 %1888 }
 0x3c2   : >>> { %v1893_v54 = vsel %vm1796_vm8, %v5252_v12, %v1889_v35 }
 0x3c7   : >>> { %v1793_v34 = vpop.permute.xlu1 %1792 }
 0x3c8   : >>> { %v1797_v36 = vsel %vm1796_vm8, %v5213_v2, %v1793_v34 }
 0x3c9   : >>> { %v1801_v38 = vsel %vm1800_vm11, %v1789_v33, %v1797_v36  ;;  %v1821_v39 = vpop.permute.xlu0 %1820  ;;  %v1921_v47 = vpop.permute.xlu2 %1920 }
 0x3ca   : >>> { %v1807_v40 = vsel %vm3453_vm12, %v1801_v38, 0.0  ;;  %v1833_v41 = vsel %vm1800_vm11, %v1821_v39, %v1829_v37  ;;  %v1925_v1 = vsel %vm1796_vm8, %v5264_v14, %v1921_v47 }
 0x3cb   : >>> { %v1839_v42 = vsel %vm3453_vm12, %v1833_v41, 0.0  ;;  %1975 = vst [vmem:[%s5199_s15] sm:$0xff] %v1807_v40 }
 0x3cc   : >>> { %3993 = vst [vmem:[%s5208_s11 + $0x8] sm:$0xff] %v1839_v42 }
 0x3cf   : >>> { %v1842_v43 = vpop.permute.xlu1 %1841 }
 0x3d0   : >>> { %v1846_v44 = vsel %vm1813_vm7, %v5222_v63, %v1842_v43 }
 0x3d1   : >>> { %3994 = vst [vmem:[%s5206_s29 + $0x8] sm:$0xff] %v1846_v44  ;;  %v1853_v46 = vpop.permute.xlu0 %1852  ;;  %v1953_v59 = vpop.permute.xlu2 %1952 }
 0x3d2   : >>> { %v1865_v48 = vsel %vm1800_vm11, %v1853_v46, %v1861_v45  ;;  %v1957_v5 = vsel %vm1796_vm8, %v5276_v16, %v1953_v59 }
 0x3d3   : >>> { %v1871_v49 = vsel %vm3453_vm12, %v1865_v48, 0.0 }
 0x3d4   : >>> { %3995 = vst [vmem:[%s5234_s17 + $0x10] sm:$0xff] %v1871_v49 }
 0x3d7   : >>> { %v1874_v53 = vpop.permute.xlu1 %1873 }
 0x3d8   : >>> { %v1878_v52 = vsel %vm1813_vm7, %v5240_v10, %v1874_v53 }
 0x3d9   : >>> { %3996 = vst [vmem:[%s5232_s21 + $0x10] sm:$0xff] %v1878_v52  ;;  %v1885_v55 = vpop.permute.xlu0 %1884  ;;  %v5413_v60 = vpop.permute.xlu2 %1990 }
 0x3da   : >>> { %v1897_v56 = vsel %vm1800_vm11, %v1885_v55, %v1893_v54 }
 0x3db   : >>> { %v1903_v57 = vsel %vm3453_vm12, %v1897_v56, 0.0 }
 0x3dc   : >>> { %3997 = vst [vmem:[%s5247_s1 + $0x18] sm:$0xff] %v1903_v57  ;;  %s5433_s1 = smov [#allocation13] }
 0x3df   : >>> { %v1906_v58 = vpop.permute.xlu1 %1905 }
 0x3e0   : >>> { %v1910_v0 = vsel %vm1813_vm7, %v5252_v12, %v1906_v58 }
 0x3e1   : >>> { %3998 = vst [vmem:[%s5245_s0 + $0x18] sm:$0xff] %v1910_v0  ;;  %v1917_v62 = vpop.permute.xlu0 %1916  ;;  %v2023_v9 = vpop.permute.xlu2 %2022  ;;  %s5427_s0 = smov [#allocation12] }
 0x3e2   : >>> { %v1929_v2 = vsel %vm1800_vm11, %v1917_v62, %v1925_v1 }
 0x3e3   : >>> { %v1935_v3 = vsel %vm3453_vm12, %v1929_v2, 0.0 }
 0x3e4   : >>> { %3999 = vst [vmem:[%s5259_s2 + $0x20] sm:$0xff] %v1935_v3  ;;  %s5570_s2 = smov [#allocation14] }
 0x3e7   : >>> { %v1938_v61 = vpop.permute.xlu1 %1937 }
 0x3e8   : >>> { %v1942_v4 = vsel %vm1813_vm7, %v5264_v14, %v1938_v61 }
 0x3e9   : >>> { %4000 = vst [vmem:[%s5257_s16 + $0x20] sm:$0xff] %v1942_v4  ;;  %v1949_v63 = vpop.permute.xlu0 %1948  ;;  %v2055_v45 = vpop.permute.xlu2 %2054 }
 0x3ea   : >>> { %v1961_v6 = vsel %vm1800_vm11, %v1949_v63, %v1957_v5 }
 0x3eb   : >>> { %v1967_v7 = vsel %vm3453_vm12, %v1961_v6, 0.0 }
 0x3ec   : >>> { %4001 = vst [vmem:[%s5271_s18 + $0x28] sm:$0xff] %v1967_v7 }
 0x3ef   : >>> { %v1970_v8 = vpop.permute.xlu1 %1969 }
 0x3f0   : >>> { %v1974_v10 = vsel %vm1813_vm7, %v5276_v16, %v1970_v8 }
 0x3f1   : >>> { %4002 = vst [vmem:[%s5269_s3 + $0x28] sm:$0xff] %v1974_v10  ;;  %v1995_v11 = vpop.permute.xlu0 %1994  ;;  %s5595_s3 = smov [#allocation15] }
 0x3f2   : >>> { %v1999_v43 = vsel %vm1796_vm8, %v5287_v17, %v1995_v11 }
 0x3f3   : >>> { %v2191_v12 = vld [vmem:[%s5427_s0] ss:$0 sm:$0xff]  ;;  %v4034_v14 = vld [vmem:[%s5427_s0 + $0x7] ss:$0 sm:$0xff]  ;;  %v4035_v18 = vld [vmem:[%s5427_s0 + $0x7] sm:$0xfe]  ;;  %v2003_v58 = vsel %vm1800_vm11, %v5413_v60, %v1999_v43 }
 0x3f4   : >>> { %v4033_v13 = vld [vmem:[%s5427_s0 - $0x1] sm:$0xfe]  ;;  %v4036_v20 = vld [vmem:[%s5427_s0 + $0xf] ss:$0 sm:$0xff]  ;;  %v4038_v16 = vld [vmem:[%s5427_s0 + $0xf] sm:$0xfe]  ;;  %v2209_v22 = vsel %vm2197_vm9, %v4034_v14, %v4035_v18 }
 0x3f5   : >>> { %v2198_v15 = vsel %vm2197_vm9, %v2191_v12, %v4033_v13  ;;  %v2220_v24 = vsel %vm2197_vm9, %v4036_v20, %v4038_v16  ;;  %v4039_v26 = vld [vmem:[%s5427_s0 + $0x17] ss:$0 sm:$0xff]  ;;  %v4041_v28 = vld [vmem:[%s5427_s0 + $0x17] sm:$0xfe]  ;;  %v4042_v29 = vld [vmem:[%s5427_s0 + $0x1f] ss:$0 sm:$0xff] }
 0x3f6   : >>> { %2201 = vst [vmem:[%s5427_s0] sm:$0xff] %v2198_v15  ;;  %v2231_v30 = vsel %vm2197_vm9, %v4039_v26, %v4041_v28  ;;  %v4044_v31 = vld [vmem:[%s5427_s0 + $0x1f] sm:$0xfe]  ;;  %v4045_v32 = vld [vmem:[%s5427_s0 + $0x27] ss:$0 sm:$0xff]  ;;  %v4047_v34 = vld [vmem:[%s5427_s0 + $0x27] sm:$0xfe] }
 0x3f7   : >>> { %4037 = vst [vmem:[%s5427_s0 + $0x8] sm:$0xff] %v2209_v22  ;;  %v2242_v33 = vsel %vm2197_vm9, %v4042_v29, %v4044_v31  ;;  %v5461_v35 = vld [vmem:[%s5427_s0 + $0x2f] ss:$0 sm:$0xff]  ;;  %v2027_v36 = vpop.permute.xlu1 %2026  ;;  %v2253_v37 = vsel %vm2197_vm9, %v4045_v32, %v4047_v34  ;;  %v2009_v61 = vsel %vm3453_vm12, %v2003_v58, 0.0 }
 0x3f8   : >>> { %4040 = vst [vmem:[%s5427_s0 + $0x10] sm:$0xff] %v2220_v24  ;;  %v2315_v38 = vld [vmem:[%s5433_s1] ss:$0 sm:$0xff]  ;;  %v4068_v41 = vld [vmem:[%s5433_s1 + $0x7] ss:$0 sm:$0xff]  ;;  %v2031_v55 = vsel %vm1796_vm8, %v5298_v19, %v2027_v36 }
 0x3f9   : >>> { %4043 = vst [vmem:[%s5427_s0 + $0x18] sm:$0xff] %v2231_v30  ;;  %v4067_v39 = vld [vmem:[%s5433_s1 - $0x1] sm:$0xfe]  ;;  %v4069_v42 = vld [vmem:[%s5433_s1 + $0x7] sm:$0xfe]  ;;  %v2012_v44 = vpop.permute.xlu0 %2011  ;;  %v2035_v3 = vsel %vm1800_vm11, %v2023_v9, %v2031_v55  ;;  %v2087_v9 = vpop.permute.xlu2 %2086 }
 0x3fa   : >>> { %4046 = vst [vmem:[%s5427_s0 + $0x20] sm:$0xff] %v2242_v33  ;;  %v2322_v40 = vsel %vm2197_vm9, %v2315_v38, %v4067_v39  ;;  %v2333_v46 = vsel %vm2197_vm9, %v4068_v41, %v4069_v42  ;;  %v4070_v47 = vld [vmem:[%s5433_s1 + $0xf] ss:$0 sm:$0xff]  ;;  %v4072_v48 = vld [vmem:[%s5433_s1 + $0xf] sm:$0xfe]  ;;  %v2016_v60 = vsel %vm1813_vm7, %v5287_v17, %v2012_v44  ;;  %v2041_v63 = vsel %vm3453_vm12, %v2035_v3, 0.0 }
 0x3fb   : >>> { %4049 = vst [vmem:[%s5427_s0 + $0x28] sm:$0xff] %v2253_v37  ;;  %v2344_v49 = vsel %vm2197_vm9, %v4070_v47, %v4072_v48  ;;  %v4073_v53 = vld [vmem:[%s5433_s1 + $0x17] ss:$0 sm:$0xff]  ;;  %v4075_v52 = vld [vmem:[%s5433_s1 + $0x17] sm:$0xfe] }
 0x3fc   : >>> { %2325 = vst [vmem:[%s5433_s1] sm:$0xff] %v2322_v40  ;;  %v4076_v54 = vld [vmem:[%s5433_s1 + $0x1f] ss:$0 sm:$0xff]  ;;  %v2355_v56 = vsel %vm2197_vm9, %v4073_v53, %v4075_v52  ;;  %v4078_v57 = vld [vmem:[%s5433_s1 + $0x1f] sm:$0xfe]  ;;  %v4079_v59 = vld [vmem:[%s5433_s1 + $0x27] ss:$0 sm:$0xff] }
 0x3fd   : >>> { %4071 = vst [vmem:[%s5433_s1 + $0x8] sm:$0xff] %v2333_v46  ;;  %v2366_v0 = vsel %vm2197_vm9, %v4076_v54, %v4078_v57  ;;  %v4081_v1 = vld [vmem:[%s5433_s1 + $0x27] sm:$0xfe]  ;;  %v5503_v62 = vld [vmem:[%s5433_s1 + $0x2f] ss:$0 sm:$0xff] }
 0x3fe   : >>> { %4074 = vst [vmem:[%s5433_s1 + $0x10] sm:$0xff] %v2344_v49  ;;  %v2377_v2 = vsel %vm2197_vm9, %v4079_v59, %v4081_v1  ;;  %vm539_vm9 = vcmp.eq.s32.totalorder (%p780_p9), %v527_v50, %v524_v51 }
 0x3ff   : >>> { %4077 = vst [vmem:[%s5433_s1 + $0x18] sm:$0xff] %v2355_v56  ;;  %v2059_v4 = vpop.permute.xlu1 %2058 }
 0x400   : >>> { %4080 = vst [vmem:[%s5433_s1 + $0x20] sm:$0xff] %v2366_v0  ;;  %v2063_v5 = vsel %vm1796_vm8, %v5310_v21, %v2059_v4 }
 0x401   : >>> { %4083 = vst [vmem:[%s5433_s1 + $0x28] sm:$0xff] %v2377_v2  ;;  %v2067_v6 = vsel %vm1800_vm11, %v2055_v45, %v2063_v5  ;;  %v2044_v17 = vpop.permute.xlu0 %2043  ;;  %v2119_v15 = vpop.permute.xlu2 %2118 }
 0x402   : >>> { %2178 = vst [vmem:[%s5283_s13] sm:$0xff] %v2016_v60  ;;  %v2073_v7 = vsel %vm3453_vm12, %v2067_v6, 0.0  ;;  %v2048_v8 = vsel %vm1813_vm7, %v5298_v19, %v2044_v17 }
 0x403   : >>> { %2177 = vst [vmem:[%s5281_s10] sm:$0xff] %v2009_v61 }
 0x404   : >>> { %4024 = vst [vmem:[%s5295_s8 + $0x8] sm:$0xff] %v2048_v8  ;;  %s5699_s8 = smov (%p780_p9), [#allocation15] }
 0x405   : >>> { %4023 = vst [vmem:[%s5293_s9 + $0x8] sm:$0xff] %v2041_v63 }
 0x406   : >>> { %4025 = vst [vmem:[%s5305_s26 + $0x10] sm:$0xff] %v2073_v7 }
 0x407   : >>> { %v2091_v10 = vpop.permute.xlu1 %2090 }
 0x408   : >>> { %v2095_v11 = vsel %vm1796_vm8, %v5322_v23, %v2091_v10 }
 0x409   : >>> { %v2099_v12 = vsel %vm1800_vm11, %v2087_v9, %v2095_v11  ;;  %v2076_v13 = vpop.permute.xlu0 %2075  ;;  %v2151_v28 = vpop.permute.xlu2 %2150 }
 0x40a   : >>> { %v2105_v14 = vsel %vm3453_vm12, %v2099_v12, 0.0  ;;  %v2080_v19 = vsel %vm1813_vm7, %v5310_v21, %v2076_v13 }
 0x40b   : >>> { %4026 = vst [vmem:[%s5307_s7 + $0x10] sm:$0xff] %v2080_v19  ;;  %s5682_s7 = smov (%p780_p9), [#allocation14] }
 0x40c   : >>> { %4027 = vst [vmem:[%s5317_s25 + $0x18] sm:$0xff] %v2105_v14 }
 0x40f   : >>> { %v2123_v18 = vpop.permute.xlu1 %2122 }
 0x410   : >>> { %v2127_v20 = vsel %vm1796_vm8, %v5334_v25, %v2123_v18 }
 0x411   : >>> { %v2131_v16 = vsel %vm1800_vm11, %v2119_v15, %v2127_v20  ;;  %v2108_v22 = vpop.permute.xlu0 %2107 }
 0x412   : >>> { %v2137_v24 = vsel %vm3453_vm12, %v2131_v16, 0.0  ;;  %v2112_v21 = vsel %vm1813_vm7, %v5322_v23, %v2108_v22 }
 0x413   : >>> { %4028 = vst [vmem:[%s5319_s6 + $0x18] sm:$0xff] %v2112_v21  ;;  %s5656_s6 = smov (%p780_p9), [#allocation13] }
 0x414   : >>> { %4029 = vst [vmem:[%s5329_s24 + $0x20] sm:$0xff] %v2137_v24 }
 0x417   : >>> { %v2155_v26 = vpop.permute.xlu1 %2154 }
 0x418   : >>> { %v2159_v29 = vsel %vm1796_vm8, %v5346_v27, %v2155_v26 }
 0x419   : >>> { %v2163_v30 = vsel %vm1800_vm11, %v2151_v28, %v2159_v29  ;;  %v2140_v31 = vpop.permute.xlu0 %2139 }
 0x41a   : >>> { %v2169_v32 = vsel %vm3453_vm12, %v2163_v30, 0.0  ;;  %v2144_v23 = vsel %vm1813_vm7, %v5334_v25, %v2140_v31 }
 0x41b   : >>> { %4031 = vst [vmem:[%s5341_s5 + $0x28] sm:$0xff] %v2169_v32  ;;  %s528_s5 = smov (%p780_p9), [#allocation12] }
 0x41c   : >>> { %4030 = vst [vmem:[%s5331_s14 + $0x20] sm:$0xff] %v2144_v23 }
 0x41f   : >>> { %v2172_v33 = vpop.permute.xlu1 %2171 }
 0x420   : >>> { %v2176_v34 = vsel %vm1813_vm7, %v5346_v27, %v2172_v33 }
 0x421   : >>> { %4032 = vst [vmem:[%s5343_s4 + $0x28] sm:$0xff] %v2176_v34  ;;  %s2883_s4 = sadd.s32 (%p780_p9), 1, %s4352_s20  }
 0x422   : >>> { %v2257_v25 = vld [vmem:[%s5570_s2] ss:$0 sm:$0xff]  ;;  %v4051_v36 = vld [vmem:[%s5570_s2 + $0x29] sm:$0x7f]  ;;  %v4052_v37 = vld [vmem:[%s5570_s2 + $0x28] ss:$0 sm:$0xff]  ;;  %s5862_s20 = smov (%p780_p9), %s2883_s4 }
 0x423   : >>> { %4050 = vst [vmem:[%s5427_s0 + $0x1] sm:$0x1] %v2257_v25  ;;  %v2266_v38 = vsel %vm2265_vm10, %v5461_v35, %v4051_v36  ;;  %v4054_v39 = vld [vmem:[%s5570_s2 + $0x21] sm:$0x7f]  ;;  %v4055_v40 = vld [vmem:[%s5570_s2 + $0x20] ss:$0 sm:$0xff] }
 0x424   : >>> { %4053 = vst [vmem:[%s5570_s2 + $0x28] sm:$0xff] %v2266_v38  ;;  %v2275_v27 = vsel %vm2265_vm10, %v4052_v37, %v4054_v39  ;;  %v4057_v41 = vld [vmem:[%s5570_s2 + $0x19] sm:$0x7f]  ;;  %v4058_v42 = vld [vmem:[%s5570_s2 + $0x18] ss:$0 sm:$0xff]  ;;  %p776_p10 = scmp.ge.s32.totalorder (%p780_p9), %s2883_s4, 15 }
 0x425   : >>> { %4056 = vst [vmem:[%s5570_s2 + $0x20] sm:$0xff] %v2275_v27  ;;  %v2284_v43 = vsel %vm2265_vm10, %v4055_v40, %v4057_v41  ;;  %v4060_v44 = vld [vmem:[%s5570_s2 + $0x11] sm:$0x7f]  ;;  %v4061_v45 = vld [vmem:[%s5570_s2 + $0x10] ss:$0 sm:$0xff]  ;;  %v546_v27 = vadd.s32 (%p780_p9), 8, %v527_v50 }
 0x426   : >>> { %4059 = vst [vmem:[%s5570_s2 + $0x18] sm:$0xff] %v2284_v43  ;;  %v2293_v35 = vsel %vm2265_vm10, %v4058_v42, %v4060_v44  ;;  %v4063_v46 = vld [vmem:[%s5570_s2 + $0x9] sm:$0x7f]  ;;  %v4064_v47 = vld [vmem:[%s5570_s2 + $0x8] ss:$0 sm:$0xff] }
 0x427   : >>> { %4062 = vst [vmem:[%s5570_s2 + $0x10] sm:$0xff] %v2293_v35  ;;  %v2302_v48 = vsel %vm2265_vm10, %v4061_v45, %v4063_v46  ;;  %v4066_v49 = vld [vmem:[%s5570_s2 + $0x1] sm:$0x7f] }
 0x428   : >>> { %4065 = vst [vmem:[%s5570_s2 + $0x8] sm:$0xff] %v2302_v48  ;;  %v2310_v53 = vsel %vm2265_vm10, %v4064_v47, %v4066_v49  ;;  %v2381_v52 = vld [vmem:[%s5595_s3] ss:$0 sm:$0xff]  ;;  %v4085_v54 = vld [vmem:[%s5595_s3 + $0x29] sm:$0x7f]  ;;  %v556_v48 = vadd.s32 (%p780_p9), 16, %v527_v50 }
 0x429   : >>> { %2312 = vst [vmem:[%s5570_s2] sm:$0xff] %v2310_v53  ;;  %v2390_v55 = vsel %vm2265_vm10, %v5503_v62, %v4085_v54  ;;  %v4086_v56 = vld [vmem:[%s5595_s3 + $0x28] ss:$0 sm:$0xff]  ;;  %v4088_v57 = vld [vmem:[%s5595_s3 + $0x21] sm:$0x7f]  ;;  %v4089_v59 = vld [vmem:[%s5595_s3 + $0x20] ss:$0 sm:$0xff] }
 0x42a   : >>> { %4084 = vst [vmem:[%s5433_s1 + $0x1] sm:$0x1] %v2381_v52  ;;  %v2399_v58 = vsel %vm2265_vm10, %v4086_v56, %v4088_v57  ;;  %v4091_v0 = vld [vmem:[%s5595_s3 + $0x19] sm:$0x7f]  ;;  %v4092_v1 = vld [vmem:[%s5595_s3 + $0x18] ss:$0 sm:$0xff]  ;;  %vm557_vm13 = vcmp.eq.s32.totalorder (%p780_p9), %v556_v48, %v524_v51 }
 0x42b   : >>> { %4087 = vst [vmem:[%s5595_s3 + $0x28] sm:$0xff] %v2390_v55  ;;  %v2408_v2 = vsel %vm2265_vm10, %v4089_v59, %v4091_v0  ;;  %v4094_v3 = vld [vmem:[%s5595_s3 + $0x11] sm:$0x7f]  ;;  %v4095_v62 = vld [vmem:[%s5595_s3 + $0x10] ss:$0 sm:$0xff]  ;;  %v534_v17 = vld [vmem:[%s528_s5] sm:$0xff] (%p780_p9) }
 0x42c   : >>> { %4090 = vst [vmem:[%s5595_s3 + $0x20] sm:$0xff] %v2399_v58  ;;  %v2417_v60 = vsel %vm2265_vm10, %v4092_v1, %v4094_v3  ;;  %v4097_v61 = vld [vmem:[%s5595_s3 + $0x9] sm:$0x7f]  ;;  %v4098_v4 = vld [vmem:[%s5595_s3 + $0x8] ss:$0 sm:$0xff]  ;;  %782 = sbr.rel (!%p780_p9) target bundleno = 360 (0x168), region = 719 }
 0x42d   : >>> { %4093 = vst [vmem:[%s5595_s3 + $0x18] sm:$0xff] %v2408_v2  ;;  %v2426_v5 = vsel %vm2265_vm10, %v4095_v62, %v4097_v61  ;;  %v4100_v63 = vld [vmem:[%s5595_s3 + $0x1] sm:$0x7f]  ;;  %v4219_v7 = vld [vmem:[%s528_s5 + $0x8] sm:$0xff] (%p780_p9)  ;;  %v4220_v8 = vld [vmem:[%s528_s5 + $0x10] sm:$0xff] (%p780_p9)  ;;  %v535_v9 = vsel (%p780_p9), %vm3453_vm12, %v534_v17, 0.0 }
 0x42e   : >>> { %4096 = vst [vmem:[%s5595_s3 + $0x10] sm:$0xff] %v2417_v60  ;;  %v2434_v6 = vsel %vm2265_vm10, %v4098_v4, %v4100_v63  ;;  %v543_v10 = vsel (%p780_p9), %vm3453_vm12, %v4219_v7, 0.0  ;;  %v553_v11 = vsel (%p780_p9), %vm3453_vm12, %v4220_v8, 0.0  ;;  %v4221_v12 = vld [vmem:[%s528_s5 + $0x18] sm:$0xff] (%p780_p9)  ;;  %v4222_v13 = vld [vmem:[%s528_s5 + $0x20] sm:$0xff] (%p780_p9)  ;;  %v536_v14 = vmul.f32 (%p780_p9), %v535_v9, %v535_v9  ;;  %v4223_v20 = vld [vmem:[%s528_s5 + $0x28] sm:$0xff] (%p780_p9) }
 0x42f   : >>> { %4099 = vst [vmem:[%s5595_s3 + $0x8] sm:$0xff] %v2426_v5  ;;  %v544_v19 = vmul.f32 (%p780_p9), %v543_v10, %v543_v10  ;;  %v554_v15 = vmul.f32 (%p780_p9), %v553_v11, %v553_v11  ;;  %v563_v18 = vsel (%p780_p9), %vm3453_vm12, %v4221_v12, 0.0  ;;  %v573_v16 = vsel (%p780_p9), %vm3453_vm12, %v4222_v13, 0.0 }
 0x430   : >>> { %2436 = vst [vmem:[%s5595_s3] sm:$0xff] %v2434_v6  ;;  %v564_v24 = vmul.f32 (%p780_p9), %v563_v18, %v563_v18  ;;  %v583_v26 = vsel (%p780_p9), %vm3453_vm12, %v4223_v20, 0.0  ;;  %v574_v29 = vmul.f32 (%p780_p9), %v573_v16, %v573_v16  ;;  %v540_v47 = vsel (%p780_p9), %vm539_vm9, 0.0, %v536_v14  ;;  %v650_v55 = vld [vmem:[%s5682_s7] sm:$0xff] (%p780_p9)  ;;  %v4229_v1 = vld [vmem:[%s5682_s7 + $0x8] sm:$0xff] (%p780_p9)  ;;  %v4230_v5 = vld [vmem:[%s5682_s7 + $0x10] sm:$0xff] (%p780_p9) }
 0x431   : >> { %v550_v22 = vadd.f32 %v544_v19, %v536_v14  ;;  %v603_v21 = vld [vmem:[%s5656_s6] sm:$0xff]  ;;  %v4224_v30 = vld [vmem:[%s5656_s6 + $0x8] sm:$0xff]  ;;  %v584_v23 = vmul.f32 %v583_v26, %v583_v26  ;;  %v4225_v33 = vld [vmem:[%s5656_s6 + $0x10] sm:$0xff]  ;;  %vm547_vm10 = vcmp.eq.s32.totalorder %v546_v27, %v524_v51  ;;  %v566_v49 = vadd.s32 24, %v527_v50 }
 0x432   : >> { %v604_v31 = vsel %vm3453_vm12, %v603_v21, 0.0  ;;  %v4226_v34 = vld [vmem:[%s5656_s6 + $0x18] sm:$0xff]  ;;  %v610_v25 = vsel %vm3453_vm12, %v4224_v30, 0.0  ;;  %v4227_v38 = vld [vmem:[%s5656_s6 + $0x20] sm:$0xff]  ;;  %v616_v39 = vsel %vm3453_vm12, %v4225_v33, 0.0  ;;  %v4228_v44 = vld [vmem:[%s5656_s6 + $0x28] sm:$0xff] }
 0x433   : >> { %v560_v28 = vadd.f32 %v554_v15, %v550_v22  ;;  %v605_v37 = vmul.f32 %v604_v31, %v604_v31  ;;  %v622_v40 = vsel %vm3453_vm12, %v4226_v34, 0.0  ;;  %v611_v42 = vmul.f32 %v610_v25, %v610_v25  ;;  %v4231_v9 = vld [vmem:[%s5682_s7 + $0x18] sm:$0xff]  ;;  %v4233_v22 = vld [vmem:[%s5682_s7 + $0x28] sm:$0xff] }
 0x434   : >> { %v628_v43 = vsel %vm3453_vm12, %v4227_v38, 0.0  ;;  %v617_v35 = vmul.f32 %v616_v39, %v616_v39  ;;  %v623_v46 = vmul.f32 %v622_v40, %v622_v40  ;;  %v576_v53 = vadd.s32 32, %v527_v50 }
 0x435   : >> { %v570_v32 = vadd.f32 %v564_v24, %v560_v28  ;;  %v634_v54 = vsel %vm3453_vm12, %v4228_v44, 0.0  ;;  %v548_v56 = vsel %vm547_vm10, 0.0, %v544_v19  ;;  %v586_v57 = vadd.s32 40, %v527_v50  ;;  %v4232_v19 = vld [vmem:[%s5682_s7 + $0x20] sm:$0xff] }
 0x436   : >> { %v549_v59 = vadd.f32 %v548_v56, %v540_v47  ;;  %vm567_vm14 = vcmp.eq.s32.totalorder %v566_v49, %v524_v51  ;;  %vm577_vm15 = vcmp.eq.s32.totalorder %v576_v53, %v524_v51  ;;  %v629_v0 = vmul.f32 %v628_v43, %v628_v43 }
 0x437   : >> { %v580_v36 = vadd.f32 %v574_v29, %v570_v32  ;;  %v558_v2 = vsel %vm557_vm13, 0.0, %v554_v15  ;;  %v568_v3 = vsel %vm567_vm14, 0.0, %v564_v24  ;;  %v651_v62 = vsel %vm3453_vm12, %v650_v55, 0.0  ;;  %v4234_v33 = vld [vmem:[%s5699_s8 + $0x8] sm:$0xff]  ;;  %v4236_v43 = vld [vmem:[%s5699_s8 + $0x18] sm:$0xff]  ;;  %v4237_v48 = vld [vmem:[%s5699_s8 + $0x20] sm:$0xff] }
 0x438   : >> { %v559_v60 = vadd.f32 %v558_v2, %v549_v59  ;;  %vm587_vm0 = vcmp.eq.s32.totalorder %v586_v57, %v524_v51  ;;  %v635_v4 = vmul.f32 %v634_v54, %v634_v54  ;;  %v578_v63 = vsel %vm577_vm15, 0.0, %v574_v29  ;;  %v697_v29 = vld [vmem:[%s5699_s8] sm:$0xff]  ;;  %v4238_v54 = vld [vmem:[%s5699_s8 + $0x28] sm:$0xff] }
 0x439   : >> { %v590_v41 = vadd.f32 %v584_v23, %v580_v36  ;;  %v657_v6 = vsel %vm3453_vm12, %v4229_v1, 0.0  ;;  %v652_v8 = vmul.f32 %v651_v62, %v651_v62  ;;  %v588_v10 = vsel %vm587_vm0, 0.0, %v584_v23 }
 0x43a   : >> { %v569_v17 = vadd.f32 %v568_v3, %v559_v60  ;;  %v663_v11 = vsel %vm3453_vm12, %v4230_v5, 0.0  ;;  %v658_v14 = vmul.f32 %v657_v6, %v657_v6  ;;  %v669_v15 = vsel %vm3453_vm12, %v4231_v9, 0.0 }
 0x43b   : >> { %v607_v45 = vadd.f32 %v605_v37, %v590_v41  ;;  %v664_v16 = vmul.f32 %v663_v11, %v663_v11  ;;  %v675_v24 = vsel %vm3453_vm12, %v4232_v19, 0.0  ;;  %v670_v28 = vmul.f32 %v669_v15, %v669_v15 }
 0x43c   : >> { %v579_v12 = vadd.f32 %v578_v63, %v569_v17  ;;  %v681_v30 = vsel %vm3453_vm12, %v4233_v22, 0.0  ;;  %v676_v23 = vmul.f32 %v675_v24, %v675_v24  ;;  %v698_v34 = vsel %vm3453_vm12, %v697_v29, 0.0 }
 0x43d   : >> { %v613_v52 = vadd.f32 %v611_v42, %v607_v45  ;;  %v682_v38 = vmul.f32 %v681_v30, %v681_v30  ;;  %v708_v39 = vsel %vm3453_vm12, %v4234_v33, 0.0  ;;  %v699_v41 = vmul.f32 %v698_v34, %v698_v34 }
 0x43e   : >> { %v589_v18 = vadd.f32 %v588_v10, %v579_v12  ;;  %v709_v47 = vmul.f32 %v708_v39, %v708_v39  ;;  %v690_v50 = vmov %v4508_v50  ;;  %v748_v59 = vsel %vm3453_vm12, %v4238_v54, 0.0 }
 0x43f   : >> { %v619_v58 = vadd.f32 %v617_v35, %v613_v52  ;;  %v687_v51 = vmov %v4516_v51  ;;  %v711_v3 = vadd.s32 8, %v690_v50  ;;  %v749_v60 = vmul.f32 %v748_v59, %v748_v59 }
 0x440   : >> { %v606_v21 = vadd.f32 %v605_v37, %v589_v18  ;;  %v4235_v37 = vld [vmem:[%s5699_s8 + $0x10] sm:$0xff]  ;;  %vm702_vm1 = vcmp.eq.s32.totalorder %v690_v50, %v687_v51  ;;  %v731_v6 = vadd.s32 24, %v690_v50  ;;  %v741_v9 = vadd.s32 32, %v690_v50 }
 0x441   : >> { %v625_v61 = vadd.f32 %v623_v46, %v619_v58  ;;  %vm712_vm2 = vcmp.eq.s32.totalorder %v711_v3, %v687_v51  ;;  %v751_v12 = vadd.s32 40, %v690_v50 }
 0x442   : >> { %v612_v31 = vadd.f32 %v611_v42, %v606_v21  ;;  %v718_v42 = vsel %vm3453_vm12, %v4235_v37, 0.0  ;;  %v713_v10 = vsel %vm712_vm2, 0.0, %v709_v47  ;;  %vm732_vm4 = vcmp.eq.s32.totalorder %v731_v6, %v687_v51 }
 0x443   : >> { %v631_v7 = vadd.f32 %v629_v0, %v625_v61  ;;  %v719_v52 = vmul.f32 %v718_v42, %v718_v42  ;;  %vm742_vm5 = vcmp.eq.s32.totalorder %v741_v9, %v687_v51  ;;  %vm752_vm6 = vcmp.eq.s32.totalorder %v751_v12, %v687_v51 }
 0x444   : >> { %v618_v25 = vadd.f32 %v617_v35, %v612_v31  ;;  %v728_v35 = vsel %vm3453_vm12, %v4236_v43, 0.0 }
 0x445   : >> { %v637_v13 = vadd.f32 %v635_v4, %v631_v7  ;;  %v729_v57 = vmul.f32 %v728_v35, %v728_v35  ;;  %v703_v7 = vsel %vm702_vm1, 0.0, %v699_v41 }
 0x446   : >> { %v624_v40 = vadd.f32 %v623_v46, %v618_v25  ;;  %v738_v46 = vsel %vm3453_vm12, %v4237_v48, 0.0 }
 0x447   : >> { %v654_v20 = vadd.f32 %v652_v8, %v637_v13  ;;  %v739_v1 = vmul.f32 %v738_v46, %v738_v46  ;;  %v733_v19 = vsel %vm732_vm4, 0.0, %v729_v57 }
 0x448   : >> { %v630_v44 = vadd.f32 %v629_v0, %v624_v40 }
 0x449   : >> { %v660_v26 = vadd.f32 %v658_v14, %v654_v20  ;;  %v743_v18 = vsel %vm742_vm5, 0.0, %v739_v1 }
 0x44a   : >> { %v636_v49 = vadd.f32 %v635_v4, %v630_v44  ;;  %v721_v4 = vadd.s32 16, %v690_v50 }
 0x44b   : >> { %v666_v32 = vadd.f32 %v664_v16, %v660_v26 }
 0x44c   : >> { %v653_v55 = vadd.f32 %v652_v8, %v636_v49  ;;  %vm722_vm3 = vcmp.eq.s32.totalorder %v721_v4, %v687_v51 }
 0x44d   : >> { %v672_v36 = vadd.f32 %v670_v28, %v666_v32  ;;  %v723_v13 = vsel %vm722_vm3, 0.0, %v719_v52 }
 0x44e   : >> { %v659_v58 = vadd.f32 %v658_v14, %v653_v55 }
 0x44f   : >> { %v678_v27 = vadd.f32 %v676_v23, %v672_v36 }
 0x450   : >> { %v665_v2 = vadd.f32 %v664_v16, %v659_v58  ;;  %v753_v16 = vsel %vm752_vm6, 0.0, %v749_v60 }
 0x451   : >> { %v684_v45 = vadd.f32 %v682_v38, %v678_v27 }
 0x452   : >> { %v671_v61 = vadd.f32 %v670_v28, %v665_v2 }
 0x453   : >> { %v705_v53 = vadd.f32 %v699_v41, %v684_v45 }
 0x454   : >> { %v677_v63 = vadd.f32 %v676_v23, %v671_v61 }
 0x455   : >> { %v715_v56 = vadd.f32 %v709_v47, %v705_v53 }
 0x456   : >> { %v683_v8 = vadd.f32 %v682_v38, %v677_v63 }
 0x457   : >> { %v725_v0 = vadd.f32 %v719_v52, %v715_v56 }
 0x458   : >> { %v704_v11 = vadd.f32 %v703_v7, %v683_v8 }
 0x459   : >> { %v735_v62 = vadd.f32 %v729_v57, %v725_v0 }
 0x45a   : >> { %v714_v14 = vadd.f32 %v713_v10, %v704_v11 }
 0x45b   : >> { %v745_v5 = vadd.f32 %v739_v1, %v735_v62 }
 0x45c   : >> { %v724_v15 = vadd.f32 %v723_v13, %v714_v14 }
 0x45d   : >> { %v755_v17 = vadd.f32 %v749_v60, %v745_v5 }
 0x45e   : >> { %v734_v20 = vadd.f32 %v733_v19, %v724_v15 }
 0x45f   : >> { %756 = vadd.xlane.f32.xlu0 %v755_v17 }
 0x460   : >> { %v744_v22 = vadd.f32 %v743_v18, %v734_v20 }
 0x462   : >> { %v754_v24 = vadd.f32 %v753_v16, %v744_v22 }
 0x467   : >> { %764 = vadd.xlane.f32.xlu0 %v754_v24 }
 0x4d2   : >> { %v757_v21 = vpop.xlane.xlu0 %756 }
 0x4d3   : >> { %v758_v26 = vrot.slane %v757_v21, 4 }
 0x4d5   : >> { %v759_v28 = vadd.f32 %v758_v26, %v757_v21 }
 0x4d7   : >> { %v760_v29 = vrot.slane %v759_v28, 2 }
 0x4d9   : >> { %v761_v23 = vadd.f32 %v760_v29, %v759_v28 }
 0x4da   : >> { %v765_v30 = vpop.xlane.xlu0 %764 }
 0x4db   : >> { %v766_v31 = vrot.slane %v765_v30, 4  ;;  %v762_v25 = vrot.slane %v761_v23, 1 }
 0x4dd   : >> { %v767_v32 = vadd.f32 %v766_v31, %v765_v30  ;;  %v763_v37 = vadd.f32 %v762_v25, %v761_v23 }
 0x4df   : >> { %v768_v33 = vrot.slane %v767_v32, 2 }
 0x4e1   : >> { %v769_v34 = vadd.f32 %v768_v33, %v767_v32 }
 0x4e3   : >> { %v770_v36 = vrot.slane %v769_v34, 1 }
 0x4e5   : >> { %v771_v38 = vadd.f32 %v770_v36, %v769_v34 }
 0x4e7   : >> { %4262 = vpush %v771_v38 }
 0x4e8   : >> { %4264 = vpush %v763_v37 }
 0x518   : >> { %s4263_s9 = spop %4262 }
 0x519   : >> { %s4265_s10 = spop %4264 }
 0x51a   : >> { %s774_s13 = smul.f32 1e-10, %s4265_s10 }
 0x51c   : >> { %p775_p11 = scmp.le.f32.partialorder %s4263_s9, %s774_s13 }
 0x51e   : >> { %p777_p12 = por %p776_p10, %p775_p11 }
 0x520   : > { %2885 = sbr.rel (!%p777_p12) target bundleno = 359 (0x167), region = 730 }
 0x525 PF: > { %s2890_s18 = smov [#allocation12]  ;;  %v2894_v51 = vmov %v4516_v51  ;;  %v2897_v50 = vmov %v4508_v50  ;;  %s2940_s14 = smov [#allocation15] }
 0x526   : > { %v2944_v51 = vmov %v4516_v51  ;;  %v2947_v50 = vmov %v4508_v50  ;;  %v2898_v39 = vld [vmem:[%s2890_s18] sm:$0xff]  ;;  %vm2901_vm7 = vcmp.eq.s32.totalorder %v2897_v50, %v2894_v51  ;;  %v4239_v40 = vld [vmem:[%s2890_s18 + $0x8] sm:$0xff]  ;;  %v2906_v27 = vadd.s32 8, %v2897_v50  ;;  %v4240_v43 = vld [vmem:[%s2890_s18 + $0x10] sm:$0xff]  ;;  %s2886_s24 = sand.u32 7, %s4427_s12   ;;  %s5863_s20 = scalar_lea.vmem [#allocation5], %s4478_s28 }
 0x527   : > { %vm2951_vm8 = vcmp.eq.s32.totalorder %v2947_v50, %v2944_v51  ;;  %v2902_v41 = vsel %vm2901_vm7, %v2898_v39, 0.0  ;;  %v2912_v42 = vadd.s32 16, %v2897_v50  ;;  %v2918_v44 = vadd.s32 24, %v2897_v50  ;;  %v4241_v47 = vld [vmem:[%s2890_s18 + $0x18] sm:$0xff]  ;;  %v4242_v48 = vld [vmem:[%s2890_s18 + $0x20] sm:$0xff]  ;;  %v4244_v46 = vld [vmem:[%s2940_s14 + $0x8] sm:$0xff] }
 0x528   : > { %v2924_v45 = vadd.s32 32, %v2897_v50  ;;  %vm2907_vm12 = vcmp.eq.s32.totalorder %v2906_v27, %v2894_v51  ;;  %v2930_v35 = vadd.s32 40, %v2897_v50  ;;  %v2956_v49 = vadd.s32 8, %v2947_v50  ;;  %v2948_v54 = vld [vmem:[%s2940_s14] sm:$0xff]  ;;  %v4245_v55 = vld [vmem:[%s2940_s14 + $0x10] sm:$0xff]  ;;  %v4243_v57 = vld [vmem:[%s2890_s18 + $0x28] sm:$0xff] }
 0x529   : > { %v2962_v53 = vadd.s32 16, %v2947_v50  ;;  %v2908_v52 = vsel %vm2907_vm12, %v4239_v40, %v2902_v41  ;;  %vm2913_vm11 = vcmp.eq.s32.totalorder %v2912_v42, %v2894_v51  ;;  %vm2919_vm9 = vcmp.eq.s32.totalorder %v2918_v44, %v2894_v51  ;;  %v4246_v1 = vld [vmem:[%s2940_s14 + $0x18] sm:$0xff]  ;;  %v4247_v60 = vld [vmem:[%s2940_s14 + $0x20] sm:$0xff]  ;;  %v4248_v63 = vld [vmem:[%s2940_s14 + $0x28] sm:$0xff]  ;;  %s2887_s25 = scalar_lea.vmem [#allocation4], %s2886_s24  ;;  %s2889_s26 = scalar_lea.vmem [#allocation6], %s2886_s24 }
 0x52a   : > { %vm2925_vm10 = vcmp.eq.s32.totalorder %v2924_v45, %v2894_v51  ;;  %v2914_v56 = vsel %vm2913_vm11, %v4240_v43, %v2908_v52  ;;  %vm2931_vm13 = vcmp.eq.s32.totalorder %v2930_v35, %v2894_v51  ;;  %v2952_v59 = vsel %vm2951_vm8, %v2948_v54, 0.0  ;;  %s2891_s25 = smov %s2887_s25  ;;  %s2941_s26 = smov %s2889_s26 }
 0x52b   : > { %vm2957_vm14 = vcmp.eq.s32.totalorder %v2956_v49, %v2944_v51  ;;  %v2920_v58 = vsel %vm2919_vm9, %v4241_v47, %v2914_v56  ;;  %vm2963_vm15 = vcmp.eq.s32.totalorder %v2962_v53, %v2944_v51  ;;  %v2968_v2 = vadd.s32 24, %v2947_v50  ;;  %s5864_s23 = scalar_lea.vmem [#allocation7], %s4478_s28  ;;  %s3029_s22 = sshrl.u32 (%p4441_p3), %s4427_s12, 3 }
 0x52c   : > { %v2958_v0 = vsel %vm2957_vm14, %v4244_v46, %v2952_v59  ;;  %v2926_v3 = vsel %vm2925_vm10, %v4242_v48, %v2920_v58  ;;  %v2974_v61 = vadd.s32 32, %v2947_v50  ;;  %v2980_v4 = vadd.s32 40, %v2947_v50  ;;  %s5865_s27 = scalar_lea.vmem (%p4441_p3), [#allocation5], %s4478_s28  ;;  %s4251_s30 = sshll.u32 (%p4441_p3), %s3029_s22, 1 }
 0x52d   : > { %v2964_v62 = vsel %vm2963_vm15, %v4245_v55, %v2958_v0  ;;  %v2932_v5 = vsel %vm2931_vm13, %v4243_v57, %v2926_v3  ;;  %vm2969_vm0 = vcmp.eq.s32.totalorder %v2968_v2, %v2944_v51  ;;  %s5866_s11 = sld [smem:[#allocation36_spill]] (%p4441_p3) }
 0x52e   : > { %v2933_v6 = vrot.slane %v2932_v5, 4  ;;  %v2970_v17 = vsel %vm2969_vm0, %v4246_v1, %v2964_v62  ;;  %vm2975_vm1 = vcmp.eq.s32.totalorder %v2974_v61, %v2944_v51  ;;  %vm2981_vm2 = vcmp.eq.s32.totalorder %v2980_v4, %v2944_v51 }
 0x52f   : > { %v2976_v7 = vsel %vm2975_vm1, %v4247_v60, %v2970_v17 }
 0x530   : > { %v2934_v8 = vadd.f32 %v2933_v6, %v2932_v5  ;;  %v2982_v9 = vsel %vm2981_vm2, %v4248_v63, %v2976_v7 }
 0x531   : > { %v2983_v10 = vrot.slane %v2982_v9, 4 }
 0x532   : > { %v2935_v11 = vrot.slane %v2934_v8, 2 }
 0x533   : > { %v2984_v12 = vadd.f32 %v2983_v10, %v2982_v9  ;;  %s3031_s21 = scalar_lea.vmem (%p4441_p3), %s5866_s11, %s4251_s30 }
 0x534   : > { %v2936_v13 = vadd.f32 %v2935_v11, %v2934_v8 }
 0x535   : > { %v2985_v14 = vrot.slane %v2984_v12, 2 }
 0x536   : > { %v2937_v19 = vrot.slane %v2936_v13, 1 }
 0x537   : > { %v2986_v50 = vadd.f32 %v2985_v14, %v2984_v12 }
 0x538   : > { %v2938_v15 = vadd.f32 %v2937_v19, %v2936_v13 }
 0x539   : > { %v2987_v18 = vrot.slane %v2986_v50, 1 }
 0x53a   : > { %2939 = vst [vmem:[%s2891_s25] sm:$0x1] %v2938_v15 }
 0x53b   : > { %v2988_v51 = vadd.f32 %v2987_v18, %v2986_v50 }
 0x53d   : > { %2989 = vst [vmem:[%s2941_s26] sm:$0x1] %v2988_v51 }
 0x541   : > { %v2992_v20 = vld [vmem:[#allocation4] sm:$0x3]  ;;  %3028 = sbr.rel (!%p4441_p3) target bundleno = 1355 (0x54b), region = 114 }
 0x542   : > { %2995 = vst [vmem:[%s5863_s20] sm:$0x3] %v2992_v20 }
 0x544   : > { %v2998_v16 = vld [vmem:[#allocation6] sm:$0x3] }
 0x545   : > { %3001 = vst [vmem:[%s5864_s23] sm:$0x3] %v2998_v16 }
 0x549   : > { %v3048_v22 = vld [vmem:[%s5865_s27] sm:$0x3] }
 0x54a   : > { %3049 = vst [vmem:[%s3031_s21] sm:$0x3] %v3048_v22 }
 0x54b PF: > { %3067 = sbr.rel (!%p4441_p3) target bundleno = 1365 (0x555), region = 148  ;;  %s3068_s17 = sshrl.u32 (%p4441_p3), %s4427_s12, 3 }
 0x54c   : > { %s5867_s16 = scalar_lea.vmem (%p4441_p3), [#allocation7], %s4478_s28  ;;  %s4252_s0 = sshll.u32 (%p4441_p3), %s3068_s17, 1 }
 0x54d   : > { %s5868_s3 = sld [smem:[#allocation37_spill]] (%p4441_p3) }
 0x551   : > { %v3087_v24 = vld [vmem:[%s5867_s16] sm:$0x3] }
 0x553   : > { %s3070_s4 = scalar_lea.vmem %s5868_s3, %s4252_s0 }
 0x554   : > { %3088 = vst [vmem:[%s3070_s4] sm:$0x3] %v3087_v24 }
 0x555 PF: > { %s5869_s5 = sld [smem:[#allocation28_spill]]  ;;  %s5759_s6 = smul.u32 48, %s4427_s12 }
 0x556   : > { %s5870_s19 = sld [smem:[#allocation29_spill]] }
 0x557   : > { %s5871_s8 = sld [smem:[#allocation38_spill]] }
 0x558   : > { %s5872_s12 = sld [smem:[#allocation30_spill]] }
 0x559   : > { %s5873_s18 = sld [smem:[#allocation39_spill]] }
 0x55a   : > { %s5874_s24 = sld [smem:[#allocation31_spill]] }
 0x55b   : > { %v3118_v21 = vld [vmem:[%s5869_s5] sm:$0xff]  ;;  %v3120_v26 = vld [vmem:[%s5869_s5 + $0x8] sm:$0xff]  ;;  %v3122_v28 = vld [vmem:[%s5869_s5 + $0x10] sm:$0xff]  ;;  %s5875_s20 = sld [smem:[#allocation40_spill]] }
 0x55c   : > { %v3124_v29 = vld [vmem:[%s5869_s5 + $0x18] sm:$0xff]  ;;  %v3126_v30 = vld [vmem:[%s5869_s5 + $0x20] sm:$0xff]  ;;  %v3128_v31 = vld [vmem:[%s5869_s5 + $0x28] sm:$0xff]  ;;  %s5876_s30 = sld [smem:[#allocation41_spill]] }
 0x55d   : > { %s3105_s9 = scalar_lea.vmem %s5871_s8, %s5759_s6  ;;  %v3147_v32 = vld [vmem:[%s5870_s19] sm:$0xff]  ;;  %v3149_v23 = vld [vmem:[%s5870_s19 + $0x8] sm:$0xff]  ;;  %v3151_v33 = vld [vmem:[%s5870_s19 + $0x10] sm:$0xff] }
 0x55e   : > { %3119 = vst [vmem:[%s3105_s9] sm:$0xff] %v3118_v21  ;;  %v3153_v34 = vld [vmem:[%s5870_s19 + $0x18] sm:$0xff]  ;;  %v3155_v25 = vld [vmem:[%s5870_s19 + $0x20] sm:$0xff]  ;;  %v3157_v36 = vld [vmem:[%s5870_s19 + $0x28] sm:$0xff] }
 0x55f   : > { %3121 = vst [vmem:[%s3105_s9 + $0x8] sm:$0xff] %v3120_v26  ;;  %s3134_s14 = scalar_lea.vmem %s5873_s18, %s5759_s6  ;;  %v3176_v38 = vld [vmem:[%s5872_s12] sm:$0xff]  ;;  %v3178_v37 = vld [vmem:[%s5872_s12 + $0x8] sm:$0xff]  ;;  %v3180_v39 = vld [vmem:[%s5872_s12 + $0x10] sm:$0xff] }
 0x560   : > { %3123 = vst [vmem:[%s3105_s9 + $0x10] sm:$0xff] %v3122_v28  ;;  %v3182_v40 = vld [vmem:[%s5872_s12 + $0x18] sm:$0xff]  ;;  %v3184_v27 = vld [vmem:[%s5872_s12 + $0x20] sm:$0xff]  ;;  %v3186_v41 = vld [vmem:[%s5872_s12 + $0x28] sm:$0xff] }
 0x561   : > { %3125 = vst [vmem:[%s3105_s9 + $0x18] sm:$0xff] %v3124_v29  ;;  %s3163_s23 = scalar_lea.vmem %s5875_s20, %s5759_s6  ;;  %v3205_v43 = vld [vmem:[%s5874_s24] sm:$0xff]  ;;  %v3207_v42 = vld [vmem:[%s5874_s24 + $0x8] sm:$0xff]  ;;  %v3209_v44 = vld [vmem:[%s5874_s24 + $0x10] sm:$0xff] }
 0x562   : > { %3127 = vst [vmem:[%s3105_s9 + $0x20] sm:$0xff] %v3126_v30  ;;  %s3192_s15 = scalar_lea.vmem %s5876_s30, %s5759_s6  ;;  %v3211_v45 = vld [vmem:[%s5874_s24 + $0x18] sm:$0xff]  ;;  %v3213_v47 = vld [vmem:[%s5874_s24 + $0x20] sm:$0xff]  ;;  %v3215_v48 = vld [vmem:[%s5874_s24 + $0x28] sm:$0xff] }
 0x563   : > { %3129 = vst [vmem:[%s3105_s9 + $0x28] sm:$0xff] %v3128_v31 }
 0x564   : > { %3148 = vst [vmem:[%s3134_s14] sm:$0xff] %v3147_v32 }
 0x565   : > { %3150 = vst [vmem:[%s3134_s14 + $0x8] sm:$0xff] %v3149_v23 }
 0x566   : > { %3152 = vst [vmem:[%s3134_s14 + $0x10] sm:$0xff] %v3151_v33 }
 0x567   : > { %3154 = vst [vmem:[%s3134_s14 + $0x18] sm:$0xff] %v3153_v34 }
 0x568   : > { %3156 = vst [vmem:[%s3134_s14 + $0x20] sm:$0xff] %v3155_v25 }
 0x569   : > { %3158 = vst [vmem:[%s3134_s14 + $0x28] sm:$0xff] %v3157_v36 }
 0x56a   : > { %3177 = vst [vmem:[%s3163_s23] sm:$0xff] %v3176_v38 }
 0x56b   : > { %3179 = vst [vmem:[%s3163_s23 + $0x8] sm:$0xff] %v3178_v37 }
 0x56c   : > { %3181 = vst [vmem:[%s3163_s23 + $0x10] sm:$0xff] %v3180_v39 }
 0x56d   : > { %3183 = vst [vmem:[%s3163_s23 + $0x18] sm:$0xff] %v3182_v40 }
 0x56e   : > { %3185 = vst [vmem:[%s3163_s23 + $0x20] sm:$0xff] %v3184_v27 }
 0x56f   : > { %3187 = vst [vmem:[%s3163_s23 + $0x28] sm:$0xff] %v3186_v41 }
 0x570   : > { %3206 = vst [vmem:[%s3192_s15] sm:$0xff] %v3205_v43 }
 0x571   : > { %3208 = vst [vmem:[%s3192_s15 + $0x8] sm:$0xff] %v3207_v42 }
 0x572   : > { %3210 = vst [vmem:[%s3192_s15 + $0x10] sm:$0xff] %v3209_v44 }
 0x573   : > { %3212 = vst [vmem:[%s3192_s15 + $0x18] sm:$0xff] %v3211_v45 }
 0x574   : > { %3214 = vst [vmem:[%s3192_s15 + $0x20] sm:$0xff] %v3213_v47 }
 0x575   : > { %3216 = vst [vmem:[%s3192_s15 + $0x28] sm:$0xff] %v3215_v48 }
 0x576 PF: > { %s5877_s11 = sld [smem:[#allocation26_spill]] }
 0x577   : > { %s5878_s30 = sld [smem:[#allocation25_spill]] }
 0x578   : > { %s5879_s10 = sld [smem:[#allocation27_spill]] }
 0x57c   : > { %p13_p13 = scmp.ge.s32.totalorder %s5877_s11, 4  }
 0x57e   :  { %15 = sbr.rel (!%p13_p13) target bundleno = 13 (0xd), region = 741 }

// kernel: rm_drl_forward.4
= control target key start
LH: loop header
LB: loop body
LE: loop exit
PB: predicated region body
PF: predicated region fallthrough
CT: control target
= control target key end

     0   :  { %s570_s12 = smov 0   ;;  %s729_s0 = inlined_call_operand.vmem [shape: f32[2,116,116], index: 0, kind: input, shape index: {}]   ;;  %s730_s1 = inlined_call_operand.vmem [shape: f32[96,116], index: 1, kind: input, shape index: {}]   ;;  %s731_s2 = inlined_call_operand.vmem [shape: f32[116,96], index: 2, kind: input, shape index: {}]   ;;  %s732_s3 = inlined_call_operand.vmem [shape: f32[2,96,96], index: 3, kind: output, shape index: {}]  }
   0x1 LB: > { %s467_s13 = sadd.s32 4294967295, %s548_s12   ;;  %p471_p0 = scmp.ge.s32.totalorder %s548_s12, 1  ;;  %s548_s12 = sphi %s570_s12, %s13_s12  }
   0x2   : > { %p137_p1 = scmp.lt.s32.totalorder %s548_s12, 3 }
   0x4   : > { %p138_p2 = pnand %p471_p0, %p137_p1 }
   0x5   : > { %p161_p3 = scmp.lt.s32.totalorder (!%p138_p2), %s467_s13, 1 }
   0x6   : > { %141 = sbr.rel (%p138_p2) target bundleno = 350 (0x15e), region = 32 }
   0xb   : > { %s734_s13 = smov (!%p161_p3, %s467_s13), 1  ;;  %vm250_vm0 = vcmask 1043456   ;;  %v177_v15 = vld [vmem:[%s730_s1 + $0x30] sm:$0xff]  ;;  %vm213_vm1 = vcmask 949248   ;;  %v171_v16 = vld [vmem:[%s730_s1] sm:$0xff]  ;;  %v178_v17 = vld [vmem:[%s730_s1 + $0x38] sm:$0xff] }
   0xc   : > { %s532_s14 = smul.u32 120, %s734_s13  ;;  %v172_v18 = vld [vmem:[%s730_s1 + $0x8] sm:$0xff]  ;;  %v197_v19 = vld [vmem:[%s731_s2 + $0x70] sm:$0xf]  ;;  %v195_v21 = vld [vmem:[%s731_s2 + $0x60] sm:$0xff]  ;;  %vm399_vm2 = vcmask 785408  }
   0xd   : > { %517 = vmatpush.msk.msra.mxu3 %vm250_vm0, %v197_v19  ;;  %v196_v20 = vld [vmem:[%s731_s2 + $0x68] sm:$0xff]  ;;  %487 = vmatpush.msk.msra.mxu1 %vm250_vm0, %v197_v19  ;;  %v194_v22 = vld [vmem:[%s731_s2 + $0x58] sm:$0xff]  ;;  %v179_v23 = vld [vmem:[%s730_s1 + $0x40] sm:$0xff]  ;;  %s533_s22 = smul.u32 96, %s734_s13 }
   0xe   : > { %s584_s17 = scalar_lea.vmem %s729_s0, %s532_s14  ;;  %v173_v24 = vld [vmem:[%s730_s1 + $0x10] sm:$0xff]  ;;  %v192_v26 = vld [vmem:[%s731_s2 + $0x48] sm:$0xff]  ;;  %v191_v27 = vld [vmem:[%s731_s2 + $0x40] sm:$0xff] }
   0xf   : > { %v212_v0 = vld [vmem:[%s584_s17 + $0x70] sm:$0xf]  ;;  %v211_v1 = vld [vmem:[%s584_s17 + $0x68] sm:$0xff]  ;;  %v210_v2 = vld [vmem:[%s584_s17 + $0x60] sm:$0xff]  ;;  %518 = vmatpush.msra.mxu3 %v196_v20  ;;  %348 = vmatpush.msra.mxu1 %v196_v20  ;;  %s170_s25 = scalar_lea.vmem %s732_s3, %s533_s22 }
  0x10   : > { %502 = vmatpush.msk.msra.mxu2 %vm250_vm0, %v212_v0  ;;  %474 = vmatpush.msk.msra.mxu0 %vm250_vm0, %v212_v0  ;;  %v209_v3 = vld [vmem:[%s584_s17 + $0x58] sm:$0xff]  ;;  %v208_v4 = vld [vmem:[%s584_s17 + $0x50] sm:$0xff]  ;;  %v207_v5 = vld [vmem:[%s584_s17 + $0x48] sm:$0xff] }
  0x11   : > { %v206_v6 = vld [vmem:[%s584_s17 + $0x40] sm:$0xff]  ;;  %v205_v7 = vld [vmem:[%s584_s17 + $0x38] sm:$0xff]  ;;  %v204_v8 = vld [vmem:[%s584_s17 + $0x30] sm:$0xff]  ;;  %519 = vmatpush.msra.mxu3 %v195_v21  ;;  %349 = vmatpush.msra.mxu1 %v195_v21 }
  0x12   : > { %503 = vmatpush.msra.mxu2 %v211_v1  ;;  %256 = vmatpush.msra.mxu0 %v211_v1  ;;  %v203_v9 = vld [vmem:[%s584_s17 + $0x28] sm:$0xff]  ;;  %v202_v10 = vld [vmem:[%s584_s17 + $0x20] sm:$0xff]  ;;  %v201_v11 = vld [vmem:[%s584_s17 + $0x18] sm:$0xff] }
  0x13   : > { %v200_v12 = vld [vmem:[%s584_s17 + $0x10] sm:$0xff]  ;;  %v199_v13 = vld [vmem:[%s584_s17 + $0x8] sm:$0xff]  ;;  %v198_v14 = vld [vmem:[%s584_s17] sm:$0xff]  ;;  %520 = vmatpush.msra.mxu3 %v194_v22  ;;  %350 = vmatpush.msra.mxu1 %v194_v22 }
  0x14   : > { %504 = vmatpush.msra.mxu2 %v210_v2  ;;  %257 = vmatpush.msra.mxu0 %v210_v2  ;;  %v193_v25 = vld [vmem:[%s731_s2 + $0x50] sm:$0xff]  ;;  %v190_v28 = vld [vmem:[%s731_s2 + $0x38] sm:$0xff]  ;;  %v180_v29 = vld [vmem:[%s730_s1 + $0x48] sm:$0xff] }
  0x15   : > { %521 = vmatpush.msra.mxu3 %v193_v25  ;;  %351 = vmatpush.msra.mxu1 %v193_v25  ;;  %v174_v30 = vld [vmem:[%s730_s1 + $0x18] sm:$0xff]  ;;  %v189_v31 = vld [vmem:[%s731_s2 + $0x30] sm:$0xff]  ;;  %v188_v32 = vld [vmem:[%s731_s2 + $0x28] sm:$0xff] }
  0x16   : > { %505 = vmatpush.msra.mxu2 %v209_v3  ;;  %258 = vmatpush.msra.mxu0 %v209_v3  ;;  %v187_v33 = vld [vmem:[%s731_s2 + $0x20] sm:$0xff]  ;;  %v186_v34 = vld [vmem:[%s731_s2 + $0x18] sm:$0xff]  ;;  %v181_v35 = vld [vmem:[%s730_s1 + $0x50] sm:$0xff] }
  0x17   : > { %522 = vmatpush.msra.mxu3 %v192_v26  ;;  %352 = vmatpush.msra.mxu1 %v192_v26  ;;  %v175_v36 = vld [vmem:[%s730_s1 + $0x20] sm:$0xff]  ;;  %v185_v37 = vld [vmem:[%s731_s2 + $0x10] sm:$0xff]  ;;  %v184_v38 = vld [vmem:[%s731_s2 + $0x8] sm:$0xff] }
  0x18   : > { %506 = vmatpush.msra.mxu2 %v208_v4  ;;  %259 = vmatpush.msra.mxu0 %v208_v4  ;;  %v182_v39 = vld [vmem:[%s730_s1 + $0x58] sm:$0xff]  ;;  %v176_v40 = vld [vmem:[%s730_s1 + $0x28] sm:$0xff]  ;;  %v183_v41 = vld [vmem:[%s731_s2] sm:$0xff] }
  0x19   : > { %523 = vmatpush.msra.mxu3 %v191_v27  ;;  %353 = vmatpush.msra.mxu1 %v191_v27 }
  0x1a   : > { %507 = vmatpush.msra.mxu2 %v207_v5  ;;  %260 = vmatpush.msra.mxu0 %v207_v5 }
  0x1b   : > { %524 = vmatpush.msra.mxu3 %v190_v28  ;;  %354 = vmatpush.msra.mxu1 %v190_v28 }
  0x1c   : > { %508 = vmatpush.msra.mxu2 %v206_v6  ;;  %261 = vmatpush.msra.mxu0 %v206_v6 }
  0x1d   : > { %525 = vmatpush.msra.mxu3 %v189_v31  ;;  %355 = vmatpush.msra.mxu1 %v189_v31 }
  0x1e   : > { %509 = vmatpush.msra.mxu2 %v205_v7  ;;  %262 = vmatpush.msra.mxu0 %v205_v7 }
  0x1f   : > { %526 = vmatpush.msra.mxu3 %v188_v32  ;;  %356 = vmatpush.msra.mxu1 %v188_v32 }
  0x20   : > { %510 = vmatpush.msra.mxu2 %v204_v8  ;;  %263 = vmatpush.msra.mxu0 %v204_v8 }
  0x21   : > { %527 = vmatpush.msra.mxu3 %v187_v33  ;;  %357 = vmatpush.msra.mxu1 %v187_v33 }
  0x22   : > { %511 = vmatpush.msra.mxu2 %v203_v9  ;;  %264 = vmatpush.msra.mxu0 %v203_v9 }
  0x23   : > { %528 = vmatpush.msra.mxu3 %v186_v34  ;;  %358 = vmatpush.msra.mxu1 %v186_v34 }
  0x24   : > { %512 = vmatpush.msra.mxu2 %v202_v10  ;;  %265 = vmatpush.msra.mxu0 %v202_v10 }
  0x25   : > { %529 = vmatpush.msra.mxu3 %v185_v37  ;;  %359 = vmatpush.msra.mxu1 %v185_v37 }
  0x26   : > { %513 = vmatpush.msra.mxu2 %v201_v11  ;;  %266 = vmatpush.msra.mxu0 %v201_v11 }
  0x27   : > { %530 = vmatpush.msra.mxu3 %v184_v38  ;;  %360 = vmatpush.msra.mxu1 %v184_v38 }
  0x28   : > { %514 = vmatpush.msra.mxu2 %v200_v12  ;;  %267 = vmatpush.msra.mxu0 %v200_v12 }
  0x29   : > { %531 = vmatpush.msra.mxu3 %v183_v41  ;;  %361 = vmatpush.msra.mxu1 %v183_v41 }
  0x2a   : > { %515 = vmatpush.msra.mxu2 %v199_v13  ;;  %268 = vmatpush.msra.mxu0 %v199_v13 }
  0x2c   : > { %516 = vmatpush.msra.mxu2 %v198_v14  ;;  %269 = vmatpush.msra.mxu0 %v198_v14 }
  0x2d   : > { %481 = vmatmul.msk.f32.vlgmr.msra.gmra.mxu2 %vm213_vm1, %v177_v15  ;;  %475 = vmatmul.msk.f32.vlgmr.msra.gmra.mxu0 %vm213_vm1, %v171_v16 }
  0x35   : > { %482 = vmatmul.msk.f32.gmra.mxu2 %vm213_vm1, %v178_v17  ;;  %476 = vmatmul.msk.f32.gmra.mxu0 %vm213_vm1, %v172_v18 }
  0x3d   : > { %483 = vmatmul.msk.f32.gmra.mxu2 %vm213_vm1, %v179_v23  ;;  %477 = vmatmul.msk.f32.gmra.mxu0 %vm213_vm1, %v173_v24 }
  0x45   : > { %484 = vmatmul.msk.f32.gmra.mxu2 %vm213_vm1, %v180_v29  ;;  %478 = vmatmul.msk.f32.gmra.mxu0 %vm213_vm1, %v174_v30 }
  0x4d   : > { %485 = vmatmul.msk.f32.gmra.mxu2 %vm213_vm1, %v181_v35  ;;  %479 = vmatmul.msk.f32.gmra.mxu0 %vm213_vm1, %v175_v36 }
  0x55   : > { %486 = vmatmul.msk.f32.gmra.mxu2 %vm213_vm1, %v182_v39  ;;  %480 = vmatmul.msk.f32.gmra.mxu0 %vm213_vm1, %v176_v40 }
  0xaa   : > { %v271_v42 = vpop.f32.mrf.mxu0 }
  0xab   : > { %488 = vmatmul.msk.f32.vlgmr.msra.gmra.mxu1 %vm213_vm1, %v271_v42 }
  0xb0   : > { %v289_v43 = vpop.f32.mrf.mxu2 }
  0xb1   : > { %494 = vmatmul.msk.f32.vlgmr.msra.gmra.mxu3 %vm213_vm1, %v289_v43 }
  0xb2   : > { %v274_v44 = vpop.f32.mrf.mxu0 }
  0xb3   : > { %489 = vmatmul.msk.f32.gmra.mxu1 %vm213_vm1, %v274_v44 }
  0xb8   : > { %v292_v45 = vpop.f32.mrf.mxu2 }
  0xb9   : > { %495 = vmatmul.msk.f32.gmra.mxu3 %vm213_vm1, %v292_v45 }
  0xba   : > { %v277_v46 = vpop.f32.mrf.mxu0 }
  0xbb   : > { %490 = vmatmul.msk.f32.gmra.mxu1 %vm213_vm1, %v277_v46 }
  0xc0   : > { %v295_v47 = vpop.f32.mrf.mxu2 }
  0xc1   : > { %496 = vmatmul.msk.f32.gmra.mxu3 %vm213_vm1, %v295_v47 }
  0xc2   : > { %v280_v48 = vpop.f32.mrf.mxu0 }
  0xc3   : > { %491 = vmatmul.msk.f32.gmra.mxu1 %vm213_vm1, %v280_v48 }
  0xc8   : > { %v298_v49 = vpop.f32.mrf.mxu2 }
  0xc9   : > { %497 = vmatmul.msk.f32.gmra.mxu3 %vm213_vm1, %v298_v49 }
  0xca   : > { %v283_v50 = vpop.f32.mrf.mxu0 }
  0xcb   : > { %492 = vmatmul.msk.f32.gmra.mxu1 %vm213_vm1, %v283_v50 }
  0xd0   : > { %v301_v51 = vpop.f32.mrf.mxu2 }
  0xd1   : > { %498 = vmatmul.msk.f32.gmra.mxu3 %vm213_vm1, %v301_v51 }
  0xd2   : > { %v286_v52 = vpop.f32.mrf.mxu0 }
  0xd3   : > { %493 = vmatmul.msk.f32.gmra.mxu1 %vm213_vm1, %v286_v52 }
  0xd8   : > { %v304_v53 = vpop.f32.mrf.mxu2 }
  0xd9   : > { %499 = vmatmul.msk.f32.gmra.mxu3 %vm213_vm1, %v304_v53 }
 0x128   : > { %v363_v54 = vpop.f32.mrf.mxu1 }
 0x129   : > { %400 = vst.msk [vmem:[%s170_s25] sm:$0xff] %vm399_vm2, %v363_v54 }
 0x130   : > { %v366_v55 = vpop.f32.mrf.mxu1 }
 0x131   : > { %401 = vst.msk [vmem:[%s170_s25 + $0x8] sm:$0xff] %vm399_vm2, %v366_v55 }
 0x134   : > { %v381_v56 = vpop.f32.mrf.mxu3 }
 0x135   : > { %406 = vst.msk [vmem:[%s170_s25 + $0x30] sm:$0xff] %vm399_vm2, %v381_v56 }
 0x138   : > { %v369_v57 = vpop.f32.mrf.mxu1 }
 0x139   : > { %402 = vst.msk [vmem:[%s170_s25 + $0x10] sm:$0xff] %vm399_vm2, %v369_v57 }
 0x13c   : > { %v384_v58 = vpop.f32.mrf.mxu3 }
 0x13d   : > { %407 = vst.msk [vmem:[%s170_s25 + $0x38] sm:$0xff] %vm399_vm2, %v384_v58 }
 0x140   : > { %v372_v59 = vpop.f32.mrf.mxu1 }
 0x141   : > { %403 = vst.msk [vmem:[%s170_s25 + $0x18] sm:$0xff] %vm399_vm2, %v372_v59 }
 0x144   : > { %v387_v60 = vpop.f32.mrf.mxu3 }
 0x145   : > { %408 = vst.msk [vmem:[%s170_s25 + $0x40] sm:$0xff] %vm399_vm2, %v387_v60 }
 0x148   : > { %v375_v61 = vpop.f32.mrf.mxu1 }
 0x149   : > { %404 = vst.msk [vmem:[%s170_s25 + $0x20] sm:$0xff] %vm399_vm2, %v375_v61 }
 0x14c   : > { %v390_v62 = vpop.f32.mrf.mxu3 }
 0x14d   : > { %409 = vst.msk [vmem:[%s170_s25 + $0x48] sm:$0xff] %vm399_vm2, %v390_v62 }
 0x150   : > { %v378_v63 = vpop.f32.mrf.mxu1 }
 0x151   : > { %405 = vst.msk [vmem:[%s170_s25 + $0x28] sm:$0xff] %vm399_vm2, %v378_v63 }
 0x154   : > { %v393_v0 = vpop.f32.mrf.mxu3 }
 0x155   : > { %410 = vst.msk [vmem:[%s170_s25 + $0x50] sm:$0xff] %vm399_vm2, %v393_v0 }
 0x15c   : > { %v396_v1 = vpop.f32.mrf.mxu3 }
 0x15d   : > { %411 = vst.msk [vmem:[%s170_s25 + $0x58] sm:$0xff] %vm399_vm2, %v396_v1 }
 0x15e PF: > { %s13_s12 = sadd.s32 1, %s548_s12  }
 0x15f   : > { %p10_p4 = scmp.ge.s32.totalorder %s13_s12, 4  }
 0x161   :  { %12 = sbr.rel (!%p10_p4) target bundleno = 1 (0x1), region = 62 }

// kernel: custom-call.7
= control target key start
LH: loop header
LB: loop body
LE: loop exit
PB: predicated region body
PF: predicated region fallthrough
CT: control target
= control target key end

     0   :  { %s5065_s0 = inlined_call_operand.vmem [shape: f32[2,33,33], index: 0, kind: input, shape index: {}]   ;;  %s5066_s1 = inlined_call_operand.vmem [shape: f32[2,33,33], index: 1, kind: input, shape index: {}]   ;;  %s5067_s2 = inlined_call_operand.vmem [shape: f32[2,33,33], index: 2, kind: input, shape index: {}]   ;;  %s5068_s3 = inlined_call_operand.vmem [shape: f32[2,33,33], index: 3, kind: input, shape index: {}]   ;;  %s5069_s4 = inlined_call_operand.vmem [shape: f32[2,33], index: 4, kind: output, shape index: {0}]   ;;  %s5070_s5 = inlined_call_operand.vmem [shape: f32[2,33], index: 5, kind: output, shape index: {1}]   ;;  %s5071_s6 = inlined_call_operand.vmem [shape: f32[2,33,33], index: 6, kind: output, shape index: {2}]   ;;  %s5072_s7 = inlined_call_operand.vmem [shape: f32[2,33,33], index: 7, kind: output, shape index: {3}]   ;;  %s5073_s8 = inlined_call_operand.vmem [shape: f32[2,33,33], index: 8, kind: output, shape index: {4}]   ;;  %s5074_s9 = inlined_call_operand.vmem [shape: f32[2,33,33], index: 9, kind: output, shape index: {5}]  }
   0x1   :  { %5086 = sst [smem:[#allocation30_spill]] %s5065_s0 }
   0x2   :  { %5087 = sst [smem:[#allocation31_spill]] %s5066_s1 }
   0x3   :  { %5088 = sst [smem:[#allocation32_spill]] %s5067_s2 }
   0x4   :  { %5089 = sst [smem:[#allocation33_spill]] %s5068_s3 }
   0x5   :  { %5090 = sst [smem:[#allocation34_spill]] %s5071_s6 }
   0x6   :  { %5091 = sst [smem:[#allocation35_spill]] %s5072_s7 }
   0x7   :  { %5092 = sst [smem:[#allocation36_spill]] %s5073_s8 }
   0x8   :  { %5093 = sst [smem:[#allocation37_spill]] %s5074_s9 }
   0x9   :  { %s3824_s30 = smov 0   ;;  %s3826_s10 = smov 0  }
   0xa   :  { %s3828_s11 = smov 0  }
   0xb LB: > { %5094 = sst [smem:[#allocation25_spill]] %s3757_s10  ;;  %s3840_s12 = sadd.s32 4294967295, %s3761_s11   ;;  %s3761_s11 = sphi %s3828_s11, %s5118_s11   ;;  %s3757_s10 = sphi %s3826_s10, %s5120_s10   ;;  %s3753_s30 = sphi %s3824_s30, %s5119_s30  }
   0xc   : > { %s3843_s13 = sadd.s32 1, %s3761_s11   ;;  %s20_s14 = sshrl.u32 %s3761_s11, 3 }
   0xd   : > { %5095 = sst [smem:[#allocation26_spill]] %s3843_s13  ;;  %s21_s15 = sshrl.u32 %s3843_s13, 3 }
   0xe   : > { %s22_s16 = ssub.s32 %s20_s14, %s21_s15  ;;  %s25_s17 = sadd.s32 1, %s3757_s10 }
   0xf   : > { %p23_p0 = scmp.eq.s32.totalorder %s22_s16, 0  ;;  %p35_p1 = scmp.ne.s32.totalorder %s3757_s10, %s3753_s30 }
  0x10   : > { %p36_p2 = scmp.eq.s32.totalorder %s3840_s12, 1  ;;  %p3238_p4 = scmp.ge.s32.totalorder %s3761_s11, 2 }
  0x11   : > { %s3852_s18 = scalar_select %p23_p0, %s3757_s10, %s25_s17  }
  0x12   : > { %p3854_p3 = por %p36_p2, %p35_p1  ;;  %86 = sbr.rel (%p3238_p4) target bundleno = 48 (0x30), region = 16 }
  0x13   : > { %5096 = sst [smem:[#allocation27_spill]] %s3852_s18  ;;  %s88_s20 = sand.u32 (!%p3238_p4), 1, %s3761_s11  }
  0x14   : > { %s3861_s21 = smul.u32 (!%p3238_p4), 40, %s3761_s11  ;;  %s5098_s0 = sld [smem:[#allocation30_spill]] (!%p3238_p4) }
  0x15   : > { %s3863_s22 = smul.u32 (!%p3238_p4), 40, %s88_s20  ;;  %s5099_s1 = sld [smem:[#allocation31_spill]] (!%p3238_p4) }
  0x16   : > { %s5100_s2 = sld [smem:[#allocation32_spill]] (!%p3238_p4) }
  0x17   : > { %s90_s29 = scalar_lea.vmem [#allocation0], %s3863_s22  ;;  %s121_s17 = scalar_lea.vmem [#allocation1], %s3863_s22 }
  0x18   : > { %s5101_s3 = sld [smem:[#allocation33_spill]]  ;;  %s183_s26 = scalar_lea.vmem [#allocation3], %s3863_s22 }
  0x1a   : > { %s92_s25 = scalar_lea.vmem %s5098_s0, %s3861_s21 }
  0x1b   : > { %v105_v0 = vld [vmem:[%s92_s25] sm:$0xff]  ;;  %v107_v1 = vld [vmem:[%s92_s25 + $0x8] sm:$0xff]  ;;  %v109_v2 = vld [vmem:[%s92_s25 + $0x10] sm:$0xff]  ;;  %s123_s28 = scalar_lea.vmem %s5099_s1, %s3861_s21 }
  0x1c   : > { %106 = vst [vmem:[%s90_s29] sm:$0xff] %v105_v0  ;;  %v111_v3 = vld [vmem:[%s92_s25 + $0x18] sm:$0xff]  ;;  %v113_v4 = vld [vmem:[%s92_s25 + $0x20] sm:$0xff]  ;;  %v138_v6 = vld [vmem:[%s123_s28 + $0x8] sm:$0xff]  ;;  %s154_s16 = scalar_lea.vmem %s5100_s2, %s3861_s21  ;;  %s152_s25 = scalar_lea.vmem [#allocation2], %s3863_s22 }
  0x1d   : > { %108 = vst [vmem:[%s90_s29 + $0x8] sm:$0xff] %v107_v1  ;;  %v136_v5 = vld [vmem:[%s123_s28] sm:$0xff]  ;;  %v140_v7 = vld [vmem:[%s123_s28 + $0x10] sm:$0xff]  ;;  %v142_v8 = vld [vmem:[%s123_s28 + $0x18] sm:$0xff] }
  0x1e   : > { %110 = vst [vmem:[%s90_s29 + $0x10] sm:$0xff] %v109_v2  ;;  %v144_v9 = vld [vmem:[%s123_s28 + $0x20] sm:$0xff]  ;;  %v169_v11 = vld [vmem:[%s154_s16 + $0x8] sm:$0xff]  ;;  %v171_v12 = vld [vmem:[%s154_s16 + $0x10] sm:$0xff]  ;;  %s185_s24 = scalar_lea.vmem %s5101_s3, %s3861_s21 }
  0x1f   : > { %112 = vst [vmem:[%s90_s29 + $0x18] sm:$0xff] %v111_v3  ;;  %v167_v10 = vld [vmem:[%s154_s16] sm:$0xff]  ;;  %v173_v13 = vld [vmem:[%s154_s16 + $0x18] sm:$0xff]  ;;  %v200_v16 = vld [vmem:[%s185_s24 + $0x8] sm:$0xff] }
  0x20   : > { %114 = vst [vmem:[%s90_s29 + $0x20] sm:$0xff] %v113_v4  ;;  %v175_v14 = vld [vmem:[%s154_s16 + $0x20] sm:$0xff]  ;;  %v202_v17 = vld [vmem:[%s185_s24 + $0x10] sm:$0xff]  ;;  %v204_v18 = vld [vmem:[%s185_s24 + $0x18] sm:$0xff] }
  0x21   : > { %137 = vst [vmem:[%s121_s17] sm:$0xff] %v136_v5  ;;  %v198_v15 = vld [vmem:[%s185_s24] sm:$0xff] }
  0x22   : > { %139 = vst [vmem:[%s121_s17 + $0x8] sm:$0xff] %v138_v6  ;;  %v206_v19 = vld [vmem:[%s185_s24 + $0x20] sm:$0xff] }
  0x23   : > { %141 = vst [vmem:[%s121_s17 + $0x10] sm:$0xff] %v140_v7 }
  0x24   : > { %143 = vst [vmem:[%s121_s17 + $0x18] sm:$0xff] %v142_v8 }
  0x25   : > { %145 = vst [vmem:[%s121_s17 + $0x20] sm:$0xff] %v144_v9 }
  0x26   : > { %168 = vst [vmem:[%s152_s25] sm:$0xff] %v167_v10 }
  0x27   : > { %170 = vst [vmem:[%s152_s25 + $0x8] sm:$0xff] %v169_v11 }
  0x28   : > { %172 = vst [vmem:[%s152_s25 + $0x10] sm:$0xff] %v171_v12 }
  0x29   : > { %174 = vst [vmem:[%s152_s25 + $0x18] sm:$0xff] %v173_v13 }
  0x2a   : > { %176 = vst [vmem:[%s152_s25 + $0x20] sm:$0xff] %v175_v14 }
  0x2b   : > { %199 = vst [vmem:[%s183_s26] sm:$0xff] %v198_v15 }
  0x2c   : > { %201 = vst [vmem:[%s183_s26 + $0x8] sm:$0xff] %v200_v16 }
  0x2d   : > { %203 = vst [vmem:[%s183_s26 + $0x10] sm:$0xff] %v202_v17 }
  0x2e   : > { %205 = vst [vmem:[%s183_s26 + $0x18] sm:$0xff] %v204_v18 }
  0x2f   : > { %207 = vst [vmem:[%s183_s26 + $0x20] sm:$0xff] %v206_v19 }
  0x30 PF: > { %p3239_p5 = scmp.ge.s32.totalorder %s3761_s11, 1  ;;  %p212_p6 = scmp.lt.s32.totalorder %s3761_s11, 3 }
  0x32   : > { %p213_p7 = pnand %p3239_p5, %p212_p6 }
  0x34   : > { %216 = sbr.rel (%p213_p7) target bundleno = 1299 (0x513), region = 96 }
  0x39   : > { %s219_s21 = sand.u32 1, %s3840_s12   ;;  %s253_s27 = sand.u32 1, %s3753_s30   ;;  %v3771_v22 = vmov 0.0   ;;  %v393_v41 = vlaneseq }
  0x3a   : > { %s3889_s28 = smul.u32 40, %s219_s21  ;;  %s3891_s22 = sshll.u32 %s253_s27, 1 }
  0x3b   : > { %s280_s11 = smov [#allocation12]  ;;  %s299_s30 = smov [#allocation13]  ;;  %v3910_v42 = vshrl.u32 %v393_v41, 7  ;;  %v3921_v43 = vand.u32 127, %v393_v41 }
  0x3c   : > { %s221_s29 = scalar_lea.vmem [#allocation0], %s3889_s28  ;;  %s3895_s14 = scalar_lea.vmem [#allocation8], %s3889_s28 }
  0x3d   : > { %v281_v20 = vld [vmem:[%s221_s29] sm:$0xff]  ;;  %v3242_v21 = vld [vmem:[%s221_s29 + $0x8] sm:$0xff]  ;;  %356 = vst [vmem:[%s3895_s14] sm:$0xff] %v3771_v22  ;;  %v3244_v23 = vld [vmem:[%s221_s29 + $0x10] sm:$0xff]  ;;  %s225_s15 = scalar_lea.vmem [#allocation1], %s3889_s28  ;;  %s318_s16 = smov [#allocation14]  ;;  %v398_v42 = vmov %v3910_v42  ;;  %v395_v43 = vmov %v3921_v43  ;;  %vm3007_vm10 = vcmp.lt.s32.totalorder %v3921_v43, 33 }
  0x3e   : > { %3274 = vst [vmem:[%s3895_s14 + $0x8] sm:$0xff] %v3771_v22  ;;  %v3246_v24 = vld [vmem:[%s221_s29 + $0x18] sm:$0xff]  ;;  %v3248_v25 = vld [vmem:[%s221_s29 + $0x20] sm:$0xff]  ;;  %v300_v26 = vld [vmem:[%s225_s15] sm:$0xff]  ;;  %s229_s17 = scalar_lea.vmem [#allocation2], %s3889_s28  ;;  %s337_s20 = smov [#allocation15]  ;;  %vm402_vm0 = vcmp.eq.s32.totalorder %v398_v42, %v395_v43 }
  0x3f   : > { %282 = vst [vmem:[%s280_s11] sm:$0xff] %v281_v20  ;;  %v3250_v27 = vld [vmem:[%s225_s15 + $0x8] sm:$0xff]  ;;  %v3252_v28 = vld [vmem:[%s225_s15 + $0x10] sm:$0xff]  ;;  %v3254_v29 = vld [vmem:[%s225_s15 + $0x18] sm:$0xff]  ;;  %s233_s23 = scalar_lea.vmem [#allocation3], %s3889_s28  ;;  %s3913_s24 = scalar_lea.vmem [#allocation9], %s3889_s28  ;;  %v408_v44 = vadd.s32 8, %v398_v42 }
  0x40   : > { %3243 = vst [vmem:[%s280_s11 + $0x8] sm:$0xff] %v3242_v21  ;;  %v3256_v30 = vld [vmem:[%s225_s15 + $0x20] sm:$0xff]  ;;  %v319_v31 = vld [vmem:[%s229_s17] sm:$0xff]  ;;  %v3258_v32 = vld [vmem:[%s229_s17 + $0x8] sm:$0xff]  ;;  %s3929_s25 = scalar_lea.vmem [#allocation10], %s3889_s28  ;;  %v415_v45 = vadd.s32 16, %v398_v42 }
  0x41   : > { %3245 = vst [vmem:[%s280_s11 + $0x10] sm:$0xff] %v3244_v23  ;;  %v3260_v33 = vld [vmem:[%s229_s17 + $0x10] sm:$0xff]  ;;  %v3262_v34 = vld [vmem:[%s229_s17 + $0x18] sm:$0xff]  ;;  %v3264_v35 = vld [vmem:[%s229_s17 + $0x20] sm:$0xff]  ;;  %5102 = sst [smem:[#allocation28_spill]] %s3929_s25  ;;  %v422_v46 = vadd.s32 24, %v398_v42  ;;  %vm409_vm1 = vcmp.eq.s32.totalorder %v408_v44, %v395_v43 }
  0x42   : > { %3247 = vst [vmem:[%s280_s11 + $0x18] sm:$0xff] %v3246_v24  ;;  %v338_v36 = vld [vmem:[%s233_s23] sm:$0xff]  ;;  %v3266_v37 = vld [vmem:[%s233_s23 + $0x8] sm:$0xff]  ;;  %v3268_v38 = vld [vmem:[%s233_s23 + $0x10] sm:$0xff]  ;;  %v429_v48 = vadd.s32 32, %v398_v42  ;;  %s3947_s26 = scalar_lea.vmem [#allocation11], %s3889_s28  ;;  %vm416_vm2 = vcmp.eq.s32.totalorder %v415_v45, %v395_v43  ;;  %v439_v42 = vmov %v3910_v42 }
  0x43   : > { %3249 = vst [vmem:[%s280_s11 + $0x20] sm:$0xff] %v3248_v25  ;;  %v3270_v39 = vld [vmem:[%s233_s23 + $0x18] sm:$0xff]  ;;  %v3272_v40 = vld [vmem:[%s233_s23 + $0x20] sm:$0xff]  ;;  %5103 = sst [smem:[#allocation29_spill]] %s3947_s26  ;;  %vm423_vm3 = vcmp.eq.s32.totalorder %v422_v46, %v395_v43  ;;  %v449_v57 = vadd.s32 8, %v439_v42  ;;  %v456_v58 = vadd.s32 16, %v439_v42 }
  0x44   : > { %301 = vst [vmem:[%s299_s30] sm:$0xff] %v300_v26  ;;  %vm430_vm4 = vcmp.eq.s32.totalorder %v429_v48, %v395_v43  ;;  %v436_v43 = vmov %v3921_v43  ;;  %v463_v60 = vadd.s32 24, %v439_v42  ;;  %v470_v61 = vadd.s32 32, %v439_v42  ;;  %s3003_s28 = smov [#allocation12]  ;;  %s3974_s29 = smov [#allocation13] }
  0x45   : > { %3251 = vst [vmem:[%s299_s30 + $0x8] sm:$0xff] %v3250_v27  ;;  %vm443_vm5 = vcmp.eq.s32.totalorder %v439_v42, %v436_v43  ;;  %vm450_vm6 = vcmp.eq.s32.totalorder %v449_v57, %v436_v43  ;;  %vm457_vm7 = vcmp.eq.s32.totalorder %v456_v58, %v436_v43  ;;  %v3055_v42 = vmov %v3910_v42  ;;  %s4003_s11 = smov [#allocation14] }
  0x46   : > { %3253 = vst [vmem:[%s299_s30 + $0x10] sm:$0xff] %v3252_v28  ;;  %vm464_vm8 = vcmp.eq.s32.totalorder %v463_v60, %v436_v43  ;;  %vm471_vm9 = vcmp.eq.s32.totalorder %v470_v61, %v436_v43  ;;  %v3052_v43 = vmov %v3921_v43  ;;  %v3096_v42 = vmov %v3910_v42 }
  0x47   : > { %3255 = vst [vmem:[%s299_s30 + $0x18] sm:$0xff] %v3254_v29  ;;  %v3093_v43 = vmov %v3921_v43  ;;  %v3002_v42 = vmov %v3910_v42 }
  0x48   : > { %3257 = vst [vmem:[%s299_s30 + $0x20] sm:$0xff] %v3256_v30  ;;  %v2999_v43 = vmov %v3921_v43  ;;  %v3036_v48 = vadd.s32 24, %v3002_v42  ;;  %s3138_s30 = smov [#allocation15] }
  0x49   : > { %320 = vst [vmem:[%s318_s16] sm:$0xff] %v319_v31  ;;  %vm3012_vm11 = vcmp.eq.s32.totalorder %v3002_v42, %v2999_v43 }
  0x4a   : > { %3259 = vst [vmem:[%s318_s16 + $0x8] sm:$0xff] %v3258_v32  ;;  %v3009_v8 = vld [vmem:[%s3003_s28] sm:$0xff]  ;;  %v3306_v9 = vld [vmem:[%s3003_s28 + $0x8] sm:$0xff]  ;;  %v3307_v10 = vld [vmem:[%s3003_s28 + $0x10] sm:$0xff]  ;;  %vm3037_vm14 = vcmp.eq.s32.totalorder %v3036_v48, %v2999_v43 }
  0x4b   : > { %3261 = vst [vmem:[%s318_s16 + $0x10] sm:$0xff] %v3260_v33  ;;  %v3010_v11 = vsel %vm3007_vm10, %v3009_v8, 0.0  ;;  %v3016_v12 = vsel %vm3007_vm10, %v3306_v9, 0.0  ;;  %v3025_v13 = vsel %vm3007_vm10, %v3307_v10, 0.0  ;;  %v3308_v14 = vld [vmem:[%s3003_s28 + $0x18] sm:$0xff]  ;;  %v3018_v33 = vadd.s32 8, %v3002_v42 }
  0x4c   : > { %3263 = vst [vmem:[%s318_s16 + $0x18] sm:$0xff] %v3262_v34  ;;  %v3309_v15 = vld [vmem:[%s3003_s28 + $0x20] sm:$0x1]  ;;  %v3011_v16 = vmul.f32 %v3010_v11, %v3010_v11  ;;  %v3017_v17 = vmul.f32 %v3016_v12, %v3016_v12  ;;  %v3026_v18 = vmul.f32 %v3025_v13, %v3025_v13  ;;  %v3034_v19 = vsel %vm3007_vm10, %v3308_v14, 0.0 }
  0x4d   : > { %3265 = vst [vmem:[%s318_s16 + $0x20] sm:$0xff] %v3264_v35  ;;  %v3043_v21 = vsel %vm3007_vm10, %v3309_v15, 0.0  ;;  %v3035_v23 = vmul.f32 %v3034_v19, %v3034_v19  ;;  %vm3019_vm12 = vcmp.eq.s32.totalorder %v3018_v33, %v2999_v43 }
  0x4e   : > { %339 = vst [vmem:[%s337_s20] sm:$0xff] %v338_v36  ;;  %v3044_v27 = vmul.f32 %v3043_v21, %v3043_v21  ;;  %v3020_v46 = vsel %vm3019_vm12, 0.0, %v3017_v17 }
  0x4f   : > { %3267 = vst [vmem:[%s337_s20 + $0x8] sm:$0xff] %v3266_v37  ;;  %v3062_v20 = vld [vmem:[%s3974_s29] sm:$0xff]  ;;  %v3310_v24 = vld [vmem:[%s3974_s29 + $0x8] sm:$0xff]  ;;  %v3311_v28 = vld [vmem:[%s3974_s29 + $0x10] sm:$0xff] }
  0x50   : > { %3269 = vst [vmem:[%s337_s20 + $0x10] sm:$0xff] %v3268_v38  ;;  %v3063_v25 = vsel %vm3007_vm10, %v3062_v20, 0.0  ;;  %v3069_v29 = vsel %vm3007_vm10, %v3310_v24, 0.0  ;;  %v3312_v32 = vld [vmem:[%s3974_s29 + $0x18] sm:$0xff]  ;;  %v3075_v34 = vsel %vm3007_vm10, %v3311_v28, 0.0 }
  0x51   : > { %3271 = vst [vmem:[%s337_s20 + $0x18] sm:$0xff] %v3270_v39  ;;  %v3064_v31 = vmul.f32 %v3063_v25, %v3063_v25  ;;  %v3313_v35 = vld [vmem:[%s3974_s29 + $0x20] sm:$0x1]  ;;  %v3070_v37 = vmul.f32 %v3069_v29, %v3069_v29  ;;  %v3081_v38 = vsel %vm3007_vm10, %v3312_v32, 0.0  ;;  %v3013_v39 = vsel %vm3012_vm11, 0.0, %v3011_v16 }
  0x52   : > { %3273 = vst [vmem:[%s337_s20 + $0x20] sm:$0xff] %v3272_v40  ;;  %v3076_v41 = vmul.f32 %v3075_v34, %v3075_v34  ;;  %v3087_v44 = vsel %vm3007_vm10, %v3313_v35, 0.0 }
  0x53   : > { %3275 = vst [vmem:[%s3895_s14 + $0x10] sm:$0xff] %v3771_v22 }
  0x54   : > { %3276 = vst [vmem:[%s3895_s14 + $0x18] sm:$0xff] %v3771_v22  ;;  %v3103_v45 = vld [vmem:[%s4003_s11] sm:$0xff]  ;;  %v3315_v57 = vld [vmem:[%s4003_s11 + $0x10] sm:$0xff] }
  0x55   : > { %3277 = vst [vmem:[%s3895_s14 + $0x20] sm:$0xff] %v3771_v22  ;;  %s3936_s14 = smov %s3895_s14 }
  0x56   : > { %365 = vst [vmem:[%s3913_s24] sm:$0xff] %v3771_v22 }
  0x57   : > { %3278 = vst [vmem:[%s3913_s24 + $0x8] sm:$0xff] %v3771_v22 }
  0x58   : > { %3279 = vst [vmem:[%s3913_s24 + $0x10] sm:$0xff] %v3771_v22 }
  0x59   : > { %3280 = vst [vmem:[%s3913_s24 + $0x18] sm:$0xff] %v3771_v22  ;;  %v3144_v11 = vld [vmem:[%s3138_s30] sm:$0xff]  ;;  %v3319_v21 = vld [vmem:[%s3138_s30 + $0x10] sm:$0xff] }
  0x5a   : > { %3281 = vst [vmem:[%s3913_s24 + $0x20] sm:$0xff] %v3771_v22 }
  0x5b   : > { %374 = vst [vmem:[%s3929_s25] sm:$0xff] %v3771_v22 }
  0x5c   : > { %3282 = vst [vmem:[%s3929_s25 + $0x8] sm:$0xff] %v3771_v22  ;;  %v399_v47 = vld [vmem:[%s3936_s14] sm:$0xff]  ;;  %v3290_v49 = vld [vmem:[%s3936_s14 + $0x8] sm:$0xff]  ;;  %v3292_v50 = vld [vmem:[%s3936_s14 + $0x10] sm:$0xff] }
  0x5d   : > { %3283 = vst [vmem:[%s3929_s25 + $0x10] sm:$0xff] %v3771_v22  ;;  %v403_v51 = vsel %vm402_vm0, 1.0, %v399_v47  ;;  %v3294_v52 = vld [vmem:[%s3936_s14 + $0x18] sm:$0xff]  ;;  %v410_v53 = vsel %vm409_vm1, 1.0, %v3290_v49  ;;  %v3296_v54 = vld [vmem:[%s3936_s14 + $0x20] sm:$0x1] }
  0x5e   : > { %3284 = vst [vmem:[%s3929_s25 + $0x18] sm:$0xff] %v3771_v22  ;;  %v417_v55 = vsel %vm416_vm2, 1.0, %v3292_v50  ;;  %v424_v56 = vsel %vm423_vm3, 1.0, %v3294_v52  ;;  %v431_v59 = vsel %vm430_vm4, 1.0, %v3296_v54  ;;  %v3027_v47 = vadd.s32 16, %v3002_v42  ;;  %v3314_v52 = vld [vmem:[%s4003_s11 + $0x8] sm:$0xff] }
  0x5f   : > { %3285 = vst [vmem:[%s3929_s25 + $0x20] sm:$0xff] %v3771_v22  ;;  %v3045_v49 = vadd.s32 32, %v3002_v42  ;;  %v3104_v54 = vsel %vm3007_vm10, %v3103_v45, 0.0  ;;  %v3110_v60 = vsel %vm3007_vm10, %v3314_v52, 0.0  ;;  %v3137_v42 = vmov %v3910_v42 }
  0x60   : > { %383 = vst [vmem:[%s3947_s26] sm:$0xff] %v3771_v22  ;;  %vm3028_vm13 = vcmp.eq.s32.totalorder %v3027_v47, %v2999_v43  ;;  %v3164_v47 = vadd.s32 16, %v3137_v42 }
  0x61   : > { %3286 = vst [vmem:[%s3947_s26 + $0x8] sm:$0xff] %v3771_v22  ;;  %vm3046_vm15 = vcmp.eq.s32.totalorder %v3045_v49, %v2999_v43  ;;  %v3029_v58 = vsel %vm3028_vm13, 0.0, %v3026_v18  ;;  %v3134_v43 = vmov %v3921_v43 }
  0x62   : > { %3287 = vst [vmem:[%s3947_s26 + $0x10] sm:$0xff] %v3771_v22  ;;  %vm3147_vm0 = vcmp.eq.s32.totalorder %v3137_v42, %v3134_v43  ;;  %vm3165_vm2 = vcmp.eq.s32.totalorder %v3164_v47, %v3134_v43 }
  0x63   : > { %3288 = vst [vmem:[%s3947_s26 + $0x18] sm:$0xff] %v3771_v22 }
  0x64   : > { %3289 = vst [vmem:[%s3947_s26 + $0x20] sm:$0xff] %v3771_v22  ;;  %s433_s26 = smov %s3947_s26  ;;  %v3022_v22 = vadd.f32 %v3017_v17, %v3011_v16  ;;  %v3318_v16 = vld [vmem:[%s3138_s30 + $0x8] sm:$0xff]  ;;  %v3145_v17 = vsel %vm3007_vm10, %v3144_v11, 0.0 }
  0x65   : > { %404 = vst [vmem:[%s3936_s14] sm:$0xff] %v403_v51  ;;  %v3082_v51 = vmul.f32 %v3081_v38, %v3081_v38  ;;  %v3146_v25 = vmul.f32 %v3145_v17, %v3145_v17 }
  0x66   : > { %3291 = vst [vmem:[%s3936_s14 + $0x8] sm:$0xff] %v410_v53  ;;  %v3031_v26 = vadd.f32 %v3026_v18, %v3022_v22  ;;  %v3021_v53 = vadd.f32 %v3020_v46, %v3013_v39  ;;  %v3153_v22 = vsel %vm3007_vm10, %v3318_v16, 0.0 }
  0x67   : > { %3293 = vst [vmem:[%s3936_s14 + $0x10] sm:$0xff] %v417_v55  ;;  %v3148_v52 = vsel %vm3147_vm0, 0.0, %v3146_v25 }
  0x68   : > { %3295 = vst [vmem:[%s3936_s14 + $0x18] sm:$0xff] %v424_v56  ;;  %v3040_v30 = vadd.f32 %v3035_v23, %v3031_v26  ;;  %v3088_v56 = vmul.f32 %v3087_v44, %v3087_v44  ;;  %v3030_v61 = vadd.f32 %v3029_v58, %v3021_v53  ;;  %v3320_v26 = vld [vmem:[%s3138_s30 + $0x18] sm:$0xff] }
  0x69   : > { %3297 = vst [vmem:[%s3936_s14 + $0x20] sm:$0x1] %v431_v59  ;;  %v3038_v59 = vsel %vm3037_vm14, 0.0, %v3035_v23  ;;  %v3171_v32 = vsel %vm3007_vm10, %v3320_v26, 0.0 }
  0x6a   : > { %v3049_v36 = vadd.f32 %v3044_v27, %v3040_v30  ;;  %v3154_v30 = vmul.f32 %v3153_v22, %v3153_v22  ;;  %v3172_v39 = vmul.f32 %v3171_v32, %v3171_v32 }
  0x6b   : > { %v440_v62 = vld [vmem:[%s433_s26] sm:$0xff]  ;;  %v3298_v63 = vld [vmem:[%s433_s26 + $0x8] sm:$0xff]  ;;  %v3300_v0 = vld [vmem:[%s433_s26 + $0x10] sm:$0xff] }
  0x6c   : > { %v444_v1 = vsel %vm443_vm5, 1.0, %v440_v62  ;;  %v451_v2 = vsel %vm450_vm6, 1.0, %v3298_v63  ;;  %v458_v3 = vsel %vm457_vm7, 1.0, %v3300_v0  ;;  %v3302_v4 = vld [vmem:[%s433_s26 + $0x18] sm:$0xff]  ;;  %v3304_v5 = vld [vmem:[%s433_s26 + $0x20] sm:$0x1]  ;;  %v3066_v40 = vadd.f32 %v3064_v31, %v3049_v36 }
  0x6d   : > { %445 = vst [vmem:[%s433_s26] sm:$0xff] %v444_v1  ;;  %v465_v6 = vsel %vm464_vm8, 1.0, %v3302_v4  ;;  %v472_v7 = vsel %vm471_vm9, 1.0, %v3304_v5  ;;  %v3105_v63 = vmul.f32 %v3104_v54, %v3104_v54  ;;  %v3316_v0 = vld [vmem:[%s4003_s11 + $0x18] sm:$0xff]  ;;  %v3047_v1 = vsel %vm3046_vm15, 0.0, %v3044_v27 }
  0x6e   : > { %3299 = vst [vmem:[%s433_s26 + $0x8] sm:$0xff] %v451_v2  ;;  %v3072_v50 = vadd.f32 %v3070_v37, %v3066_v40  ;;  %v3116_v2 = vsel %vm3007_vm10, %v3315_v57, 0.0  ;;  %v3111_v5 = vmul.f32 %v3110_v60, %v3110_v60  ;;  %v3162_v27 = vsel %vm3007_vm10, %v3319_v21, 0.0 }
  0x6f   : > { %3301 = vst [vmem:[%s433_s26 + $0x10] sm:$0xff] %v458_v3  ;;  %v3039_v3 = vadd.f32 %v3038_v59, %v3030_v61  ;;  %v3117_v10 = vmul.f32 %v3116_v2, %v3116_v2  ;;  %v3163_v35 = vmul.f32 %v3162_v27, %v3162_v27  ;;  %v3182_v54 = vadd.s32 32, %v3137_v42 }
  0x70   : > { %3303 = vst [vmem:[%s433_s26 + $0x18] sm:$0xff] %v465_v6  ;;  %v3078_v55 = vadd.f32 %v3076_v41, %v3072_v50  ;;  %v3317_v6 = vld [vmem:[%s4003_s11 + $0x20] sm:$0x1]  ;;  %v3173_v50 = vadd.s32 24, %v3137_v42 }
  0x71   : > { %3305 = vst [vmem:[%s433_s26 + $0x20] sm:$0x1] %v472_v7  ;;  %v3122_v7 = vsel %vm3007_vm10, %v3316_v0, 0.0  ;;  %v3048_v8 = vadd.f32 %v3047_v1, %v3039_v3  ;;  %v3128_v12 = vsel %vm3007_vm10, %v3317_v6, 0.0  ;;  %v3166_v57 = vsel %vm3165_vm2, 0.0, %v3163_v35 }
  0x72   : > { %v3084_v62 = vadd.f32 %v3082_v51, %v3078_v55  ;;  %v3123_v15 = vmul.f32 %v3122_v7, %v3122_v7  ;;  %v3129_v20 = vmul.f32 %v3128_v12, %v3128_v12  ;;  %vm3174_vm3 = vcmp.eq.s32.totalorder %v3173_v50, %v3134_v43 }
  0x73   : > { %v3065_v13 = vadd.f32 %v3064_v31, %v3048_v8  ;;  %v3321_v31 = vld [vmem:[%s3138_s30 + $0x20] sm:$0x1]  ;;  %vm3183_vm4 = vcmp.eq.s32.totalorder %v3182_v54, %v3134_v43  ;;  %v3175_v59 = vsel %vm3174_vm3, 0.0, %v3172_v39 }
  0x74   : > { %v3090_v4 = vadd.f32 %v3088_v56, %v3084_v62  ;;  %v3180_v36 = vsel %vm3007_vm10, %v3321_v31, 0.0 }
  0x75   : > { %v3071_v18 = vadd.f32 %v3070_v37, %v3065_v13  ;;  %v3181_v45 = vmul.f32 %v3180_v36, %v3180_v36 }
  0x76   : > { %v3107_v9 = vadd.f32 %v3105_v63, %v3090_v4 }
  0x77   : > { %v3077_v23 = vadd.f32 %v3076_v41, %v3071_v18  ;;  %v3155_v41 = vadd.s32 8, %v3137_v42  ;;  %v3184_v61 = vsel %vm3183_vm4, 0.0, %v3181_v45 }
  0x78   : > { %v3113_v14 = vadd.f32 %v3111_v5, %v3107_v9 }
  0x79   : > { %v3083_v28 = vadd.f32 %v3082_v51, %v3077_v23  ;;  %vm3156_vm1 = vcmp.eq.s32.totalorder %v3155_v41, %v3134_v43 }
  0x7a   : > { %v3119_v19 = vadd.f32 %v3117_v10, %v3113_v14  ;;  %v3157_v55 = vsel %vm3156_vm1, 0.0, %v3154_v30 }
  0x7b   : > { %v3089_v33 = vadd.f32 %v3088_v56, %v3083_v28 }
  0x7c   : > { %v3125_v24 = vadd.f32 %v3123_v15, %v3119_v19 }
  0x7d   : > { %v3106_v37 = vadd.f32 %v3105_v63, %v3089_v33 }
  0x7e   : > { %v3131_v29 = vadd.f32 %v3129_v20, %v3125_v24 }
  0x7f   : > { %v3112_v40 = vadd.f32 %v3111_v5, %v3106_v37 }
  0x80   : > { %v3150_v34 = vadd.f32 %v3146_v25, %v3131_v29 }
  0x81   : > { %v3118_v46 = vadd.f32 %v3117_v10, %v3112_v40 }
  0x82   : > { %v3159_v38 = vadd.f32 %v3154_v30, %v3150_v34 }
  0x83   : > { %v3124_v49 = vadd.f32 %v3123_v15, %v3118_v46 }
  0x84   : > { %v3168_v44 = vadd.f32 %v3163_v35, %v3159_v38 }
  0x85   : > { %v3130_v53 = vadd.f32 %v3129_v20, %v3124_v49 }
  0x86   : > { %v3177_v48 = vadd.f32 %v3172_v39, %v3168_v44 }
  0x87   : > { %v3149_v56 = vadd.f32 %v3148_v52, %v3130_v53 }
  0x88   : > { %v3186_v51 = vadd.f32 %v3181_v45, %v3177_v48 }
  0x89   : > { %v3158_v58 = vadd.f32 %v3157_v55, %v3149_v56 }
  0x8a   : > { %3187 = vadd.xlane.f32.xlu0 %v3186_v51 }
  0x8b   : > { %v3167_v60 = vadd.f32 %v3166_v57, %v3158_v58 }
  0x8d   : > { %v3176_v62 = vadd.f32 %v3175_v59, %v3167_v60 }
  0x8f   : > { %v3185_v63 = vadd.f32 %v3184_v61, %v3176_v62 }
  0x92   : > { %3195 = vadd.xlane.f32.xlu0 %v3185_v63 }
  0xfd   : > { %v3188_v0 = vpop.xlane.xlu0 %3187 }
  0xfe   : > { %v3189_v1 = vrot.slane %v3188_v0, 4 }
 0x100   : > { %v3190_v2 = vadd.f32 %v3189_v1, %v3188_v0 }
 0x102   : > { %v3191_v3 = vrot.slane %v3190_v2, 2 }
 0x104   : > { %v3192_v7 = vadd.f32 %v3191_v3, %v3190_v2 }
 0x105   : > { %v3196_v4 = vpop.xlane.xlu0 %3195 }
 0x106   : > { %v3197_v5 = vrot.slane %v3196_v4, 4  ;;  %v3193_v10 = vrot.slane %v3192_v7, 1 }
 0x108   : > { %v3198_v6 = vadd.f32 %v3197_v5, %v3196_v4  ;;  %v3194_v13 = vadd.f32 %v3193_v10, %v3192_v7 }
 0x10a   : > { %v3199_v8 = vrot.slane %v3198_v6, 2 }
 0x10c   : > { %v3200_v9 = vadd.f32 %v3199_v8, %v3198_v6 }
 0x10e   : > { %v3201_v11 = vrot.slane %v3200_v9, 1 }
 0x110   : > { %v3202_v12 = vadd.f32 %v3201_v11, %v3200_v9 }
 0x112   : > { %3671 = vpush %v3202_v12 }
 0x113   : > { %3673 = vpush %v3194_v13 }
 0x143   : > { %s3672_s15 = spop %3671 }
 0x144   : > { %s3674_s16 = spop %3673 }
 0x145   : > { %s3205_s17 = smul.f32 1e-10, %s3674_s16 }
 0x147   : > { %p3206_p8 = scmp.le.f32.partialorder %s3672_s15, %s3205_s17 }
 0x148   : > { %s4036_s20 = smov (!%p3206_p8), 0  }
 0x149   : > { %3209 = sbr.rel (%p3206_p8) target bundleno = 1227 (0x4cb), region = 651 }
 0x14e LB: >> { %s4041_s23 = smov 0   ;;  %s3765_s20 = sphi %s4036_s20, %s5107_s20  }
 0x14f LB: >>> { %s5104_s25 = sld [smem:[#allocation28_spill]]  ;;  %s3769_s23 = sphi %s4041_s23, %s705_s23  }
 0x150   : >>> { %s5105_s26 = sld [smem:[#allocation29_spill]] }
 0x151   : >>> { %s706_s28 = smov [#allocation12]  ;;  %v710_v43 = vmov %v3921_v43  ;;  %v713_v42 = vmov %v3910_v42  ;;  %s750_s29 = smov [#allocation13] }
 0x152   : >>> { %v754_v43 = vmov %v3921_v43  ;;  %v757_v42 = vmov %v3910_v42  ;;  %v714_v14 = vld [vmem:[%s706_s28] sm:$0xff]  ;;  %vm717_vm5 = vcmp.eq.s32.totalorder %v713_v42, %v710_v43  ;;  %v3322_v15 = vld [vmem:[%s706_s28 + $0x8] sm:$0xff]  ;;  %v722_v16 = vadd.s32 8, %v713_v42  ;;  %v3323_v20 = vld [vmem:[%s706_s28 + $0x10] sm:$0xff]  ;;  %s4051_s11 = smov [#allocation15]  ;;  %s707_s30 = smov [#allocation16] }
 0x153   : >>> { %v728_v17 = vadd.s32 16, %v713_v42  ;;  %v734_v18 = vadd.s32 24, %v713_v42  ;;  %v718_v19 = vsel %vm717_vm5, %v714_v14, 0.0  ;;  %v740_v21 = vadd.s32 32, %v713_v42  ;;  %v3324_v22 = vld [vmem:[%s706_s28 + $0x18] sm:$0xff]  ;;  %v758_v23 = vld [vmem:[%s750_s29] sm:$0xff]  ;;  %s4092_s14 = smov %s3895_s14  ;;  %s4095_s24 = smov %s3913_s24 }
 0x154   : >>> { %vm761_vm6 = vcmp.eq.s32.totalorder %v757_v42, %v754_v43  ;;  %v798_v43 = vmov %v3921_v43  ;;  %vm723_vm7 = vcmp.eq.s32.totalorder %v722_v16, %v710_v43  ;;  %v3326_v24 = vld [vmem:[%s750_s29 + $0x8] sm:$0xff]  ;;  %v766_v25 = vadd.s32 8, %v757_v42  ;;  %v3325_v27 = vld [vmem:[%s706_s28 + $0x20] sm:$0x1]  ;;  %v3327_v29 = vld [vmem:[%s750_s29 + $0x10] sm:$0xff]  ;;  %s751_s15 = smov [#allocation17] }
 0x155   : >>> { %vm729_vm8 = vcmp.eq.s32.totalorder %v728_v17, %v710_v43  ;;  %vm735_vm9 = vcmp.eq.s32.totalorder %v734_v18, %v710_v43  ;;  %v724_v26 = vsel %vm723_vm7, %v3322_v15, %v718_v19  ;;  %vm741_vm11 = vcmp.eq.s32.totalorder %v740_v21, %v710_v43  ;;  %v3328_v32 = vld [vmem:[%s750_s29 + $0x18] sm:$0xff]  ;;  %v3329_v37 = vld [vmem:[%s750_s29 + $0x20] sm:$0x1]  ;;  %v3330_v45 = vld [vmem:[%s4051_s11 + $0x8] sm:$0xff]  ;;  %s795_s16 = smov [#allocation18]  ;;  %s842_s17 = smov [#allocation17] }
 0x156   : >>> { %v762_v28 = vsel %vm761_vm6, %v758_v23, 0.0  ;;  %v772_v30 = vadd.s32 16, %v757_v42  ;;  %v730_v31 = vsel %vm729_vm8, %v3323_v20, %v724_v26  ;;  %vm767_vm12 = vcmp.eq.s32.totalorder %v766_v25, %v754_v43  ;;  %v802_v38 = vld [vmem:[%s4051_s11] sm:$0xff]  ;;  %v3331_v49 = vld [vmem:[%s4051_s11 + $0x10] sm:$0xff]  ;;  %v3332_v54 = vld [vmem:[%s4051_s11 + $0x18] sm:$0xff]  ;;  %s840_s28 = smov [#allocation16]  ;;  %s4103_s25 = smov %s5104_s25 }
 0x157   : >>> { %v778_v33 = vadd.s32 24, %v757_v42  ;;  %v784_v34 = vadd.s32 32, %v757_v42  ;;  %v736_v35 = vsel %vm735_vm9, %v3324_v22, %v730_v31  ;;  %v768_v36 = vsel %vm767_vm12, %v3326_v24, %v762_v28  ;;  %v3333_v57 = vld [vmem:[%s4051_s11 + $0x20] sm:$0x1]  ;;  %s844_s29 = smov [#allocation18]  ;;  %s919_s11 = smov [#allocation19] }
 0x158   : >>> { %vm773_vm13 = vcmp.eq.s32.totalorder %v772_v30, %v754_v43  ;;  %v801_v42 = vmov %v3910_v42  ;;  %v742_v39 = vsel %vm741_vm11, %v3325_v27, %v736_v35  ;;  %s1050_s27 = smov [#allocation24]  ;;  %s1066_s21 = smov [#allocation24] }
 0x159   : >>> { %v774_v40 = vsel %vm773_vm13, %v3327_v29, %v768_v36  ;;  %vm779_vm14 = vcmp.eq.s32.totalorder %v778_v33, %v754_v43  ;;  %vm785_vm15 = vcmp.eq.s32.totalorder %v784_v34, %v754_v43  ;;  %v743_v41 = vrot.slane %v742_v39, 4  ;;  %s4106_s26 = smov %s5105_s26  ;;  %s4613_s0 = smov [#allocation12] }
 0x15a   : >>> { %v780_v44 = vsel %vm779_vm14, %v3328_v32, %v774_v40  ;;  %vm805_vm0 = vcmp.eq.s32.totalorder %v801_v42, %v798_v43  ;;  %v810_v46 = vadd.s32 8, %v801_v42  ;;  %v816_v50 = vadd.s32 16, %v801_v42  ;;  %s4623_s1 = smov [#allocation14]  ;;  %s4625_s2 = smov [#allocation15] }
 0x15b   : >>> { %v786_v47 = vsel %vm785_vm15, %v3329_v37, %v780_v44  ;;  %v806_v48 = vsel %vm805_vm0, %v802_v38, 0.0  ;;  %v822_v51 = vadd.s32 24, %v801_v42  ;;  %v744_v52 = vadd.f32 %v743_v41, %v742_v39  ;;  %s4627_s3 = smov [#allocation14]  ;;  %s4643_s18 = smov [#allocation15] }
 0x15c   : >>> { %v787_v53 = vrot.slane %v786_v47, 4  ;;  %vm811_vm1 = vcmp.eq.s32.totalorder %v810_v46, %v798_v43  ;;  %v828_v55 = vadd.s32 32, %v801_v42  ;;  %vm817_vm2 = vcmp.eq.s32.totalorder %v816_v50, %v798_v43  ;;  %s5106_s10 = smov 127   ;;  %s4653_s13 = smov [#allocation15] }
 0x15d   : >>> { %v812_v56 = vsel %vm811_vm1, %v3330_v45, %v806_v48  ;;  %vm823_vm3 = vcmp.eq.s32.totalorder %v822_v51, %v798_v43  ;;  %v745_v58 = vrot.slane %v744_v52, 2  ;;  %v965_v42 = vmov %v3910_v42  ;;  %s4655_s9 = smov [#allocation12]  ;;  %s4665_s8 = smov [#allocation13] }
 0x15e   : >>> { %v788_v59 = vadd.f32 %v787_v53, %v786_v47  ;;  %v818_v60 = vsel %vm817_vm2, %v3331_v49, %v812_v56  ;;  %vm829_vm4 = vcmp.eq.s32.totalorder %v828_v55, %v798_v43  ;;  %v949_v42 = vmov %v3910_v42  ;;  %s4677_s7 = smov [#allocation14]  ;;  %s4690_s6 = smov [#allocation15] }
 0x15f   : >>> { %v824_v61 = vsel %vm823_vm3, %v3332_v54, %v818_v60  ;;  %v746_v62 = vadd.f32 %v745_v58, %v744_v52  ;;  %v962_v43 = vmov %v3921_v43  ;;  %s705_s23 = sadd.s32 1, %s3769_s23  }
 0x160   : >>> { %v789_v63 = vrot.slane %v788_v59, 2  ;;  %v830_v0 = vsel %vm829_vm4, %v3333_v57, %v824_v61  ;;  %v931_v43 = vmov %v3921_v43  ;;  %p702_p9 = scmp.ge.s32.totalorder %s705_s23, 65  }
 0x161   : >>> { %v831_v1 = vrot.slane %v830_v0, 4  ;;  %v747_v2 = vrot.slane %v746_v62, 1  ;;  %v946_v43 = vmov %v3921_v43 }
 0x162   : >>> { %v790_v3 = vadd.f32 %v789_v63, %v788_v59 }
 0x163   : >>> { %v832_v4 = vadd.f32 %v831_v1, %v830_v0  ;;  %v748_v5 = vadd.f32 %v747_v2, %v746_v62 }
 0x164   : >>> { %v791_v6 = vrot.slane %v790_v3, 1 }
 0x165   : >>> { %v833_v7 = vrot.slane %v832_v4, 2  ;;  %749 = vst [vmem:[%s707_s30] sm:$0x1] %v748_v5  ;;  %s921_s30 = smov [#allocation20] }
 0x166   : >>> { %v792_v8 = vadd.f32 %v791_v6, %v790_v3 }
 0x167   : >>> { %v834_v9 = vadd.f32 %v833_v7, %v832_v4 }
 0x168   : >>> { %793 = vst [vmem:[%s751_s15] sm:$0x1] %v792_v8  ;;  %s838_s15 = smov [#allocation21] }
 0x169   : >>> { %v835_v10 = vrot.slane %v834_v9, 1  ;;  %s923_s15 = smov %s838_s15 }
 0x16b   : >>> { %v836_v11 = vadd.f32 %v835_v10, %v834_v9  ;;  %v966_v10 = vadd.s32 16, %v965_v42  ;;  %v934_v42 = vmov %v3910_v42 }
 0x16c   : >>> { %v841_v19 = vld [vmem:[%s840_s28] sm:$0xff]  ;;  %s927_s28 = smov [#allocation21] }
 0x16d   : >>> { %837 = vst [vmem:[%s795_s16] sm:$0x1] %v836_v11  ;;  %v895_v45 = vand.u32 2147483647, %v841_v19  ;;  %s839_s16 = smov [#allocation22]  ;;  %v950_v11 = vadd.s32 8, %v949_v42  ;;  %v981_v42 = vmov %v3910_v42 }
 0x16e   : >>> { %s925_s16 = smov %s839_s16  ;;  %v1044_v42 = vmov %v3910_v42 }
 0x16f   : >>> { %v4060_v12 = vld [vmem:[%s842_s17] sm:$0xff]  ;;  %s958_s17 = smov [#allocation21] }
 0x170   : >>> { %v847_v13 = vmul.f32 2.0, %v4060_v12  ;;  %v896_v53 = vand.u32 2147483647, %v4060_v12 }
 0x172   : >>> { %3723 = vrcp.f32 %v847_v13  ;;  %v859_v16 = vand.u32 2147483648, %v847_v13  ;;  %vm853_vm5 = vweird.f32 %v847_v13  ;;  %v857_v18 = vand.u32 2147483647, %v847_v13 }
 0x174   : >>> { %v845_v20 = vld [vmem:[%s844_s29] sm:$0xff]  ;;  %v860_v22 = vor.u32 1.1754944e-38, %v859_v16  ;;  %vm858_vm8 = vcmp.eq.f32.partialorder %v857_v18, 8.507059e+37  ;;  %s942_s29 = smov [#allocation21] }
 0x175   : >>> { %v846_v23 = vsub.f32 %v845_v20, %v841_v19  ;;  %v897_v46 = vand.u32 2147483647, %v845_v20 }
 0x177   : >>> { %v898_v48 = vmin.f32 %v895_v45, %v897_v46 }
 0x178   : >>> { %v3724_v14 = vpop.eup %3723 }
 0x179   : >>> { %v849_v15 = vmul.f32 %v3724_v14, %v847_v13  ;;  %vm854_vm6 = vweird.f32 %v3724_v14  ;;  %v899_v54 = vmul.f32 1.1920929e-08, %v898_v48 }
 0x17a   : >>> { %vm855_vm7 = vmor %vm853_vm5, %vm854_vm6  ;;  %vm967_vm5 = vcmp.eq.s32.totalorder %v966_v10, %v962_v43  ;;  %vm936_vm6 = vcmp.eq.s32.totalorder %v934_v42, %v931_v43  ;;  %v1028_v42 = vmov %v3910_v42 }
 0x17b   : >>> { %v850_v17 = vsub.f32 1.0, %v849_v15  ;;  %vm900_vm1 = vcmp.le.f32.partialorder %v896_v53, %v899_v54  ;;  %v1045_v15 = vadd.s32 16, %v1044_v42 }
 0x17d   : >>> { %v851_v21 = vmul.f32 %v3724_v14, %v850_v17 }
 0x17f   : >>> { %v852_v24 = vadd.f32 %v3724_v14, %v851_v21 }
 0x181   : >>> { %v856_v25 = vsel %vm855_vm7, %v3724_v14, %v852_v24  ;;  %vm951_vm7 = vcmp.eq.s32.totalorder %v950_v11, %v946_v43  ;;  %v978_v43 = vmov %v3921_v43  ;;  %v982_v14 = vadd.s32 24, %v981_v42 }
 0x182   : >>> { %v861_v26 = vsel %vm858_vm8, %v860_v22, %v856_v25  ;;  %v1041_v43 = vmov %v3921_v43 }
 0x183   : >>> { %v862_v27 = vmul.f32 %v861_v26, %v846_v23  ;;  %v1025_v43 = vmov %v3921_v43  ;;  %vm983_vm8 = vcmp.eq.s32.totalorder %v982_v14, %v978_v43 }
 0x185   : >>> { %v864_v28 = vmul.f32 %v862_v27, %v862_v27  ;;  %vm863_vm12 = vcmp.ge.f32.partialorder %v862_v27, 0.0 }
 0x187   : >>> { %v865_v29 = vadd.f32 1.0, %v864_v28 }
 0x189   : >>> { %3725 = vrsqrt.f32 %v865_v29  ;;  %vm873_vm9 = vcmp.eq.f32.partialorder %v865_v29, inf  ;;  %v876_v36 = vand.u32 2147483648, %v865_v29  ;;  %vm875_vm11 = vcmp.eq.f32.partialorder %v865_v29, 0.0 }
 0x18f   : >>> { %v3726_v30 = vpop.eup %3725 }
 0x190   : >>> { %v867_v31 = vmul.f32 %v3726_v30, %v865_v29 }
 0x192   : >>> { %v868_v32 = vmul.f32 %v3726_v30, %v867_v31 }
 0x194   : >>> { %v869_v33 = vmul.f32 0.5, %v868_v32 }
 0x196   : >>> { %v870_v34 = vsub.f32 1.5, %v869_v33 }
 0x198   : >>> { %v871_v35 = vmul.f32 %v3726_v30, %v870_v34 }
 0x19a   : >>> { %v872_v37 = vmul.f32 %v871_v35, %v865_v29 }
 0x19c   : >>> { %v874_v38 = vsel %vm873_vm9, %v865_v29, %v872_v37  ;;  %vm1046_vm9 = vcmp.eq.s32.totalorder %v1045_v15, %v1041_v43 }
 0x19d   : >>> { %v877_v39 = vsel %vm875_vm11, %v876_v36, %v874_v38 }
 0x19e   : >>> { %v878_v40 = vxor.u32 2147483648, %v877_v39 }
 0x1a0   : >>> { %v879_v41 = vsel %vm863_vm12, %v877_v39, %v878_v40 }
 0x1a1   : >>> { %v880_v44 = vadd.f32 %v879_v41, %v862_v27 }
 0x1a3   : >>> { %3727 = vrcp.f32 %v880_v44  ;;  %v892_v50 = vand.u32 2147483648, %v880_v44  ;;  %vm886_vm13 = vweird.f32 %v880_v44  ;;  %v890_v52 = vand.u32 2147483647, %v880_v44 }
 0x1a5   : >>> { %v893_v56 = vor.u32 1.1754944e-38, %v892_v50  ;;  %vm891_vm0 = vcmp.eq.f32.partialorder %v890_v52, 8.507059e+37 }
 0x1a9   : >>> { %v3728_v47 = vpop.eup %3727 }
 0x1aa   : >>> { %v882_v49 = vmul.f32 %v3728_v47, %v880_v44  ;;  %vm887_vm14 = vweird.f32 %v3728_v47 }
 0x1ab   : >>> { %vm888_vm15 = vmor %vm886_vm13, %vm887_vm14 }
 0x1ac   : >>> { %v883_v51 = vsub.f32 1.0, %v882_v49 }
 0x1ae   : >>> { %v884_v55 = vmul.f32 %v3728_v47, %v883_v51 }
 0x1b0   : >>> { %v885_v57 = vadd.f32 %v3728_v47, %v884_v55  ;;  %v2113_v55 = vld [vmem:[%s4092_s14] sm:$0xff] }
 0x1b2   : >>> { %v889_v58 = vsel %vm888_vm15, %v3728_v47, %v885_v57  ;;  %v2114_v57 = vld [vmem:[%s4095_s24] sm:$0xff] }
 0x1b3   : >>> { %v894_v59 = vsel %vm891_vm0, %v893_v56, %v889_v58  ;;  %vm1909_vm0 = vcmp.eq.s32.totalorder %v3910_v42, 0 }
 0x1b4   : >>> { %v901_v60 = vsel %vm900_vm1, 0.0, %v894_v59  ;;  %vm1973_vm1 = vcmp.eq.s32.totalorder %v3910_v42, 7 }
 0x1b5   : >>> { %v902_v61 = vmul.f32 %v901_v60, %v901_v60  ;;  %v915_v62 = vmul.f32 %v901_v60, %v4060_v12 }
 0x1b7   : >>> { %v903_v63 = vadd.f32 1.0, %v902_v61  ;;  %v916_v0 = vsub.f32 %v841_v19, %v915_v62  ;;  %v918_v1 = vadd.f32 %v915_v62, %v845_v20  ;;  %v1029_v19 = vadd.s32 8, %v1028_v42  ;;  %v2115_v62 = vld [vmem:[%s4103_s25] sm:$0xff] }
 0x1b8   : >>> { %v997_v42 = vmov %v3910_v42 }
 0x1b9   : >>> { %3729 = vrsqrt.f32 %v903_v63  ;;  %920 = vst [vmem:[%s919_s11] sm:$0xff] %v916_v0  ;;  %vm910_vm2 = vweird.f32 %v903_v63  ;;  %s974_s11 = smov [#allocation21]  ;;  %vm1030_vm11 = vcmp.eq.s32.totalorder %v1029_v19, %v1025_v43  ;;  %v1060_v42 = vmov %v3910_v42 }
 0x1ba   : >>> { %922 = vst [vmem:[%s921_s30] sm:$0xff] %v918_v1  ;;  %s1037_s30 = smov [#allocation22]  ;;  %v998_v27 = vadd.s32 32, %v997_v42  ;;  %v994_v43 = vmov %v3921_v43  ;;  %v1013_v42 = vmov %v3910_v42  ;;  %v1061_v28 = vadd.s32 24, %v1060_v42 }
 0x1bb   : >>> { %v1010_v43 = vmov %v3921_v43 }
 0x1bc   : >>> { %v1057_v43 = vmov %v3921_v43  ;;  %vm999_vm12 = vcmp.eq.s32.totalorder %v998_v27, %v994_v43  ;;  %vm1015_vm13 = vcmp.eq.s32.totalorder %v1013_v42, %v1010_v43  ;;  %v1076_v42 = vmov %v3910_v42 }
 0x1bd   : >>> { %vm1062_vm14 = vcmp.eq.s32.totalorder %v1061_v28, %v1057_v43  ;;  %v1077_v35 = vadd.s32 32, %v1076_v42  ;;  %v1073_v43 = vmov %v3921_v43  ;;  %v1396_v42 = vmov %v3910_v42 }
 0x1bf   : >>> { %v3730_v2 = vpop.eup %3729  ;;  %vm1078_vm15 = vcmp.eq.s32.totalorder %v1077_v35, %v1073_v43  ;;  %v4473_v43 = vmov %v3921_v43 }
 0x1c0   : >>> { %v905_v3 = vmul.f32 %v3730_v2, %v903_v63  ;;  %vm911_vm3 = vweird.f32 %v3730_v2  ;;  %v2116_v63 = vld [vmem:[%s4106_s26] sm:$0xff]  ;;  %v4477_v43 = vmov %v3921_v43 }
 0x1c1   : >>> { %vm912_vm4 = vmor %vm910_vm2, %vm911_vm3  ;;  %v4482_v43 = vmov %v3921_v43  ;;  %vm1401_vm2 = vcmp.eq.s32.totalorder %v1396_v42, %v4473_v43 }
 0x1c2   : >>> { %v906_v4 = vmul.f32 %v3730_v2, %v905_v3 }
 0x1c4   : >>> { %v907_v5 = vmul.f32 0.5, %v906_v4 }
 0x1c6   : >>> { %v908_v6 = vsub.f32 1.5, %v907_v5 }
 0x1c8   : >>> { %v909_v7 = vmul.f32 %v3730_v2, %v908_v6 }
 0x1ca   : >>> { %v913_v8 = vsel %vm912_vm4, %v3730_v2, %v909_v7 }
 0x1cb   : >>> { %924 = vst [vmem:[%s923_s15] sm:$0xff] %v913_v8  ;;  %v914_v9 = vmul.f32 %v913_v8, %v901_v60  ;;  %s1021_s15 = smov [#allocation22] }
 0x1cd   : >>> { %926 = vst [vmem:[%s925_s16] sm:$0xff] %v914_v9  ;;  %s990_s16 = smov [#allocation21] }
 0x1d2   : >>> { %v959_v12 = vld [vmem:[%s958_s17] ss:$0 sm:$0xff]  ;;  %s1006_s17 = smov [#allocation22] }
 0x1d3   : >>> { %v928_v13 = vld [vmem:[%s927_s28] ss:$0 sm:$0xff]  ;;  %v968_v16 = vsel %vm967_vm5, %v959_v12, 0.0  ;;  %s1053_s28 = smov [#allocation22] }
 0x1d4   : >>> { %v937_v17 = vsel %vm936_vm6, %v928_v13, 0.0  ;;  %v943_v18 = vld [vmem:[%s942_s29] ss:$0 sm:$0xff]  ;;  %969 = vadd.xlane.f32.xlu2 %v968_v16  ;;  %s1069_s29 = smov [#allocation22] }
 0x1d5   : >>> { %938 = vadd.xlane.f32.xlu0 %v937_v17  ;;  %v952_v20 = vsel %vm951_vm7, %v943_v18, 0.0  ;;  %v975_v21 = vld [vmem:[%s974_s11] ss:$0 sm:$0xff]  ;;  %s940_s11 = smov [#allocation23] }
 0x1d6   : >>> { %953 = vadd.xlane.f32.xlu1 %v952_v20  ;;  %v1038_v22 = vld [vmem:[%s1037_s30] ss:$0 sm:$0xff]  ;;  %v984_v24 = vsel %vm983_vm8, %v975_v21, 0.0  ;;  %s955_s30 = smov [#allocation23] }
 0x1d7   : >>> { %v1022_v23 = vld [vmem:[%s1021_s15] ss:$0 sm:$0xff]  ;;  %v1047_v25 = vsel %vm1046_vm9, %v1038_v22, 0.0  ;;  %s971_s15 = smov [#allocation23] }
 0x1d8   : >>> { %v1031_v26 = vsel %vm1030_vm11, %v1022_v23, 0.0  ;;  %v991_v29 = vld [vmem:[%s990_s16] ss:$0 sm:$0xff]  ;;  %s987_s16 = smov [#allocation23] }
 0x1d9   : >>> { %v1007_v30 = vld [vmem:[%s1006_s17] ss:$0 sm:$0xff]  ;;  %v1000_v32 = vsel %vm999_vm12, %v991_v29, 0.0  ;;  %s1003_s17 = smov [#allocation23] }
 0x1da   : >>> { %v1054_v31 = vld [vmem:[%s1053_s28] ss:$0 sm:$0xff]  ;;  %v1016_v33 = vsel %vm1015_vm13, %v1007_v30, 0.0  ;;  %s1019_s28 = smov [#allocation24] }
 0x1db   : >>> { %v1063_v34 = vsel %vm1062_vm14, %v1054_v31, 0.0  ;;  %v1070_v36 = vld [vmem:[%s1069_s29] ss:$0 sm:$0xff]  ;;  %s1034_s29 = smov [#allocation24] }
 0x1dc   : >>> { %1048 = vadd.xlane.f32.xlu2 %v1047_v25  ;;  %v1079_v37 = vsel %vm1078_vm15, %v1070_v36, 0.0 }
 0x1dd   : >>> { %985 = vadd.xlane.f32.xlu0 %v984_v24 }
 0x1de   : >>> { %1032 = vadd.xlane.f32.xlu1 %v1031_v26 }
 0x1e4   : >>> { %1001 = vadd.xlane.f32.xlu2 %v1000_v32 }
 0x1e5   : >>> { %1017 = vadd.xlane.f32.xlu0 %v1016_v33 }
 0x1e6   : >>> { %1064 = vadd.xlane.f32.xlu1 %v1063_v34 }
 0x1ed   : >>> { %1080 = vadd.xlane.f32.xlu0 %v1079_v37 }
 0x247   : >>> { %v970_v38 = vpop.xlane.xlu2 %969 }
 0x248   : >>> { %v939_v39 = vpop.xlane.xlu0 %938 }
 0x249   : >>> { %941 = vst [vmem:[%s940_s11] sm:$0xff] %v939_v39  ;;  %v954_v40 = vpop.xlane.xlu1 %953  ;;  %s1082_s11 = smov [#allocation24] }
 0x24a   : >>> { %3334 = vst [vmem:[%s955_s30 + $0x8] sm:$0xff] %v954_v40  ;;  %s1085_s30 = smov [#allocation23] }
 0x24b   : >>> { %3335 = vst [vmem:[%s971_s15 + $0x10] sm:$0xff] %v970_v38  ;;  %s4085_s15 = smov [#allocation12] }
 0x24c   : >>> { %v1093_v50 = vld [vmem:[%s4085_s15] sm:$0xff] }
 0x24f   : >>> { %v1049_v44 = vpop.xlane.xlu2 %1048 }
 0x250   : >>> { %v986_v41 = vpop.xlane.xlu0 %985 }
 0x251   : >>> { %3336 = vst [vmem:[%s987_s16 + $0x18] sm:$0xff] %v986_v41  ;;  %v1033_v45 = vpop.xlane.xlu1 %1032  ;;  %s4087_s16 = smov [#allocation13] }
 0x252   : >>> { %v1094_v51 = vld [vmem:[%s4087_s16] sm:$0xff] }
 0x257   : >>> { %v1002_v46 = vpop.xlane.xlu2 %1001 }
 0x258   : >>> { %v1018_v47 = vpop.xlane.xlu0 %1017  ;;  %3337 = vst [vmem:[%s1003_s17 + $0x20] sm:$0xff] %v1002_v46  ;;  %s4089_s17 = smov [#allocation14] }
 0x259   : >>> { %1020 = vst [vmem:[%s1019_s28] sm:$0xff] %v1018_v47  ;;  %v1065_v48 = vpop.xlane.xlu1 %1064  ;;  %v1095_v52 = vld [vmem:[%s4089_s17] sm:$0xff]  ;;  %s1087_s28 = smov [#allocation24] }
 0x25a   : >>> { %3338 = vst [vmem:[%s1034_s29 + $0x8] sm:$0xff] %v1033_v45  ;;  %s2107_s29 = smov [#allocation24] }
 0x25b   : >>> { %3339 = vst [vmem:[%s1050_s27 + $0x10] sm:$0xff] %v1049_v44  ;;  %s2105_s27 = smov [#allocation23] }
 0x25c   : >>> { %3340 = vst [vmem:[%s1066_s21 + $0x18] sm:$0xff] %v1065_v48  ;;  %s4097_s21 = smov [#allocation15] }
 0x25d   : >>> { %v1096_v54 = vld [vmem:[%s4097_s21] sm:$0xff] }
 0x25f   : >>> { %v1086_v53 = vld [vmem:[%s1085_s30] sm:$0xff]  ;;  %s4117_s30 = smov [#allocation12] }
 0x260   : >>> { %v1081_v49 = vpop.xlane.xlu0 %1080  ;;  %v2106_v56 = vld [vmem:[%s2105_s27] sm:$0xff]  ;;  %v1097_v58 = vmul.f32 %v1093_v50, %v1086_v53  ;;  %v1100_v59 = vmul.f32 %v1094_v51, %v1086_v53  ;;  %v1104_v60 = vmul.f32 %v1095_v52, %v1086_v53  ;;  %v1107_v5 = vmul.f32 %v1096_v54, %v1086_v53  ;;  %s1116_s27 = smov [#allocation24] }
 0x261   : >>> { %3341 = vst [vmem:[%s1082_s11 + $0x20] sm:$0xff] %v1081_v49  ;;  %v2117_v6 = vmul.f32 %v2113_v55, %v2106_v56  ;;  %v2120_v13 = vmul.f32 %v2114_v57, %v2106_v56  ;;  %v2124_v16 = vmul.f32 %v2115_v62, %v2106_v56  ;;  %v2127_v18 = vmul.f32 %v2116_v63, %v2106_v56  ;;  %s1113_s11 = smov [#allocation23] }
 0x262   : >>> { %v3342_v22 = vld [vmem:[%s1113_s11 + $0x8] sm:$0xff]  ;;  %s1150_s11 = smov [#allocation24] }
 0x268   : >>> { %v1088_v61 = vld [vmem:[%s1087_s28] sm:$0xff]  ;;  %s4120_s28 = smov [#allocation13]  ;;  %v3343_v23 = vld [vmem:[%s1116_s27 + $0x8] sm:$0xff]  ;;  %s4156_s27 = smov [#allocation13] }
 0x269   : >>> { %v1098_v0 = vmul.f32 %v1095_v52, %v1088_v61  ;;  %v1101_v1 = vmul.f32 %v1096_v54, %v1088_v61  ;;  %v1103_v2 = vmul.f32 %v1093_v50, %v1088_v61  ;;  %v1106_v3 = vmul.f32 %v1094_v51, %v1088_v61  ;;  %v2108_v4 = vld [vmem:[%s2107_s29] sm:$0xff]  ;;  %s1147_s29 = smov [#allocation23]  ;;  %v3353_v61 = vld [vmem:[%s1150_s11 + $0x10] sm:$0xff]  ;;  %s4189_s11 = smov [#allocation12] }
 0x26a   : >>> { %v2118_v7 = vmul.f32 %v2115_v62, %v2108_v4  ;;  %v2121_v8 = vmul.f32 %v2116_v63, %v2108_v4  ;;  %v2123_v12 = vmul.f32 %v2113_v55, %v2108_v4  ;;  %v2126_v15 = vmul.f32 %v2114_v57, %v2108_v4 }
 0x26b   : >>> { %v1099_v9 = vsub.f32 %v1097_v58, %v1098_v0  ;;  %v1102_v10 = vsub.f32 %v1100_v59, %v1101_v1  ;;  %v1105_v11 = vadd.f32 %v1104_v60, %v1103_v2  ;;  %v1108_v14 = vadd.f32 %v1107_v5, %v1106_v3  ;;  %v3352_v60 = vld [vmem:[%s1147_s29 + $0x10] sm:$0xff]  ;;  %s1184_s29 = smov [#allocation24] }
 0x26c   : >>> { %v2119_v17 = vsub.f32 %v2117_v6, %v2118_v7  ;;  %v2122_v19 = vsub.f32 %v2120_v13, %v2121_v8  ;;  %v2125_v20 = vadd.f32 %v2124_v16, %v2123_v12  ;;  %v2128_v21 = vadd.f32 %v2127_v18, %v2126_v15 }
 0x26d   : >>> { %1109 = vst [vmem:[%s4085_s15] sm:$0xff] %v1099_v9  ;;  %s4123_s15 = smov [#allocation14] }
 0x26e   : >>> { %1110 = vst [vmem:[%s4087_s16] sm:$0xff] %v1102_v10  ;;  %s4126_s16 = smov [#allocation15] }
 0x26f   : >>> { %1111 = vst [vmem:[%s4089_s17] sm:$0xff] %v1105_v11  ;;  %s2133_s17 = smov [#allocation23] }
 0x270   : >>> { %1112 = vst [vmem:[%s4097_s21] sm:$0xff] %v1108_v14  ;;  %s2136_s21 = smov [#allocation24]  ;;  %v3546_v34 = vld [vmem:[%s2133_s17 + $0x8] sm:$0xff]  ;;  %s2170_s17 = smov [#allocation24] }
 0x271   : >>> { %2129 = vst [vmem:[%s4092_s14] sm:$0xff] %v2119_v17  ;;  %s4131_s14 = smov %s3895_s14  ;;  %v3547_v37 = vld [vmem:[%s2136_s21 + $0x8] sm:$0xff]  ;;  %v3557_v11 = vld [vmem:[%s2170_s17 + $0x10] sm:$0xff]  ;;  %s1181_s21 = smov [#allocation23] }
 0x272   : >>> { %2130 = vst [vmem:[%s4095_s24] sm:$0xff] %v2122_v19  ;;  %s4135_s24 = smov %s3913_s24  ;;  %s1215_s17 = smov [#allocation23] }
 0x273   : >>> { %2131 = vst [vmem:[%s4103_s25] sm:$0xff] %v2125_v20  ;;  %s4139_s25 = smov %s5104_s25 }
 0x274   : >>> { %v3344_v24 = vld [vmem:[%s4117_s30 + $0x8] sm:$0xff]  ;;  %2132 = vst [vmem:[%s4106_s26] sm:$0xff] %v2128_v21  ;;  %s4143_s26 = smov %s5105_s26 }
 0x275   : >>> { %v3345_v25 = vld [vmem:[%s4120_s28 + $0x8] sm:$0xff]  ;;  %v1131_v26 = vmul.f32 %v3344_v24, %v3342_v22  ;;  %v1137_v27 = vmul.f32 %v3344_v24, %v3343_v23 }
 0x276   : >>> { %v3346_v28 = vld [vmem:[%s4123_s15 + $0x8] sm:$0xff]  ;;  %v1134_v29 = vmul.f32 %v3345_v25, %v3342_v22  ;;  %v1140_v30 = vmul.f32 %v3345_v25, %v3343_v23 }
 0x277   : >>> { %v3347_v31 = vld [vmem:[%s4126_s16 + $0x8] sm:$0xff]  ;;  %v1132_v32 = vmul.f32 %v3346_v28, %v3343_v23  ;;  %v1138_v33 = vmul.f32 %v3346_v28, %v3342_v22 }
 0x278   : >>> { %v1135_v35 = vmul.f32 %v3347_v31, %v3343_v23  ;;  %v1141_v36 = vmul.f32 %v3347_v31, %v3342_v22  ;;  %v3548_v38 = vld [vmem:[%s4131_s14 + $0x8] sm:$0xff] }
 0x279   : >>> { %v1133_v39 = vsub.f32 %v1131_v26, %v1132_v32  ;;  %v1139_v40 = vadd.f32 %v1138_v33, %v1137_v27  ;;  %v3549_v41 = vld [vmem:[%s4135_s24 + $0x8] sm:$0xff]  ;;  %v2151_v44 = vmul.f32 %v3548_v38, %v3546_v34  ;;  %v2157_v45 = vmul.f32 %v3548_v38, %v3547_v37  ;;  %v3362_v32 = vld [vmem:[%s1181_s21 + $0x18] sm:$0xff]  ;;  %s1218_s21 = smov [#allocation24] }
 0x27a   : >>> { %v1136_v46 = vsub.f32 %v1134_v29, %v1135_v35  ;;  %v1142_v47 = vadd.f32 %v1141_v36, %v1140_v30  ;;  %v3550_v48 = vld [vmem:[%s4139_s25 + $0x8] sm:$0xff]  ;;  %v2154_v49 = vmul.f32 %v3549_v41, %v3546_v34  ;;  %v2160_v50 = vmul.f32 %v3549_v41, %v3547_v37  ;;  %v3363_v33 = vld [vmem:[%s1184_s29 + $0x18] sm:$0xff]  ;;  %s4225_s29 = smov [#allocation12] }
 0x27b   : >>> { %3348 = vst [vmem:[%s4117_s30 + $0x8] sm:$0xff] %v1133_v39  ;;  %v3551_v51 = vld [vmem:[%s4143_s26 + $0x8] sm:$0xff]  ;;  %v2152_v52 = vmul.f32 %v3550_v48, %v3547_v37  ;;  %v2158_v53 = vmul.f32 %v3550_v48, %v3546_v34  ;;  %s4153_s30 = smov [#allocation12] }
 0x27c   : >>> { %3349 = vst [vmem:[%s4120_s28 + $0x8] sm:$0xff] %v1136_v46  ;;  %v2155_v54 = vmul.f32 %v3551_v51, %v3547_v37  ;;  %v2161_v55 = vmul.f32 %v3551_v51, %v3546_v34  ;;  %s4159_s28 = smov [#allocation14] }
 0x27d   : >>> { %3350 = vst [vmem:[%s4123_s15 + $0x8] sm:$0xff] %v1139_v40  ;;  %v2153_v56 = vsub.f32 %v2151_v44, %v2152_v52  ;;  %v2159_v57 = vadd.f32 %v2158_v53, %v2157_v45  ;;  %s4162_s15 = smov [#allocation15] }
 0x27e   : >>> { %3351 = vst [vmem:[%s4126_s16 + $0x8] sm:$0xff] %v1142_v47  ;;  %v2156_v58 = vsub.f32 %v2154_v49, %v2155_v54  ;;  %v2162_v59 = vadd.f32 %v2161_v55, %v2160_v50  ;;  %s2167_s16 = smov [#allocation23] }
 0x27f   : >>> { %3552 = vst [vmem:[%s4131_s14 + $0x8] sm:$0xff] %v2153_v56  ;;  %s4167_s14 = smov %s3895_s14  ;;  %v3556_v8 = vld [vmem:[%s2167_s16 + $0x10] sm:$0xff]  ;;  %s2204_s16 = smov [#allocation24] }
 0x280   : >>> { %3553 = vst [vmem:[%s4135_s24 + $0x8] sm:$0xff] %v2156_v58  ;;  %s4171_s24 = smov %s3913_s24  ;;  %v3567_v49 = vld [vmem:[%s2204_s16 + $0x18] sm:$0xff]  ;;  %s1249_s16 = smov [#allocation21] }
 0x281   : >>> { %3554 = vst [vmem:[%s4139_s25 + $0x8] sm:$0xff] %v2159_v57  ;;  %s4175_s25 = smov %s5104_s25 }
 0x282   : >>> { %v3354_v62 = vld [vmem:[%s4153_s30 + $0x10] sm:$0xff]  ;;  %3555 = vst [vmem:[%s4143_s26 + $0x8] sm:$0xff] %v2162_v59  ;;  %s4179_s26 = smov %s5105_s26 }
 0x283   : >>> { %v3355_v63 = vld [vmem:[%s4156_s27 + $0x10] sm:$0xff]  ;;  %v1165_v0 = vmul.f32 %v3354_v62, %v3352_v60  ;;  %v1171_v1 = vmul.f32 %v3354_v62, %v3353_v61 }
 0x284   : >>> { %v3356_v2 = vld [vmem:[%s4159_s28 + $0x10] sm:$0xff]  ;;  %v1168_v3 = vmul.f32 %v3355_v63, %v3352_v60  ;;  %v1174_v4 = vmul.f32 %v3355_v63, %v3353_v61 }
 0x285   : >>> { %v3357_v5 = vld [vmem:[%s4162_s15 + $0x10] sm:$0xff]  ;;  %v1166_v6 = vmul.f32 %v3356_v2, %v3353_v61  ;;  %v1172_v7 = vmul.f32 %v3356_v2, %v3352_v60 }
 0x286   : >>> { %v1169_v9 = vmul.f32 %v3357_v5, %v3353_v61  ;;  %v1175_v10 = vmul.f32 %v3357_v5, %v3352_v60  ;;  %v3558_v12 = vld [vmem:[%s4167_s14 + $0x10] sm:$0xff] }
 0x287   : >>> { %v1167_v13 = vsub.f32 %v1165_v0, %v1166_v6  ;;  %v1173_v14 = vadd.f32 %v1172_v7, %v1171_v1  ;;  %v3559_v15 = vld [vmem:[%s4171_s24 + $0x10] sm:$0xff]  ;;  %v2185_v16 = vmul.f32 %v3558_v12, %v3556_v8  ;;  %v2191_v17 = vmul.f32 %v3558_v12, %v3557_v11  ;;  %v3372_v6 = vld [vmem:[%s1215_s17 + $0x20] sm:$0xff]  ;;  %s1251_s17 = smov [#allocation22] }
 0x288   : >>> { %v1170_v18 = vsub.f32 %v1168_v3, %v1169_v9  ;;  %v1176_v19 = vadd.f32 %v1175_v10, %v1174_v4  ;;  %v3560_v20 = vld [vmem:[%s4175_s25 + $0x10] sm:$0xff]  ;;  %v2188_v21 = vmul.f32 %v3559_v15, %v3556_v8  ;;  %v2194_v22 = vmul.f32 %v3559_v15, %v3557_v11  ;;  %v3373_v7 = vld [vmem:[%s1218_s21 + $0x20] sm:$0xff]  ;;  %s4263_s21 = smov [#allocation12] }
 0x289   : >>> { %3358 = vst [vmem:[%s4153_s30 + $0x10] sm:$0xff] %v1167_v13  ;;  %v3561_v23 = vld [vmem:[%s4179_s26 + $0x10] sm:$0xff]  ;;  %v2186_v24 = vmul.f32 %v3560_v20, %v3557_v11  ;;  %v2192_v25 = vmul.f32 %v3560_v20, %v3556_v8  ;;  %s4192_s30 = smov [#allocation13] }
 0x28a   : >>> { %3359 = vst [vmem:[%s4156_s27 + $0x10] sm:$0xff] %v1170_v18  ;;  %v2189_v26 = vmul.f32 %v3561_v23, %v3557_v11  ;;  %v2195_v27 = vmul.f32 %v3561_v23, %v3556_v8  ;;  %s4195_s27 = smov [#allocation14] }
 0x28b   : >>> { %3360 = vst [vmem:[%s4159_s28 + $0x10] sm:$0xff] %v1173_v14  ;;  %v2187_v28 = vsub.f32 %v2185_v16, %v2186_v24  ;;  %v2193_v29 = vadd.f32 %v2192_v25, %v2191_v17  ;;  %s4198_s28 = smov [#allocation15] }
 0x28c   : >>> { %3361 = vst [vmem:[%s4162_s15 + $0x10] sm:$0xff] %v1176_v19  ;;  %v2190_v30 = vsub.f32 %v2188_v21, %v2189_v26  ;;  %v2196_v31 = vadd.f32 %v2195_v27, %v2194_v22  ;;  %s2201_s15 = smov [#allocation23] }
 0x28d   : >>> { %3562 = vst [vmem:[%s4167_s14 + $0x10] sm:$0xff] %v2187_v28  ;;  %s4203_s14 = smov %s3895_s14  ;;  %v3566_v46 = vld [vmem:[%s2201_s15 + $0x18] sm:$0xff]  ;;  %s2238_s15 = smov [#allocation24] }
 0x28e   : >>> { %3563 = vst [vmem:[%s4171_s24 + $0x10] sm:$0xff] %v2190_v30  ;;  %s4207_s24 = smov %s3913_s24  ;;  %v3577_v21 = vld [vmem:[%s2238_s15 + $0x20] sm:$0xff]  ;;  %s4329_s15 = smov [#allocation14] }
 0x28f   : >>> { %3564 = vst [vmem:[%s4175_s25 + $0x10] sm:$0xff] %v2193_v29  ;;  %s4211_s25 = smov %s5104_s25 }
 0x290   : >>> { %v3364_v34 = vld [vmem:[%s4189_s11 + $0x18] sm:$0xff]  ;;  %3565 = vst [vmem:[%s4179_s26 + $0x10] sm:$0xff] %v2196_v31  ;;  %s4215_s26 = smov %s5105_s26 }
 0x291   : >>> { %v3365_v35 = vld [vmem:[%s4192_s30 + $0x18] sm:$0xff]  ;;  %v1199_v36 = vmul.f32 %v3364_v34, %v3362_v32  ;;  %v1205_v37 = vmul.f32 %v3364_v34, %v3363_v33 }
 0x292   : >>> { %v3366_v38 = vld [vmem:[%s4195_s27 + $0x18] sm:$0xff]  ;;  %v1202_v39 = vmul.f32 %v3365_v35, %v3362_v32  ;;  %v1208_v40 = vmul.f32 %v3365_v35, %v3363_v33 }
 0x293   : >>> { %v3367_v41 = vld [vmem:[%s4198_s28 + $0x18] sm:$0xff]  ;;  %v1200_v44 = vmul.f32 %v3366_v38, %v3363_v33  ;;  %v1206_v45 = vmul.f32 %v3366_v38, %v3362_v32 }
 0x294   : >>> { %v1203_v47 = vmul.f32 %v3367_v41, %v3363_v33  ;;  %v1209_v48 = vmul.f32 %v3367_v41, %v3362_v32  ;;  %v3568_v50 = vld [vmem:[%s4203_s14 + $0x18] sm:$0xff] }
 0x295   : >>> { %v1201_v51 = vsub.f32 %v1199_v36, %v1200_v44  ;;  %v1207_v52 = vadd.f32 %v1206_v45, %v1205_v37  ;;  %v3569_v53 = vld [vmem:[%s4207_s24 + $0x18] sm:$0xff]  ;;  %v2219_v54 = vmul.f32 %v3568_v50, %v3566_v46  ;;  %v2225_v55 = vmul.f32 %v3568_v50, %v3567_v49  ;;  %v4261_v44 = vld [vmem:[%s1249_s16] ss:$0 sm:$0xff]  ;;  %s4334_s16 = smov [#allocation15] }
 0x296   : >>> { %v1204_v56 = vsub.f32 %v1202_v39, %v1203_v47  ;;  %v1210_v57 = vadd.f32 %v1209_v48, %v1208_v40  ;;  %v3570_v58 = vld [vmem:[%s4211_s25 + $0x18] sm:$0xff]  ;;  %v2222_v59 = vmul.f32 %v3569_v53, %v3566_v46  ;;  %v2228_v60 = vmul.f32 %v3569_v53, %v3567_v49  ;;  %v4266_v45 = vld [vmem:[%s1251_s17] ss:$0 sm:$0xff]  ;;  %s4386_s17 = smov [#allocation12] }
 0x297   : >>> { %3368 = vst [vmem:[%s4189_s11 + $0x18] sm:$0xff] %v1201_v51  ;;  %v3571_v61 = vld [vmem:[%s4215_s26 + $0x18] sm:$0xff]  ;;  %v2220_v62 = vmul.f32 %v3570_v58, %v3567_v49  ;;  %v2226_v63 = vmul.f32 %v3570_v58, %v3566_v46  ;;  %s4228_s11 = smov [#allocation13] }
 0x298   : >>> { %3369 = vst [vmem:[%s4192_s30 + $0x18] sm:$0xff] %v1204_v56  ;;  %v2223_v0 = vmul.f32 %v3571_v61, %v3567_v49  ;;  %v2229_v1 = vmul.f32 %v3571_v61, %v3566_v46  ;;  %s4231_s30 = smov [#allocation15] }
 0x299   : >>> { %3370 = vst [vmem:[%s4195_s27 + $0x18] sm:$0xff] %v1207_v52  ;;  %v2221_v2 = vsub.f32 %v2219_v54, %v2220_v62  ;;  %v2227_v3 = vadd.f32 %v2226_v63, %v2225_v55  ;;  %s4233_s27 = smov [#allocation14] }
 0x29a   : >>> { %3371 = vst [vmem:[%s4198_s28 + $0x18] sm:$0xff] %v1210_v57  ;;  %v2224_v4 = vsub.f32 %v2222_v59, %v2223_v0  ;;  %v2230_v5 = vadd.f32 %v2229_v1, %v2228_v60  ;;  %s2235_s28 = smov [#allocation23] }
 0x29b   : >>> { %3572 = vst [vmem:[%s4203_s14 + $0x18] sm:$0xff] %v2221_v2  ;;  %s4239_s14 = smov %s3895_s14  ;;  %v3576_v18 = vld [vmem:[%s2235_s28 + $0x20] sm:$0xff]  ;;  %s4317_s28 = smov [#allocation13] }
 0x29c   : >>> { %3573 = vst [vmem:[%s4207_s24 + $0x18] sm:$0xff] %v2224_v4  ;;  %s4243_s24 = smov %s3913_s24 }
 0x29d   : >>> { %3574 = vst [vmem:[%s4211_s25 + $0x18] sm:$0xff] %v2227_v3  ;;  %s4247_s25 = smov %s5104_s25 }
 0x29e   : >>> { %v3374_v8 = vld [vmem:[%s4225_s29 + $0x20] sm:$0x1]  ;;  %3575 = vst [vmem:[%s4215_s26 + $0x18] sm:$0xff] %v2230_v5  ;;  %s4251_s26 = smov %s5105_s26 }
 0x29f   : >>> { %v3375_v9 = vld [vmem:[%s4228_s11 + $0x20] sm:$0x1]  ;;  %v1233_v10 = vmul.f32 %v3374_v8, %v3372_v6  ;;  %v1239_v11 = vmul.f32 %v3374_v8, %v3373_v7 }
 0x2a0   : >>> { %v3376_v12 = vld [vmem:[%s4233_s27 + $0x20] sm:$0x1]  ;;  %v1236_v13 = vmul.f32 %v3375_v9, %v3372_v6  ;;  %v1242_v14 = vmul.f32 %v3375_v9, %v3373_v7 }
 0x2a1   : >>> { %v3377_v15 = vld [vmem:[%s4231_s30 + $0x20] sm:$0x1]  ;;  %v1234_v16 = vmul.f32 %v3376_v12, %v3373_v7  ;;  %v1240_v17 = vmul.f32 %v3376_v12, %v3372_v6 }
 0x2a2   : >>> { %v1237_v19 = vmul.f32 %v3377_v15, %v3373_v7  ;;  %v1243_v20 = vmul.f32 %v3377_v15, %v3372_v6  ;;  %v3578_v22 = vld [vmem:[%s4239_s14 + $0x20] sm:$0x1] }
 0x2a3   : >>> { %v1235_v23 = vsub.f32 %v1233_v10, %v1234_v16  ;;  %v1241_v24 = vadd.f32 %v1240_v17, %v1239_v11  ;;  %v3579_v25 = vld [vmem:[%s4243_s24 + $0x20] sm:$0x1]  ;;  %v2253_v26 = vmul.f32 %v3578_v22, %v3576_v18  ;;  %v2259_v27 = vmul.f32 %v3578_v22, %v3577_v21 }
 0x2a4   : >>> { %v1238_v28 = vsub.f32 %v1236_v13, %v1237_v19  ;;  %v1244_v29 = vadd.f32 %v1243_v20, %v1242_v14  ;;  %v3580_v30 = vld [vmem:[%s4247_s25 + $0x20] sm:$0x1]  ;;  %v2256_v31 = vmul.f32 %v3579_v25, %v3576_v18  ;;  %v2262_v32 = vmul.f32 %v3579_v25, %v3577_v21 }
 0x2a5   : >>> { %3378 = vst [vmem:[%s4225_s29 + $0x20] sm:$0x1] %v1235_v23  ;;  %v3581_v33 = vld [vmem:[%s4251_s26 + $0x20] sm:$0x1]  ;;  %v2254_v34 = vmul.f32 %v3580_v30, %v3577_v21  ;;  %v2260_v35 = vmul.f32 %v3580_v30, %v3576_v18  ;;  %s4268_s29 = smov [#allocation13] }
 0x2a6   : >>> { %3379 = vst [vmem:[%s4228_s11 + $0x20] sm:$0x1] %v1238_v28  ;;  %v2257_v36 = vmul.f32 %v3581_v33, %v3577_v21  ;;  %v2263_v37 = vmul.f32 %v3581_v33, %v3576_v18  ;;  %s4271_s11 = smov [#allocation14] }
 0x2a7   : >>> { %3380 = vst [vmem:[%s4233_s27 + $0x20] sm:$0x1] %v1241_v24  ;;  %v2255_v38 = vsub.f32 %v2253_v26, %v2254_v34  ;;  %v2261_v39 = vadd.f32 %v2260_v35, %v2259_v27  ;;  %s4274_s27 = smov [#allocation15] }
 0x2a8   : >>> { %3381 = vst [vmem:[%s4231_s30 + $0x20] sm:$0x1] %v1244_v29  ;;  %v2258_v40 = vsub.f32 %v2256_v31, %v2257_v36  ;;  %v2264_v41 = vadd.f32 %v2263_v37, %v2262_v32  ;;  %s4315_s30 = smov [#allocation12] }
 0x2a9   : >>> { %3582 = vst [vmem:[%s4239_s14 + $0x20] sm:$0x1] %v2255_v38  ;;  %s4279_s14 = smov %s3895_s14 }
 0x2aa   : >>> { %3583 = vst [vmem:[%s4243_s24 + $0x20] sm:$0x1] %v2258_v40  ;;  %s4355_s24 = smov %s3913_s24 }
 0x2ab   : >>> { %3584 = vst [vmem:[%s4247_s25 + $0x20] sm:$0x1] %v2261_v39  ;;  %s4306_s25 = smov %s5104_s25 }
 0x2ac   : >>> { %v1257_v46 = vld [vmem:[%s4263_s21] sm:$0xff]  ;;  %3585 = vst [vmem:[%s4251_s26 + $0x20] sm:$0x1] %v2264_v41  ;;  %s4400_s26 = smov %s5105_s26 }
 0x2ad   : >>> { %v1258_v47 = vld [vmem:[%s4268_s29] sm:$0xff]  ;;  %v1261_v48 = vmul.f32 %v1257_v46, %v4261_v44  ;;  %v1264_v49 = vmul.f32 %v1257_v46, %v4266_v45 }
 0x2ae   : >>> { %v1259_v50 = vld [vmem:[%s4271_s11] sm:$0xff]  ;;  %v1262_v51 = vmul.f32 %v1258_v47, %v4266_v45  ;;  %v1265_v52 = vmul.f32 %v1258_v47, %v4261_v44 }
 0x2af   : >>> { %v1260_v53 = vld [vmem:[%s4274_s27] sm:$0xff]  ;;  %v1267_v54 = vmul.f32 %v1259_v50, %v4261_v44  ;;  %v1270_v55 = vmul.f32 %v1259_v50, %v4266_v45 }
 0x2b0   : >>> { %v1263_v56 = vsub.f32 %v1261_v48, %v1262_v51  ;;  %v1266_v57 = vadd.f32 %v1265_v52, %v1264_v49  ;;  %v1268_v58 = vmul.f32 %v1260_v53, %v4266_v45  ;;  %v1271_v59 = vmul.f32 %v1260_v53, %v4261_v44  ;;  %v2271_v60 = vld [vmem:[%s4279_s14] ss:$0 sm:$0xff]  ;;  %v3587_v62 = vld [vmem:[%s4279_s14 + $0x7] ss:$0 sm:$0xff]  ;;  %v3588_v63 = vld [vmem:[%s4279_s14 + $0x7] sm:$0xfe] }
 0x2b1   : >>> { %v3586_v61 = vld [vmem:[%s4279_s14 - $0x1] sm:$0xfe]  ;;  %v3589_v2 = vld [vmem:[%s4279_s14 + $0xf] ss:$0 sm:$0xff]  ;;  %v3591_v3 = vld [vmem:[%s4279_s14 + $0xf] sm:$0xfe]  ;;  %v2289_v7 = vsel %vm1909_vm0, %v3587_v62, %v3588_v63 }
 0x2b2   : >>> { %v1269_v0 = vsub.f32 %v1267_v54, %v1268_v58  ;;  %v1272_v1 = vadd.f32 %v1271_v59, %v1270_v55  ;;  %1273 = vst [vmem:[%s4263_s21] sm:$0xff] %v1263_v56  ;;  %v2278_v4 = vsel %vm1909_vm0, %v2271_v60, %v3586_v61  ;;  %v3592_v5 = vld [vmem:[%s4279_s14 + $0x17] ss:$0 sm:$0xff]  ;;  %v3594_v6 = vld [vmem:[%s4279_s14 + $0x17] sm:$0xfe]  ;;  %v3595_v8 = vld [vmem:[%s4279_s14 + $0x1f] ss:$0 sm:$0xff]  ;;  %v2300_v9 = vsel %vm1909_vm0, %v3589_v2, %v3591_v3 }
 0x2b3   : >>> { %1274 = vst [vmem:[%s4268_s29] sm:$0xff] %v1266_v57  ;;  %v2311_v10 = vsel %vm1909_vm0, %v3592_v5, %v3594_v6  ;;  %v3597_v11 = vld [vmem:[%s4279_s14 + $0x20] ss:$0 sm:$0xff]  ;;  %v2322_v12 = vsel %vm1909_vm0, %v3595_v8, 0  ;;  %v3602_v14 = vld [vmem:[%s4306_s25 + $0x19] sm:$0x7f]  ;;  %s4392_s21 = smov [#allocation13] }
 0x2b4   : >>> { %1275 = vst [vmem:[%s4271_s11] sm:$0xff] %v1269_v0  ;;  %v3600_v13 = vld [vmem:[%s4306_s25 + $0x20] ss:$0 sm:$0xff]  ;;  %v3603_v15 = vld [vmem:[%s4306_s25 + $0x18] ss:$0 sm:$0xff]  ;;  %v3605_v16 = vld [vmem:[%s4306_s25 + $0x11] sm:$0x7f] }
 0x2b5   : >>> { %1276 = vst [vmem:[%s4274_s27] sm:$0xff] %v1272_v1  ;;  %v2333_v18 = vsel %vm1909_vm0, %v3597_v11, 0  ;;  %v2325_v22 = vld [vmem:[%s4306_s25] ss:$0 sm:$0xff]  ;;  %v2342_v23 = vsel %vm1973_vm1, %v3600_v13, %v3602_v14  ;;  %v2351_v27 = vsel %vm1973_vm1, %v3603_v15, %v3605_v16  ;;  %v3606_v28 = vld [vmem:[%s4306_s25 + $0x10] ss:$0 sm:$0xff]  ;;  %s4397_s29 = smov [#allocation14] }
 0x2b6   : >>> { %2281 = vst [vmem:[%s4279_s14] sm:$0xff] %v2278_v4  ;;  %v3608_v36 = vld [vmem:[%s4306_s25 + $0x9] sm:$0x7f]  ;;  %v3609_v37 = vld [vmem:[%s4306_s25 + $0x8] ss:$0 sm:$0xff]  ;;  %v3611_v38 = vld [vmem:[%s4306_s25 + $0x1] sm:$0x7f] }
 0x2b7   : >>> { %3590 = vst [vmem:[%s4279_s14 + $0x8] sm:$0xff] %v2289_v7  ;;  %v2373_v41 = vld [vmem:[%s4355_s24] ss:$0 sm:$0xff]  ;;  %v2360_v47 = vsel %vm1973_vm1, %v3606_v28, %v3608_v36  ;;  %v3613_v48 = vld [vmem:[%s4355_s24 + $0x7] ss:$0 sm:$0xff]  ;;  %v2368_v50 = vsel %vm1973_vm1, %v3609_v37, %v3611_v38  ;;  %s4406_s11 = smov [#allocation15] }
 0x2b8   : >>> { %3593 = vst [vmem:[%s4279_s14 + $0x10] sm:$0xff] %v2300_v9  ;;  %v3612_v46 = vld [vmem:[%s4355_s24 - $0x1] sm:$0xfe]  ;;  %v3614_v49 = vld [vmem:[%s4355_s24 + $0x7] sm:$0xfe]  ;;  %s1333_s27 = smov [#allocation12] }
 0x2b9   : >>> { %v3382_v17 = vld [vmem:[%s4315_s30 + $0x8] sm:$0xff]  ;;  %3596 = vst [vmem:[%s4279_s14 + $0x18] sm:$0xff] %v2311_v10  ;;  %v3617_v52 = vld [vmem:[%s4355_s24 + $0xf] sm:$0xfe]  ;;  %v2380_v53 = vsel %vm1909_vm0, %v2373_v41, %v3612_v46  ;;  %v3618_v54 = vld [vmem:[%s4355_s24 + $0x17] ss:$0 sm:$0xff]  ;;  %v2391_v56 = vsel %vm1909_vm0, %v3613_v48, %v3614_v49 }
 0x2ba   : >>> { %v3383_v19 = vld [vmem:[%s4317_s28 + $0x8] sm:$0xff]  ;;  %v1289_v20 = vmul.f32 %v3382_v17, %v4261_v44  ;;  %v1292_v21 = vmul.f32 %v3382_v17, %v4266_v45  ;;  %3598 = vst [vmem:[%s4279_s14 + $0x20] sm:$0x1] %v2322_v12  ;;  %v3620_v55 = vld [vmem:[%s4355_s24 + $0x17] sm:$0xfe] }
 0x2bb   : >>> { %v3384_v24 = vld [vmem:[%s4329_s15 + $0x8] sm:$0xff]  ;;  %v1290_v25 = vmul.f32 %v3383_v19, %v4266_v45  ;;  %v1293_v26 = vmul.f32 %v3383_v19, %v4261_v44  ;;  %3599 = vst [vmem:[%s4279_s14 + $0x1] sm:$0x1] %v2325_v22  ;;  %v3621_v57 = vld [vmem:[%s4355_s24 + $0x1f] ss:$0 sm:$0xff]  ;;  %v2413_v59 = vsel %vm1909_vm0, %v3618_v54, %v3620_v55 }
 0x2bc   : >>> { %v3385_v29 = vld [vmem:[%s4334_s16 + $0x8] sm:$0xff]  ;;  %v1295_v30 = vmul.f32 %v3384_v24, %v4261_v44  ;;  %v1298_v31 = vmul.f32 %v3384_v24, %v4266_v45  ;;  %3601 = vst [vmem:[%s4306_s25 + $0x20] sm:$0x1] %v2333_v18  ;;  %v3623_v60 = vld [vmem:[%s4355_s24 + $0x20] ss:$0 sm:$0xff]  ;;  %v2424_v62 = vsel %vm1909_vm0, %v3621_v57, 0 }
 0x2bd   : >>> { %v1291_v32 = vsub.f32 %v1289_v20, %v1290_v25  ;;  %v1294_v33 = vadd.f32 %v1293_v26, %v1292_v21  ;;  %v1296_v34 = vmul.f32 %v3385_v29, %v4266_v45  ;;  %v1299_v35 = vmul.f32 %v3385_v29, %v4261_v44  ;;  %3604 = vst [vmem:[%s4306_s25 + $0x18] sm:$0xff] %v2342_v23  ;;  %v3615_v51 = vld [vmem:[%s4355_s24 + $0xf] ss:$0 sm:$0xff]  ;;  %v3626_v6 = vld [vmem:[%s4400_s26 + $0x20] ss:$0 sm:$0xff] }
 0x2be   : >>> { %3607 = vst [vmem:[%s4306_s25 + $0x10] sm:$0xff] %v2351_v27  ;;  %v2402_v58 = vsel %vm1909_vm0, %v3615_v51, %v3617_v52  ;;  %v2435_v5 = vsel %vm1909_vm0, %v3623_v60, 0  ;;  %v2427_v10 = vld [vmem:[%s4400_s26] ss:$0 sm:$0xff]  ;;  %v3628_v15 = vld [vmem:[%s4400_s26 + $0x19] sm:$0x7f] }
 0x2bf   : >>> { %v1297_v39 = vsub.f32 %v1295_v30, %v1296_v34  ;;  %v1300_v40 = vadd.f32 %v1299_v35, %v1298_v31  ;;  %3386 = vst [vmem:[%s4315_s30 + $0x8] sm:$0xff] %v1291_v32  ;;  %v3629_v16 = vld [vmem:[%s4400_s26 + $0x18] ss:$0 sm:$0xff]  ;;  %v3631_v17 = vld [vmem:[%s4400_s26 + $0x11] sm:$0x7f]  ;;  %v2444_v22 = vsel %vm1973_vm1, %v3626_v6, %v3628_v15  ;;  %s1335_s30 = smov [#allocation13] }
 0x2c0   : >>> { %3387 = vst [vmem:[%s4317_s28 + $0x8] sm:$0xff] %v1294_v33  ;;  %v3632_v20 = vld [vmem:[%s4400_s26 + $0x10] ss:$0 sm:$0xff]  ;;  %v3634_v21 = vld [vmem:[%s4400_s26 + $0x9] sm:$0x7f]  ;;  %v2453_v25 = vsel %vm1973_vm1, %v3629_v16, %v3631_v17  ;;  %s1337_s28 = smov [#allocation14] }
 0x2c1   : >>> { %3388 = vst [vmem:[%s4329_s15 + $0x8] sm:$0xff] %v1297_v39  ;;  %v3635_v23 = vld [vmem:[%s4400_s26 + $0x8] ss:$0 sm:$0xff]  ;;  %v3637_v24 = vld [vmem:[%s4400_s26 + $0x1] sm:$0x7f]  ;;  %v2462_v26 = vsel %vm1973_vm1, %v3632_v20, %v3634_v21  ;;  %s1339_s15 = smov [#allocation15] }
 0x2c2   : >>> { %3389 = vst [vmem:[%s4334_s16 + $0x8] sm:$0xff] %v1300_v40  ;;  %v2470_v27 = vsel %vm1973_vm1, %v3635_v23, %v3637_v24  ;;  %s1361_s16 = smov [#allocation12]  ;;  %v1432_v24 = vadd.s32 32, %v1396_v42 }
 0x2c3   : >>> { %3610 = vst [vmem:[%s4306_s25 + $0x8] sm:$0xff] %v2360_v47 }
 0x2c4   : >>> { %2370 = vst [vmem:[%s4306_s25] sm:$0xff] %v2368_v50  ;;  %s4679_s25 = smov [#allocation15] }
 0x2c5   : >>> { %2383 = vst [vmem:[%s4355_s24] sm:$0xff] %v2380_v53 }
 0x2c6   : >>> { %v3390_v61 = vld [vmem:[%s4386_s17 + $0x10] sm:$0xff]  ;;  %3616 = vst [vmem:[%s4355_s24 + $0x8] sm:$0xff] %v2391_v56 }
 0x2c7   : >>> { %v3391_v63 = vld [vmem:[%s4392_s21 + $0x10] sm:$0xff]  ;;  %v1317_v0 = vmul.f32 %v3390_v61, %v4261_v44  ;;  %v1320_v1 = vmul.f32 %v3390_v61, %v4266_v45  ;;  %3619 = vst [vmem:[%s4355_s24 + $0x10] sm:$0xff] %v2402_v58 }
 0x2c8   : >>> { %v3392_v2 = vld [vmem:[%s4397_s29 + $0x10] sm:$0xff]  ;;  %v1318_v3 = vmul.f32 %v3391_v63, %v4266_v45  ;;  %v1321_v4 = vmul.f32 %v3391_v63, %v4261_v44  ;;  %3622 = vst [vmem:[%s4355_s24 + $0x18] sm:$0xff] %v2413_v59 }
 0x2c9   : >>> { %v3393_v7 = vld [vmem:[%s4406_s11 + $0x10] sm:$0xff]  ;;  %v1323_v8 = vmul.f32 %v3392_v2, %v4261_v44  ;;  %v1326_v9 = vmul.f32 %v3392_v2, %v4266_v45  ;;  %3624 = vst [vmem:[%s4355_s24 + $0x20] sm:$0x1] %v2424_v62  ;;  %v1424_v2 = vadd.s32 24, %v1396_v42 }
 0x2ca   : >>> { %v1319_v11 = vsub.f32 %v1317_v0, %v1318_v3  ;;  %v1322_v12 = vadd.f32 %v1321_v4, %v1320_v1  ;;  %v1324_v13 = vmul.f32 %v3393_v7, %v4266_v45  ;;  %v1327_v14 = vmul.f32 %v3393_v7, %v4261_v44  ;;  %3625 = vst [vmem:[%s4355_s24 + $0x1] sm:$0x1] %v2427_v10 }
 0x2cb   : >>> { %3627 = vst [vmem:[%s4400_s26 + $0x20] sm:$0x1] %v2435_v5  ;;  %v1408_v0 = vadd.s32 8, %v1396_v42  ;;  %v1416_v1 = vadd.s32 16, %v1396_v42  ;;  %v1483_v42 = vmov %v3910_v42  ;;  %vm1425_vm6 = vcmp.eq.s32.totalorder %v1424_v2, %v4473_v43 }
 0x2cc   : >>> { %v1325_v18 = vsub.f32 %v1323_v8, %v1324_v13  ;;  %v1328_v19 = vadd.f32 %v1327_v14, %v1326_v9  ;;  %3394 = vst [vmem:[%s4386_s17 + $0x10] sm:$0xff] %v1319_v11  ;;  %s1363_s17 = smov [#allocation13]  ;;  %v1500_v3 = vadd.s32 16, %v1483_v42  ;;  %v1507_v4 = vadd.s32 24, %v1483_v42 }
 0x2cd   : >>> { %3395 = vst [vmem:[%s4392_s21 + $0x10] sm:$0xff] %v1322_v12  ;;  %s1365_s21 = smov [#allocation14]  ;;  %vm1409_vm3 = vcmp.eq.s32.totalorder %v1408_v0, %v4473_v43  ;;  %vm1417_vm4 = vcmp.eq.s32.totalorder %v1416_v1, %v4473_v43  ;;  %vm1487_vm7 = vcmp.eq.s32.totalorder %v1483_v42, %v4482_v43 }
 0x2ce   : >>> { %3396 = vst [vmem:[%s4397_s29 + $0x10] sm:$0xff] %v1325_v18  ;;  %s1367_s29 = smov [#allocation15]  ;;  %vm1501_vm9 = vcmp.eq.s32.totalorder %v1500_v3, %v4482_v43  ;;  %vm1508_vm11 = vcmp.eq.s32.totalorder %v1507_v4, %v4482_v43 }
 0x2cf   : >>> { %3397 = vst [vmem:[%s4406_s11 + $0x10] sm:$0xff] %v1328_v19  ;;  %s1390_s11 = smov [#allocation19] }
 0x2d0   : >>> { %3630 = vst [vmem:[%s4400_s26 + $0x18] sm:$0xff] %v2444_v22 }
 0x2d1   : >>> { %3633 = vst [vmem:[%s4400_s26 + $0x10] sm:$0xff] %v2453_v25 }
 0x2d2   : >>> { %3636 = vst [vmem:[%s4400_s26 + $0x8] sm:$0xff] %v2462_v26 }
 0x2d3   : >>> { %v3398_v28 = vld [vmem:[%s1333_s27 + $0x18] sm:$0xff]  ;;  %2472 = vst [vmem:[%s4400_s26] sm:$0xff] %v2470_v27  ;;  %s4667_s26 = smov [#allocation14] }
 0x2d4   : >>> { %v3399_v29 = vld [vmem:[%s1335_s30 + $0x18] sm:$0xff]  ;;  %v1345_v30 = vmul.f32 %v3398_v28, %v4261_v44  ;;  %v1348_v31 = vmul.f32 %v3398_v28, %v4266_v45 }
 0x2d5   : >>> { %v3400_v32 = vld [vmem:[%s1337_s28 + $0x18] sm:$0xff]  ;;  %v1346_v33 = vmul.f32 %v3399_v29, %v4266_v45  ;;  %v1349_v34 = vmul.f32 %v3399_v29, %v4261_v44  ;;  %v1514_v29 = vadd.s32 32, %v1483_v42 }
 0x2d6   : >>> { %v3401_v35 = vld [vmem:[%s1339_s15 + $0x18] sm:$0xff]  ;;  %v1351_v36 = vmul.f32 %v3400_v32, %v4261_v44  ;;  %v1354_v37 = vmul.f32 %v3400_v32, %v4266_v45 }
 0x2d7   : >>> { %v1347_v38 = vsub.f32 %v1345_v30, %v1346_v33  ;;  %v1350_v39 = vadd.f32 %v1349_v34, %v1348_v31  ;;  %v1352_v40 = vmul.f32 %v3401_v35, %v4266_v45  ;;  %v1355_v41 = vmul.f32 %v3401_v35, %v4261_v44 }
 0x2d9   : >>> { %v1353_v46 = vsub.f32 %v1351_v36, %v1352_v40  ;;  %v1356_v47 = vadd.f32 %v1355_v41, %v1354_v37  ;;  %3402 = vst [vmem:[%s1333_s27 + $0x18] sm:$0xff] %v1347_v38  ;;  %s4479_s27 = smov [#allocation12] }
 0x2da   : >>> { %3403 = vst [vmem:[%s1335_s30 + $0x18] sm:$0xff] %v1350_v39  ;;  %s4488_s30 = smov [#allocation13] }
 0x2db   : >>> { %3404 = vst [vmem:[%s1337_s28 + $0x18] sm:$0xff] %v1353_v46  ;;  %s4492_s28 = smov [#allocation14] }
 0x2dc   : >>> { %3405 = vst [vmem:[%s1339_s15 + $0x18] sm:$0xff] %v1356_v47  ;;  %s4535_s15 = smov [#allocation20] }
 0x2dd   : >>> { %v1526_v46 = vld [vmem:[%s4535_s15] ss:$0 sm:$0xff] }
 0x2e0   : >>> { %v3406_v48 = vld [vmem:[%s1361_s16 + $0x20] sm:$0x1] }
 0x2e1   : >>> { %v3407_v49 = vld [vmem:[%s1363_s17 + $0x20] sm:$0x1]  ;;  %v1373_v50 = vmul.f32 %v3406_v48, %v4261_v44  ;;  %v1376_v51 = vmul.f32 %v3406_v48, %v4266_v45 }
 0x2e2   : >>> { %v3408_v52 = vld [vmem:[%s1365_s21 + $0x20] sm:$0x1]  ;;  %v1374_v53 = vmul.f32 %v3407_v49, %v4266_v45  ;;  %v1377_v54 = vmul.f32 %v3407_v49, %v4261_v44 }
 0x2e3   : >>> { %v3409_v55 = vld [vmem:[%s1367_s29 + $0x20] sm:$0x1]  ;;  %v1379_v56 = vmul.f32 %v3408_v52, %v4261_v44  ;;  %v1382_v57 = vmul.f32 %v3408_v52, %v4266_v45 }
 0x2e4   : >>> { %v1375_v58 = vsub.f32 %v1373_v50, %v1374_v53  ;;  %v1380_v59 = vmul.f32 %v3409_v55, %v4266_v45  ;;  %v1378_v60 = vadd.f32 %v1377_v54, %v1376_v51  ;;  %v1383_v61 = vmul.f32 %v3409_v55, %v4261_v44  ;;  %v4484_v44 = vld [vmem:[%s1390_s11] ss:$0 sm:$0xff]  ;;  %s3773_s11 = smov 1  }
 0x2e5   : >>> { %v1493_v45 = vadd.s32 8, %v1483_v42  ;;  %v1442_v42 = vmov %v3910_v42  ;;  %v1557_v55 = vld [vmem:[%s4535_s15] ss:$0 sm:$0xff]  ;;  %s4601_s15 = smov [#allocation12] }
 0x2e6   : >>> { %v1381_v62 = vsub.f32 %v1379_v56, %v1380_v59  ;;  %3410 = vst [vmem:[%s1361_s16 + $0x20] sm:$0x1] %v1375_v58  ;;  %v1384_v63 = vadd.f32 %v1383_v61, %v1382_v57  ;;  %vm1446_vm5 = vcmp.eq.s32.totalorder %v1442_v42, %v4477_v43  ;;  %v1452_v12 = vadd.s32 8, %v1442_v42  ;;  %s4545_s16 = smov [#allocation15] }
 0x2e7   : >>> { %3411 = vst [vmem:[%s1363_s17 + $0x20] sm:$0x1] %v1378_v60  ;;  %vm1494_vm8 = vcmp.eq.s32.totalorder %v1493_v45, %v4482_v43  ;;  %v1459_v17 = vadd.s32 16, %v1442_v42  ;;  %v1466_v20 = vadd.s32 24, %v1442_v42  ;;  %v1473_v23 = vadd.s32 32, %v1442_v42  ;;  %s4571_s17 = smov [#allocation13] }
 0x2e8   : >>> { %3412 = vst [vmem:[%s1365_s21 + $0x20] sm:$0x1] %v1381_v62  ;;  %vm1453_vm12 = vcmp.eq.s32.totalorder %v1452_v12, %v4477_v43  ;;  %v1525_v42 = vmov %v3910_v42  ;;  %s4574_s21 = smov [#allocation12] }
 0x2e9   : >>> { %3413 = vst [vmem:[%s1367_s29 + $0x20] sm:$0x1] %v1384_v63  ;;  %vm1460_vm13 = vcmp.eq.s32.totalorder %v1459_v17, %v4477_v43  ;;  %vm1467_vm14 = vcmp.eq.s32.totalorder %v1466_v20, %v4477_v43  ;;  %vm1474_vm15 = vcmp.eq.s32.totalorder %v1473_v23, %v4477_v43  ;;  %v1522_v43 = vmov %v3921_v43  ;;  %s5075_s29 = smov 127  }
 0x2ea   : >>> { %v1537_v34 = vadd.s32 8, %v1525_v42  ;;  %v1545_v37 = vadd.s32 16, %v1525_v42  ;;  %v1553_v40 = vadd.s32 24, %v1525_v42  ;;  %v1561_v48 = vadd.s32 32, %v1525_v42 }
 0x2ed   : >>> { %v1398_v5 = vld [vmem:[%s4479_s27] sm:$0xff]  ;;  %v3414_v6 = vld [vmem:[%s4479_s27 + $0x8] sm:$0xff]  ;;  %v3416_v7 = vld [vmem:[%s4479_s27 + $0x10] sm:$0xff] }
 0x2ee   : >>> { %v1402_v8 = vsel %vm1401_vm2, %v4484_v44, %v1398_v5  ;;  %v1410_v9 = vsel %vm1409_vm3, %v4484_v44, %v3414_v6  ;;  %v3418_v10 = vld [vmem:[%s4479_s27 + $0x18] sm:$0xff]  ;;  %v1443_v11 = vld [vmem:[%s4488_s30] sm:$0xff]  ;;  %v1418_v13 = vsel %vm1417_vm4, %v4484_v44, %v3416_v7  ;;  %v3422_v26 = vld [vmem:[%s4488_s30 + $0x8] sm:$0xff]  ;;  %vm1433_vm2 = vcmp.eq.s32.totalorder %v1432_v24, %v4473_v43 }
 0x2ef   : >>> { %v1484_v14 = vld [vmem:[%s4492_s28] sm:$0xff]  ;;  %v3430_v15 = vld [vmem:[%s4492_s28 + $0x8] sm:$0xff]  ;;  %1403 = vst [vmem:[%s4479_s27] sm:$0xff] %v1402_v8  ;;  %v1447_v16 = vsel %vm1446_vm5, 0.0, %v1443_v11  ;;  %v1426_v18 = vsel %vm1425_vm6, %v4484_v44, %v3418_v10  ;;  %v3432_v19 = vld [vmem:[%s4492_s28 + $0x10] sm:$0xff]  ;;  %v1454_v32 = vsel %vm1453_vm12, 0.0, %v3422_v26  ;;  %vm1515_vm3 = vcmp.eq.s32.totalorder %v1514_v29, %v4482_v43 }
 0x2f0   : >>> { %1448 = vst [vmem:[%s4488_s30] sm:$0xff] %v1447_v16  ;;  %v1488_v21 = vsel %vm1487_vm7, 0.0, %v1484_v14  ;;  %v3434_v22 = vld [vmem:[%s4492_s28 + $0x18] sm:$0xff]  ;;  %v1495_v25 = vsel %vm1494_vm8, 0.0, %v3430_v15  ;;  %v1502_v27 = vsel %vm1501_vm9, 0.0, %v3432_v19  ;;  %v3424_v28 = vld [vmem:[%s4488_s30 + $0x10] sm:$0xff]  ;;  %v1527_v47 = vld [vmem:[%s4545_s16] sm:$0xff]  ;;  %vm1530_vm4 = vcmp.eq.s32.totalorder %v1525_v42, %v1522_v43 }
 0x2f1   : >>> { %3415 = vst [vmem:[%s4479_s27 + $0x8] sm:$0xff] %v1410_v9  ;;  %v1509_v30 = vsel %vm1508_vm11, 0.0, %v3434_v22  ;;  %v3426_v31 = vld [vmem:[%s4488_s30 + $0x18] sm:$0xff]  ;;  %v3428_v33 = vld [vmem:[%s4488_s30 + $0x20] sm:$0x1]  ;;  %v1461_v36 = vsel %vm1460_vm13, 0.0, %v3424_v28  ;;  %vm1538_vm5 = vcmp.eq.s32.totalorder %v1537_v34, %v1522_v43  ;;  %vm1546_vm6 = vcmp.eq.s32.totalorder %v1545_v37, %v1522_v43 }
 0x2f2   : >>> { %3417 = vst [vmem:[%s4479_s27 + $0x10] sm:$0xff] %v1418_v13  ;;  %v3420_v35 = vld [vmem:[%s4479_s27 + $0x20] sm:$0x1]  ;;  %v1468_v39 = vsel %vm1467_vm14, 0.0, %v3426_v31  ;;  %v1475_v41 = vsel %vm1474_vm15, 0.0, %v3428_v33  ;;  %v3438_v50 = vld [vmem:[%s4545_s16 + $0x8] sm:$0xff]  ;;  %v1531_v53 = vsel %vm1530_vm4, %v1526_v46, %v1527_v47  ;;  %vm1554_vm7 = vcmp.eq.s32.totalorder %v1553_v40, %v1522_v43 }
 0x2f3   : >>> { %3419 = vst [vmem:[%s4479_s27 + $0x18] sm:$0xff] %v1426_v18  ;;  %v3436_v38 = vld [vmem:[%s4492_s28 + $0x20] sm:$0x1]  ;;  %v1434_v49 = vsel %vm1433_vm2, %v4484_v44, %v3420_v35  ;;  %v3440_v52 = vld [vmem:[%s4545_s16 + $0x10] sm:$0xff]  ;;  %v3442_v54 = vld [vmem:[%s4545_s16 + $0x18] sm:$0xff]  ;;  %v1539_v56 = vsel %vm1538_vm5, %v1526_v46, %v3438_v50  ;;  %vm1562_vm8 = vcmp.eq.s32.totalorder %v1561_v48, %v1522_v43  ;;  %vm1576_vm9 = vcmp.eq.s32.totalorder %v3921_v43, 0 }
 0x2f4   : >>> { %1489 = vst [vmem:[%s4492_s28] sm:$0xff] %v1488_v21  ;;  %v1516_v51 = vsel %vm1515_vm3, 0.0, %v3436_v38  ;;  %v3444_v57 = vld [vmem:[%s4545_s16 + $0x20] sm:$0x1]  ;;  %v1547_v58 = vsel %vm1546_vm6, %v1526_v46, %v3440_v52  ;;  %v1555_v59 = vsel %vm1554_vm7, %v1526_v46, %v3442_v54  ;;  %vm1593_vm11 = vcmp.eq.s32.totalorder %v3921_v43, 32 }
 0x2f5   : >>> { %3431 = vst [vmem:[%s4492_s28 + $0x8] sm:$0xff] %v1495_v25  ;;  %v1563_v60 = vsel %vm1562_vm8, %v1557_v55, %v3444_v57  ;;  %vm1580_vm12 = vcmp.eq.s32.totalorder %v3921_v43, 1  ;;  %v537_v43 = vmov (%p702_p9), %v3921_v43  ;;  %v540_v42 = vmov (%p702_p9), %v3910_v42 }
 0x2f6   : >>> { %3433 = vst [vmem:[%s4492_s28 + $0x10] sm:$0xff] %v1502_v27  ;;  %v578_v43 = vmov (%p702_p9), %v3921_v43  ;;  %v581_v42 = vmov (%p702_p9), %v3910_v42 }
 0x2f7   : >>> { %3435 = vst [vmem:[%s4492_s28 + $0x18] sm:$0xff] %v1509_v30  ;;  %v478_v43 = vmov (%p702_p9), %v3921_v43  ;;  %v481_v42 = vmov (%p702_p9), %v3910_v42 }
 0x2f8   : >>> { %3423 = vst [vmem:[%s4488_s30 + $0x8] sm:$0xff] %v1454_v32 }
 0x2f9   : >>> { %3425 = vst [vmem:[%s4488_s30 + $0x10] sm:$0xff] %v1461_v36 }
 0x2fa   : >>> { %3427 = vst [vmem:[%s4488_s30 + $0x18] sm:$0xff] %v1468_v39 }
 0x2fb   : >>> { %3429 = vst [vmem:[%s4488_s30 + $0x20] sm:$0x1] %v1475_v41  ;;  %s4589_s30 = smov [#allocation12] }
 0x2fc   : >>> { %3421 = vst [vmem:[%s4479_s27 + $0x20] sm:$0x1] %v1434_v49  ;;  %s4587_s27 = smov [#allocation13] }
 0x2fd   : >>> { %3437 = vst [vmem:[%s4492_s28 + $0x20] sm:$0x1] %v1516_v51  ;;  %s4599_s28 = smov [#allocation13] }
 0x2fe   : >>> { %1532 = vst [vmem:[%s4545_s16] sm:$0xff] %v1531_v53 }
 0x2ff   : >>> { %3439 = vst [vmem:[%s4545_s16 + $0x8] sm:$0xff] %v1539_v56 }
 0x300   : >>> { %3441 = vst [vmem:[%s4545_s16 + $0x10] sm:$0xff] %v1547_v58 }
 0x301   : >>> { %3443 = vst [vmem:[%s4545_s16 + $0x18] sm:$0xff] %v1555_v59 }
 0x302   : >>> { %v1588_v61 = vld [vmem:[%s4571_s17] sm:$0xff]  ;;  %3445 = vst [vmem:[%s4545_s16 + $0x20] sm:$0x1] %v1563_v60  ;;  %v3449_v63 = vld [vmem:[%s4587_s27 + $0x8] sm:$0xff]  ;;  %v3453_v1 = vld [vmem:[%s4599_s28 + $0x10] sm:$0xff]  ;;  %s4611_s16 = smov [#allocation13] }
 0x303   : >>> { %1589 = vrot.lane.b32.xlu0 %v1588_v61, %s5075_s29  ;;  %1568 = vrot.lane.b32.xlu1 %v1588_v61, %s3773_s11  ;;  %v4583_v62 = vld [vmem:[%s4574_s21] sm:$0xff]  ;;  %v4593_v0 = vld [vmem:[%s4589_s30 + $0x8] sm:$0xff] }
 0x304   : >>> { %1572 = vrot.lane.b32.xlu2 %v4583_v62, %s3773_s11  ;;  %v4605_v2 = vld [vmem:[%s4601_s15 + $0x10] sm:$0xff]  ;;  %v3457_v44 = vld [vmem:[%s4611_s16 + $0x18] sm:$0xff]  ;;  %v4630_v3 = vld [vmem:[%s4623_s1 + $0x8] sm:$0xff] }
 0x305   : >>> { %v4617_v45 = vld [vmem:[%s4613_s0 + $0x18] sm:$0xff]  ;;  %v4637_v5 = vld [vmem:[%s4627_s3] sm:$0xff] }
 0x306   : >>> { %v4661_v9 = vld [vmem:[%s4655_s9 + $0x20] sm:$0x1]  ;;  %v4673_v11 = vld [vmem:[%s4667_s26 + $0x18] sm:$0xff] }
 0x307   : >>> { %v3458_v10 = vld [vmem:[%s4665_s8 + $0x20] sm:$0x1] }
 0x308   : >>> { %v3461_v12 = vld [vmem:[%s4665_s8 + $0x20] sm:$0x1] }
 0x309   : >>> { %v1735_v4 = vld [vmem:[%s4625_s2] sm:$0xff]  ;;  %v3470_v7 = vld [vmem:[%s4643_s18 + $0x8] sm:$0xff]  ;;  %v3474_v8 = vld [vmem:[%s4653_s13 + $0x10] sm:$0xff] }
 0x30a   : >>> { %v4683_v13 = vld [vmem:[%s4677_s7 + $0x20] sm:$0x1]  ;;  %v3478_v14 = vld [vmem:[%s4679_s25 + $0x18] sm:$0xff] }
 0x30b   : >>> { %1621 = vrot.lane.b32.xlu0 %v3449_v63, %s5075_s29  ;;  %1604 = vrot.lane.b32.xlu1 %v4593_v0, %s3773_s11  ;;  %v3485_v15 = vld [vmem:[%s4690_s6 + $0x20] sm:$0x1] }
 0x30c   : >>> { %1600 = vrot.lane.b32.xlu2 %v3449_v63, %s3773_s11  ;;  %v3482_v16 = vld [vmem:[%s4690_s6 + $0x20] sm:$0x1] }
 0x30d   : >>> { %v4712_v27 = vld [vmem:[%s4655_s9 + $0x20] sm:$0x1] }
 0x30e   : >>> { %v4763_v59 = vld [vmem:[%s4677_s7 + $0x20] sm:$0x1] }
 0x313   : >>> { %1653 = vrot.lane.b32.xlu0 %v3453_v1, %s5075_s29  ;;  %1636 = vrot.lane.b32.xlu1 %v4605_v2, %s3773_s11 }
 0x314   : >>> { %1632 = vrot.lane.b32.xlu2 %v3453_v1, %s3773_s11 }
 0x31b   : >>> { %1685 = vrot.lane.b32.xlu0 %v3457_v44, %s5075_s29  ;;  %1668 = vrot.lane.b32.xlu1 %v4617_v45, %s3773_s11  ;;  %s4641_s29 = smov [#allocation14] }
 0x31c   : >>> { %1664 = vrot.lane.b32.xlu2 %v3457_v44, %s3773_s11  ;;  %v4646_v6 = vld [vmem:[%s4641_s29 + $0x10] sm:$0xff] }
 0x323   : >>> { %1772 = vrot.lane.b32.xlu0 %v4630_v3, %s3773_s11  ;;  %1736 = vrot.lane.b32.xlu1 %v1735_v4, %s3773_s11 }
 0x324   : >>> { %1740 = vrot.lane.b32.xlu2 %v4637_v5, %s3773_s11 }
 0x32b   : >>> { %1804 = vrot.lane.b32.xlu0 %v4646_v6, %s3773_s11  ;;  %1768 = vrot.lane.b32.xlu1 %v3470_v7, %s3773_s11 }
 0x32c   : >>> { %1757 = vrot.lane.b32.xlu2 %v1735_v4, %s5106_s10 }
 0x333   : >>> { %1800 = vrot.lane.b32.xlu0 %v3474_v8, %s3773_s11  ;;  %1789 = vrot.lane.b32.xlu1 %v3470_v7, %s5106_s10 }
 0x334   : >>> { %1700 = vrot.lane.b32.xlu2 %v4661_v9, %s3773_s11 }
 0x33b   : >>> { %1821 = vrot.lane.b32.xlu0 %v3474_v8, %s5106_s10  ;;  %1696 = vrot.lane.b32.xlu1 %v3458_v10, %s3773_s11 }
 0x33c   : >>> { %1836 = vrot.lane.b32.xlu2 %v4673_v11, %s3773_s11 }
 0x343   : >>> { %1717 = vrot.lane.b32.xlu0 %v3461_v12, %s5106_s10  ;;  %1868 = vrot.lane.b32.xlu1 %v4683_v13, %s3773_s11 }
 0x344   : >>> { %1832 = vrot.lane.b32.xlu2 %v3478_v14, %s3773_s11 }
 0x34b   : >>> { %1885 = vrot.lane.b32.xlu0 %v3485_v15, %s5106_s10  ;;  %1864 = vrot.lane.b32.xlu1 %v3482_v16, %s3773_s11 }
 0x34c   : >>> { %1853 = vrot.lane.b32.xlu2 %v3478_v14, %s5106_s10  ;;  %s623_s10 = smov (%p702_p9), [#allocation15] }
 0x35e   : >>> { %v1573_v17 = vpop.permute.xlu2 %1572 }
 0x35f   : >>> { %v1577_v20 = vsel %vm1576_vm9, %v4583_v62, %v1573_v17 }
 0x366   : >>> { %v1601_v18 = vpop.permute.xlu2 %1600 }
 0x36e   : >>> { %v1633_v19 = vpop.permute.xlu2 %1632 }
 0x375   : >>> { %v1590_v21 = vpop.permute.xlu0 %1589  ;;  %v1569_v22 = vpop.permute.xlu1 %1568 }
 0x376   : >>> { %v1594_v23 = vsel %vm1593_vm11, %v4583_v62, %v1590_v21  ;;  %v1581_v24 = vsel %vm1580_vm12, %v1569_v22, %v1577_v20  ;;  %v1665_v25 = vpop.permute.xlu2 %1664 }
 0x377   : >>> { %1724 = vst [vmem:[%s4571_s17] sm:$0xff] %v1594_v23  ;;  %v1587_v26 = vsel %vm3007_vm10, %v1581_v24, 0.0 }
 0x378   : >>> { %1723 = vst [vmem:[%s4574_s21] sm:$0xff] %v1587_v26 }
 0x37d   : >>> { %v1622_v28 = vpop.permute.xlu0 %1621  ;;  %v1605_v29 = vpop.permute.xlu1 %1604 }
 0x37e   : >>> { %v1626_v30 = vsel %vm1593_vm11, %v4593_v0, %v1622_v28  ;;  %v1609_v31 = vsel %vm1576_vm9, %v4593_v0, %v1605_v29  ;;  %v1741_v32 = vpop.permute.xlu2 %1740 }
 0x37f   : >>> { %3463 = vst [vmem:[%s4587_s27 + $0x8] sm:$0xff] %v1626_v30  ;;  %v1613_v33 = vsel %vm1580_vm12, %v1601_v18, %v1609_v31  ;;  %v1745_v54 = vsel %vm1576_vm9, %v4637_v5, %v1741_v32 }
 0x380   : >>> { %v1619_v34 = vsel %vm3007_vm10, %v1613_v33, 0.0 }
 0x381   : >>> { %3462 = vst [vmem:[%s4589_s30 + $0x8] sm:$0xff] %v1619_v34 }
 0x385   : >>> { %v1654_v35 = vpop.permute.xlu0 %1653  ;;  %v1637_v36 = vpop.permute.xlu1 %1636 }
 0x386   : >>> { %v1658_v37 = vsel %vm1593_vm11, %v4605_v2, %v1654_v35  ;;  %v1641_v38 = vsel %vm1576_vm9, %v4605_v2, %v1637_v36  ;;  %v1758_v39 = vpop.permute.xlu2 %1757 }
 0x387   : >>> { %3465 = vst [vmem:[%s4599_s28 + $0x10] sm:$0xff] %v1658_v37  ;;  %v1645_v40 = vsel %vm1580_vm12, %v1633_v19, %v1641_v38  ;;  %v1762_v41 = vsel %vm1593_vm11, %v4637_v5, %v1758_v39 }
 0x388   : >>> { %v1651_v46 = vsel %vm3007_vm10, %v1645_v40, 0.0  ;;  %1892 = vst [vmem:[%s4625_s2] sm:$0xff] %v1762_v41  ;;  %s2004_s2 = smov [#allocation15] }
 0x389   : >>> { %3464 = vst [vmem:[%s4601_s15 + $0x10] sm:$0xff] %v1651_v46 }
 0x38d   : >>> { %v1686_v47 = vpop.permute.xlu0 %1685  ;;  %v1669_v48 = vpop.permute.xlu1 %1668 }
 0x38e   : >>> { %v1690_v49 = vsel %vm1593_vm11, %v4617_v45, %v1686_v47  ;;  %v1673_v50 = vsel %vm1576_vm9, %v4617_v45, %v1669_v48  ;;  %v1701_v51 = vpop.permute.xlu2 %1700 }
 0x38f   : >>> { %3467 = vst [vmem:[%s4611_s16 + $0x18] sm:$0xff] %v1690_v49  ;;  %v1677_v52 = vsel %vm1580_vm12, %v1665_v25, %v1673_v50  ;;  %v1705_v16 = vsel %vm1576_vm9, %v4661_v9, %v1701_v51 }
 0x390   : >>> { %v1683_v53 = vsel %vm3007_vm10, %v1677_v52, 0.0 }
 0x391   : >>> { %3466 = vst [vmem:[%s4613_s0 + $0x18] sm:$0xff] %v1683_v53  ;;  %s4810_s0 = smov [#allocation12] }
 0x395   : >>> { %v1773_v55 = vpop.permute.xlu0 %1772  ;;  %v1737_v56 = vpop.permute.xlu1 %1736 }
 0x396   : >>> { %v1749_v57 = vsel %vm1580_vm12, %v1737_v56, %v1745_v54  ;;  %v1837_v60 = vpop.permute.xlu2 %1836  ;;  %v1777_v61 = vsel %vm1576_vm9, %v4630_v3, %v1773_v55 }
 0x397   : >>> { %v1755_v58 = vsel %vm3007_vm10, %v1749_v57, 0.0  ;;  %v1841_v44 = vsel %vm1576_vm9, %v4673_v11, %v1837_v60 }
 0x398   : >>> { %1891 = vst [vmem:[%s4627_s3] sm:$0xff] %v1755_v58  ;;  %s4882_s3 = smov [#allocation14] }
 0x39d   : >>> { %v1805_v62 = vpop.permute.xlu0 %1804  ;;  %v1769_v63 = vpop.permute.xlu1 %1768 }
 0x39e   : >>> { %v1781_v0 = vsel %vm1580_vm12, %v1769_v63, %v1777_v61  ;;  %v1833_v2 = vpop.permute.xlu2 %1832  ;;  %v1809_v45 = vsel %vm1576_vm9, %v4646_v6, %v1805_v62 }
 0x39f   : >>> { %v1787_v1 = vsel %vm3007_vm10, %v1781_v0, 0.0  ;;  %v1845_v4 = vsel %vm1580_vm12, %v1833_v2, %v1841_v44 }
 0x3a0   : >>> { %3486 = vst [vmem:[%s4623_s1 + $0x8] sm:$0xff] %v1787_v1  ;;  %v1851_v14 = vsel %vm3007_vm10, %v1845_v4, 0.0  ;;  %s4838_s1 = smov [#allocation13] }
 0x3a5   : >>> { %v1801_v5 = vpop.permute.xlu0 %1800  ;;  %v1790_v7 = vpop.permute.xlu1 %1789 }
 0x3a6   : >>> { %v1813_v8 = vsel %vm1580_vm12, %v1801_v5, %v1809_v45  ;;  %v1794_v10 = vsel %vm1593_vm11, %v4630_v3, %v1790_v7  ;;  %v1854_v15 = vpop.permute.xlu2 %1853 }
 0x3a7   : >>> { %v1819_v12 = vsel %vm3007_vm10, %v1813_v8, 0.0  ;;  %3487 = vst [vmem:[%s4643_s18 + $0x8] sm:$0xff] %v1794_v10  ;;  %v1858_v20 = vsel %vm1593_vm11, %v4673_v11, %v1854_v15 }
 0x3a8   : >>> { %3488 = vst [vmem:[%s4641_s29 + $0x10] sm:$0xff] %v1819_v12 }
 0x3a9   : >>> { %3490 = vst [vmem:[%s4667_s26 + $0x18] sm:$0xff] %v1851_v14 }
 0x3ad   : >>> { %v1822_v17 = vpop.permute.xlu0 %1821  ;;  %v1697_v18 = vpop.permute.xlu1 %1696 }
 0x3ae   : >>> { %v1826_v3 = vsel %vm1593_vm11, %v4646_v6, %v1822_v17  ;;  %v1709_v19 = vsel %vm1580_vm12, %v1697_v18, %v1705_v16 }
 0x3af   : >>> { %3489 = vst [vmem:[%s4653_s13 + $0x10] sm:$0xff] %v1826_v3  ;;  %v1715_v21 = vsel %vm3007_vm10, %v1709_v19, 0.0 }
 0x3b0   : >>> { %3491 = vst [vmem:[%s4679_s25 + $0x18] sm:$0xff] %v1858_v20 }
 0x3b1   : >>> { %3468 = vst [vmem:[%s4655_s9 + $0x20] sm:$0x1] %v1715_v21  ;;  %s4951_s9 = smov (%p702_p9), [#allocation14] }
 0x3b5   : >>> { %v1718_v6 = vpop.permute.xlu0 %1717  ;;  %v1869_v9 = vpop.permute.xlu1 %1868 }
 0x3b6   : >>> { %v1722_v11 = vsel %vm1593_vm11, %v4712_v27, %v1718_v6  ;;  %v1873_v48 = vsel %vm1576_vm9, %v4683_v13, %v1869_v9 }
 0x3b7   : >>> { %3469 = vst [vmem:[%s4665_s8 + $0x20] sm:$0x1] %v1722_v11  ;;  %s4922_s8 = smov (%p702_p9), [#allocation13] }
 0x3b8   : >>> { %v1903_v22 = vld [vmem:[%s4810_s0] ss:$0 sm:$0xff]  ;;  %v3495_v24 = vld [vmem:[%s4810_s0 + $0x7] ss:$0 sm:$0xff]  ;;  %v3496_v26 = vld [vmem:[%s4810_s0 + $0x7] sm:$0xfe] }
 0x3b9   : >>> { %v3494_v23 = vld [vmem:[%s4810_s0 - $0x1] sm:$0xfe]  ;;  %v3497_v28 = vld [vmem:[%s4810_s0 + $0xf] ss:$0 sm:$0xff]  ;;  %v3499_v29 = vld [vmem:[%s4810_s0 + $0xf] sm:$0xfe]  ;;  %v1921_v30 = vsel %vm1909_vm0, %v3495_v24, %v3496_v26 }
 0x3ba   : >>> { %v1910_v25 = vsel %vm1909_vm0, %v1903_v22, %v3494_v23  ;;  %v1932_v27 = vsel %vm1909_vm0, %v3497_v28, %v3499_v29  ;;  %v3500_v31 = vld [vmem:[%s4810_s0 + $0x17] ss:$0 sm:$0xff]  ;;  %v3502_v32 = vld [vmem:[%s4810_s0 + $0x17] sm:$0xfe]  ;;  %v3503_v33 = vld [vmem:[%s4810_s0 + $0x1f] ss:$0 sm:$0xff] }
 0x3bb   : >>> { %1913 = vst [vmem:[%s4810_s0] sm:$0xff] %v1910_v25  ;;  %v1943_v34 = vsel %vm1909_vm0, %v3500_v31, %v3502_v32  ;;  %v1954_v35 = vsel %vm1909_vm0, %v3503_v33, 0  ;;  %v3505_v36 = vld [vmem:[%s4810_s0 + $0x20] ss:$0 sm:$0xff] }
 0x3bc   : >>> { %3498 = vst [vmem:[%s4810_s0 + $0x8] sm:$0xff] %v1921_v30  ;;  %v1965_v16 = vsel %vm1909_vm0, %v3505_v36, 0 }
 0x3bd   : >>> { %3501 = vst [vmem:[%s4810_s0 + $0x10] sm:$0xff] %v1932_v27  ;;  %v1865_v37 = vpop.permute.xlu1 %1864  ;;  %v1886_v49 = vpop.permute.xlu0 %1885 }
 0x3be   : >>> { %3504 = vst [vmem:[%s4810_s0 + $0x18] sm:$0xff] %v1943_v34  ;;  %v2005_v38 = vld [vmem:[%s4838_s1] ss:$0 sm:$0xff]  ;;  %v3521_v41 = vld [vmem:[%s4838_s1 + $0x7] ss:$0 sm:$0xff]  ;;  %v1877_v54 = vsel %vm1580_vm12, %v1865_v37, %v1873_v48  ;;  %v1890_v60 = vsel %vm1593_vm11, %v4763_v59, %v1886_v49 }
 0x3bf   : >>> { %3506 = vst [vmem:[%s4810_s0 + $0x20] sm:$0x1] %v1954_v35  ;;  %v3520_v39 = vld [vmem:[%s4838_s1 - $0x1] sm:$0xfe]  ;;  %v3522_v46 = vld [vmem:[%s4838_s1 + $0x7] sm:$0xfe] }
 0x3c0   : >>> { %v2012_v40 = vsel %vm1909_vm0, %v2005_v38, %v3520_v39  ;;  %v3523_v47 = vld [vmem:[%s4838_s1 + $0xf] ss:$0 sm:$0xff]  ;;  %v2023_v50 = vsel %vm1909_vm0, %v3521_v41, %v3522_v46  ;;  %v3525_v51 = vld [vmem:[%s4838_s1 + $0xf] sm:$0xfe]  ;;  %v3526_v52 = vld [vmem:[%s4838_s1 + $0x17] ss:$0 sm:$0xff] }
 0x3c1   : >>> { %2015 = vst [vmem:[%s4838_s1] sm:$0xff] %v2012_v40  ;;  %v3528_v53 = vld [vmem:[%s4838_s1 + $0x17] sm:$0xfe]  ;;  %v2034_v55 = vsel %vm1909_vm0, %v3523_v47, %v3525_v51  ;;  %v3529_v56 = vld [vmem:[%s4838_s1 + $0x1f] ss:$0 sm:$0xff]  ;;  %v3531_v57 = vld [vmem:[%s4838_s1 + $0x20] ss:$0 sm:$0xff] }
 0x3c2   : >>> { %3524 = vst [vmem:[%s4838_s1 + $0x8] sm:$0xff] %v2023_v50  ;;  %v2045_v13 = vsel %vm1909_vm0, %v3526_v52, %v3528_v53  ;;  %v2056_v58 = vsel %vm1909_vm0, %v3529_v56, 0  ;;  %v1883_v61 = vsel %vm3007_vm10, %v1877_v54, 0.0  ;;  %v2067_v62 = vsel %vm1909_vm0, %v3531_v57, 0 }
 0x3c3   : >>> { %3527 = vst [vmem:[%s4838_s1 + $0x10] sm:$0xff] %v2034_v55  ;;  %vm493_vm0 = vcmp.eq.s32.totalorder (%p702_p9), %v481_v42, %v478_v43  ;;  %v500_v53 = vadd.s32 (%p702_p9), 8, %v481_v42 }
 0x3c4   : >>> { %3530 = vst [vmem:[%s4838_s1 + $0x18] sm:$0xff] %v2045_v13 }
 0x3c5   : >>> { %3532 = vst [vmem:[%s4838_s1 + $0x20] sm:$0x1] %v2056_v58 }
 0x3c6   : >>> { %3493 = vst [vmem:[%s4690_s6 + $0x20] sm:$0x1] %v1890_v60  ;;  %s2473_s6 = sadd.s32 (%p702_p9), 1, %s3765_s20  }
 0x3c7   : >>> { %3492 = vst [vmem:[%s4677_s7 + $0x20] sm:$0x1] %v1883_v61  ;;  %s482_s7 = smov (%p702_p9), [#allocation12]  ;;  %p698_p10 = scmp.ge.s32.totalorder (%p702_p9), %s2473_s6, 15 }
 0x3c8   : >> { %s5107_s20 = smov (%p702_p9), %s2473_s6 }
 0x3cd   : >>> { %v2059_v63 = vld [vmem:[%s2004_s2] ss:$0 sm:$0xff]  ;;  %v3536_v1 = vld [vmem:[%s2004_s2 + $0x19] sm:$0x7f]  ;;  %v3537_v2 = vld [vmem:[%s2004_s2 + $0x18] ss:$0 sm:$0xff] }
 0x3ce   : >>> { %v3534_v0 = vld [vmem:[%s2004_s2 + $0x20] ss:$0 sm:$0xff]  ;;  %3533 = vst [vmem:[%s4838_s1 + $0x1] sm:$0x1] %v2059_v63  ;;  %v3539_v44 = vld [vmem:[%s2004_s2 + $0x11] sm:$0x7f] }
 0x3cf   : >>> { %v2076_v59 = vsel %vm1973_vm1, %v3534_v0, %v3536_v1  ;;  %3535 = vst [vmem:[%s2004_s2 + $0x20] sm:$0x1] %v2067_v62  ;;  %v2085_v45 = vsel %vm1973_vm1, %v3537_v2, %v3539_v44  ;;  %v3540_v4 = vld [vmem:[%s2004_s2 + $0x10] ss:$0 sm:$0xff]  ;;  %v3542_v5 = vld [vmem:[%s2004_s2 + $0x9] sm:$0x7f] }
 0x3d0   : >>> { %3538 = vst [vmem:[%s2004_s2 + $0x18] sm:$0xff] %v2076_v59  ;;  %v2094_v7 = vsel %vm1973_vm1, %v3540_v4, %v3542_v5  ;;  %v3543_v8 = vld [vmem:[%s2004_s2 + $0x8] ss:$0 sm:$0xff]  ;;  %v3545_v10 = vld [vmem:[%s2004_s2 + $0x1] sm:$0x7f]  ;;  %v510_v1 = vadd.s32 (%p702_p9), 16, %v481_v42 }
 0x3d1   : >>> { %3541 = vst [vmem:[%s2004_s2 + $0x10] sm:$0xff] %v2085_v45  ;;  %v2102_v12 = vsel %vm1973_vm1, %v3543_v8, %v3545_v10  ;;  %v1957_v14 = vld [vmem:[%s4882_s3] ss:$0 sm:$0xff]  ;;  %v3510_v17 = vld [vmem:[%s4882_s3 + $0x19] sm:$0x7f]  ;;  %v520_v59 = vadd.s32 (%p702_p9), 24, %v481_v42 }
 0x3d2   : >>> { %v3508_v15 = vld [vmem:[%s4882_s3 + $0x20] ss:$0 sm:$0xff]  ;;  %3544 = vst [vmem:[%s2004_s2 + $0x8] sm:$0xff] %v2094_v7  ;;  %v3511_v18 = vld [vmem:[%s4882_s3 + $0x18] ss:$0 sm:$0xff]  ;;  %v530_v2 = vadd.s32 (%p702_p9), 32, %v481_v42  ;;  %vm511_vm13 = vcmp.eq.s32.totalorder (%p702_p9), %v510_v1, %v478_v43  ;;  %v622_v42 = vmov (%p702_p9), %v3910_v42 }
 0x3d3   : >>> { %2104 = vst [vmem:[%s2004_s2] sm:$0xff] %v2102_v12  ;;  %v1974_v3 = vsel %vm1973_vm1, %v3508_v15, %v3510_v17  ;;  %v3513_v19 = vld [vmem:[%s4882_s3 + $0x11] sm:$0x7f]  ;;  %v3514_v20 = vld [vmem:[%s4882_s3 + $0x10] ss:$0 sm:$0xff]  ;;  %v3516_v21 = vld [vmem:[%s4882_s3 + $0x9] sm:$0x7f]  ;;  %vm521_vm14 = vcmp.eq.s32.totalorder (%p702_p9), %v520_v59, %v478_v43 }
 0x3d4   : >>> { %3507 = vst [vmem:[%s4810_s0 + $0x1] sm:$0x1] %v1957_v14  ;;  %v1983_v6 = vsel %vm1973_vm1, %v3511_v18, %v3513_v19  ;;  %v3517_v9 = vld [vmem:[%s4882_s3 + $0x8] ss:$0 sm:$0xff]  ;;  %v3519_v11 = vld [vmem:[%s4882_s3 + $0x1] sm:$0x7f]  ;;  %v1992_v22 = vsel %vm1973_vm1, %v3514_v20, %v3516_v21  ;;  %vm531_vm15 = vcmp.eq.s32.totalorder (%p702_p9), %v530_v2, %v478_v43 }
 0x3d5   : >>> { %3509 = vst [vmem:[%s4882_s3 + $0x20] sm:$0x1] %v1965_v16  ;;  %v2000_v23 = vsel %vm1973_vm1, %v3517_v9, %v3519_v11  ;;  %v547_v36 = vld [vmem:[%s4922_s8] sm:$0xff] (%p702_p9)  ;;  %v3642_v40 = vld [vmem:[%s4922_s8 + $0x8] sm:$0xff] (%p702_p9)  ;;  %v3643_v48 = vld [vmem:[%s4922_s8 + $0x10] sm:$0xff] (%p702_p9)  ;;  %vm501_vm1 = vcmp.eq.s32.totalorder (%p702_p9), %v500_v53, %v478_v43  ;;  %v619_v43 = vmov (%p702_p9), %v3921_v43  ;;  %v653_v1 = vadd.s32 (%p702_p9), 16, %v622_v42 }
 0x3d6   : >>> { %3512 = vst [vmem:[%s4882_s3 + $0x18] sm:$0xff] %v1974_v3  ;;  %704 = sbr.rel (!%p702_p9) target bundleno = 335 (0x14f), region = 646  ;;  %v548_v41 = vsel (%p702_p9), %vm3007_vm10, %v547_v36, 0.0  ;;  %v554_v49 = vsel (%p702_p9), %vm3007_vm10, %v3642_v40, 0.0  ;;  %v3644_v52 = vld [vmem:[%s4922_s8 + $0x18] sm:$0xff] (%p702_p9)  ;;  %v560_v54 = vsel (%p702_p9), %vm3007_vm10, %v3643_v48, 0.0  ;;  %vm634_vm2 = vcmp.eq.s32.totalorder (%p702_p9), %v622_v42, %v619_v43 }
 0x3d7   : >>> { %3515 = vst [vmem:[%s4882_s3 + $0x10] sm:$0xff] %v1983_v6  ;;  %v549_v51 = vmul.f32 (%p702_p9), %v548_v41, %v548_v41  ;;  %v3645_v55 = vld [vmem:[%s4922_s8 + $0x20] sm:$0x1] (%p702_p9)  ;;  %v555_v56 = vmul.f32 (%p702_p9), %v554_v49, %v554_v49  ;;  %v566_v57 = vsel (%p702_p9), %vm3007_vm10, %v3644_v52, 0.0  ;;  %v561_v61 = vmul.f32 (%p702_p9), %v560_v54, %v560_v54 }
 0x3d8   : >>> { %3518 = vst [vmem:[%s4882_s3 + $0x8] sm:$0xff] %v1992_v22  ;;  %v572_v62 = vsel (%p702_p9), %vm3007_vm10, %v3645_v55, 0.0  ;;  %v567_v45 = vmul.f32 (%p702_p9), %v566_v57, %v566_v57  ;;  %vm654_vm4 = vcmp.eq.s32.totalorder (%p702_p9), %v653_v1, %v619_v43 }
 0x3d9   : >>> { %2002 = vst [vmem:[%s4882_s3] sm:$0xff] %v2000_v23  ;;  %v573_v10 = vmul.f32 (%p702_p9), %v572_v62, %v572_v62 }
 0x3db   : >> { %v488_v24 = vld [vmem:[%s482_s7] sm:$0xff]  ;;  %v3638_v25 = vld [vmem:[%s482_s7 + $0x8] sm:$0xff]  ;;  %v3639_v26 = vld [vmem:[%s482_s7 + $0x10] sm:$0xff] }
 0x3dc   : >> { %v489_v28 = vsel %vm3007_vm10, %v488_v24, 0.0  ;;  %v497_v29 = vsel %vm3007_vm10, %v3638_v25, 0.0  ;;  %v507_v30 = vsel %vm3007_vm10, %v3639_v26, 0.0  ;;  %v3640_v27 = vld [vmem:[%s482_s7 + $0x18] sm:$0xff]  ;;  %v3641_v31 = vld [vmem:[%s482_s7 + $0x20] sm:$0x1] }
 0x3dd   : >> { %v490_v32 = vmul.f32 %v489_v28, %v489_v28  ;;  %v498_v33 = vmul.f32 %v497_v29, %v497_v29  ;;  %v508_v34 = vmul.f32 %v507_v30, %v507_v30  ;;  %v517_v35 = vsel %vm3007_vm10, %v3640_v27, 0.0  ;;  %v629_v28 = vld [vmem:[%s623_s10] sm:$0xff] }
 0x3de   : >> { %v527_v37 = vsel %vm3007_vm10, %v3641_v31, 0.0  ;;  %v518_v39 = vmul.f32 %v517_v35, %v517_v35 }
 0x3df   : >> { %v504_v38 = vadd.f32 %v498_v33, %v490_v32  ;;  %v528_v47 = vmul.f32 %v527_v37, %v527_v37  ;;  %v494_v58 = vsel %vm493_vm0, 0.0, %v490_v32  ;;  %v502_v0 = vsel %vm501_vm1, 0.0, %v498_v33  ;;  %v3650_v32 = vld [vmem:[%s623_s10 + $0x8] sm:$0xff]  ;;  %v3651_v37 = vld [vmem:[%s623_s10 + $0x10] sm:$0xff] }
 0x3e0   : >> { %v588_v63 = vld [vmem:[%s4951_s9] sm:$0xff]  ;;  %v3646_v4 = vld [vmem:[%s4951_s9 + $0x8] sm:$0xff]  ;;  %v503_v5 = vadd.f32 %v502_v0, %v494_v58  ;;  %v3647_v12 = vld [vmem:[%s4951_s9 + $0x10] sm:$0xff]  ;;  %v512_v14 = vsel %vm511_vm13, 0.0, %v508_v34  ;;  %v522_v15 = vsel %vm521_vm14, 0.0, %v518_v39  ;;  %v630_v33 = vsel %vm3007_vm10, %v629_v28, 0.0 }
 0x3e1   : >> { %v514_v46 = vadd.f32 %v508_v34, %v504_v38  ;;  %v589_v7 = vsel %vm3007_vm10, %v588_v63, 0.0  ;;  %v595_v16 = vsel %vm3007_vm10, %v3646_v4, 0.0  ;;  %v3648_v19 = vld [vmem:[%s4951_s9 + $0x18] sm:$0xff]  ;;  %v532_v20 = vsel %vm531_vm15, 0.0, %v528_v47  ;;  %v3649_v22 = vld [vmem:[%s4951_s9 + $0x20] sm:$0x1] }
 0x3e2   : >> { %v513_v17 = vadd.f32 %v512_v14, %v503_v5  ;;  %v590_v3 = vmul.f32 %v589_v7, %v589_v7  ;;  %v601_v21 = vsel %vm3007_vm10, %v3647_v12, 0.0  ;;  %v596_v11 = vmul.f32 %v595_v16, %v595_v16 }
 0x3e3   : >> { %v524_v50 = vadd.f32 %v518_v39, %v514_v46  ;;  %v607_v23 = vsel %vm3007_vm10, %v3648_v19, 0.0  ;;  %v602_v26 = vmul.f32 %v601_v21, %v601_v21  ;;  %v613_v29 = vsel %vm3007_vm10, %v3649_v22, 0.0  ;;  %v3652_v46 = vld [vmem:[%s623_s10 + $0x18] sm:$0xff] }
 0x3e4   : >> { %v523_v6 = vadd.f32 %v522_v15, %v513_v17  ;;  %v608_v31 = vmul.f32 %v607_v23, %v607_v23  ;;  %v614_v36 = vmul.f32 %v613_v29, %v613_v29  ;;  %v640_v38 = vsel %vm3007_vm10, %v3650_v32, 0.0 }
 0x3e5   : >> { %v534_v13 = vadd.f32 %v528_v47, %v524_v50  ;;  %v631_v41 = vmul.f32 %v630_v33, %v630_v33  ;;  %v650_v47 = vsel %vm3007_vm10, %v3651_v37, 0.0  ;;  %v641_v50 = vmul.f32 %v640_v38, %v640_v38 }
 0x3e6   : >> { %v533_v24 = vadd.f32 %v532_v20, %v523_v6  ;;  %v660_v52 = vsel %vm3007_vm10, %v3652_v46, 0.0  ;;  %v651_v55 = vmul.f32 %v650_v47, %v650_v47  ;;  %v673_v7 = vadd.s32 32, %v622_v42 }
 0x3e7   : >> { %v551_v60 = vadd.f32 %v549_v51, %v534_v13  ;;  %v661_v58 = vmul.f32 %v660_v52, %v660_v52  ;;  %v635_v4 = vsel %vm634_vm2, 0.0, %v631_v41 }
 0x3e8   : >> { %v550_v30 = vadd.f32 %v549_v51, %v533_v24  ;;  %v3653_v51 = vld [vmem:[%s623_s10 + $0x20] sm:$0x1]  ;;  %v655_v12 = vsel %vm654_vm4, 0.0, %v651_v55  ;;  %vm674_vm6 = vcmp.eq.s32.totalorder %v673_v7, %v619_v43 }
 0x3e9   : >> { %v557_v44 = vadd.f32 %v555_v56, %v551_v60  ;;  %v670_v13 = vsel %vm3007_vm10, %v3653_v51, 0.0 }
 0x3ea   : >> { %v556_v34 = vadd.f32 %v555_v56, %v550_v30  ;;  %v671_v63 = vmul.f32 %v670_v13, %v670_v13 }
 0x3eb   : >> { %v563_v8 = vadd.f32 %v561_v61, %v557_v44  ;;  %v663_v44 = vadd.s32 24, %v622_v42 }
 0x3ec   : >> { %v562_v39 = vadd.f32 %v561_v61, %v556_v34  ;;  %v643_v61 = vadd.s32 8, %v622_v42  ;;  %v675_v17 = vsel %vm674_vm6, 0.0, %v671_v63 }
 0x3ed   : >> { %v569_v18 = vadd.f32 %v567_v45, %v563_v8  ;;  %vm664_vm5 = vcmp.eq.s32.totalorder %v663_v44, %v619_v43 }
 0x3ee   : >> { %v568_v48 = vadd.f32 %v567_v45, %v562_v39  ;;  %vm644_vm3 = vcmp.eq.s32.totalorder %v643_v61, %v619_v43  ;;  %v665_v15 = vsel %vm664_vm5, 0.0, %v661_v58 }
 0x3ef   : >> { %v575_v9 = vadd.f32 %v573_v10, %v569_v18  ;;  %v645_v8 = vsel %vm644_vm3, 0.0, %v641_v50 }
 0x3f0   : >> { %v574_v53 = vadd.f32 %v573_v10, %v568_v48 }
 0x3f1   : >> { %v592_v25 = vadd.f32 %v590_v3, %v575_v9 }
 0x3f2   : >> { %v591_v56 = vadd.f32 %v590_v3, %v574_v53 }
 0x3f3   : >> { %v598_v27 = vadd.f32 %v596_v11, %v592_v25 }
 0x3f4   : >> { %v597_v60 = vadd.f32 %v596_v11, %v591_v56 }
 0x3f5   : >> { %v604_v35 = vadd.f32 %v602_v26, %v598_v27 }
 0x3f6   : >> { %v603_v0 = vadd.f32 %v602_v26, %v597_v60 }
 0x3f7   : >> { %v610_v40 = vadd.f32 %v608_v31, %v604_v35 }
 0x3f8   : >> { %v609_v2 = vadd.f32 %v608_v31, %v603_v0 }
 0x3f9   : >> { %v616_v49 = vadd.f32 %v614_v36, %v610_v40 }
 0x3fa   : >> { %v615_v5 = vadd.f32 %v614_v36, %v609_v2 }
 0x3fb   : >> { %v637_v54 = vadd.f32 %v631_v41, %v616_v49 }
 0x3fc   : >> { %v636_v10 = vadd.f32 %v635_v4, %v615_v5 }
 0x3fd   : >> { %v647_v57 = vadd.f32 %v641_v50, %v637_v54 }
 0x3fe   : >> { %v646_v14 = vadd.f32 %v645_v8, %v636_v10 }
 0x3ff   : >> { %v657_v62 = vadd.f32 %v651_v55, %v647_v57 }
 0x400   : >> { %v656_v16 = vadd.f32 %v655_v12, %v646_v14 }
 0x401   : >> { %v667_v59 = vadd.f32 %v661_v58, %v657_v62 }
 0x402   : >> { %v666_v18 = vadd.f32 %v665_v15, %v656_v16 }
 0x403   : >> { %v677_v45 = vadd.f32 %v671_v63, %v667_v59 }
 0x404   : >> { %v676_v3 = vadd.f32 %v675_v17, %v666_v18 }
 0x405   : >> { %678 = vadd.xlane.f32.xlu0 %v677_v45 }
 0x40d   : >> { %686 = vadd.xlane.f32.xlu0 %v676_v3 }
 0x478   : >> { %v679_v19 = vpop.xlane.xlu0 %678 }
 0x479   : >> { %v680_v20 = vrot.slane %v679_v19, 4 }
 0x47b   : >> { %v681_v21 = vadd.f32 %v680_v20, %v679_v19 }
 0x47d   : >> { %v682_v6 = vrot.slane %v681_v21, 2 }
 0x47f   : >> { %v683_v23 = vadd.f32 %v682_v6, %v681_v21 }
 0x480   : >> { %v687_v9 = vpop.xlane.xlu0 %686 }
 0x481   : >> { %v688_v11 = vrot.slane %v687_v9, 4  ;;  %v684_v26 = vrot.slane %v683_v23, 1 }
 0x483   : >> { %v689_v22 = vadd.f32 %v688_v11, %v687_v9  ;;  %v685_v30 = vadd.f32 %v684_v26, %v683_v23 }
 0x485   : >> { %v690_v24 = vrot.slane %v689_v22, 2 }
 0x487   : >> { %v691_v25 = vadd.f32 %v690_v24, %v689_v22 }
 0x489   : >> { %v692_v28 = vrot.slane %v691_v25, 1 }
 0x48b   : >> { %v693_v29 = vadd.f32 %v692_v28, %v691_v25 }
 0x48d   : >> { %3675 = vpush %v693_v29 }
 0x48e   : >> { %3677 = vpush %v685_v30 }
 0x4be   : >> { %s3676_s13 = spop %3675 }
 0x4bf   : >> { %s3678_s18 = spop %3677 }
 0x4c0   : >> { %s696_s25 = smul.f32 1e-10, %s3678_s18 }
 0x4c2   : >> { %p697_p11 = scmp.le.f32.partialorder %s3676_s13, %s696_s25 }
 0x4c4   : >> { %p699_p12 = por %p698_p10, %p697_p11 }
 0x4c6   : > { %2475 = sbr.rel (!%p699_p12) target bundleno = 334 (0x14e), region = 657 }
 0x4cb PF: > { %s2480_s26 = smov [#allocation12]  ;;  %v2484_v43 = vmov %v3921_v43  ;;  %v2487_v42 = vmov %v3910_v42  ;;  %s2524_s20 = smov [#allocation15] }
 0x4cc   : > { %v2528_v43 = vmov %v3921_v43  ;;  %v2531_v42 = vmov %v3910_v42  ;;  %v2488_v27 = vld [vmem:[%s2480_s26] sm:$0xff]  ;;  %vm2491_vm7 = vcmp.eq.s32.totalorder %v2487_v42, %v2484_v43  ;;  %v3654_v31 = vld [vmem:[%s2480_s26 + $0x8] sm:$0xff]  ;;  %v2496_v32 = vadd.s32 8, %v2487_v42  ;;  %v3655_v34 = vld [vmem:[%s2480_s26 + $0x10] sm:$0xff]  ;;  %s2476_s23 = sand.u32 7, %s3840_s12   ;;  %s5108_s29 = scalar_lea.vmem [#allocation5], %s3891_s22 }
 0x4cd   : > { %v2492_v33 = vsel %vm2491_vm7, %v2488_v27, 0.0  ;;  %v2502_v35 = vadd.s32 16, %v2487_v42  ;;  %v3656_v36 = vld [vmem:[%s2480_s26 + $0x18] sm:$0xff]  ;;  %v2508_v37 = vadd.s32 24, %v2487_v42  ;;  %vm2535_vm8 = vcmp.eq.s32.totalorder %v2531_v42, %v2528_v43  ;;  %v3657_v38 = vld [vmem:[%s2480_s26 + $0x20] sm:$0x1] }
 0x4ce   : > { %vm2497_vm10 = vcmp.eq.s32.totalorder %v2496_v32, %v2484_v43  ;;  %v2514_v39 = vadd.s32 32, %v2487_v42  ;;  %v2540_v40 = vadd.s32 8, %v2531_v42  ;;  %v2546_v41 = vadd.s32 16, %v2531_v42  ;;  %v2532_v47 = vld [vmem:[%s2524_s20] sm:$0xff]  ;;  %v3658_v48 = vld [vmem:[%s2524_s20 + $0x8] sm:$0xff]  ;;  %v3659_v49 = vld [vmem:[%s2524_s20 + $0x10] sm:$0xff] }
 0x4cf   : > { %v2498_v46 = vsel %vm2497_vm10, %v3654_v31, %v2492_v33  ;;  %vm2503_vm9 = vcmp.eq.s32.totalorder %v2502_v35, %v2484_v43  ;;  %vm2509_vm11 = vcmp.eq.s32.totalorder %v2508_v37, %v2484_v43  ;;  %v2552_v50 = vadd.s32 24, %v2531_v42  ;;  %v3660_v53 = vld [vmem:[%s2524_s20 + $0x18] sm:$0xff]  ;;  %v3661_v57 = vld [vmem:[%s2524_s20 + $0x20] sm:$0x1]  ;;  %s2477_s17 = scalar_lea.vmem [#allocation4], %s2476_s23  ;;  %s2479_s21 = scalar_lea.vmem [#allocation6], %s2476_s23 }
 0x4d0   : > { %v2504_v51 = vsel %vm2503_vm9, %v3655_v34, %v2498_v46  ;;  %vm2515_vm12 = vcmp.eq.s32.totalorder %v2514_v39, %v2484_v43  ;;  %v2536_v52 = vsel %vm2535_vm8, %v2532_v47, 0.0  ;;  %vm2541_vm0 = vcmp.eq.s32.totalorder %v2540_v40, %v2528_v43  ;;  %s2481_s17 = smov %s2477_s17  ;;  %s2525_s21 = smov %s2479_s21 }
 0x4d1   : > { %v2510_v54 = vsel %vm2509_vm11, %v3656_v36, %v2504_v51  ;;  %v2542_v55 = vsel %vm2541_vm0, %v3658_v48, %v2536_v52  ;;  %vm2547_vm1 = vcmp.eq.s32.totalorder %v2546_v41, %v2528_v43  ;;  %vm2553_vm13 = vcmp.eq.s32.totalorder %v2552_v50, %v2528_v43  ;;  %s5109_s11 = scalar_lea.vmem [#allocation7], %s3891_s22  ;;  %s2607_s27 = sshrl.u32 (%p3854_p3), %s3840_s12, 3 }
 0x4d2   : > { %v2516_v13 = vsel %vm2515_vm12, %v3657_v38, %v2510_v54  ;;  %v2548_v56 = vsel %vm2547_vm1, %v3659_v49, %v2542_v55  ;;  %v2558_v58 = vadd.s32 32, %v2531_v42  ;;  %s5110_s30 = scalar_lea.vmem (%p3854_p3), [#allocation5], %s3891_s22  ;;  %s3664_s28 = sshll.u32 (%p3854_p3), %s2607_s27, 1 }
 0x4d3   : > { %v2517_v60 = vrot.slane %v2516_v13, 4  ;;  %v2554_v61 = vsel %vm2553_vm13, %v3660_v53, %v2548_v56  ;;  %s2609_s0 = scalar_lea.vmem (%p3854_p3), %s5069_s4, %s3664_s28 }
 0x4d4   : > { %vm2559_vm14 = vcmp.eq.s32.totalorder %v2558_v58, %v2528_v43 }
 0x4d5   : > { %v2518_v62 = vadd.f32 %v2517_v60, %v2516_v13  ;;  %v2560_v63 = vsel %vm2559_vm14, %v3661_v57, %v2554_v61 }
 0x4d6   : > { %v2561_v0 = vrot.slane %v2560_v63, 4 }
 0x4d7   : > { %v2519_v1 = vrot.slane %v2518_v62, 2 }
 0x4d8   : > { %v2562_v59 = vadd.f32 %v2561_v0, %v2560_v63 }
 0x4d9   : > { %v2520_v2 = vadd.f32 %v2519_v1, %v2518_v62 }
 0x4da   : > { %v2563_v44 = vrot.slane %v2562_v59, 2 }
 0x4db   : > { %v2521_v45 = vrot.slane %v2520_v2, 1 }
 0x4dc   : > { %v2564_v4 = vadd.f32 %v2563_v44, %v2562_v59 }
 0x4dd   : > { %v2522_v5 = vadd.f32 %v2521_v45, %v2520_v2 }
 0x4de   : > { %v2565_v7 = vrot.slane %v2564_v4, 1 }
 0x4df   : > { %2523 = vst [vmem:[%s2481_s17] sm:$0x1] %v2522_v5 }
 0x4e0   : > { %v2566_v42 = vadd.f32 %v2565_v7, %v2564_v4 }
 0x4e2   : > { %2567 = vst [vmem:[%s2525_s21] sm:$0x1] %v2566_v42 }
 0x4e6   : > { %v2570_v43 = vld [vmem:[#allocation4] sm:$0x3]  ;;  %2606 = sbr.rel (!%p3854_p3) target bundleno = 1264 (0x4f0), region = 114 }
 0x4e7   : > { %2573 = vst [vmem:[%s5108_s29] sm:$0x3] %v2570_v43 }
 0x4e9   : > { %v2576_v8 = vld [vmem:[#allocation6] sm:$0x3] }
 0x4ea   : > { %2579 = vst [vmem:[%s5109_s11] sm:$0x3] %v2576_v8 }
 0x4ee   : > { %v2626_v10 = vld [vmem:[%s5110_s30] sm:$0x3] }
 0x4ef   : > { %2627 = vst [vmem:[%s2609_s0] sm:$0x3] %v2626_v10 }
 0x4f0 PF: > { %2645 = sbr.rel (!%p3854_p3) target bundleno = 1272 (0x4f8), region = 148  ;;  %s2646_s1 = sshrl.u32 (%p3854_p3), %s3840_s12, 3 }
 0x4f1   : > { %s5111_s2 = scalar_lea.vmem (%p3854_p3), [#allocation7], %s3891_s22  ;;  %s3665_s3 = sshll.u32 (%p3854_p3), %s2646_s1, 1 }
 0x4f2   : > { %s2648_s8 = scalar_lea.vmem (%p3854_p3), %s5070_s5, %s3665_s3 }
 0x4f6   : > { %v2665_v12 = vld [vmem:[%s5111_s2] sm:$0x3] }
 0x4f7   : > { %2666 = vst [vmem:[%s2648_s8] sm:$0x3] %v2665_v12 }
 0x4f8 PF: > { %s5017_s19 = smul.u32 40, %s3840_s12  ;;  %v2696_v14 = vld [vmem:[%s3895_s14] sm:$0xff]  ;;  %v2698_v15 = vld [vmem:[%s3895_s14 + $0x8] sm:$0xff]  ;;  %s5112_s10 = sld [smem:[#allocation34_spill]]  ;;  %v2700_v16 = vld [vmem:[%s3895_s14 + $0x10] sm:$0xff] }
 0x4f9   : > { %v2702_v17 = vld [vmem:[%s3895_s14 + $0x18] sm:$0xff]  ;;  %s5113_s18 = sld [smem:[#allocation28_spill]]  ;;  %v2704_v18 = vld [vmem:[%s3895_s14 + $0x20] sm:$0xff]  ;;  %v2723_v3 = vld [vmem:[%s3913_s24] sm:$0xff] }
 0x4fa   : > { %s5114_s26 = sld [smem:[#allocation35_spill]]  ;;  %v2725_v19 = vld [vmem:[%s3913_s24 + $0x8] sm:$0xff]  ;;  %v2727_v20 = vld [vmem:[%s3913_s24 + $0x10] sm:$0xff]  ;;  %v2729_v21 = vld [vmem:[%s3913_s24 + $0x18] sm:$0xff] }
 0x4fb   : > { %s5115_s23 = sld [smem:[#allocation29_spill]]  ;;  %v2731_v6 = vld [vmem:[%s3913_s24 + $0x20] sm:$0xff] }
 0x4fc   : > { %s5116_s21 = sld [smem:[#allocation36_spill]] }
 0x4fd   : > { %s5117_s27 = sld [smem:[#allocation37_spill]] }
 0x4fe   : > { %s2683_s13 = scalar_lea.vmem %s5112_s10, %s5017_s19 }
 0x4ff   : > { %2697 = vst [vmem:[%s2683_s13] sm:$0xff] %v2696_v14  ;;  %v2750_v9 = vld [vmem:[%s5113_s18] sm:$0xff]  ;;  %v2752_v11 = vld [vmem:[%s5113_s18 + $0x8] sm:$0xff]  ;;  %v2754_v22 = vld [vmem:[%s5113_s18 + $0x10] sm:$0xff] }
 0x500   : > { %2699 = vst [vmem:[%s2683_s13 + $0x8] sm:$0xff] %v2698_v15  ;;  %s2710_s20 = scalar_lea.vmem %s5114_s26, %s5017_s19  ;;  %v2756_v23 = vld [vmem:[%s5113_s18 + $0x18] sm:$0xff]  ;;  %v2758_v24 = vld [vmem:[%s5113_s18 + $0x20] sm:$0xff] }
 0x501   : > { %2701 = vst [vmem:[%s2683_s13 + $0x10] sm:$0xff] %v2700_v16  ;;  %v2777_v25 = vld [vmem:[%s5115_s23] sm:$0xff]  ;;  %v2779_v26 = vld [vmem:[%s5115_s23 + $0x8] sm:$0xff]  ;;  %v2781_v28 = vld [vmem:[%s5115_s23 + $0x10] sm:$0xff] }
 0x502   : > { %2703 = vst [vmem:[%s2683_s13 + $0x18] sm:$0xff] %v2702_v17  ;;  %s2737_s29 = scalar_lea.vmem %s5116_s21, %s5017_s19  ;;  %v2783_v29 = vld [vmem:[%s5115_s23 + $0x18] sm:$0xff]  ;;  %v2785_v30 = vld [vmem:[%s5115_s23 + $0x20] sm:$0xff] }
 0x503   : > { %2705 = vst [vmem:[%s2683_s13 + $0x20] sm:$0xff] %v2704_v18  ;;  %s2764_s30 = scalar_lea.vmem %s5117_s27, %s5017_s19 }
 0x504   : > { %2724 = vst [vmem:[%s2710_s20] sm:$0xff] %v2723_v3 }
 0x505   : > { %2726 = vst [vmem:[%s2710_s20 + $0x8] sm:$0xff] %v2725_v19 }
 0x506   : > { %2728 = vst [vmem:[%s2710_s20 + $0x10] sm:$0xff] %v2727_v20 }
 0x507   : > { %2730 = vst [vmem:[%s2710_s20 + $0x18] sm:$0xff] %v2729_v21 }
 0x508   : > { %2732 = vst [vmem:[%s2710_s20 + $0x20] sm:$0xff] %v2731_v6 }
 0x509   : > { %2751 = vst [vmem:[%s2737_s29] sm:$0xff] %v2750_v9 }
 0x50a   : > { %2753 = vst [vmem:[%s2737_s29 + $0x8] sm:$0xff] %v2752_v11 }
 0x50b   : > { %2755 = vst [vmem:[%s2737_s29 + $0x10] sm:$0xff] %v2754_v22 }
 0x50c   : > { %2757 = vst [vmem:[%s2737_s29 + $0x18] sm:$0xff] %v2756_v23 }
 0x50d   : > { %2759 = vst [vmem:[%s2737_s29 + $0x20] sm:$0xff] %v2758_v24 }
 0x50e   : > { %2778 = vst [vmem:[%s2764_s30] sm:$0xff] %v2777_v25 }
 0x50f   : > { %2780 = vst [vmem:[%s2764_s30 + $0x8] sm:$0xff] %v2779_v26 }
 0x510   : > { %2782 = vst [vmem:[%s2764_s30 + $0x10] sm:$0xff] %v2781_v28 }
 0x511   : > { %2784 = vst [vmem:[%s2764_s30 + $0x18] sm:$0xff] %v2783_v29 }
 0x512   : > { %2786 = vst [vmem:[%s2764_s30 + $0x20] sm:$0xff] %v2785_v30 }
 0x513 PF: > { %s5118_s11 = sld [smem:[#allocation26_spill]] }
 0x514   : > { %s5119_s30 = sld [smem:[#allocation25_spill]] }
 0x515   : > { %s5120_s10 = sld [smem:[#allocation27_spill]] }
 0x519   : > { %p13_p13 = scmp.ge.s32.totalorder %s5118_s11, 4  }
 0x51b   :  { %15 = sbr.rel (!%p13_p13) target bundleno = 11 (0xb), region = 668 }

// kernel: rm_drl_forward.5
= control target key start
LH: loop header
LB: loop body
LE: loop exit
PB: predicated region body
PF: predicated region fallthrough
CT: control target
= control target key end

     0   :  { %11 = vsyncpa [#allocation3], 0  ;;  %s1181_s0 = inlined_call_operand.vmem [shape: f32[2,96,96], index: 0, kind: input, shape index: {}]   ;;  %s1182_s1 = inlined_call_operand.vmem [shape: f32[2,1,96], index: 1, kind: input, shape index: {}]   ;;  %s1183_s2 = inlined_call_operand.vmem [shape: f32[66,96], index: 2, kind: input, shape index: {}]   ;;  %s1184_s3 = inlined_call_operand.vmem [shape: f32[96,66], index: 3, kind: input, shape index: {}]   ;;  %s1185_s4 = inlined_call_operand.hbm [shape: f32[2,96,96], index: 4, kind: output, shape index: {0}]   ;;  %s1186_s5 = inlined_call_operand.vmem [shape: f32[2,66,66], index: 5, kind: output, shape index: {1}]  }
   0x1   :  { %13 = vsyncpa [#allocation3 + $0x1], 0  ;;  %s915_s18 = smov 0   ;;  %s917_s19 = smov 0  }
   0x2   :  { %s919_s20 = smov 0   ;;  %s921_s21 = smov 0  }
   0x3 LB: > { %s936_s22 = sadd.s32 4294967295, %s881_s21   ;;  %s711_s23 = sadd.s32 4294967294, %s881_s21   ;;  %s881_s21 = sphi %s921_s21, %s1192_s21   ;;  %s877_s20 = sphi %s919_s20, %s1191_s20   ;;  %s873_s19 = sphi %s917_s19, %s1190_s19   ;;  %s869_s18 = sphi %s915_s18, %s1189_s18  }
   0x4   : > { %s940_s24 = sadd.s32 1, %s881_s21   ;;  %s120_s25 = sadd.s32 1, %s877_s20 }
   0x5   : > { %s117_s26 = ssub.s32 %s881_s21, %s940_s24  ;;  %p130_p0 = scmp.ne.s32.totalorder %s877_s20, %s873_s19 }
   0x6   : > { %p118_p1 = scmp.eq.s32.totalorder %s117_s26, 0  ;;  %p131_p2 = scmp.eq.s32.totalorder %s936_s22, 1 }
   0x7   : > { %p136_p3 = scmp.ne.s32.totalorder %s873_s19, %s869_s18  ;;  %p137_p4 = scmp.eq.s32.totalorder %s711_s23, 1 }
   0x8   : > { %s951_s27 = scalar_select %p118_p1, %s877_s20, %s120_s25  }
   0x9   : > { %p953_p5 = por %p131_p2, %p130_p0  ;;  %p957_p6 = por %p137_p4, %p136_p3 }
   0xa   : > { %p714_p7 = scmp.ge.s32.totalorder %s881_s21, 1  ;;  %p201_p8 = scmp.lt.s32.totalorder %s881_s21, 3 }
   0xc   : > { %p202_p9 = pnand %p714_p7, %p201_p8 }
   0xd   : > { %p237_p10 = scmp.lt.s32.totalorder (!%p202_p9), %s936_s22, 1  ;;  %s227_s13 = sand.u32 (!%p202_p9), 1, %s873_s19  }
   0xe   : > { %205 = sbr.rel (%p202_p9) target bundleno = 590 (0x24e), region = 36  ;;  %s592_s10 = scalar_lea.sflag (!%p202_p9), [#allocation3], %s227_s13 }
   0xf   : > { %s774_s14 = smul.u32 (!%p202_p9), 96, %s227_s13  ;;  %s839_s16 = scalar_lea.hbm (!%p202_p9), %s1185_s4, 192 }
  0x10   : > { %s777_s25 = smul.u32 (!%p202_p9), 96, %s936_s22 }
  0x11   : > { %s1028_s15 = scalar_lea.vmem (!%p202_p9), [#allocation2], %s774_s14 }
  0x12   : > { %s608_s7 = scalar_lea.hbm (!%p202_p9), %s1185_s4, %s777_s25  ;;  %s609_s8 = sshll.u32 (!%p202_p9), %s1028_s15, 4  ;;  %s610_s8 = int_to_ptr.vmem [resolvable:$true] %s609_s8 }
  0x13   : > { %s965_s30 = scalar_select %p237_p10, %s936_s22, 1  ;;  %vm279_vm0 = vcmask 785408   ;;  %v417_v39 = vld [vmem:[%s1183_s2] sm:$0xff]  ;;  %v418_v40 = vld [vmem:[%s1183_s2 + $0x8] sm:$0xff]  ;;  %v419_v41 = vld [vmem:[%s1183_s2 + $0x10] sm:$0xff] }
  0x14   : > { %v420_v42 = vld [vmem:[%s1183_s2 + $0x18] sm:$0xff]  ;;  %v421_v43 = vld [vmem:[%s1183_s2 + $0x20] sm:$0xff]  ;;  %v436_v45 = vld [vmem:[%s1184_s3 + $0x50] sm:$0xff] }
  0x15   : > { %s775_s6 = smul.u32 96, %s965_s30  ;;  %s244_s12 = scalar_lea.vmem %s1182_s1, %s965_s30  ;;  %v437_v44 = vld [vmem:[%s1184_s3 + $0x58] sm:$0xff]  ;;  %v435_v46 = vld [vmem:[%s1184_s3 + $0x48] sm:$0xff]  ;;  %v434_v47 = vld [vmem:[%s1184_s3 + $0x40] sm:$0xff] }
  0x16   : > { %v250_v9 = vld [vmem:[%s244_s12] sm:$0x1]  ;;  %540 = vmatpush.msra.mxu2 %v437_v44  ;;  %v422_v48 = vld [vmem:[%s1183_s2 + $0x28] sm:$0xff]  ;;  %v433_v49 = vld [vmem:[%s1184_s3 + $0x38] sm:$0xff] }
  0x17   : > { %s971_s9 = scalar_lea.vmem %s1181_s0, %s775_s6  ;;  %v251_v11 = vmax.f32 %v250_v9, 0.0001  ;;  %v432_v50 = vld [vmem:[%s1184_s3 + $0x30] sm:$0xff]  ;;  %v431_v51 = vld [vmem:[%s1184_s3 + $0x28] sm:$0xff]  ;;  %v430_v52 = vld [vmem:[%s1184_s3 + $0x20] sm:$0xff] }
  0x18   : > { %v263_v0 = vld [vmem:[%s971_s9 + $0x58] sm:$0xff]  ;;  %v262_v1 = vld [vmem:[%s971_s9 + $0x50] sm:$0xff]  ;;  %v261_v2 = vld [vmem:[%s971_s9 + $0x48] sm:$0xff]  ;;  %541 = vmatpush.msra.mxu2 %v436_v45 }
  0x19   : > { %762 = vmatpush.xpose.msk.msra.mxu3 %vm279_vm0, %v263_v0  ;;  %717 = vmatpush.xpose.msk.msra.mxu0 %vm279_vm0, %v263_v0  ;;  %v260_v3 = vld [vmem:[%s971_s9 + $0x40] sm:$0xff]  ;;  %v259_v4 = vld [vmem:[%s971_s9 + $0x38] sm:$0xff]  ;;  %v258_v5 = vld [vmem:[%s971_s9 + $0x30] sm:$0xff]  ;;  %v265_v13 = vperm.slane %v251_v11, 0 }
  0x1a   : > { %v257_v6 = vld [vmem:[%s971_s9 + $0x28] sm:$0xff]  ;;  %v256_v7 = vld [vmem:[%s971_s9 + $0x20] sm:$0xff]  ;;  %v255_v8 = vld [vmem:[%s971_s9 + $0x18] sm:$0xff]  ;;  %542 = vmatpush.msra.mxu2 %v435_v46 }
  0x1b   : > { %v254_v10 = vld [vmem:[%s971_s9 + $0x10] sm:$0xff]  ;;  %v253_v12 = vld [vmem:[%s971_s9 + $0x8] sm:$0xff]  ;;  %v252_v14 = vld [vmem:[%s971_s9] sm:$0xff]  ;;  %v273_v15 = vmul.f32 %v265_v13, %v258_v5  ;;  %v274_v17 = vmul.f32 %v265_v13, %v259_v4  ;;  %v275_v19 = vmul.f32 %v265_v13, %v260_v3  ;;  %v276_v21 = vmul.f32 %v265_v13, %v261_v2  ;;  %s611_s9 = sshll.u32 %s608_s7, 4  ;;  %s612_s9 = int_to_ptr.hbm [resolvable:$true] %s611_s9 }
  0x1c   : > { %v267_v16 = vmul.f32 %v265_v13, %v252_v14  ;;  %v268_v18 = vmul.f32 %v265_v13, %v253_v12  ;;  %v269_v20 = vmul.f32 %v265_v13, %v254_v10  ;;  %v270_v22 = vmul.f32 %v265_v13, %v255_v8  ;;  %543 = vmatpush.msra.mxu2 %v434_v47  ;;  %v423_v53 = vld [vmem:[%s1183_s2 + $0x30] sm:$0xff]  ;;  %v429_v54 = vld [vmem:[%s1184_s3 + $0x18] sm:$0xff]  ;;  %v427_v56 = vld [vmem:[%s1184_s3 + $0x8] sm:$0xff]  ;;  %s833_s11 = sshra.s32 %s612_s9, 4  ;;  %s834_s11 = int_to_ptr.hbm [resolvable:$true] %s833_s11 }
  0x1d   : > { %763 = vmatpush.xpose.msk.msra.mxu3 %vm279_vm0, %v262_v1  ;;  %718 = vmatpush.xpose.msk.msra.mxu0 %vm279_vm0, %v262_v1  ;;  %v277_v23 = vmul.f32 %v265_v13, %v262_v1  ;;  %v271_v24 = vmul.f32 %v265_v13, %v256_v7  ;;  %v278_v25 = vmul.f32 %v265_v13, %v263_v0  ;;  %v428_v55 = vld [vmem:[%s1184_s3 + $0x10] sm:$0xff]  ;;  %v424_v57 = vld [vmem:[%s1183_s2 + $0x38] sm:$0xff]  ;;  %v425_v58 = vld [vmem:[%s1183_s2 + $0x40] sm:$0x3]  ;;  %s835_s12 = scalar_lea.hbm %s834_s11, 96  ;;  %p840_p0 = scmp.lt.s32.totalorder %s834_s11, %s1185_s4 }
  0x1e   : > { %v272_v26 = vmul.f32 %v265_v13, %v257_v6  ;;  %544 = vmatpush.msra.mxu2 %v433_v49  ;;  %v426_v59 = vld [vmem:[%s1184_s3] sm:$0xff]  ;;  %p836_p11 = scmp.ne.s32.totalorder %s834_s11, %s835_s12  ;;  %p841_p1 = scmp.lt.s32.totalorder %s839_s16, %s835_s12 }
  0x20   : > { %545 = vmatpush.msra.mxu2 %v432_v50  ;;  %p837_p12 = pnand %p836_p11, %p953_p5  ;;  %p842_p2 = por %p841_p1, %p840_p0 }
  0x21   : > { %764 = vmatpush.xpose.msk.msra.mxu3 %vm279_vm0, %v261_v2  ;;  %719 = vmatpush.xpose.msk.msra.mxu0 %vm279_vm0, %v261_v2 }
  0x22   : > { %546 = vmatpush.msra.mxu2 %v431_v51  ;;  %p838_p13 = pneg %p837_p12 }
  0x24   : > { %547 = vmatpush.msra.mxu2 %v430_v52  ;;  %p843_p3 = pnand %p842_p2, %p838_p13 }
  0x25   : > { %765 = vmatpush.xpose.msk.msra.mxu3 %vm279_vm0, %v260_v3  ;;  %720 = vmatpush.xpose.msk.msra.mxu0 %vm279_vm0, %v260_v3 }
  0x26   : > { %548 = vmatpush.msra.mxu2 %v429_v54 }
  0x28   : > { %549 = vmatpush.msra.mxu2 %v428_v55 }
  0x29   : > { %766 = vmatpush.xpose.msk.msra.mxu3 %vm279_vm0, %v259_v4  ;;  %721 = vmatpush.xpose.msk.msra.mxu0 %vm279_vm0, %v259_v4 }
  0x2a   : > { %550 = vmatpush.msra.mxu2 %v427_v56 }
  0x2c   : > { %551 = vmatpush.msra.mxu2 %v426_v59 }
  0x2d   : > { %767 = vmatpush.xpose.msk.msra.mxu3 %vm279_vm0, %v258_v5  ;;  %722 = vmatpush.xpose.msk.msra.mxu0 %vm279_vm0, %v258_v5 }
  0x31   : > { %768 = vmatpush.xpose.msk.msra.mxu3 %vm279_vm0, %v257_v6  ;;  %723 = vmatpush.xpose.msk.msra.mxu0 %vm279_vm0, %v257_v6 }
  0x35   : > { %769 = vmatpush.xpose.msk.msra.mxu3 %vm279_vm0, %v256_v7  ;;  %724 = vmatpush.xpose.msk.msra.mxu0 %vm279_vm0, %v256_v7 }
  0x39   : > { %770 = vmatpush.xpose.msk.msra.mxu3 %vm279_vm0, %v255_v8  ;;  %725 = vmatpush.xpose.msk.msra.mxu0 %vm279_vm0, %v255_v8 }
  0x3d   : > { %771 = vmatpush.xpose.msk.msra.mxu3 %vm279_vm0, %v254_v10  ;;  %726 = vmatpush.xpose.msk.msra.mxu0 %vm279_vm0, %v254_v10 }
  0x41   : > { %772 = vmatpush.xpose.msk.msra.mxu3 %vm279_vm0, %v253_v12  ;;  %727 = vmatpush.xpose.msk.msra.mxu0 %vm279_vm0, %v253_v12 }
  0x45   : > { %773 = vmatpush.xpose.msk.msra.mxu3 %vm279_vm0, %v252_v14  ;;  %728 = vmatpush.xpose.msk.msra.mxu0 %vm279_vm0, %v252_v14 }
  0x48   : > { %735 = vmatmul.msk.f32.vlgmr.msra.gmra.mxu3 %vm279_vm0, %v273_v15  ;;  %729 = vmatmul.msk.f32.vlgmr.msra.gmra.mxu0 %vm279_vm0, %v267_v16 }
  0x50   : > { %736 = vmatmul.msk.f32.gmra.mxu3 %vm279_vm0, %v274_v17  ;;  %730 = vmatmul.msk.f32.gmra.mxu0 %vm279_vm0, %v268_v18 }
  0x58   : > { %737 = vmatmul.msk.f32.gmra.mxu3 %vm279_vm0, %v275_v19  ;;  %731 = vmatmul.msk.f32.gmra.mxu0 %vm279_vm0, %v269_v20 }
  0x60   : > { %738 = vmatmul.msk.f32.gmra.mxu3 %vm279_vm0, %v276_v21  ;;  %732 = vmatmul.msk.f32.gmra.mxu0 %vm279_vm0, %v270_v22 }
  0x68   : > { %739 = vmatmul.msk.f32.gmra.mxu3 %vm279_vm0, %v277_v23  ;;  %733 = vmatmul.msk.f32.gmra.mxu0 %vm279_vm0, %v271_v24 }
  0x70   : > { %740 = vmatmul.msk.f32.gmra.mxu3 %vm279_vm0, %v278_v25  ;;  %734 = vmatmul.msk.f32.gmra.mxu0 %vm279_vm0, %v272_v26 }
  0xc5   : > { %v369_v27 = vpop.f32.mrf.mxu0 }
  0xc6   : > { %405 = vst.msk [vmem:[%s1028_s15] sm:$0xff] %vm279_vm0, %v369_v27 }
  0xcb   : > { %v387_v28 = vpop.f32.mrf.mxu3 }
  0xcc   : > { %411 = vst.msk [vmem:[%s1028_s15 + $0x30] sm:$0xff] %vm279_vm0, %v387_v28 }
  0xcd   : > { %v372_v29 = vpop.f32.mrf.mxu0 }
  0xce   : > { %406 = vst.msk [vmem:[%s1028_s15 + $0x8] sm:$0xff] %vm279_vm0, %v372_v29 }
  0xd3   : > { %v390_v30 = vpop.f32.mrf.mxu3 }
  0xd4   : > { %412 = vst.msk [vmem:[%s1028_s15 + $0x38] sm:$0xff] %vm279_vm0, %v390_v30 }
  0xd5   : > { %v375_v31 = vpop.f32.mrf.mxu0 }
  0xd6   : > { %407 = vst.msk [vmem:[%s1028_s15 + $0x10] sm:$0xff] %vm279_vm0, %v375_v31 }
  0xdb   : > { %v393_v32 = vpop.f32.mrf.mxu3 }
  0xdc   : > { %413 = vst.msk [vmem:[%s1028_s15 + $0x40] sm:$0xff] %vm279_vm0, %v393_v32 }
  0xdd   : > { %v378_v33 = vpop.f32.mrf.mxu0 }
  0xde   : > { %408 = vst.msk [vmem:[%s1028_s15 + $0x18] sm:$0xff] %vm279_vm0, %v378_v33 }
  0xe3   : > { %v396_v34 = vpop.f32.mrf.mxu3 }
  0xe4   : > { %414 = vst.msk [vmem:[%s1028_s15 + $0x48] sm:$0xff] %vm279_vm0, %v396_v34 }
  0xe5   : > { %v381_v35 = vpop.f32.mrf.mxu0 }
  0xe6   : > { %409 = vst.msk [vmem:[%s1028_s15 + $0x20] sm:$0xff] %vm279_vm0, %v381_v35 }
  0xeb   : > { %v399_v36 = vpop.f32.mrf.mxu3 }
  0xec   : > { %415 = vst.msk [vmem:[%s1028_s15 + $0x50] sm:$0xff] %vm279_vm0, %v399_v36 }
  0xed   : > { %v384_v37 = vpop.f32.mrf.mxu0 }
  0xee   : > { %410 = vst.msk [vmem:[%s1028_s15 + $0x28] sm:$0xff] %vm279_vm0, %v384_v37 }
  0xf3   : > { %v402_v38 = vpop.f32.mrf.mxu3 }
  0xf4   : > { %416 = vst.msk [vmem:[%s1028_s15 + $0x58] sm:$0xff] %vm279_vm0, %v402_v38  ;;  %469 = vmatpush.msra.mxu1 %v402_v38 }
  0xf6   : > { %470 = vmatpush.msra.mxu1 %v399_v36 }
  0xf8   : > { %471 = vmatpush.msra.mxu1 %v396_v34 }
  0xfa   : > { %472 = vmatpush.msra.mxu1 %v393_v32 }
  0xfc   : > { %473 = vmatpush.msra.mxu1 %v390_v30 }
  0xfe   : > { %474 = vmatpush.msra.mxu1 %v387_v28 }
 0x100   : > { %475 = vmatpush.msra.mxu1 %v384_v37 }
 0x102   : > { %476 = vmatpush.msra.mxu1 %v381_v35 }
 0x104   : > { %477 = vmatpush.msra.mxu1 %v378_v33 }
 0x106   : > { %478 = vmatpush.msra.mxu1 %v375_v31 }
 0x108   : > { %479 = vmatpush.msra.mxu1 %v372_v29 }
 0x10a   : > { %480 = vmatpush.msra.mxu1 %v369_v27 }
 0x10b   : > { %741 = vmatmul.msk.f32.vlgmr.msra.gmra.mxu1 %vm279_vm0, %v417_v39 }
 0x113   : > { %742 = vmatmul.msk.f32.gmra.mxu1 %vm279_vm0, %v418_v40 }
 0x11b   : > { %743 = vmatmul.msk.f32.gmra.mxu1 %vm279_vm0, %v419_v41 }
 0x123   : > { %744 = vmatmul.msk.f32.gmra.mxu1 %vm279_vm0, %v420_v42 }
 0x12b   : > { %745 = vmatmul.msk.f32.gmra.mxu1 %vm279_vm0, %v421_v43 }
 0x133   : > { %746 = vmatmul.msk.f32.gmra.mxu1 %vm279_vm0, %v422_v48 }
 0x13b   : > { %747 = vmatmul.msk.f32.gmra.mxu1 %vm279_vm0, %v423_v53 }
 0x143   : > { %748 = vmatmul.msk.f32.gmra.mxu1 %vm279_vm0, %v424_v57 }
 0x14b   : > { %749 = vmatmul.msk.f32.gmra.mxu1 %vm279_vm0, %v425_v58 }
 0x188   : > { %v482_v60 = vpop.f32.mrf.mxu1 }
 0x189   : > { %750 = vmatmul.msk.f32.vlgmr.msra.gmra.mxu2 %vm279_vm0, %v482_v60 }
 0x190   : > { %v485_v61 = vpop.f32.mrf.mxu1 }
 0x191   : > { %751 = vmatmul.msk.f32.gmra.mxu2 %vm279_vm0, %v485_v61 }
 0x198   : > { %v488_v62 = vpop.f32.mrf.mxu1 }
 0x199   : > { %752 = vmatmul.msk.f32.gmra.mxu2 %vm279_vm0, %v488_v62 }
 0x1a0   : > { %v491_v63 = vpop.f32.mrf.mxu1 }
 0x1a1   : > { %753 = vmatmul.msk.f32.gmra.mxu2 %vm279_vm0, %v491_v63 }
 0x1a8   : > { %v494_v0 = vpop.f32.mrf.mxu1 }
 0x1a9   : > { %754 = vmatmul.msk.f32.gmra.mxu2 %vm279_vm0, %v494_v0 }
 0x1b0   : > { %v497_v1 = vpop.f32.mrf.mxu1 }
 0x1b1   : > { %755 = vmatmul.msk.f32.gmra.mxu2 %vm279_vm0, %v497_v1 }
 0x1b8   : > { %v500_v2 = vpop.f32.mrf.mxu1 }
 0x1b9   : > { %756 = vmatmul.msk.f32.gmra.mxu2 %vm279_vm0, %v500_v2 }
 0x1c0   : > { %v503_v3 = vpop.f32.mrf.mxu1 }
 0x1c1   : > { %757 = vmatmul.msk.f32.gmra.mxu2 %vm279_vm0, %v503_v3 }
 0x1c8   : > { %v506_v4 = vpop.f32.mrf.mxu1 }
 0x1c9   : > { %758 = vmatmul.msk.f32.gmra.mxu2 %vm279_vm0, %v506_v4 }
 0x1ca   : > { %846 = shalt.err (!%p843_p3)
}
 0x1cb   : > { %s883_s13 = smov 128   ;;  %s884_s15 = smov 8   ;;  %vm580_vm1 = vcmask 539648   ;;  %vm589_vm2 = vcmask 533504  }
 0x1cc   : > { %778 = dma.vmem_to_hbm [thread:$0]  (%p953_p5), %s610_s8, 1536, %s612_s9, %s592_s10, %s883_s13, %s883_s13, %s884_s15  }
 0x1cd   : > { %s776_s25 = smul.u32 72, %s965_s30 }
 0x1cf   : > { %s249_s7 = scalar_lea.vmem %s1186_s5, %s776_s25 }
 0x20c   : > { %v553_v5 = vpop.f32.mrf.mxu2 }
 0x20d   : > { %581 = vst.msk [vmem:[%s249_s7] sm:$0xff] %vm580_vm1, %v553_v5 }
 0x214   : > { %v556_v6 = vpop.f32.mrf.mxu2 }
 0x215   : > { %582 = vst.msk [vmem:[%s249_s7 + $0x8] sm:$0xff] %vm580_vm1, %v556_v6 }
 0x21c   : > { %v559_v7 = vpop.f32.mrf.mxu2 }
 0x21d   : > { %583 = vst.msk [vmem:[%s249_s7 + $0x10] sm:$0xff] %vm580_vm1, %v559_v7 }
 0x224   : > { %v562_v8 = vpop.f32.mrf.mxu2 }
 0x225   : > { %584 = vst.msk [vmem:[%s249_s7 + $0x18] sm:$0xff] %vm580_vm1, %v562_v8 }
 0x22c   : > { %v565_v9 = vpop.f32.mrf.mxu2 }
 0x22d   : > { %585 = vst.msk [vmem:[%s249_s7 + $0x20] sm:$0xff] %vm580_vm1, %v565_v9 }
 0x234   : > { %v568_v10 = vpop.f32.mrf.mxu2 }
 0x235   : > { %586 = vst.msk [vmem:[%s249_s7 + $0x28] sm:$0xff] %vm580_vm1, %v568_v10 }
 0x23c   : > { %v571_v11 = vpop.f32.mrf.mxu2 }
 0x23d   : > { %587 = vst.msk [vmem:[%s249_s7 + $0x30] sm:$0xff] %vm580_vm1, %v571_v11 }
 0x244   : > { %v574_v12 = vpop.f32.mrf.mxu2 }
 0x245   : > { %588 = vst.msk [vmem:[%s249_s7 + $0x38] sm:$0xff] %vm580_vm1, %v574_v12 }
 0x24c   : > { %v577_v13 = vpop.f32.mrf.mxu2 }
 0x24d   : > { %590 = vst.msk [vmem:[%s249_s7 + $0x40] sm:$0x3] %vm589_vm2, %v577_v13 }
 0x24e PF: > { %p784_p4 = scmp.ge.s32.totalorder %s881_s21, 2  ;;  %s629_s28 = sand.u32 1, %s869_s18  }
 0x24f   : > { %s630_s30 = scalar_lea.sflag [#allocation3], %s629_s28 }
 0x250   : > { %p781_p5 = pnand %p784_p4, %p957_p6 }
 0x252   : > { %p782_p7 = pneg %p781_p5 }
 0x254   : > { %864 = dma.done.wait (%p782_p7), %s630_s30, 1536  }
 0x255   : > { %866 = vsyncadd (%p782_p7), %s630_s30, 4294965760  ;;  %p16_p8 = scmp.ge.s32.totalorder %s940_s24, 4   ;;  %s1189_s18 = smov %s873_s19 }
 0x256   : > { %s1190_s19 = smov %s877_s20  ;;  %s1191_s20 = smov %s951_s27 }
 0x257   : > { %s1192_s21 = smov %s940_s24  ;;  %18 = sbr.rel (!%p16_p8) target bundleno = 3 (0x3), region = 86 }
 0x25c   :  { %644 = vsyncpa [#allocation3], 1 }
 0x25d   :  { %646 = vsyncpa [#allocation3 + $0x1], 1 }

// kernel: custom-call.8
= control target key start
LH: loop header
LB: loop body
LE: loop exit
PB: predicated region body
PF: predicated region fallthrough
CT: control target
= control target key end

     0   :  { %s2674_s0 = inlined_call_operand.vmem [shape: f32[2,13,13], index: 0, kind: input, shape index: {}]   ;;  %s2675_s1 = inlined_call_operand.vmem [shape: f32[2,13,13], index: 1, kind: input, shape index: {}]   ;;  %s2676_s2 = inlined_call_operand.vmem [shape: f32[2,13,13], index: 2, kind: input, shape index: {}]   ;;  %s2677_s3 = inlined_call_operand.vmem [shape: f32[2,13,13], index: 3, kind: input, shape index: {}]   ;;  %s2678_s4 = inlined_call_operand.vmem [shape: f32[2,13], index: 4, kind: output, shape index: {0}]   ;;  %s2679_s5 = inlined_call_operand.vmem [shape: f32[2,13], index: 5, kind: output, shape index: {1}]   ;;  %s2680_s6 = inlined_call_operand.vmem [shape: f32[2,13,13], index: 6, kind: output, shape index: {2}]   ;;  %s2681_s7 = inlined_call_operand.vmem [shape: f32[2,13,13], index: 7, kind: output, shape index: {3}]   ;;  %s2682_s8 = inlined_call_operand.vmem [shape: f32[2,13,13], index: 8, kind: output, shape index: {4}]   ;;  %s2683_s9 = inlined_call_operand.vmem [shape: f32[2,13,13], index: 9, kind: output, shape index: {5}]  }
   0x1   :  { %2684 = sst [smem:[#allocation25_spill]] %s2674_s0 }
   0x2   :  { %s2163_s30 = smov 0   ;;  %s2165_s10 = smov 0  }
   0x3   :  { %s2167_s11 = smov 0  }
   0x4 LB: > { %s2179_s12 = sadd.s32 4294967295, %s2100_s11   ;;  %s2182_s13 = sadd.s32 1, %s2100_s11   ;;  %s2100_s11 = sphi %s2167_s11, %s2694_s11   ;;  %s2096_s10 = sphi %s2165_s10, %s2693_s10   ;;  %s2092_s30 = sphi %s2163_s30, %s2692_s30  }
   0x5   : > { %s20_s14 = sshrl.u32 %s2100_s11, 3  ;;  %s21_s15 = sshrl.u32 %s2182_s13, 3 }
   0x6   : > { %s22_s16 = ssub.s32 %s20_s14, %s21_s15  ;;  %s25_s17 = sadd.s32 1, %s2096_s10 }
   0x7   : > { %p23_p0 = scmp.eq.s32.totalorder %s22_s16, 0  ;;  %p35_p1 = scmp.ne.s32.totalorder %s2096_s10, %s2092_s30 }
   0x8   : > { %p36_p2 = scmp.eq.s32.totalorder %s2179_s12, 1  ;;  %p1858_p4 = scmp.ge.s32.totalorder %s2100_s11, 2 }
   0x9   : > { %s2191_s18 = scalar_select %p23_p0, %s2096_s10, %s25_s17  }
   0xa   : > { %p2193_p3 = por %p36_p2, %p35_p1  ;;  %86 = sbr.rel (%p1858_p4) target bundleno = 26 (0x1a), region = 16 }
   0xb   : > { %s88_s20 = sand.u32 (!%p1858_p4), 1, %s2100_s11   ;;  %s1860_s21 = sshll.u32 (!%p1858_p4), %s2100_s11, 4 }
   0xc   : > { %s1859_s22 = sshll.u32 (!%p1858_p4), %s88_s20, 4  ;;  %s2686_s0 = sld [smem:[#allocation25_spill]] (!%p1858_p4) }
   0xd   : > { %s90_s26 = scalar_lea.vmem (!%p1858_p4), [#allocation0], %s1859_s22  ;;  %s117_s29 = scalar_lea.vmem (!%p1858_p4), %s2675_s1, %s1860_s21 }
   0xe   : > { %s142_s16 = scalar_lea.vmem (!%p1858_p4), %s2676_s2, %s1860_s21  ;;  %s115_s17 = scalar_lea.vmem (!%p1858_p4), [#allocation1], %s1859_s22 }
   0xf   : > { %v130_v2 = vld [vmem:[%s117_s29] sm:$0xff]  ;;  %v132_v3 = vld [vmem:[%s117_s29 + $0x8] sm:$0xff]  ;;  %s167_s24 = scalar_lea.vmem %s2677_s3, %s1860_s21 }
  0x10   : > { %131 = vst [vmem:[%s115_s17] sm:$0xff] %v130_v2  ;;  %v155_v4 = vld [vmem:[%s142_s16] sm:$0xff]  ;;  %v157_v5 = vld [vmem:[%s142_s16 + $0x8] sm:$0xff] }
  0x11   : > { %133 = vst [vmem:[%s115_s17 + $0x8] sm:$0xff] %v132_v3  ;;  %v180_v6 = vld [vmem:[%s167_s24] sm:$0xff]  ;;  %v182_v7 = vld [vmem:[%s167_s24 + $0x8] sm:$0xff] }
  0x12   : > { %s92_s25 = scalar_lea.vmem %s2686_s0, %s1860_s21 }
  0x13   : > { %v105_v0 = vld [vmem:[%s92_s25] sm:$0xff]  ;;  %v107_v1 = vld [vmem:[%s92_s25 + $0x8] sm:$0xff]  ;;  %s140_s25 = scalar_lea.vmem [#allocation2], %s1859_s22 }
  0x14   : > { %106 = vst [vmem:[%s90_s26] sm:$0xff] %v105_v0 }
  0x15   : > { %108 = vst [vmem:[%s90_s26 + $0x8] sm:$0xff] %v107_v1  ;;  %s165_s26 = scalar_lea.vmem [#allocation3], %s1859_s22 }
  0x16   : > { %156 = vst [vmem:[%s140_s25] sm:$0xff] %v155_v4 }
  0x17   : > { %158 = vst [vmem:[%s140_s25 + $0x8] sm:$0xff] %v157_v5 }
  0x18   : > { %181 = vst [vmem:[%s165_s26] sm:$0xff] %v180_v6 }
  0x19   : > { %183 = vst [vmem:[%s165_s26 + $0x8] sm:$0xff] %v182_v7 }
  0x1a PF: > { %p1867_p5 = scmp.ge.s32.totalorder %s2100_s11, 1  ;;  %p188_p6 = scmp.lt.s32.totalorder %s2100_s11, 3 }
  0x1c   : > { %p189_p7 = pnand %p1867_p5, %p188_p6 }
  0x1e   : > { %192 = sbr.rel (%p189_p7) target bundleno = 1021 (0x3fd), region = 96 }
  0x23   : > { %s195_s27 = sand.u32 1, %s2179_s12   ;;  %s229_s21 = sand.u32 1, %s2092_s30   ;;  %v297_v8 = vlaneseq  ;;  %v2110_v11 = vmov 0.0  }
  0x24   : > { %s2216_s28 = sshll.u32 %s195_s27, 4  ;;  %s2218_s29 = sshll.u32 %s229_s21, 1 }
  0x25   : > { %s197_s22 = scalar_lea.vmem [#allocation0], %s2216_s28  ;;  %s2222_s14 = scalar_lea.vmem [#allocation8], %s2216_s28  ;;  %v2225_v12 = vshrl.u32 %v297_v8, 7  ;;  %v2230_v16 = vand.u32 127, %v297_v8 }
  0x26   : > { %v257_v9 = vld [vmem:[%s197_s22] sm:$0xff]  ;;  %v1878_v10 = vld [vmem:[%s197_s22 + $0x8] sm:$0xff]  ;;  %284 = vst [vmem:[%s2222_s14] sm:$0xff] %v2110_v11  ;;  %s256_s30 = smov [#allocation12]  ;;  %s263_s11 = smov [#allocation13] }
  0x27   : > { %s201_s15 = scalar_lea.vmem [#allocation1], %s2216_s28  ;;  %1886 = vst [vmem:[%s2222_s14 + $0x8] sm:$0xff] %v2110_v11  ;;  %s270_s16 = smov [#allocation14]  ;;  %v302_v12 = vmov %v2225_v12  ;;  %v299_v16 = vmov %v2230_v16  ;;  %vm1717_vm4 = vcmp.lt.s32.totalorder %v2230_v16, 13 }
  0x28   : > { %v264_v13 = vld [vmem:[%s201_s15] sm:$0xff]  ;;  %258 = vst [vmem:[%s256_s30] sm:$0xff] %v257_v9  ;;  %v1880_v14 = vld [vmem:[%s201_s15 + $0x8] sm:$0xff]  ;;  %s205_s17 = scalar_lea.vmem [#allocation2], %s2216_s28  ;;  %s277_s20 = smov [#allocation15]  ;;  %v312_v20 = vadd.s32 8, %v302_v12  ;;  %vm306_vm0 = vcmp.eq.s32.totalorder %v302_v12, %v299_v16  ;;  %v322_v12 = vmov %v2225_v12 }
  0x29   : > { %1879 = vst [vmem:[%s256_s30 + $0x8] sm:$0xff] %v1878_v10  ;;  %v271_v15 = vld [vmem:[%s205_s17] sm:$0xff]  ;;  %v1882_v17 = vld [vmem:[%s205_s17 + $0x8] sm:$0xff]  ;;  %s209_s23 = scalar_lea.vmem [#allocation3], %s2216_s28  ;;  %s296_s14 = smov %s2222_s14  ;;  %v332_v25 = vadd.s32 8, %v322_v12 }
  0x2a   : > { %265 = vst [vmem:[%s263_s11] sm:$0xff] %v264_v13  ;;  %v278_v18 = vld [vmem:[%s209_s23] sm:$0xff]  ;;  %v1884_v19 = vld [vmem:[%s209_s23 + $0x8] sm:$0xff]  ;;  %s2237_s24 = scalar_lea.vmem [#allocation9], %s2216_s28  ;;  %vm313_vm1 = vcmp.eq.s32.totalorder %v312_v20, %v299_v16  ;;  %s2242_s25 = scalar_lea.vmem [#allocation10], %s2216_s28  ;;  %v319_v16 = vmov %v2230_v16 }
  0x2b   : > { %1881 = vst [vmem:[%s263_s11 + $0x8] sm:$0xff] %v1880_v14  ;;  %s2248_s26 = scalar_lea.vmem [#allocation11], %s2216_s28  ;;  %vm326_vm2 = vcmp.eq.s32.totalorder %v322_v12, %v319_v16  ;;  %vm333_vm3 = vcmp.eq.s32.totalorder %v332_v25, %v319_v16  ;;  %s1713_s28 = smov [#allocation12]  ;;  %v1709_v16 = vmov %v2230_v16  ;;  %v1738_v12 = vmov %v2225_v12 }
  0x2c   : > { %272 = vst [vmem:[%s270_s16] sm:$0xff] %v271_v15  ;;  %s1739_s22 = smov [#allocation13]  ;;  %s1762_s30 = smov [#allocation14]  ;;  %v1735_v16 = vmov %v2230_v16  ;;  %v1712_v12 = vmov %v2225_v12 }
  0x2d   : > { %1883 = vst [vmem:[%s270_s16 + $0x8] sm:$0xff] %v1882_v17  ;;  %s1785_s11 = smov [#allocation15]  ;;  %vm1722_vm5 = vcmp.eq.s32.totalorder %v1712_v12, %v1709_v16  ;;  %v1728_v48 = vadd.s32 8, %v1712_v12  ;;  %v1758_v16 = vmov %v2230_v16  ;;  %v1761_v12 = vmov %v2225_v12 }
  0x2e   : > { %279 = vst [vmem:[%s277_s20] sm:$0xff] %v278_v18  ;;  %v303_v21 = vld [vmem:[%s296_s14] sm:$0xff]  ;;  %v1890_v22 = vld [vmem:[%s296_s14 + $0x8] sm:$0x1f]  ;;  %v1784_v12 = vmov %v2225_v12 }
  0x2f   : > { %1885 = vst [vmem:[%s277_s20 + $0x8] sm:$0xff] %v1884_v19  ;;  %v307_v23 = vsel %vm306_vm0, 1.0, %v303_v21  ;;  %v314_v24 = vsel %vm313_vm1, 1.0, %v1890_v22  ;;  %vm1729_vm6 = vcmp.eq.s32.totalorder %v1728_v48, %v1709_v16  ;;  %v1781_v16 = vmov %v2230_v16 }
  0x30   : > { %287 = vst [vmem:[%s2237_s24] sm:$0xff] %v2110_v11  ;;  %v1719_v30 = vld [vmem:[%s1713_s28] sm:$0xff]  ;;  %v1894_v31 = vld [vmem:[%s1713_s28 + $0x8] sm:$0x1f]  ;;  %v1802_v0 = vadd.s32 8, %v1784_v12  ;;  %vm1794_vm7 = vcmp.eq.s32.totalorder %v1784_v12, %v1781_v16 }
  0x31   : > { %1887 = vst [vmem:[%s2237_s24 + $0x8] sm:$0xff] %v2110_v11  ;;  %v1720_v33 = vsel %vm1717_vm4, %v1719_v30, 0.0  ;;  %v1726_v34 = vsel %vm1717_vm4, %v1894_v31, 0.0 }
  0x32   : > { %290 = vst [vmem:[%s2242_s25] sm:$0xff] %v2110_v11  ;;  %v1745_v32 = vld [vmem:[%s1739_s22] sm:$0xff]  ;;  %v1895_v36 = vld [vmem:[%s1739_s22 + $0x8] sm:$0x1f]  ;;  %v1721_v38 = vmul.f32 %v1720_v33, %v1720_v33  ;;  %v1727_v39 = vmul.f32 %v1726_v34, %v1726_v34  ;;  %vm1803_vm8 = vcmp.eq.s32.totalorder %v1802_v0, %v1781_v16 }
  0x33   : > { %1888 = vst [vmem:[%s2242_s25 + $0x8] sm:$0xff] %v2110_v11  ;;  %v1746_v35 = vsel %vm1717_vm4, %v1745_v32, 0.0  ;;  %v1752_v41 = vsel %vm1717_vm4, %v1895_v36, 0.0 }
  0x34   : > { %293 = vst [vmem:[%s2248_s26] sm:$0xff] %v2110_v11  ;;  %v1768_v37 = vld [vmem:[%s1762_s30] sm:$0xff]  ;;  %v1747_v40 = vmul.f32 %v1746_v35, %v1746_v35  ;;  %v1896_v42 = vld [vmem:[%s1762_s30 + $0x8] sm:$0x1f]  ;;  %v1732_v44 = vadd.f32 %v1727_v39, %v1721_v38  ;;  %v1753_v45 = vmul.f32 %v1752_v41, %v1752_v41  ;;  %v1723_v52 = vsel %vm1722_vm5, 0.0, %v1721_v38 }
  0x35   : > { %1889 = vst [vmem:[%s2248_s26 + $0x8] sm:$0xff] %v2110_v11  ;;  %s316_s26 = smov %s2248_s26  ;;  %v1769_v43 = vsel %vm1717_vm4, %v1768_v37, 0.0  ;;  %v1775_v47 = vsel %vm1717_vm4, %v1896_v42, 0.0  ;;  %v1730_v56 = vsel %vm1729_vm6, 0.0, %v1727_v39 }
  0x36   : > { %308 = vst [vmem:[%s296_s14] sm:$0xff] %v307_v23  ;;  %v1791_v46 = vld [vmem:[%s1785_s11] sm:$0xff]  ;;  %v1749_v49 = vadd.f32 %v1747_v40, %v1732_v44  ;;  %v1770_v50 = vmul.f32 %v1769_v43, %v1769_v43  ;;  %v1897_v51 = vld [vmem:[%s1785_s11 + $0x8] sm:$0x1f]  ;;  %v1776_v55 = vmul.f32 %v1775_v47, %v1775_v47  ;;  %v1731_v58 = vadd.f32 %v1730_v56, %v1723_v52 }
  0x37   : > { %1891 = vst [vmem:[%s296_s14 + $0x8] sm:$0x1f] %v314_v24  ;;  %v1792_v53 = vsel %vm1717_vm4, %v1791_v46, 0.0  ;;  %v1800_v57 = vsel %vm1717_vm4, %v1897_v51, 0.0 }
  0x38   : > { %v1755_v54 = vadd.f32 %v1753_v45, %v1749_v49  ;;  %v1793_v60 = vmul.f32 %v1792_v53, %v1792_v53  ;;  %v1748_v61 = vadd.f32 %v1747_v40, %v1731_v58  ;;  %v1801_v63 = vmul.f32 %v1800_v57, %v1800_v57 }
  0x3a   : > { %v1772_v59 = vadd.f32 %v1770_v50, %v1755_v54  ;;  %v1754_v1 = vadd.f32 %v1753_v45, %v1748_v61  ;;  %v1795_v5 = vsel %vm1794_vm7, 0.0, %v1793_v60  ;;  %v1804_v8 = vsel %vm1803_vm8, 0.0, %v1801_v63 }
  0x3c   : > { %v323_v26 = vld [vmem:[%s316_s26] sm:$0xff]  ;;  %v1892_v27 = vld [vmem:[%s316_s26 + $0x8] sm:$0x1f]  ;;  %v1778_v62 = vadd.f32 %v1776_v55, %v1772_v59  ;;  %v1771_v3 = vadd.f32 %v1770_v50, %v1754_v1 }
  0x3d   : > { %v327_v28 = vsel %vm326_vm2, 1.0, %v323_v26  ;;  %v334_v29 = vsel %vm333_vm3, 1.0, %v1892_v27 }
  0x3e   : > { %328 = vst [vmem:[%s316_s26] sm:$0xff] %v327_v28  ;;  %v1797_v2 = vadd.f32 %v1793_v60, %v1778_v62  ;;  %v1777_v6 = vadd.f32 %v1776_v55, %v1771_v3 }
  0x3f   : > { %1893 = vst [vmem:[%s316_s26 + $0x8] sm:$0x1f] %v334_v29 }
  0x40   : > { %v1806_v4 = vadd.f32 %v1801_v63, %v1797_v2  ;;  %v1796_v7 = vadd.f32 %v1795_v5, %v1777_v6 }
  0x42   : > { %1807 = vadd.xlane.f32.xlu0 %v1806_v4  ;;  %v1805_v9 = vadd.f32 %v1804_v8, %v1796_v7 }
  0x4a   : > { %1815 = vadd.xlane.f32.xlu0 %v1805_v9 }
  0xb5   : > { %v1808_v10 = vpop.xlane.xlu0 %1807 }
  0xb6   : > { %v1809_v11 = vrot.slane %v1808_v10, 4 }
  0xb8   : > { %v1810_v13 = vadd.f32 %v1809_v11, %v1808_v10 }
  0xba   : > { %v1811_v14 = vrot.slane %v1810_v13, 2 }
  0xbc   : > { %v1812_v19 = vadd.f32 %v1811_v14, %v1810_v13 }
  0xbd   : > { %v1816_v15 = vpop.xlane.xlu0 %1815 }
  0xbe   : > { %v1817_v17 = vrot.slane %v1816_v15, 4  ;;  %v1813_v22 = vrot.slane %v1812_v19, 1 }
  0xc0   : > { %v1818_v18 = vadd.f32 %v1817_v17, %v1816_v15  ;;  %v1814_v25 = vadd.f32 %v1813_v22, %v1812_v19 }
  0xc2   : > { %v1819_v20 = vrot.slane %v1818_v18, 2 }
  0xc4   : > { %v1820_v21 = vadd.f32 %v1819_v20, %v1818_v18 }
  0xc6   : > { %v1821_v23 = vrot.slane %v1820_v21, 1 }
  0xc8   : > { %v1822_v24 = vadd.f32 %v1821_v23, %v1820_v21 }
  0xca   : > { %2011 = vpush %v1822_v24 }
  0xcb   : > { %2013 = vpush %v1814_v25 }
  0xfb   : > { %s2012_s15 = spop %2011 }
  0xfc   : > { %s2014_s16 = spop %2013 }
  0xfd   : > { %s1825_s17 = smul.f32 1e-10, %s2014_s16 }
  0xff   : > { %p1826_p8 = scmp.le.f32.partialorder %s2012_s15, %s1825_s17 }
 0x100   : > { %s2281_s20 = smov (!%p1826_p8), 0  }
 0x101   : > { %1829 = sbr.rel (%p1826_p8) target bundleno = 969 (0x3c9), region = 448 }
 0x106 LB: >> { %s2286_s23 = smov 0   ;;  %s2104_s20 = sphi %s2281_s20, %s2687_s20  }
 0x107 LB: >>> { %s472_s28 = smov [#allocation12]  ;;  %v476_v16 = vmov %v2230_v16  ;;  %v479_v12 = vmov %v2225_v12  ;;  %s498_s22 = smov [#allocation13]  ;;  %s2108_s23 = sphi %s2286_s23, %s471_s23  }
 0x108   : >>> { %v502_v16 = vmov %v2230_v16  ;;  %v505_v12 = vmov %v2225_v12  ;;  %v480_v26 = vld [vmem:[%s472_s28] sm:$0xff]  ;;  %vm483_vm9 = vcmp.eq.s32.totalorder %v479_v12, %v476_v16  ;;  %v1898_v27 = vld [vmem:[%s472_s28 + $0x8] sm:$0x1f]  ;;  %v488_v28 = vadd.s32 8, %v479_v12  ;;  %s524_s30 = smov [#allocation15]  ;;  %s473_s11 = smov [#allocation16] }
 0x109   : >>> { %vm509_vm10 = vcmp.eq.s32.totalorder %v505_v12, %v502_v16  ;;  %v528_v16 = vmov %v2230_v16  ;;  %v484_v29 = vsel %vm483_vm9, %v480_v26, 0.0  ;;  %v506_v30 = vld [vmem:[%s498_s22] sm:$0xff]  ;;  %v1899_v31 = vld [vmem:[%s498_s22 + $0x8] sm:$0x1f]  ;;  %v514_v32 = vadd.s32 8, %v505_v12  ;;  %s499_s15 = smov [#allocation17]  ;;  %s2315_s14 = smov %s2222_s14 }
 0x10a   : >>> { %v531_v12 = vmov %v2225_v12  ;;  %vm489_vm11 = vcmp.eq.s32.totalorder %v488_v28, %v476_v16  ;;  %v510_v33 = vsel %vm509_vm10, %v506_v30, 0.0  ;;  %v532_v34 = vld [vmem:[%s524_s30] sm:$0xff]  ;;  %v1900_v35 = vld [vmem:[%s524_s30 + $0x8] sm:$0x1f]  ;;  %s525_s16 = smov [#allocation18]  ;;  %s554_s17 = smov [#allocation17] }
 0x10b   : >>> { %vm535_vm12 = vcmp.eq.s32.totalorder %v531_v12, %v528_v16  ;;  %v540_v36 = vadd.s32 8, %v531_v12  ;;  %v490_v37 = vsel %vm489_vm11, %v1898_v27, %v484_v29  ;;  %vm515_vm13 = vcmp.eq.s32.totalorder %v514_v32, %v502_v16  ;;  %s552_s28 = smov [#allocation16]  ;;  %s556_s22 = smov [#allocation18] }
 0x10c   : >>> { %v536_v38 = vsel %vm535_vm12, %v532_v34, 0.0  ;;  %v491_v39 = vrot.slane %v490_v37, 4  ;;  %v516_v40 = vsel %vm515_vm13, %v1899_v31, %v510_v33  ;;  %s631_s30 = smov [#allocation19]  ;;  %v661_v12 = vmov %v2225_v12  ;;  %s1125_s21 = smov [#allocation23] }
 0x10d   : >>> { %vm541_vm14 = vcmp.eq.s32.totalorder %v540_v36, %v528_v16  ;;  %v517_v41 = vrot.slane %v516_v40, 4  ;;  %v643_v16 = vmov %v2230_v16  ;;  %s2318_s24 = smov %s2237_s24  ;;  %s2323_s25 = smov %s2242_s25 }
 0x10e   : >>> { %v542_v42 = vsel %vm541_vm14, %v1900_v35, %v536_v38  ;;  %v492_v43 = vadd.f32 %v491_v39, %v490_v37  ;;  %v658_v16 = vmov %v2230_v16  ;;  %s2327_s26 = smov %s2248_s26  ;;  %s2112_s27 = smov 127  }
 0x10f   : >>> { %v543_v44 = vrot.slane %v542_v42, 4  ;;  %v518_v45 = vadd.f32 %v517_v41, %v516_v40  ;;  %s2508_s0 = smov [#allocation13]  ;;  %s471_s23 = sadd.s32 1, %s2108_s23  }
 0x110   : >>> { %v493_v46 = vrot.slane %v492_v43, 2  ;;  %p468_p9 = scmp.ge.s32.totalorder %s471_s23, 25  }
 0x111   : >>> { %v544_v47 = vadd.f32 %v543_v44, %v542_v42  ;;  %v519_v48 = vrot.slane %v518_v45, 2 }
 0x112   : >>> { %v494_v49 = vadd.f32 %v493_v46, %v492_v43 }
 0x113   : >>> { %v545_v50 = vrot.slane %v544_v47, 2  ;;  %v520_v51 = vadd.f32 %v519_v48, %v518_v45 }
 0x114   : >>> { %v495_v52 = vrot.slane %v494_v49, 1 }
 0x115   : >>> { %v546_v53 = vadd.f32 %v545_v50, %v544_v47  ;;  %v521_v54 = vrot.slane %v520_v51, 1 }
 0x116   : >>> { %v496_v55 = vadd.f32 %v495_v52, %v494_v49 }
 0x117   : >>> { %v547_v56 = vrot.slane %v546_v53, 1  ;;  %v522_v57 = vadd.f32 %v521_v54, %v520_v51 }
 0x118   : >>> { %497 = vst [vmem:[%s473_s11] sm:$0x1] %v496_v55  ;;  %s633_s11 = smov [#allocation20] }
 0x119   : >>> { %v548_v58 = vadd.f32 %v547_v56, %v546_v53  ;;  %523 = vst [vmem:[%s499_s15] sm:$0x1] %v522_v57  ;;  %s550_s15 = smov [#allocation21]  ;;  %v662_v57 = vadd.s32 8, %v661_v12  ;;  %v646_v12 = vmov %v2225_v12 }
 0x11a   : >>> { %s635_s15 = smov %s550_s15  ;;  %v692_v12 = vmov %v2225_v12 }
 0x11b   : >>> { %549 = vst [vmem:[%s525_s16] sm:$0x1] %v548_v58  ;;  %s551_s16 = smov [#allocation22] }
 0x11c   : >>> { %s637_s16 = smov %s551_s16 }
 0x11f   : >>> { %v553_v2 = vld [vmem:[%s552_s28] sm:$0xff]  ;;  %s654_s28 = smov [#allocation21] }
 0x120   : >>> { %v2297_v59 = vld [vmem:[%s554_s17] sm:$0xff]  ;;  %v607_v28 = vand.u32 2147483647, %v553_v2  ;;  %s639_s17 = smov [#allocation21] }
 0x121   : >>> { %v559_v60 = vmul.f32 2.0, %v2297_v59  ;;  %v608_v36 = vand.u32 2147483647, %v2297_v59 }
 0x122   : >>> { %v557_v3 = vld [vmem:[%s556_s22] sm:$0xff]  ;;  %s670_s22 = smov [#allocation22] }
 0x123   : >>> { %2062 = vrcp.f32 %v559_v60  ;;  %v571_v63 = vand.u32 2147483648, %v559_v60  ;;  %vm565_vm15 = vweird.f32 %v559_v60  ;;  %v569_v1 = vand.u32 2147483647, %v559_v60 }
 0x124   : >>> { %v558_v6 = vsub.f32 %v557_v3, %v553_v2  ;;  %v609_v29 = vand.u32 2147483647, %v557_v3 }
 0x125   : >>> { %v572_v5 = vor.u32 1.1754944e-38, %v571_v63  ;;  %vm570_vm2 = vcmp.eq.f32.partialorder %v569_v1, 8.507059e+37 }
 0x126   : >>> { %v610_v31 = vmin.f32 %v607_v28, %v609_v29 }
 0x128   : >>> { %v611_v37 = vmul.f32 1.1920929e-08, %v610_v31 }
 0x129   : >>> { %v2063_v61 = vpop.eup %2062 }
 0x12a   : >>> { %v561_v62 = vmul.f32 %v2063_v61, %v559_v60  ;;  %vm566_vm0 = vweird.f32 %v2063_v61  ;;  %vm612_vm11 = vcmp.le.f32.partialorder %v608_v36, %v611_v37  ;;  %v693_v60 = vadd.s32 8, %v692_v12 }
 0x12b   : >>> { %vm567_vm1 = vmor %vm565_vm15, %vm566_vm0  ;;  %vm648_vm15 = vcmp.eq.s32.totalorder %v646_v12, %v643_v16  ;;  %vm663_vm0 = vcmp.eq.s32.totalorder %v662_v57, %v658_v16  ;;  %v674_v16 = vmov %v2230_v16  ;;  %v677_v12 = vmov %v2225_v12 }
 0x12c   : >>> { %v562_v0 = vsub.f32 1.0, %v561_v62  ;;  %v689_v16 = vmov %v2230_v16 }
 0x12e   : >>> { %v563_v4 = vmul.f32 %v2063_v61, %v562_v0 }
 0x130   : >>> { %v564_v7 = vadd.f32 %v2063_v61, %v563_v4 }
 0x132   : >>> { %v568_v8 = vsel %vm567_vm1, %v2063_v61, %v564_v7  ;;  %vm679_vm1 = vcmp.eq.s32.totalorder %v677_v12, %v674_v16 }
 0x133   : >>> { %v573_v9 = vsel %vm570_vm2, %v572_v5, %v568_v8  ;;  %vm694_vm2 = vcmp.eq.s32.totalorder %v693_v60, %v689_v16  ;;  %v865_v16 = vmov %v2230_v16 }
 0x134   : >>> { %v574_v10 = vmul.f32 %v573_v9, %v558_v6  ;;  %v1133_v9 = vld [vmem:[%s2315_s14] sm:$0xff]  ;;  %v823_v16 = vmov %v2230_v16 }
 0x135   : >>> { %v886_v16 = vmov %v2230_v16 }
 0x136   : >>> { %v576_v11 = vmul.f32 %v574_v10, %v574_v10  ;;  %vm575_vm6 = vcmp.ge.f32.partialorder %v574_v10, 0.0 }
 0x138   : >>> { %v577_v13 = vadd.f32 1.0, %v576_v11 }
 0x13a   : >>> { %2064 = vrsqrt.f32 %v577_v13  ;;  %vm585_vm3 = vcmp.eq.f32.partialorder %v577_v13, inf  ;;  %v588_v21 = vand.u32 2147483648, %v577_v13  ;;  %vm587_vm5 = vcmp.eq.f32.partialorder %v577_v13, 0.0 }
 0x140   : >>> { %v2065_v14 = vpop.eup %2064 }
 0x141   : >>> { %v579_v15 = vmul.f32 %v2065_v14, %v577_v13 }
 0x143   : >>> { %v580_v17 = vmul.f32 %v2065_v14, %v579_v15 }
 0x145   : >>> { %v581_v18 = vmul.f32 0.5, %v580_v17 }
 0x147   : >>> { %v582_v19 = vsub.f32 1.5, %v581_v18 }
 0x149   : >>> { %v583_v20 = vmul.f32 %v2065_v14, %v582_v19  ;;  %v1135_v14 = vld [vmem:[%s2323_s25] sm:$0xff] }
 0x14b   : >>> { %v584_v22 = vmul.f32 %v583_v20, %v577_v13 }
 0x14d   : >>> { %v586_v23 = vsel %vm585_vm3, %v577_v13, %v584_v22  ;;  %v1134_v13 = vld [vmem:[%s2318_s24] sm:$0xff]  ;;  %vm1045_vm3 = vcmp.eq.s32.totalorder %v2225_v12, 0 }
 0x14e   : >>> { %v589_v24 = vsel %vm587_vm5, %v588_v21, %v586_v23  ;;  %v1136_v21 = vld [vmem:[%s2327_s26] sm:$0xff]  ;;  %vm1069_vm5 = vcmp.eq.s32.totalorder %v2225_v12, 4 }
 0x14f   : >>> { %v590_v25 = vxor.u32 2147483648, %v589_v24 }
 0x151   : >>> { %v591_v26 = vsel %vm575_vm6, %v589_v24, %v590_v25  ;;  %vm1077_vm6 = vcmp.eq.s32.totalorder %v2225_v12, 7  ;;  %v868_v12 = vmov %v2225_v12 }
 0x152   : >>> { %v592_v27 = vadd.f32 %v591_v26, %v574_v10  ;;  %v826_v12 = vmov %v2225_v12 }
 0x154   : >>> { %2066 = vrcp.f32 %v592_v27  ;;  %v604_v33 = vand.u32 2147483648, %v592_v27  ;;  %vm598_vm7 = vweird.f32 %v592_v27  ;;  %v602_v35 = vand.u32 2147483647, %v592_v27 }
 0x156   : >>> { %v605_v39 = vor.u32 1.1754944e-38, %v604_v33  ;;  %vm603_vm10 = vcmp.eq.f32.partialorder %v602_v35, 8.507059e+37 }
 0x15a   : >>> { %v2067_v30 = vpop.eup %2066 }
 0x15b   : >>> { %v594_v32 = vmul.f32 %v2067_v30, %v592_v27  ;;  %vm599_vm8 = vweird.f32 %v2067_v30 }
 0x15c   : >>> { %vm600_vm9 = vmor %vm598_vm7, %vm599_vm8  ;;  %vm872_vm7 = vcmp.eq.s32.totalorder %v868_v12, %v865_v16 }
 0x15d   : >>> { %v595_v34 = vsub.f32 1.0, %v594_v32 }
 0x15f   : >>> { %v596_v38 = vmul.f32 %v2067_v30, %v595_v34 }
 0x161   : >>> { %v597_v40 = vadd.f32 %v2067_v30, %v596_v38 }
 0x163   : >>> { %v601_v41 = vsel %vm600_vm9, %v2067_v30, %v597_v40  ;;  %vm831_vm9 = vcmp.eq.s32.totalorder %v826_v12, %v823_v16 }
 0x164   : >>> { %v606_v42 = vsel %vm603_vm10, %v605_v39, %v601_v41 }
 0x165   : >>> { %v613_v43 = vsel %vm612_vm11, 0.0, %v606_v42 }
 0x166   : >>> { %v614_v44 = vmul.f32 %v613_v43, %v613_v43  ;;  %v627_v45 = vmul.f32 %v613_v43, %v2297_v59 }
 0x168   : >>> { %v615_v46 = vadd.f32 1.0, %v614_v44  ;;  %v628_v47 = vsub.f32 %v553_v2, %v627_v45  ;;  %v630_v48 = vadd.f32 %v627_v45, %v557_v3 }
 0x16a   : >>> { %2068 = vrsqrt.f32 %v615_v46  ;;  %632 = vst [vmem:[%s631_s30] sm:$0xff] %v628_v47  ;;  %vm622_vm12 = vweird.f32 %v615_v46  ;;  %s685_s30 = smov [#allocation22] }
 0x16b   : >>> { %634 = vst [vmem:[%s633_s11] sm:$0xff] %v630_v48  ;;  %s652_s11 = smov [#allocation23] }
 0x170   : >>> { %v2069_v49 = vpop.eup %2068 }
 0x171   : >>> { %v617_v50 = vmul.f32 %v2069_v49, %v615_v46  ;;  %vm623_vm13 = vweird.f32 %v2069_v49 }
 0x172   : >>> { %vm624_vm14 = vmor %vm622_vm12, %vm623_vm13 }
 0x173   : >>> { %v618_v51 = vmul.f32 %v2069_v49, %v617_v50 }
 0x175   : >>> { %v619_v52 = vmul.f32 0.5, %v618_v51 }
 0x177   : >>> { %v620_v53 = vsub.f32 1.5, %v619_v52 }
 0x179   : >>> { %v621_v54 = vmul.f32 %v2069_v49, %v620_v53 }
 0x17b   : >>> { %v625_v55 = vsel %vm624_vm14, %v2069_v49, %v621_v54 }
 0x17c   : >>> { %636 = vst [vmem:[%s635_s15] sm:$0xff] %v625_v55  ;;  %v626_v56 = vmul.f32 %v625_v55, %v613_v43  ;;  %s667_s15 = smov [#allocation23] }
 0x17e   : >>> { %638 = vst [vmem:[%s637_s16] sm:$0xff] %v626_v56  ;;  %s683_s16 = smov [#allocation24] }
 0x183   : >>> { %v640_v58 = vld [vmem:[%s639_s17] ss:$0 sm:$0xff]  ;;  %s698_s17 = smov [#allocation24] }
 0x184   : >>> { %v655_v59 = vld [vmem:[%s654_s28] ss:$0 sm:$0xff]  ;;  %v649_v61 = vsel %vm648_vm15, %v640_v58, 0.0  ;;  %s701_s28 = smov [#allocation23]  ;;  %vm916_vm15 = vcmp.eq.s32.totalorder %v2230_v16, 0 }
 0x185   : >>> { %v664_v62 = vsel %vm663_vm0, %v655_v59, 0.0  ;;  %650 = vadd.xlane.f32.xlu0 %v649_v61  ;;  %v671_v63 = vld [vmem:[%s670_s22] ss:$0 sm:$0xff]  ;;  %s2310_s22 = smov [#allocation13]  ;;  %vm920_vm0 = vcmp.eq.s32.totalorder %v2230_v16, 1 }
 0x186   : >>> { %665 = vadd.xlane.f32.xlu1 %v664_v62  ;;  %v686_v0 = vld [vmem:[%s685_s30] ss:$0 sm:$0xff]  ;;  %v680_v1 = vsel %vm679_vm1, %v671_v63, 0.0  ;;  %s2312_s30 = smov [#allocation15]  ;;  %vm933_vm1 = vcmp.eq.s32.totalorder %v2230_v16, 12 }
 0x187   : >>> { %v695_v2 = vsel %vm694_vm2, %v686_v0, 0.0  ;;  %v710_v7 = vld [vmem:[%s2310_s22] sm:$0xff] }
 0x188   : >>> { %v712_v8 = vld [vmem:[%s2312_s30] sm:$0xff] }
 0x18d   : >>> { %681 = vadd.xlane.f32.xlu0 %v680_v1 }
 0x18e   : >>> { %696 = vadd.xlane.f32.xlu1 %v695_v2 }
 0x1f8   : >>> { %v651_v3 = vpop.xlane.xlu0 %650 }
 0x1f9   : >>> { %v666_v4 = vpop.xlane.xlu1 %665  ;;  %653 = vst [vmem:[%s652_s11] sm:$0xff] %v651_v3  ;;  %s703_s11 = smov [#allocation24] }
 0x1fa   : >>> { %1901 = vst [vmem:[%s667_s15 + $0x8] sm:$0xff] %v666_v4  ;;  %s1127_s15 = smov [#allocation24] }
 0x200   : >>> { %v682_v5 = vpop.xlane.xlu0 %681 }
 0x201   : >>> { %v697_v6 = vpop.xlane.xlu1 %696  ;;  %684 = vst [vmem:[%s683_s16] sm:$0xff] %v682_v5  ;;  %v702_v10 = vld [vmem:[%s701_s28] sm:$0xff]  ;;  %s2330_s16 = smov [#allocation12]  ;;  %s732_s28 = smov [#allocation24] }
 0x202   : >>> { %1902 = vst [vmem:[%s698_s17 + $0x8] sm:$0xff] %v697_v6  ;;  %v1126_v11 = vld [vmem:[%s1125_s21] sm:$0xff]  ;;  %s2333_s17 = smov [#allocation14]  ;;  %v716_v15 = vmul.f32 %v710_v7, %v702_v10  ;;  %v723_v17 = vmul.f32 %v712_v8, %v702_v10  ;;  %s729_s21 = smov [#allocation23] }
 0x203   : >>> { %v1137_v18 = vmul.f32 %v1133_v9, %v1126_v11  ;;  %v1140_v22 = vmul.f32 %v1134_v13, %v1126_v11  ;;  %v709_v26 = vld [vmem:[%s2330_s16] sm:$0xff]  ;;  %v1144_v27 = vmul.f32 %v1135_v14, %v1126_v11  ;;  %v1147_v36 = vmul.f32 %v1136_v21, %v1126_v11  ;;  %v1903_v45 = vld [vmem:[%s729_s21 + $0x8] sm:$0xff]  ;;  %s763_s21 = smov [#allocation21] }
 0x204   : >>> { %v711_v31 = vld [vmem:[%s2333_s17] sm:$0xff]  ;;  %v713_v39 = vmul.f32 %v709_v26, %v702_v10 }
 0x205   : >>> { %v720_v42 = vmul.f32 %v711_v31, %v702_v10 }
 0x209   : >>> { %v704_v19 = vld [vmem:[%s703_s11] sm:$0xff]  ;;  %s2342_s11 = smov [#allocation13]  ;;  %v1904_v46 = vld [vmem:[%s732_s28 + $0x8] sm:$0xff]  ;;  %s765_s28 = smov [#allocation22] }
 0x20a   : >>> { %v1128_v20 = vld [vmem:[%s1127_s15] sm:$0xff]  ;;  %v717_v23 = vmul.f32 %v712_v8, %v704_v19  ;;  %v722_v24 = vmul.f32 %v710_v7, %v704_v19  ;;  %v714_v35 = vmul.f32 %v711_v31, %v704_v19  ;;  %v719_v37 = vmul.f32 %v709_v26, %v704_v19  ;;  %s2345_s15 = smov [#allocation15] }
 0x20b   : >>> { %v1138_v25 = vmul.f32 %v1135_v14, %v1128_v20  ;;  %v1141_v28 = vmul.f32 %v1136_v21, %v1128_v20  ;;  %v1143_v29 = vmul.f32 %v1133_v9, %v1128_v20  ;;  %v1146_v30 = vmul.f32 %v1134_v13, %v1128_v20  ;;  %v2406_v26 = vld [vmem:[%s763_s21] ss:$0 sm:$0xff]  ;;  %s791_s21 = smov [#allocation12] }
 0x20c   : >>> { %v718_v32 = vsub.f32 %v716_v15, %v717_v23  ;;  %v724_v33 = vadd.f32 %v723_v17, %v722_v24  ;;  %v715_v43 = vsub.f32 %v713_v39, %v714_v35  ;;  %v721_v44 = vadd.f32 %v720_v42, %v719_v37 }
 0x20d   : >>> { %v1139_v34 = vsub.f32 %v1137_v18, %v1138_v25  ;;  %v1142_v38 = vsub.f32 %v1140_v22, %v1141_v28  ;;  %v1145_v40 = vadd.f32 %v1144_v27, %v1143_v29  ;;  %v1148_v41 = vadd.f32 %v1147_v36, %v1146_v30  ;;  %v2408_v27 = vld [vmem:[%s765_s28] ss:$0 sm:$0xff]  ;;  %s793_s28 = smov [#allocation13] }
 0x20e   : >>> { %726 = vst [vmem:[%s2310_s22] sm:$0xff] %v718_v32  ;;  %s1153_s22 = smov [#allocation23] }
 0x20f   : >>> { %728 = vst [vmem:[%s2312_s30] sm:$0xff] %v724_v33  ;;  %s1156_s30 = smov [#allocation24]  ;;  %v1961_v51 = vld [vmem:[%s1153_s22 + $0x8] sm:$0xff]  ;;  %s2390_s22 = smov [#allocation13] }
 0x210   : >>> { %1149 = vst [vmem:[%s2315_s14] sm:$0xff] %v1139_v34  ;;  %s2349_s14 = smov %s2222_s14  ;;  %v1962_v54 = vld [vmem:[%s1156_s30 + $0x8] sm:$0xff]  ;;  %s2396_s30 = smov [#allocation12] }
 0x211   : >>> { %1150 = vst [vmem:[%s2318_s24] sm:$0xff] %v1142_v38  ;;  %s2353_s24 = smov %s2237_s24 }
 0x212   : >>> { %1151 = vst [vmem:[%s2323_s25] sm:$0xff] %v1145_v40  ;;  %s2358_s25 = smov %s2242_s25 }
 0x213   : >>> { %1152 = vst [vmem:[%s2327_s26] sm:$0xff] %v1148_v41  ;;  %s2362_s26 = smov %s2248_s26 }
 0x214   : >>> { %725 = vst [vmem:[%s2330_s16] sm:$0xff] %v715_v43  ;;  %s2366_s16 = smov [#allocation12] }
 0x215   : >>> { %v1906_v47 = vld [vmem:[%s2342_s11 + $0x8] sm:$0x1f]  ;;  %727 = vst [vmem:[%s2333_s17] sm:$0xff] %v721_v44  ;;  %s739_s17 = smov [#allocation14] }
 0x216   : >>> { %v1908_v48 = vld [vmem:[%s2345_s15 + $0x8] sm:$0x1f]  ;;  %v750_v49 = vmul.f32 %v1906_v47, %v1903_v45  ;;  %v756_v50 = vmul.f32 %v1906_v47, %v1904_v46 }
 0x217   : >>> { %v751_v52 = vmul.f32 %v1908_v48, %v1904_v46  ;;  %v757_v53 = vmul.f32 %v1908_v48, %v1903_v45  ;;  %v1963_v55 = vld [vmem:[%s2349_s14 + $0x8] sm:$0x1f] }
 0x218   : >>> { %v1964_v56 = vld [vmem:[%s2353_s24 + $0x8] sm:$0x1f]  ;;  %v1171_v57 = vmul.f32 %v1963_v55, %v1961_v51  ;;  %v1177_v58 = vmul.f32 %v1963_v55, %v1962_v54 }
 0x219   : >>> { %v752_v59 = vsub.f32 %v750_v49, %v751_v52  ;;  %v758_v60 = vadd.f32 %v757_v53, %v756_v50  ;;  %v1965_v61 = vld [vmem:[%s2358_s25 + $0x8] sm:$0x1f]  ;;  %v1174_v62 = vmul.f32 %v1964_v56, %v1961_v51  ;;  %v1180_v63 = vmul.f32 %v1964_v56, %v1962_v54 }
 0x21a   : >>> { %v1966_v0 = vld [vmem:[%s2362_s26 + $0x8] sm:$0x1f]  ;;  %v1172_v1 = vmul.f32 %v1965_v61, %v1962_v54  ;;  %v1178_v2 = vmul.f32 %v1965_v61, %v1961_v51 }
 0x21b   : >>> { %1910 = vst [vmem:[%s2342_s11 + $0x8] sm:$0x1f] %v752_v59  ;;  %v1175_v3 = vmul.f32 %v1966_v0, %v1962_v54  ;;  %v1181_v4 = vmul.f32 %v1966_v0, %v1961_v51  ;;  %v1905_v5 = vld [vmem:[%s2366_s16 + $0x8] sm:$0x1f]  ;;  %s2387_s11 = smov [#allocation15] }
 0x21c   : >>> { %1912 = vst [vmem:[%s2345_s15 + $0x8] sm:$0x1f] %v758_v60  ;;  %v1173_v6 = vsub.f32 %v1171_v57, %v1172_v1  ;;  %v1179_v7 = vadd.f32 %v1178_v2, %v1177_v58  ;;  %v1907_v8 = vld [vmem:[%s739_s17 + $0x8] sm:$0x1f]  ;;  %v753_v9 = vmul.f32 %v1905_v5, %v1904_v46  ;;  %v747_v10 = vmul.f32 %v1905_v5, %v1903_v45  ;;  %s2394_s15 = smov [#allocation14] }
 0x21d   : >>> { %v1176_v11 = vsub.f32 %v1174_v62, %v1175_v3  ;;  %v1182_v13 = vadd.f32 %v1181_v4, %v1180_v63  ;;  %v754_v14 = vmul.f32 %v1907_v8, %v1903_v45  ;;  %v748_v15 = vmul.f32 %v1907_v8, %v1904_v46 }
 0x21e   : >>> { %1967 = vst [vmem:[%s2349_s14 + $0x8] sm:$0x1f] %v1173_v6  ;;  %s2376_s14 = smov %s2222_s14 }
 0x21f   : >>> { %1968 = vst [vmem:[%s2353_s24 + $0x8] sm:$0x1f] %v1176_v11  ;;  %v755_v17 = vadd.f32 %v754_v14, %v753_v9  ;;  %v749_v18 = vsub.f32 %v747_v10, %v748_v15  ;;  %s2383_s24 = smov %s2237_s24 }
 0x220   : >>> { %1969 = vst [vmem:[%s2358_s25 + $0x8] sm:$0x1f] %v1179_v7  ;;  %s2380_s25 = smov %s2242_s25 }
 0x221   : >>> { %1970 = vst [vmem:[%s2362_s26 + $0x8] sm:$0x1f] %v1182_v13  ;;  %s2419_s26 = smov %s2248_s26 }
 0x222   : >>> { %1911 = vst [vmem:[%s739_s17 + $0x8] sm:$0x1f] %v755_v17  ;;  %v772_v29 = vld [vmem:[%s2390_s22] sm:$0xff]  ;;  %s797_s17 = smov [#allocation15]  ;;  %v878_v17 = vadd.s32 8, %v868_v12  ;;  %v889_v12 = vmov %v2225_v12 }
 0x223   : >>> { %1909 = vst [vmem:[%s2366_s16 + $0x8] sm:$0x1f] %v749_v18  ;;  %v774_v28 = vld [vmem:[%s2387_s11] sm:$0xff]  ;;  %v776_v48 = vmul.f32 %v772_v29, %v2408_v27  ;;  %v779_v53 = vmul.f32 %v772_v29, %v2406_v26  ;;  %s795_s16 = smov [#allocation14]  ;;  %v838_v18 = vadd.s32 8, %v826_v12  ;;  %v848_v12 = vmov %v2225_v12 }
 0x224   : >>> { %v782_v46 = vmul.f32 %v774_v28, %v2408_v27  ;;  %v785_v47 = vmul.f32 %v774_v28, %v2406_v26  ;;  %vm879_vm8 = vcmp.eq.s32.totalorder %v878_v17, %v865_v16  ;;  %v845_v16 = vmov %v2230_v16 }
 0x225   : >>> { %v1189_v19 = vld [vmem:[%s2376_s14] ss:$0 sm:$0xff]  ;;  %v1972_v21 = vld [vmem:[%s2376_s14 + $0x7] ss:$0 sm:$0xff]  ;;  %v1973_v23 = vld [vmem:[%s2376_s14 + $0x7] sm:$0x1e]  ;;  %vm839_vm10 = vcmp.eq.s32.totalorder %v838_v18, %v823_v16  ;;  %vm894_vm11 = vcmp.eq.s32.totalorder %v889_v12, %v886_v16  ;;  %vm852_vm13 = vcmp.eq.s32.totalorder %v848_v12, %v845_v16 }
 0x226   : >>> { %v1971_v20 = vld [vmem:[%s2376_s14 - $0x1] sm:$0xfe]  ;;  %v1974_v24 = vld [vmem:[%s2376_s14 + $0xc] ss:$0 sm:$0xff]  ;;  %v1207_v30 = vsel %vm1045_vm3, %v1972_v21, %v1973_v23  ;;  %v1982_v39 = vld [vmem:[%s2383_s24 + $0x7] ss:$0 sm:$0xff] }
 0x227   : >>> { %v1196_v22 = vsel %vm1045_vm3, %v1189_v19, %v1971_v20  ;;  %v1233_v25 = vld [vmem:[%s2383_s24] ss:$0 sm:$0xff]  ;;  %v1977_v32 = vld [vmem:[%s2380_s25 + $0x9] sm:$0xf]  ;;  %v1978_v33 = vld [vmem:[%s2380_s25 + $0x8] ss:$0 sm:$0xff] }
 0x228   : >>> { %1199 = vst [vmem:[%s2376_s14] sm:$0xff] %v1196_v22  ;;  %v1211_v31 = vld [vmem:[%s2380_s25] ss:$0 sm:$0xff]  ;;  %v1220_v34 = vsel %vm1069_vm5, %v1974_v24, %v1977_v32  ;;  %v1980_v35 = vld [vmem:[%s2380_s25 + $0x1] sm:$0x7f]  ;;  %v1983_v40 = vld [vmem:[%s2383_s24 + $0x7] sm:$0x1e] }
 0x229   : >>> { %1975 = vst [vmem:[%s2376_s14 + $0x8] sm:$0x1f] %v1207_v30  ;;  %v1981_v36 = vld [vmem:[%s2383_s24 - $0x1] sm:$0xfe]  ;;  %v1228_v37 = vsel %vm1077_vm6, %v1978_v33, %v1980_v35  ;;  %v1251_v41 = vsel %vm1045_vm3, %v1982_v39, %v1983_v40  ;;  %v1984_v42 = vld [vmem:[%s2383_s24 + $0xc] ss:$0 sm:$0xff] }
 0x22a   : >>> { %1976 = vst [vmem:[%s2376_s14 + $0x1] sm:$0x1] %v1211_v31  ;;  %v1240_v38 = vsel %vm1045_vm3, %v1233_v25, %v1981_v36  ;;  %v1987_v43 = vld [vmem:[%s2419_s26 + $0x9] sm:$0xf]  ;;  %v1988_v44 = vld [vmem:[%s2419_s26 + $0x8] ss:$0 sm:$0xff] }
 0x22b   : >>> { %1979 = vst [vmem:[%s2380_s25 + $0x8] sm:$0x1f] %v1220_v34  ;;  %v1990_v45 = vld [vmem:[%s2419_s26 + $0x1] sm:$0x7f]  ;;  %v1264_v49 = vsel %vm1069_vm5, %v1984_v42, %v1987_v43  ;;  %v1255_v54 = vld [vmem:[%s2419_s26] ss:$0 sm:$0xff] }
 0x22c   : >>> { %1230 = vst [vmem:[%s2380_s25] sm:$0xff] %v1228_v37  ;;  %v1272_v50 = vsel %vm1077_vm6, %v1988_v44, %v1990_v45  ;;  %v773_v51 = vld [vmem:[%s2394_s15] sm:$0xff]  ;;  %v901_v19 = vadd.s32 8, %v889_v12  ;;  %v858_v21 = vadd.s32 8, %v848_v12  ;;  %v343_v12 = vmov (%p468_p9), %v2225_v12 }
 0x22d   : >>> { %1243 = vst [vmem:[%s2383_s24] sm:$0xff] %v1240_v38  ;;  %v771_v52 = vld [vmem:[%s2396_s30] sm:$0xff]  ;;  %v781_v55 = vmul.f32 %v773_v51, %v2406_v26  ;;  %v784_v56 = vmul.f32 %v773_v51, %v2408_v27  ;;  %v372_v12 = vmov (%p468_p9), %v2225_v12 }
 0x22e   : >>> { %1985 = vst [vmem:[%s2383_s24 + $0x8] sm:$0x1f] %v1251_v41  ;;  %v775_v57 = vmul.f32 %v771_v52, %v2406_v26  ;;  %v778_v58 = vmul.f32 %v771_v52, %v2408_v27  ;;  %vm902_vm12 = vcmp.eq.s32.totalorder %v901_v19, %v886_v16  ;;  %vm859_vm14 = vcmp.eq.s32.totalorder %v858_v21, %v845_v16 }
 0x22f   : >>> { %1986 = vst [vmem:[%s2383_s24 + $0x1] sm:$0x1] %v1255_v54  ;;  %v783_v59 = vsub.f32 %v781_v55, %v782_v46  ;;  %v786_v60 = vadd.f32 %v785_v47, %v784_v56  ;;  %v340_v16 = vmov (%p468_p9), %v2230_v16 }
 0x230   : >>> { %1989 = vst [vmem:[%s2419_s26 + $0x8] sm:$0x1f] %v1264_v49  ;;  %v777_v61 = vsub.f32 %v775_v57, %v776_v48  ;;  %v780_v62 = vadd.f32 %v779_v53, %v778_v58  ;;  %v369_v16 = vmov (%p468_p9), %v2230_v16  ;;  %vm355_vm2 = vcmp.eq.s32.totalorder (%p468_p9), %v343_v12, %v340_v16 }
 0x231   : >>> { %1274 = vst [vmem:[%s2419_s26] sm:$0xff] %v1272_v50  ;;  %v392_v16 = vmov (%p468_p9), %v2230_v16 }
 0x232   : >>> { %789 = vst [vmem:[%s2394_s15] sm:$0xff] %v783_v59  ;;  %s883_s15 = smov [#allocation20] }
 0x233   : >>> { %790 = vst [vmem:[%s2387_s11] sm:$0xff] %v786_v60  ;;  %s820_s11 = smov [#allocation19]  ;;  %v890_v24 = vld [vmem:[%s883_s15] ss:$0 sm:$0xff]  ;;  %s2496_s15 = smov [#allocation15] }
 0x234   : >>> { %787 = vst [vmem:[%s2396_s30] sm:$0xff] %v777_v61  ;;  %s2480_s30 = smov [#allocation15]  ;;  %v827_v20 = vld [vmem:[%s820_s11] ss:$0 sm:$0xff]  ;;  %s2491_s11 = smov [#allocation12] }
 0x235   : >>> { %788 = vst [vmem:[%s2390_s22] sm:$0xff] %v780_v62  ;;  %s862_s22 = smov [#allocation14] }
 0x239   : >>> { %v1915_v63 = vld [vmem:[%s795_s16 + $0x8] sm:$0x1f] }
 0x23a   : >>> { %v1916_v0 = vld [vmem:[%s797_s17 + $0x8] sm:$0x1f]  ;;  %v809_v1 = vmul.f32 %v1915_v63, %v2406_v26  ;;  %v812_v2 = vmul.f32 %v1915_v63, %v2408_v27 }
 0x23b   : >>> { %v810_v3 = vmul.f32 %v1916_v0, %v2408_v27  ;;  %v813_v4 = vmul.f32 %v1916_v0, %v2406_v26  ;;  %v1913_v5 = vld [vmem:[%s791_s21 + $0x8] sm:$0x1f] }
 0x23c   : >>> { %v1914_v6 = vld [vmem:[%s793_s28 + $0x8] sm:$0x1f]  ;;  %v803_v7 = vmul.f32 %v1913_v5, %v2406_v26  ;;  %v806_v8 = vmul.f32 %v1913_v5, %v2408_v27 }
 0x23d   : >>> { %v811_v9 = vsub.f32 %v809_v1, %v810_v3  ;;  %v814_v10 = vadd.f32 %v813_v4, %v812_v2  ;;  %v804_v11 = vmul.f32 %v1914_v6, %v2408_v27  ;;  %v807_v13 = vmul.f32 %v1914_v6, %v2406_v26 }
 0x23f   : >>> { %1919 = vst [vmem:[%s795_s16 + $0x8] sm:$0x1f] %v811_v9  ;;  %v805_v14 = vsub.f32 %v803_v7, %v804_v11  ;;  %v808_v15 = vadd.f32 %v807_v13, %v806_v8  ;;  %s819_s16 = smov [#allocation12] }
 0x240   : >>> { %1920 = vst [vmem:[%s797_s17 + $0x8] sm:$0x1f] %v814_v10  ;;  %s842_s17 = smov [#allocation13] }
 0x241   : >>> { %1917 = vst [vmem:[%s791_s21 + $0x8] sm:$0x1f] %v805_v14  ;;  %s2486_s21 = smov [#allocation14] }
 0x242   : >>> { %1918 = vst [vmem:[%s793_s28 + $0x8] sm:$0x1f] %v808_v15  ;;  %s2489_s28 = smov [#allocation12] }
 0x246   : >>> { %v869_v22 = vld [vmem:[%s862_s22] sm:$0xff]  ;;  %v1925_v23 = vld [vmem:[%s862_s22 + $0x8] sm:$0x1f] }
 0x247   : >>> { %v873_v25 = vsel %vm872_vm7, 0.0, %v869_v22  ;;  %v880_v26 = vsel %vm879_vm8, 0.0, %v1925_v23  ;;  %v891_v27 = vld [vmem:[%s2480_s30] sm:$0xff]  ;;  %v1927_v28 = vld [vmem:[%s2480_s30 + $0x8] sm:$0x1f] }
 0x248   : >>> { %874 = vst [vmem:[%s862_s22] sm:$0xff] %v873_v25  ;;  %v828_v29 = vld [vmem:[%s819_s16] sm:$0xff]  ;;  %v1921_v30 = vld [vmem:[%s819_s16 + $0x8] sm:$0x1f]  ;;  %v895_v33 = vsel %vm894_vm11, %v890_v24, %v891_v27  ;;  %v903_v36 = vsel %vm902_vm12, %v890_v24, %v1927_v28 }
 0x249   : >>> { %1926 = vst [vmem:[%s862_s22 + $0x8] sm:$0x1f] %v880_v26  ;;  %v832_v31 = vsel %vm831_vm9, %v827_v20, %v828_v29  ;;  %v840_v32 = vsel %vm839_vm10, %v827_v20, %v1921_v30  ;;  %v849_v34 = vld [vmem:[%s842_s17] sm:$0xff]  ;;  %v1923_v35 = vld [vmem:[%s842_s17 + $0x8] sm:$0x1f]  ;;  %s2111_s22 = smov 1  }
 0x24a   : >>> { %833 = vst [vmem:[%s819_s16] sm:$0xff] %v832_v31  ;;  %v853_v37 = vsel %vm852_vm13, 0.0, %v849_v34  ;;  %v860_v38 = vsel %vm859_vm14, 0.0, %v1923_v35 }
 0x24b   : >>> { %1922 = vst [vmem:[%s819_s16 + $0x8] sm:$0x1f] %v840_v32  ;;  %s2498_s16 = smov [#allocation14] }
 0x24c   : >>> { %896 = vst [vmem:[%s2480_s30] sm:$0xff] %v895_v33 }
 0x24d   : >>> { %1928 = vst [vmem:[%s2480_s30 + $0x8] sm:$0x1f] %v903_v36  ;;  %s2500_s30 = smov [#allocation13] }
 0x24e   : >>> { %854 = vst [vmem:[%s842_s17] sm:$0xff] %v853_v37 }
 0x24f   : >>> { %1924 = vst [vmem:[%s842_s17 + $0x8] sm:$0x1f] %v860_v38  ;;  %s2505_s17 = smov [#allocation15] }
 0x250   : >>> { %v977_v39 = vld [vmem:[%s2486_s21] sm:$0xff]  ;;  %v1937_v43 = vld [vmem:[%s2498_s16 + $0x8] sm:$0x1f] }
 0x251   : >>> { %978 = vrot.lane.b32.xlu1 %v977_v39, %s2111_s22  ;;  %v1936_v6 = vld [vmem:[%s2498_s16 + $0x8] sm:$0x1f] }
 0x252   : >>> { %v1931_v40 = vld [vmem:[%s2489_s28 + $0x8] sm:$0x1f]  ;;  %v911_v41 = vld [vmem:[%s2491_s11] sm:$0xff] }
 0x253   : >>> { %944 = vrot.lane.b32.xlu0 %v1931_v40, %s2111_s22  ;;  %912 = vrot.lane.b32.xlu2 %v911_v41, %s2111_s22  ;;  %v1930_v54 = vld [vmem:[%s2489_s28 + $0x8] sm:$0x1f] }
 0x254   : >>> { %v994_v42 = vld [vmem:[%s2496_s15] sm:$0xff]  ;;  %v1935_v45 = vld [vmem:[%s2505_s17 + $0x8] sm:$0x1f] }
 0x255   : >>> { %v1938_v48 = vld [vmem:[%s2505_s17 + $0x8] sm:$0x1f] }
 0x256   : >>> { %v907_v44 = vld [vmem:[%s2500_s30] sm:$0xff]  ;;  %v1929_v46 = vld [vmem:[%s2508_s0 + $0x8] sm:$0x1f] }
 0x257   : >>> { %v1932_v47 = vld [vmem:[%s2508_s0 + $0x8] sm:$0x1f] }
 0x259   : >>> { %995 = vrot.lane.b32.xlu1 %v994_v42, %s2112_s27 }
 0x25b   : >>> { %1010 = vrot.lane.b32.xlu0 %v1937_v43, %s2111_s22  ;;  %908 = vrot.lane.b32.xlu2 %v907_v44, %s2111_s22 }
 0x263   : >>> { %1006 = vrot.lane.b32.xlu0 %v1935_v45, %s2111_s22  ;;  %929 = vrot.lane.b32.xlu2 %v907_v44, %s2112_s27 }
 0x26b   : >>> { %940 = vrot.lane.b32.xlu2 %v1929_v46, %s2111_s22 }
 0x273   : >>> { %974 = vrot.lane.b32.xlu2 %v994_v42, %s2111_s22  ;;  %s344_s22 = smov (%p468_p9), [#allocation12] }
 0x27b   : >>> { %961 = vrot.lane.b32.xlu2 %v1932_v47, %s2112_s27 }
 0x283   : >>> { %1027 = vrot.lane.b32.xlu2 %v1938_v48, %s2112_s27  ;;  %s2536_s27 = smov [#allocation12] }
 0x2ad   : >>> { %v913_v49 = vpop.permute.xlu2 %912 }
 0x2ae   : >>> { %v917_v50 = vsel %vm916_vm15, %v911_v41, %v913_v49 }
 0x2b5   : >>> { %v909_v51 = vpop.permute.xlu2 %908 }
 0x2b6   : >>> { %v921_v52 = vsel %vm920_vm0, %v909_v51, %v917_v50 }
 0x2b7   : >>> { %v927_v53 = vsel %vm1717_vm4, %v921_v52, 0.0 }
 0x2b8   : >>> { %967 = vst [vmem:[%s2491_s11] sm:$0xff] %v927_v53  ;;  %s1275_s11 = sadd.s32 (%p468_p9), 1, %s2104_s20  }
 0x2b9   : >> { %p464_p10 = scmp.ge.s32.totalorder (%p468_p9), %s1275_s11, 15  ;;  %s2687_s20 = smov (%p468_p9), %s1275_s11 }
 0x2bd   : >>> { %v930_v55 = vpop.permute.xlu2 %929 }
 0x2be   : >>> { %v934_v56 = vsel %vm933_vm1, %v911_v41, %v930_v55 }
 0x2bf   : >>> { %968 = vst [vmem:[%s2500_s30] sm:$0xff] %v934_v56  ;;  %s419_s30 = smov (%p468_p9), [#allocation15] }
 0x2c3   : >>> { %v979_v57 = vpop.permute.xlu1 %978 }
 0x2c4   : >>> { %v983_v1 = vsel %vm916_vm15, %v977_v39, %v979_v57 }
 0x2c5   : >>> { %v945_v58 = vpop.permute.xlu0 %944  ;;  %v941_v59 = vpop.permute.xlu2 %940 }
 0x2c6   : >>> { %v949_v60 = vsel %vm916_vm15, %v1931_v40, %v945_v58 }
 0x2c7   : >>> { %v953_v61 = vsel %vm920_vm0, %v941_v59, %v949_v60 }
 0x2c8   : >>> { %v959_v62 = vsel %vm1717_vm4, %v953_v61, 0.0  ;;  %v362_v61 = vadd.s32 (%p468_p9), 8, %v343_v12  ;;  %v395_v12 = vmov (%p468_p9), %v2225_v12 }
 0x2c9   : >>> { %1933 = vst [vmem:[%s2489_s28 + $0x8] sm:$0x1f] %v959_v62  ;;  %s1038_s28 = smov [#allocation14]  ;;  %v418_v12 = vmov (%p468_p9), %v2225_v12 }
 0x2cb   : >>> { %v996_v63 = vpop.permute.xlu1 %995 }
 0x2cc   : >>> { %v1000_v0 = vsel %vm933_vm1, %v977_v39, %v996_v63 }
 0x2cd   : >>> { %1034 = vst [vmem:[%s2496_s15] sm:$0xff] %v1000_v0  ;;  %v1011_v2 = vpop.permute.xlu0 %1010  ;;  %v975_v3 = vpop.permute.xlu2 %974  ;;  %s373_s15 = smov (%p468_p9), [#allocation13] }
 0x2ce   : >>> { %v987_v4 = vsel %vm920_vm0, %v975_v3, %v983_v1  ;;  %v1015_v15 = vsel %vm916_vm15, %v1937_v43, %v1011_v2 }
 0x2cf   : >>> { %v993_v5 = vsel %vm1717_vm4, %v987_v4, 0.0 }
 0x2d0   : >>> { %v1039_v7 = vld [vmem:[%s2536_s27] ss:$0 sm:$0xff]  ;;  %v1942_v9 = vld [vmem:[%s2536_s27 + $0x7] ss:$0 sm:$0xff]  ;;  %1033 = vst [vmem:[%s2486_s21] sm:$0xff] %v993_v5  ;;  %v1943_v11 = vld [vmem:[%s2536_s27 + $0x7] sm:$0x1e] }
 0x2d1   : >>> { %v1941_v8 = vld [vmem:[%s2536_s27 - $0x1] sm:$0xfe]  ;;  %v1944_v13 = vld [vmem:[%s2536_s27 + $0xc] ss:$0 sm:$0xff]  ;;  %v1057_v14 = vsel %vm1045_vm3, %v1942_v9, %v1943_v11  ;;  %s1081_s21 = smov [#allocation13] }
 0x2d2   : >>> { %v1046_v10 = vsel %vm1045_vm3, %v1039_v7, %v1941_v8  ;;  %1945 = vst [vmem:[%s2536_s27 + $0x8] sm:$0x1f] %v1057_v14  ;;  %v439_v14 = vadd.s32 (%p468_p9), 8, %v418_v12 }
 0x2d3   : >>> { %1049 = vst [vmem:[%s2536_s27] sm:$0xff] %v1046_v10 }
 0x2d5   : >>> { %v1007_v17 = vpop.permute.xlu0 %1006  ;;  %v962_v18 = vpop.permute.xlu2 %961 }
 0x2d6   : >>> { %v1019_v19 = vsel %vm920_vm0, %v1007_v17, %v1015_v15  ;;  %v966_v20 = vsel %vm933_vm1, %v1930_v54, %v962_v18 }
 0x2d7   : >>> { %v1025_v21 = vsel %vm1717_vm4, %v1019_v19, 0.0  ;;  %1934 = vst [vmem:[%s2508_s0 + $0x8] sm:$0x1f] %v966_v20  ;;  %s1082_s0 = smov [#allocation15] }
 0x2d8   : >>> { %1939 = vst [vmem:[%s2498_s16 + $0x8] sm:$0x1f] %v1025_v21  ;;  %s396_s16 = smov (%p468_p9), [#allocation14] }
 0x2dd   : >>> { %v1028_v22 = vpop.permute.xlu2 %1027 }
 0x2de   : >>> { %v1083_v23 = vld [vmem:[%s1081_s21] ss:$0 sm:$0xff]  ;;  %v1952_v25 = vld [vmem:[%s1081_s21 + $0x7] ss:$0 sm:$0xff]  ;;  %v1953_v27 = vld [vmem:[%s1081_s21 + $0x7] sm:$0x1e]  ;;  %v1032_v34 = vsel %vm933_vm1, %v1936_v6, %v1028_v22 }
 0x2df   : >>> { %v1951_v24 = vld [vmem:[%s1081_s21 - $0x1] sm:$0xfe]  ;;  %v1954_v28 = vld [vmem:[%s1081_s21 + $0xc] ss:$0 sm:$0xff]  ;;  %v1101_v30 = vsel %vm1045_vm3, %v1952_v25, %v1953_v27  ;;  %v1948_v32 = vld [vmem:[%s1038_s28 + $0x8] ss:$0 sm:$0xff] }
 0x2e0   : >>> { %v1090_v26 = vsel %vm1045_vm3, %v1083_v23, %v1951_v24  ;;  %v1061_v29 = vld [vmem:[%s1038_s28] ss:$0 sm:$0xff]  ;;  %v1947_v31 = vld [vmem:[%s1038_s28 + $0x9] sm:$0xf]  ;;  %v1950_v33 = vld [vmem:[%s1038_s28 + $0x1] sm:$0x7f]  ;;  %vm363_vm3 = vcmp.eq.s32.totalorder (%p468_p9), %v362_v61, %v340_v16  ;;  %v415_v16 = vmov (%p468_p9), %v2230_v16 }
 0x2e1   : >>> { %1093 = vst [vmem:[%s1081_s21] sm:$0xff] %v1090_v26  ;;  %v1078_v35 = vsel %vm1077_vm6, %v1948_v32, %v1950_v33  ;;  %v1070_v36 = vsel %vm1069_vm5, %v1944_v13, %v1947_v31 }
 0x2e2   : >>> { %1955 = vst [vmem:[%s1081_s21 + $0x8] sm:$0x1f] %v1101_v30 }
 0x2e3   : >>> { %1080 = vst [vmem:[%s1038_s28] sm:$0xff] %v1078_v35 }
 0x2e4   : >>> { %1940 = vst [vmem:[%s2505_s17 + $0x8] sm:$0x1f] %v1032_v34 }
 0x2e5   : >>> { %1946 = vst [vmem:[%s2536_s27 + $0x1] sm:$0x1] %v1061_v29 }
 0x2e6   : >>> { %1949 = vst [vmem:[%s1038_s28 + $0x8] sm:$0x1f] %v1070_v36 }
 0x2ea   : >> { %470 = sbr.rel (!%p468_p9) target bundleno = 263 (0x107), region = 443 }
 0x2eb   : >>> { %v1105_v37 = vld [vmem:[%s1082_s0] ss:$0 sm:$0xff]  ;;  %v1957_v38 = vld [vmem:[%s1082_s0 + $0x9] sm:$0xf]  ;;  %v1958_v39 = vld [vmem:[%s1082_s0 + $0x8] ss:$0 sm:$0xff] }
 0x2ec   : >>> { %1956 = vst [vmem:[%s1081_s21 + $0x1] sm:$0x1] %v1105_v37  ;;  %v1114_v40 = vsel %vm1069_vm5, %v1954_v28, %v1957_v38  ;;  %v1960_v41 = vld [vmem:[%s1082_s0 + $0x1] sm:$0x7f]  ;;  %v1991_v44 = vld [vmem:[%s344_s22 + $0x8] sm:$0x1f] (%p468_p9)  ;;  %vm430_vm5 = vcmp.eq.s32.totalorder (%p468_p9), %v418_v12, %v415_v16 }
 0x2ed   : >>> { %1959 = vst [vmem:[%s1082_s0 + $0x8] sm:$0x1f] %v1114_v40  ;;  %v1122_v42 = vsel %vm1077_vm6, %v1958_v39, %v1960_v41  ;;  %v350_v43 = vld [vmem:[%s344_s22] sm:$0xff] (%p468_p9)  ;;  %v359_v47 = vsel (%p468_p9), %vm1717_vm4, %v1991_v44, 0.0  ;;  %v1993_v55 = vld [vmem:[%s396_s16 + $0x8] sm:$0x1f] (%p468_p9)  ;;  %vm440_vm6 = vcmp.eq.s32.totalorder (%p468_p9), %v439_v14, %v415_v16 }
 0x2ee   : >>> { %1124 = vst [vmem:[%s1082_s0] sm:$0xff] %v1122_v42  ;;  %v351_v46 = vsel (%p468_p9), %vm1717_vm4, %v350_v43, 0.0  ;;  %v402_v50 = vld [vmem:[%s396_s16] sm:$0xff] (%p468_p9)  ;;  %v360_v52 = vmul.f32 (%p468_p9), %v359_v47, %v359_v47  ;;  %v409_v60 = vsel (%p468_p9), %vm1717_vm4, %v1993_v55, 0.0 }
 0x2ef   : >> { %v352_v51 = vmul.f32 %v351_v46, %v351_v46  ;;  %v403_v56 = vsel %vm1717_vm4, %v402_v50, 0.0  ;;  %v410_v4 = vmul.f32 %v409_v60, %v409_v60 }
 0x2f0   : >> { %v404_v63 = vmul.f32 %v403_v56, %v403_v56  ;;  %v364_v5 = vsel %vm363_vm3, 0.0, %v360_v52 }
 0x2f1   : >> { %v366_v57 = vadd.f32 %v360_v52, %v352_v51  ;;  %v356_v1 = vsel %vm355_vm2, 0.0, %v352_v51 }
 0x2f2   : >> { %v365_v7 = vadd.f32 %v364_v5, %v356_v1 }
 0x2f3   : >> { %v379_v45 = vld [vmem:[%s373_s15] sm:$0xff]  ;;  %v1992_v49 = vld [vmem:[%s373_s15 + $0x8] sm:$0x1f] }
 0x2f4   : >> { %v380_v48 = vsel %vm1717_vm4, %v379_v45, 0.0  ;;  %v386_v54 = vsel %vm1717_vm4, %v1992_v49, 0.0 }
 0x2f5   : >> { %v381_v53 = vmul.f32 %v380_v48, %v380_v48  ;;  %v387_v58 = vmul.f32 %v386_v54, %v386_v54  ;;  %v425_v59 = vld [vmem:[%s419_s30] sm:$0xff]  ;;  %v1994_v0 = vld [vmem:[%s419_s30 + $0x8] sm:$0x1f] }
 0x2f6   : >> { %v426_v2 = vsel %vm1717_vm4, %v425_v59, 0.0  ;;  %v436_v6 = vsel %vm1717_vm4, %v1994_v0, 0.0 }
 0x2f7   : >> { %v383_v62 = vadd.f32 %v381_v53, %v366_v57  ;;  %v427_v9 = vmul.f32 %v426_v2, %v426_v2  ;;  %v382_v10 = vadd.f32 %v381_v53, %v365_v7  ;;  %v437_v13 = vmul.f32 %v436_v6, %v436_v6 }
 0x2f9   : >> { %v389_v3 = vadd.f32 %v387_v58, %v383_v62  ;;  %v388_v15 = vadd.f32 %v387_v58, %v382_v10  ;;  %v431_v20 = vsel %vm430_vm5, 0.0, %v427_v9  ;;  %v441_v23 = vsel %vm440_vm6, 0.0, %v437_v13 }
 0x2fb   : >> { %v406_v8 = vadd.f32 %v404_v63, %v389_v3  ;;  %v405_v18 = vadd.f32 %v404_v63, %v388_v15 }
 0x2fd   : >> { %v412_v11 = vadd.f32 %v410_v4, %v406_v8  ;;  %v411_v21 = vadd.f32 %v410_v4, %v405_v18 }
 0x2ff   : >> { %v433_v17 = vadd.f32 %v427_v9, %v412_v11  ;;  %v432_v22 = vadd.f32 %v431_v20, %v411_v21 }
 0x301   : >> { %v443_v19 = vadd.f32 %v437_v13, %v433_v17  ;;  %v442_v24 = vadd.f32 %v441_v23, %v432_v22 }
 0x303   : >> { %444 = vadd.xlane.f32.xlu0 %v443_v19 }
 0x30b   : >> { %452 = vadd.xlane.f32.xlu0 %v442_v24 }
 0x376   : >> { %v445_v25 = vpop.xlane.xlu0 %444 }
 0x377   : >> { %v446_v26 = vrot.slane %v445_v25, 4 }
 0x379   : >> { %v447_v27 = vadd.f32 %v446_v26, %v445_v25 }
 0x37b   : >> { %v448_v28 = vrot.slane %v447_v27, 2 }
 0x37d   : >> { %v449_v32 = vadd.f32 %v448_v28, %v447_v27 }
 0x37e   : >> { %v453_v29 = vpop.xlane.xlu0 %452 }
 0x37f   : >> { %v454_v30 = vrot.slane %v453_v29, 4  ;;  %v450_v35 = vrot.slane %v449_v32, 1 }
 0x381   : >> { %v455_v31 = vadd.f32 %v454_v30, %v453_v29  ;;  %v451_v38 = vadd.f32 %v450_v35, %v449_v32 }
 0x383   : >> { %v456_v33 = vrot.slane %v455_v31, 2 }
 0x385   : >> { %v457_v34 = vadd.f32 %v456_v33, %v455_v31 }
 0x387   : >> { %v458_v36 = vrot.slane %v457_v34, 1 }
 0x389   : >> { %v459_v37 = vadd.f32 %v458_v36, %v457_v34 }
 0x38b   : >> { %2015 = vpush %v459_v37 }
 0x38c   : >> { %2017 = vpush %v451_v38 }
 0x3bc   : >> { %s2016_s23 = spop %2015 }
 0x3bd   : >> { %s2018_s17 = spop %2017 }
 0x3be   : >> { %s462_s27 = smul.f32 1e-10, %s2018_s17 }
 0x3c0   : >> { %p463_p11 = scmp.le.f32.partialorder %s2016_s23, %s462_s27 }
 0x3c2   : >> { %p465_p12 = por %p464_p10, %p463_p11 }
 0x3c4   : > { %1277 = sbr.rel (!%p465_p12) target bundleno = 262 (0x106), region = 454 }
 0x3c9 PF: > { %s1282_s21 = smov [#allocation12]  ;;  %v1286_v16 = vmov %v2230_v16  ;;  %v1289_v12 = vmov %v2225_v12  ;;  %s1308_s20 = smov [#allocation15] }
 0x3ca   : > { %v1312_v16 = vmov %v2230_v16  ;;  %v1315_v12 = vmov %v2225_v12  ;;  %v1290_v39 = vld [vmem:[%s1282_s21] sm:$0xff]  ;;  %vm1293_vm7 = vcmp.eq.s32.totalorder %v1289_v12, %v1286_v16  ;;  %v1995_v40 = vld [vmem:[%s1282_s21 + $0x8] sm:$0x1f]  ;;  %v1298_v41 = vadd.s32 8, %v1289_v12  ;;  %s1278_s28 = sand.u32 7, %s2179_s12   ;;  %s2688_s22 = scalar_lea.vmem [#allocation5], %s2218_s29 }
 0x3cb   : > { %vm1319_vm8 = vcmp.eq.s32.totalorder %v1315_v12, %v1312_v16  ;;  %v1294_v42 = vsel %vm1293_vm7, %v1290_v39, 0.0  ;;  %v1324_v43 = vadd.s32 8, %v1315_v12  ;;  %v1316_v44 = vld [vmem:[%s1308_s20] sm:$0xff]  ;;  %v1996_v45 = vld [vmem:[%s1308_s20 + $0x8] sm:$0x1f]  ;;  %s1279_s0 = scalar_lea.vmem [#allocation4], %s1278_s28 }
 0x3cc   : > { %vm1299_vm9 = vcmp.eq.s32.totalorder %v1298_v41, %v1286_v16  ;;  %v1320_v47 = vsel %vm1319_vm8, %v1316_v44, 0.0  ;;  %s1283_s0 = smov %s1279_s0  ;;  %s1281_s11 = scalar_lea.vmem [#allocation6], %s1278_s28 }
 0x3cd   : > { %v1300_v46 = vsel %vm1299_vm9, %v1995_v40, %v1294_v42  ;;  %vm1325_vm4 = vcmp.eq.s32.totalorder %v1324_v43, %v1312_v16  ;;  %s1309_s11 = smov %s1281_s11  ;;  %s2689_s15 = scalar_lea.vmem [#allocation7], %s2218_s29 }
 0x3ce   : > { %v1301_v48 = vrot.slane %v1300_v46, 4  ;;  %v1326_v49 = vsel %vm1325_vm4, %v1996_v45, %v1320_v47  ;;  %s1373_s16 = sshrl.u32 (%p2193_p3), %s2179_s12, 3  ;;  %s2690_s30 = scalar_lea.vmem (%p2193_p3), [#allocation5], %s2218_s29 }
 0x3cf   : > { %v1327_v50 = vrot.slane %v1326_v49, 4  ;;  %s2003_s23 = sshll.u32 (%p2193_p3), %s1373_s16, 1 }
 0x3d0   : > { %v1302_v51 = vadd.f32 %v1301_v48, %v1300_v46  ;;  %s1375_s21 = scalar_lea.vmem (%p2193_p3), %s2678_s4, %s2003_s23 }
 0x3d1   : > { %v1328_v52 = vadd.f32 %v1327_v50, %v1326_v49 }
 0x3d2   : > { %v1303_v53 = vrot.slane %v1302_v51, 2 }
 0x3d3   : > { %v1329_v54 = vrot.slane %v1328_v52, 2 }
 0x3d4   : > { %v1304_v55 = vadd.f32 %v1303_v53, %v1302_v51 }
 0x3d5   : > { %v1330_v56 = vadd.f32 %v1329_v54, %v1328_v52 }
 0x3d6   : > { %v1305_v57 = vrot.slane %v1304_v55, 1 }
 0x3d7   : > { %v1331_v12 = vrot.slane %v1330_v56, 1 }
 0x3d8   : > { %v1306_v58 = vadd.f32 %v1305_v57, %v1304_v55 }
 0x3d9   : > { %v1332_v16 = vadd.f32 %v1331_v12, %v1330_v56 }
 0x3da   : > { %1307 = vst [vmem:[%s1283_s0] sm:$0x1] %v1306_v58 }
 0x3db   : > { %1333 = vst [vmem:[%s1309_s11] sm:$0x1] %v1332_v16 }
 0x3df   : > { %1372 = sbr.rel (!%p2193_p3) target bundleno = 1003 (0x3eb), region = 114 }
 0x3e1   : > { %v1336_v59 = vld [vmem:[#allocation4] sm:$0x3] }
 0x3e2   : > { %1339 = vst [vmem:[%s2688_s22] sm:$0x3] %v1336_v59  ;;  %v1342_v60 = vld [vmem:[#allocation6] sm:$0x3] }
 0x3e3   : > { %1345 = vst [vmem:[%s2689_s15] sm:$0x3] %v1342_v60 }
 0x3e9   : > { %v1392_v61 = vld [vmem:[%s2690_s30] sm:$0x3] }
 0x3ea   : > { %1393 = vst [vmem:[%s1375_s21] sm:$0x3] %v1392_v61 }
 0x3eb PF: > { %1411 = sbr.rel (!%p2193_p3) target bundleno = 1011 (0x3f3), region = 148  ;;  %s1412_s20 = sshrl.u32 (%p2193_p3), %s2179_s12, 3 }
 0x3ec   : > { %s2691_s28 = scalar_lea.vmem (%p2193_p3), [#allocation7], %s2218_s29  ;;  %s2004_s0 = sshll.u32 (%p2193_p3), %s1412_s20, 1 }
 0x3ed   : > { %s1414_s15 = scalar_lea.vmem (%p2193_p3), %s2679_s5, %s2004_s0 }
 0x3f1   : > { %v1431_v62 = vld [vmem:[%s2691_s28] sm:$0x3] }
 0x3f2   : > { %1432 = vst [vmem:[%s1414_s15] sm:$0x3] %v1431_v62 }
 0x3f3 PF: > { %s2005_s19 = sshll.u32 %s2179_s12, 4  ;;  %v1462_v63 = vld [vmem:[%s2222_s14] sm:$0xff]  ;;  %v1464_v0 = vld [vmem:[%s2222_s14 + $0x8] sm:$0xff] }
 0x3f4   : > { %s1449_s30 = scalar_lea.vmem %s2680_s6, %s2005_s19  ;;  %s1470_s27 = scalar_lea.vmem %s2681_s7, %s2005_s19  ;;  %v1483_v1 = vld [vmem:[%s2237_s24] sm:$0xff]  ;;  %v1485_v2 = vld [vmem:[%s2237_s24 + $0x8] sm:$0xff] }
 0x3f5   : > { %1463 = vst [vmem:[%s1449_s30] sm:$0xff] %v1462_v63  ;;  %s1491_s28 = scalar_lea.vmem %s2682_s8, %s2005_s19  ;;  %v1504_v3 = vld [vmem:[%s2242_s25] sm:$0xff]  ;;  %v1506_v4 = vld [vmem:[%s2242_s25 + $0x8] sm:$0xff]  ;;  %s1512_s0 = scalar_lea.vmem %s2683_s9, %s2005_s19 }
 0x3f6   : > { %1465 = vst [vmem:[%s1449_s30 + $0x8] sm:$0xff] %v1464_v0  ;;  %v1525_v5 = vld [vmem:[%s2248_s26] sm:$0xff]  ;;  %v1527_v6 = vld [vmem:[%s2248_s26 + $0x8] sm:$0xff] }
 0x3f7   : > { %1484 = vst [vmem:[%s1470_s27] sm:$0xff] %v1483_v1 }
 0x3f8   : > { %1486 = vst [vmem:[%s1470_s27 + $0x8] sm:$0xff] %v1485_v2 }
 0x3f9   : > { %1505 = vst [vmem:[%s1491_s28] sm:$0xff] %v1504_v3 }
 0x3fa   : > { %1507 = vst [vmem:[%s1491_s28 + $0x8] sm:$0xff] %v1506_v4 }
 0x3fb   : > { %1526 = vst [vmem:[%s1512_s0] sm:$0xff] %v1525_v5 }
 0x3fc   : > { %1528 = vst [vmem:[%s1512_s0 + $0x8] sm:$0xff] %v1527_v6 }
 0x3fd PF: > { %p13_p13 = scmp.ge.s32.totalorder %s2182_s13, 4   ;;  %s2692_s30 = smov %s2096_s10 }
 0x3fe   : > { %s2693_s10 = smov %s2191_s18  ;;  %s2694_s11 = smov %s2182_s13 }
 0x3ff   :  { %15 = sbr.rel (!%p13_p13) target bundleno = 4 (0x4), region = 465 }

// kernel: rm_drl_forward.6
= control target key start
LH: loop header
LB: loop body
LE: loop exit
PB: predicated region body
PF: predicated region fallthrough
CT: control target
= control target key end

     0   :  { %s948_s27 = smov 0   ;;  %s1114_s0 = inlined_call_operand.vmem [shape: f32[2,66,66], index: 0, kind: input, shape index: {}]   ;;  %s1115_s1 = inlined_call_operand.vmem [shape: f32[2,1,66], index: 1, kind: input, shape index: {}]   ;;  %s1116_s2 = inlined_call_operand.vmem [shape: f32[26,66], index: 2, kind: input, shape index: {}]   ;;  %s1117_s3 = inlined_call_operand.vmem [shape: f32[66,26], index: 3, kind: input, shape index: {}]   ;;  %s1118_s4 = inlined_call_operand.vmem [shape: f32[26,26], index: 4, kind: input, shape index: {}]   ;;  %s1119_s5 = inlined_call_operand.vmem [shape: f32[26,26], index: 5, kind: input, shape index: {}]   ;;  %s1120_s6 = inlined_call_operand.vmem [shape: f32[2,66,66], index: 6, kind: output, shape index: {0}]   ;;  %s1121_s7 = inlined_call_operand.vmem [shape: f32[2,26,26], index: 7, kind: output, shape index: {1}]   ;;  %s1122_s8 = inlined_call_operand.vmem [shape: f32[2,26,26], index: 8, kind: output, shape index: {2}]  }
   0x1 LB: > { %s815_s28 = sadd.s32 4294967295, %s901_s27   ;;  %p819_p0 = scmp.ge.s32.totalorder %s901_s27, 1  ;;  %s901_s27 = sphi %s948_s27, %s19_s27  }
   0x2   : > { %p275_p1 = scmp.lt.s32.totalorder %s901_s27, 3 }
   0x4   : > { %p276_p2 = pnand %p819_p0, %p275_p1 }
   0x5   : > { %p322_p3 = scmp.lt.s32.totalorder (!%p276_p2), %s815_s28, 1 }
   0x6   : > { %279 = sbr.rel (%p276_p2) target bundleno = 796 (0x31c), region = 44 }
   0xb   : > { %s1124_s28 = smov (!%p322_p3, %s815_s28), 1  ;;  %vm368_vm0 = vcmask 539648   ;;  %vm502_vm1 = vcmask 1041408   ;;  %vm475_vm2 = vcmask 533504   ;;  %v477_v30 = vld [vmem:[%s1116_s2] sm:$0xff]  ;;  %v478_v31 = vld [vmem:[%s1116_s2 + $0x8] sm:$0xff] }
   0xc   : > { %s886_s29 = smul.u32 72, %s1124_s28  ;;  %s329_s13 = scalar_lea.vmem %s1115_s1, %s1124_s28  ;;  %v489_v32 = vld [vmem:[%s1117_s3 + $0x40] sm:$0x3]  ;;  %v488_v33 = vld [vmem:[%s1117_s3 + $0x38] sm:$0xff]  ;;  %v487_v34 = vld [vmem:[%s1117_s3 + $0x30] sm:$0xff]  ;;  %vm579_vm3 = vcmask 211968  }
   0xd   : > { %v345_v6 = vld [vmem:[%s329_s13] sm:$0x1]  ;;  %v486_v35 = vld [vmem:[%s1117_s3 + $0x28] sm:$0xff]  ;;  %v479_v36 = vld [vmem:[%s1116_s2 + $0x10] sm:$0xff]  ;;  %s866_s23 = sshll.u32 %s1124_s28, 5  ;;  %vm583_vm4 = vcmask 205824  }
   0xe   : > { %s326_s10 = scalar_lea.vmem %s1114_s0, %s886_s29  ;;  %v346_v8 = vmax.f32 %v345_v6, 0.0001  ;;  %s334_s16 = scalar_lea.vmem %s1120_s6, %s886_s29  ;;  %v485_v37 = vld [vmem:[%s1117_s3 + $0x20] sm:$0xff]  ;;  %v484_v38 = vld [vmem:[%s1117_s3 + $0x18] sm:$0xff]  ;;  %v483_v39 = vld [vmem:[%s1117_s3 + $0x10] sm:$0xff] }
   0xf   : > { %v355_v0 = vld [vmem:[%s326_s10 + $0x40] sm:$0x3]  ;;  %v354_v1 = vld [vmem:[%s326_s10 + $0x38] sm:$0xff]  ;;  %v353_v2 = vld [vmem:[%s326_s10 + $0x30] sm:$0xff]  ;;  %s339_s26 = scalar_lea.vmem %s1121_s7, %s866_s23 }
  0x10   : > { %826 = vmatpush.xpose.msk.msra.mxu0 %vm368_vm0, %v355_v0  ;;  %868 = vmatpush.xpose.msk.msra.mxu1 %vm368_vm0, %v355_v0  ;;  %v352_v3 = vld [vmem:[%s326_s10 + $0x28] sm:$0xff]  ;;  %v351_v4 = vld [vmem:[%s326_s10 + $0x20] sm:$0xff]  ;;  %v350_v5 = vld [vmem:[%s326_s10 + $0x18] sm:$0xff]  ;;  %v357_v10 = vperm.slane %v346_v8, 0 }
  0x11   : > { %v349_v7 = vld [vmem:[%s326_s10 + $0x10] sm:$0xff]  ;;  %v348_v9 = vld [vmem:[%s326_s10 + $0x8] sm:$0xff]  ;;  %v347_v11 = vld [vmem:[%s326_s10] sm:$0xff] }
  0x12   : > { %v359_v12 = vmul.f32 %v357_v10, %v347_v11  ;;  %v364_v13 = vmul.f32 %v357_v10, %v352_v3  ;;  %v360_v14 = vmul.f32 %v357_v10, %v348_v9  ;;  %v365_v15 = vmul.f32 %v357_v10, %v353_v2  ;;  %v482_v40 = vld [vmem:[%s1117_s3 + $0x8] sm:$0xff]  ;;  %v480_v41 = vld [vmem:[%s1116_s2 + $0x18] sm:$0x3]  ;;  %v481_v42 = vld [vmem:[%s1117_s3] sm:$0xff] }
  0x13   : > { %v361_v16 = vmul.f32 %v357_v10, %v349_v7  ;;  %v366_v17 = vmul.f32 %v357_v10, %v354_v1  ;;  %v362_v18 = vmul.f32 %v357_v10, %v350_v5  ;;  %v367_v19 = vmul.f32 %v357_v10, %v355_v0  ;;  %v585_v51 = vld [vmem:[%s1118_s4] sm:$0xff]  ;;  %v592_v52 = vld [vmem:[%s1119_s5 + $0x18] sm:$0x3]  ;;  %v591_v53 = vld [vmem:[%s1119_s5 + $0x10] sm:$0xff] }
  0x14   : > { %827 = vmatpush.xpose.msk.msra.mxu0 %vm368_vm0, %v354_v1  ;;  %869 = vmatpush.xpose.msk.msra.mxu1 %vm368_vm0, %v354_v1  ;;  %v363_v20 = vmul.f32 %v357_v10, %v351_v4  ;;  %v590_v54 = vld [vmem:[%s1119_s5 + $0x8] sm:$0xff]  ;;  %v589_v55 = vld [vmem:[%s1119_s5] sm:$0xff]  ;;  %v587_v57 = vld [vmem:[%s1118_s4 + $0x10] sm:$0xff] }
  0x15   : > { %v586_v56 = vld [vmem:[%s1118_s4 + $0x8] sm:$0xff]  ;;  %v588_v58 = vld [vmem:[%s1118_s4 + $0x18] sm:$0x3] }
  0x18   : > { %828 = vmatpush.xpose.msk.msra.mxu0 %vm368_vm0, %v353_v2  ;;  %870 = vmatpush.xpose.msk.msra.mxu1 %vm368_vm0, %v353_v2 }
  0x1c   : > { %829 = vmatpush.xpose.msk.msra.mxu0 %vm368_vm0, %v352_v3  ;;  %871 = vmatpush.xpose.msk.msra.mxu1 %vm368_vm0, %v352_v3 }
  0x20   : > { %830 = vmatpush.xpose.msk.msra.mxu0 %vm368_vm0, %v351_v4  ;;  %872 = vmatpush.xpose.msk.msra.mxu1 %vm368_vm0, %v351_v4 }
  0x24   : > { %831 = vmatpush.xpose.msk.msra.mxu0 %vm368_vm0, %v350_v5  ;;  %873 = vmatpush.xpose.msk.msra.mxu1 %vm368_vm0, %v350_v5 }
  0x28   : > { %832 = vmatpush.xpose.msk.msra.mxu0 %vm368_vm0, %v349_v7  ;;  %874 = vmatpush.xpose.msk.msra.mxu1 %vm368_vm0, %v349_v7 }
  0x2c   : > { %833 = vmatpush.xpose.msk.msra.mxu0 %vm368_vm0, %v348_v9  ;;  %875 = vmatpush.xpose.msk.msra.mxu1 %vm368_vm0, %v348_v9 }
  0x30   : > { %834 = vmatpush.xpose.msk.msra.mxu0 %vm368_vm0, %v347_v11  ;;  %876 = vmatpush.xpose.msk.msra.mxu1 %vm368_vm0, %v347_v11 }
  0x33   : > { %835 = vmatmul.msk.f32.vlgmr.msra.gmra.mxu0 %vm368_vm0, %v359_v12  ;;  %840 = vmatmul.msk.f32.vlgmr.msra.gmra.mxu1 %vm368_vm0, %v364_v13 }
  0x3b   : > { %836 = vmatmul.msk.f32.gmra.mxu0 %vm368_vm0, %v360_v14  ;;  %841 = vmatmul.msk.f32.gmra.mxu1 %vm368_vm0, %v365_v15 }
  0x43   : > { %837 = vmatmul.msk.f32.gmra.mxu0 %vm368_vm0, %v361_v16  ;;  %842 = vmatmul.msk.f32.gmra.mxu1 %vm368_vm0, %v366_v17 }
  0x4b   : > { %838 = vmatmul.msk.f32.gmra.mxu0 %vm368_vm0, %v362_v18  ;;  %843 = vmatmul.msk.f32.gmra.mxu1 %vm368_vm0, %v367_v19 }
  0x53   : > { %839 = vmatmul.msk.f32.gmra.mxu0 %vm368_vm0, %v363_v20 }
  0xb0   : > { %v440_v21 = vpop.f32.mrf.mxu0  ;;  %v455_v22 = vpop.f32.mrf.mxu1 }
  0xb1   : > { %467 = vst.msk [vmem:[%s334_s16] sm:$0xff] %vm368_vm0, %v440_v21 }
  0xb2   : > { %472 = vst.msk [vmem:[%s334_s16 + $0x28] sm:$0xff] %vm368_vm0, %v455_v22 }
  0xb8   : > { %v443_v23 = vpop.f32.mrf.mxu0  ;;  %v458_v24 = vpop.f32.mrf.mxu1 }
  0xb9   : > { %468 = vst.msk [vmem:[%s334_s16 + $0x8] sm:$0xff] %vm368_vm0, %v443_v23 }
  0xba   : > { %473 = vst.msk [vmem:[%s334_s16 + $0x30] sm:$0xff] %vm368_vm0, %v458_v24 }
  0xc0   : > { %v446_v25 = vpop.f32.mrf.mxu0  ;;  %v461_v26 = vpop.f32.mrf.mxu1 }
  0xc1   : > { %469 = vst.msk [vmem:[%s334_s16 + $0x10] sm:$0xff] %vm368_vm0, %v446_v25 }
  0xc2   : > { %474 = vst.msk [vmem:[%s334_s16 + $0x38] sm:$0xff] %vm368_vm0, %v461_v26 }
  0xc8   : > { %v449_v27 = vpop.f32.mrf.mxu0  ;;  %v464_v28 = vpop.f32.mrf.mxu1 }
  0xc9   : > { %470 = vst.msk [vmem:[%s334_s16 + $0x18] sm:$0xff] %vm368_vm0, %v449_v27  ;;  %844 = vmatpush.msk.msrb.mxu1 %vm502_vm1, %v464_v28  ;;  %877 = vmatpush.msk.msra.mxu2 %vm502_vm1, %v464_v28 }
  0xca   : > { %476 = vst.msk [vmem:[%s334_s16 + $0x40] sm:$0x3] %vm475_vm2, %v464_v28 }
  0xcb   : > { %514 = vmatpush.msrb.mxu1 %v461_v26  ;;  %878 = vmatpush.msra.mxu2 %v461_v26 }
  0xcd   : > { %515 = vmatpush.msrb.mxu1 %v458_v24  ;;  %879 = vmatpush.msra.mxu2 %v458_v24 }
  0xcf   : > { %516 = vmatpush.msrb.mxu1 %v455_v22  ;;  %880 = vmatpush.msra.mxu2 %v455_v22 }
  0xd0   : > { %v452_v29 = vpop.f32.mrf.mxu0 }
  0xd1   : > { %471 = vst.msk [vmem:[%s334_s16 + $0x20] sm:$0xff] %vm368_vm0, %v452_v29  ;;  %517 = vmatpush.msrb.mxu1 %v452_v29  ;;  %881 = vmatpush.msra.mxu2 %v452_v29 }
  0xd3   : > { %518 = vmatpush.msrb.mxu1 %v449_v27  ;;  %882 = vmatpush.msra.mxu2 %v449_v27 }
  0xd5   : > { %519 = vmatpush.msrb.mxu1 %v446_v25  ;;  %883 = vmatpush.msra.mxu2 %v446_v25 }
  0xd7   : > { %520 = vmatpush.msrb.mxu1 %v443_v23  ;;  %884 = vmatpush.msra.mxu2 %v443_v23 }
  0xd9   : > { %521 = vmatpush.msrb.mxu1 %v440_v21  ;;  %885 = vmatpush.msra.mxu2 %v440_v21 }
  0xda   : > { %845 = vmatmul.msk.f32.vlgmr.msrb.gmra.mxu1 %vm368_vm0, %v477_v30  ;;  %846 = vmatmul.msk.f32.vlgmr.msra.gmra.mxu2 %vm368_vm0, %v478_v31 }
  0xdb   : > { %849 = vmatpush.msk.msrb.mxu2 %vm502_vm1, %v489_v32 }
  0xdd   : > { %558 = vmatpush.msrb.mxu2 %v488_v33 }
  0xdf   : > { %559 = vmatpush.msrb.mxu2 %v487_v34 }
  0xe1   : > { %560 = vmatpush.msrb.mxu2 %v486_v35 }
  0xe2   : > { %847 = vmatmul.msk.f32.gmra.mxu2 %vm368_vm0, %v479_v36 }
  0xe3   : > { %561 = vmatpush.msrb.mxu2 %v485_v37 }
  0xe5   : > { %562 = vmatpush.msrb.mxu2 %v484_v38 }
  0xe7   : > { %563 = vmatpush.msrb.mxu2 %v483_v39 }
  0xe9   : > { %564 = vmatpush.msrb.mxu2 %v482_v40 }
  0xea   : > { %848 = vmatmul.msk.f32.gmra.mxu2 %vm368_vm0, %v480_v41 }
  0xeb   : > { %565 = vmatpush.msrb.mxu2 %v481_v42 }
 0x157   : > { %v523_v43 = vpop.f32.mrf.mxu1 }
 0x158   : > { %850 = vmatmul.msk.f32.vlgmr.msrb.gmra.mxu2 %vm368_vm0, %v523_v43 }
 0x15d   : > { %v526_v44 = vpop.f32.mrf.mxu2 }
 0x160   : > { %851 = vmatmul.msk.f32.gmra.mxu2 %vm368_vm0, %v526_v44 }
 0x165   : > { %v529_v45 = vpop.f32.mrf.mxu2 }
 0x168   : > { %852 = vmatmul.msk.f32.gmra.mxu2 %vm368_vm0, %v529_v45 }
 0x16d   : > { %v532_v46 = vpop.f32.mrf.mxu2 }
 0x170   : > { %853 = vmatmul.msk.f32.gmra.mxu2 %vm368_vm0, %v532_v46 }
 0x1db   : > { %v567_v47 = vpop.f32.mrf.mxu2 }
 0x1dc   : > { %580 = vst.msk [vmem:[%s339_s26] sm:$0xff] %vm579_vm3, %v567_v47 }
 0x1e3   : > { %v570_v48 = vpop.f32.mrf.mxu2 }
 0x1e4   : > { %581 = vst.msk [vmem:[%s339_s26 + $0x8] sm:$0xff] %vm579_vm3, %v570_v48 }
 0x1eb   : > { %v573_v49 = vpop.f32.mrf.mxu2 }
 0x1ec   : > { %582 = vst.msk [vmem:[%s339_s26 + $0x10] sm:$0xff] %vm579_vm3, %v573_v49 }
 0x1f3   : > { %v576_v50 = vpop.f32.mrf.mxu2 }
 0x1f4   : > { %584 = vst.msk [vmem:[%s339_s26 + $0x18] sm:$0x3] %vm583_vm4, %v576_v50  ;;  %854 = vmatpush.msk.msra.mxu3 %vm502_vm1, %v576_v50  ;;  %s344_s26 = scalar_lea.vmem %s1122_s8, %s866_s23 }
 0x1f6   : > { %621 = vmatpush.msra.mxu3 %v573_v49 }
 0x1f8   : > { %622 = vmatpush.msra.mxu3 %v570_v48 }
 0x1fa   : > { %623 = vmatpush.msra.mxu3 %v567_v47 }
 0x1fb   : > { %855 = vmatmul.msk.f32.vlgmr.msra.gmra.mxu3 %vm579_vm3, %v585_v51 }
 0x1fc   : > { %859 = vmatpush.msk.msrb.mxu3 %vm502_vm1, %v592_v52 }
 0x1fe   : > { %665 = vmatpush.msrb.mxu3 %v591_v53 }
 0x200   : > { %666 = vmatpush.msrb.mxu3 %v590_v54 }
 0x202   : > { %667 = vmatpush.msrb.mxu3 %v589_v55 }
 0x203   : > { %856 = vmatmul.msk.f32.gmra.mxu3 %vm579_vm3, %v586_v56 }
 0x20b   : > { %857 = vmatmul.msk.f32.gmra.mxu3 %vm579_vm3, %v587_v57 }
 0x213   : > { %858 = vmatmul.msk.f32.gmra.mxu3 %vm579_vm3, %v588_v58 }
 0x27e   : > { %v625_v59 = vpop.f32.mrf.mxu3 }
 0x27f   : > { %860 = vmatmul.msk.f32.vlgmr.msrb.gmra.mxu3 %vm579_vm3, %v625_v59 }
 0x286   : > { %v628_v60 = vpop.f32.mrf.mxu3 }
 0x287   : > { %861 = vmatmul.msk.f32.gmra.mxu3 %vm579_vm3, %v628_v60 }
 0x28e   : > { %v631_v61 = vpop.f32.mrf.mxu3 }
 0x28f   : > { %862 = vmatmul.msk.f32.gmra.mxu3 %vm579_vm3, %v631_v61 }
 0x296   : > { %v634_v62 = vpop.f32.mrf.mxu3 }
 0x297   : > { %863 = vmatmul.msk.f32.gmra.mxu3 %vm579_vm3, %v634_v62 }
 0x302   : > { %v669_v63 = vpop.f32.mrf.mxu3 }
 0x303   : > { %681 = vst.msk [vmem:[%s344_s26] sm:$0xff] %vm579_vm3, %v669_v63 }
 0x30a   : > { %v672_v0 = vpop.f32.mrf.mxu3 }
 0x30b   : > { %682 = vst.msk [vmem:[%s344_s26 + $0x8] sm:$0xff] %vm579_vm3, %v672_v0 }
 0x312   : > { %v675_v1 = vpop.f32.mrf.mxu3 }
 0x313   : > { %683 = vst.msk [vmem:[%s344_s26 + $0x10] sm:$0xff] %vm579_vm3, %v675_v1 }
 0x31a   : > { %v678_v2 = vpop.f32.mrf.mxu3 }
 0x31b   : > { %684 = vst.msk [vmem:[%s344_s26 + $0x18] sm:$0x3] %vm583_vm4, %v678_v2 }
 0x31c PF: > { %s19_s27 = sadd.s32 1, %s901_s27  }
 0x31d   : > { %p16_p4 = scmp.ge.s32.totalorder %s19_s27, 4  }
 0x31f   :  { %18 = sbr.rel (!%p16_p4) target bundleno = 1 (0x1), region = 101 }

// kernel: rm_drl_forward.7
= control target key start
LH: loop header
LB: loop body
LE: loop exit
PB: predicated region body
PF: predicated region fallthrough
CT: control target
= control target key end

     0   :  { %13 = vsyncpa [#allocation3], 0  ;;  %s3804_s0 = inlined_call_operand.vmem [shape: f32[2,26,26], index: 0, kind: input, shape index: {}]   ;;  %s3805_s1 = inlined_call_operand.vmem [shape: f32[2,1,26], index: 1, kind: input, shape index: {}]   ;;  %s3806_s2 = inlined_call_operand.vmem [shape: f32[26,26,256], index: 2, kind: input, shape index: {}]   ;;  %s3807_s3 = inlined_call_operand.vmem [shape: f32[1,256], index: 3, kind: input, shape index: {}]   ;;  %s3808_s4 = inlined_call_operand.vmem [shape: f32[256,2], index: 4, kind: input, shape index: {}]   ;;  %s3809_s5 = inlined_call_operand.vmem [shape: f32[1,2], index: 5, kind: input, shape index: {}]   ;;  %s3810_s6 = inlined_call_operand.vmem [shape: f32[2,26,26], index: 6, kind: output, shape index: {0}]   ;;  %s3811_s7 = inlined_call_operand.hbm [shape: f32[2,1,2], index: 7, kind: output, shape index: {1}]  }
   0x1   :  { %15 = vsyncpa [#allocation3 + $0x1], 0  ;;  %s2761_s24 = smov 0   ;;  %s2763_s25 = smov 0  }
   0x2   :  { %s2765_s26 = smov 0   ;;  %s2767_s27 = smov 0  }
   0x3 LB: > { %s2782_s28 = sadd.s32 4294967295, %s2719_s27   ;;  %s2284_s29 = sadd.s32 4294967294, %s2719_s27   ;;  %s2719_s27 = sphi %s2767_s27, %s3817_s27   ;;  %s2715_s26 = sphi %s2765_s26, %s3816_s26   ;;  %s2711_s25 = sphi %s2763_s25, %s3815_s25   ;;  %s2707_s24 = sphi %s2761_s24, %s3814_s24  }
   0x4   : > { %s2786_s30 = sadd.s32 1, %s2719_s27   ;;  %s190_s8 = sadd.s32 1, %s2715_s26 }
   0x5   : > { %s187_s9 = ssub.s32 %s2719_s27, %s2786_s30  ;;  %p200_p0 = scmp.ne.s32.totalorder %s2715_s26, %s2711_s25 }
   0x6   : > { %p188_p1 = scmp.eq.s32.totalorder %s187_s9, 0  ;;  %p201_p2 = scmp.eq.s32.totalorder %s2782_s28, 1 }
   0x7   : > { %p206_p3 = scmp.ne.s32.totalorder %s2711_s25, %s2707_s24  ;;  %p207_p4 = scmp.eq.s32.totalorder %s2284_s29, 1 }
   0x8   : > { %s2797_s10 = scalar_select %p188_p1, %s2715_s26, %s190_s8  }
   0x9   : > { %p2799_p5 = por %p201_p2, %p200_p0  ;;  %p2803_p6 = por %p207_p4, %p206_p3 }
   0xa   : > { %p2287_p7 = scmp.ge.s32.totalorder %s2719_s27, 1  ;;  %p251_p8 = scmp.lt.s32.totalorder %s2719_s27, 3 }
   0xc   : > { %p252_p9 = pnand %p2287_p7, %p251_p8 }
   0xd   : > { %p290_p10 = scmp.lt.s32.totalorder (!%p252_p9), %s2782_s28, 1  ;;  %s2677_s16 = scalar_lea.hbm (!%p252_p9), %s3811_s7, 2 }
   0xe   : > { %255 = sbr.rel (%p252_p9) target bundleno = 565 (0x235), region = 44 }
  0x13   : > { %s2811_s13 = scalar_select %p290_p10, %s2782_s28, 1  ;;  %vm316_vm0 = vcmask 211968   ;;  %vm437_vm1 = vcmask 1041408   ;;  %v2318_v8 = vld [vmem:[%s3806_s2 + $0x70] sm:$0x3]  ;;  %v2316_v11 = vld [vmem:[%s3806_s2 + $0x60] sm:$0xff] }
  0x14   : > { %2320 = vmatpush.msk.msra.mxu2 %vm437_vm1, %v2318_v8  ;;  %v2319_v10 = vld [vmem:[%s3806_s2 + $0x78] sm:$0x3]  ;;  %v432_v13 = vld [vmem:[%s3806_s2 + $0x30] sm:$0x3]  ;;  %v2317_v16 = vld [vmem:[%s3806_s2 + $0x68] sm:$0xff]  ;;  %vm373_vm2 = vcmask 205824  }
  0x15   : > { %s2614_s14 = sshll.u32 %s2811_s13, 5  ;;  %s297_s17 = scalar_lea.vmem %s3805_s1, %s2811_s13  ;;  %v433_v14 = vld [vmem:[%s3806_s2 + $0x38] sm:$0x3]  ;;  %2322 = vmatpush.msk.msra.mxu3 %vm437_vm1, %v2319_v10  ;;  %v430_v18 = vld [vmem:[%s3806_s2 + $0x20] sm:$0xff]  ;;  %v431_v19 = vld [vmem:[%s3806_s2 + $0x28] sm:$0xff]  ;;  %vm487_vm3 = vcmask 1040384  }
  0x16   : > { %s294_s20 = scalar_lea.vmem %s3804_s0, %s2614_s14  ;;  %v307_v0 = vld [vmem:[%s297_s17] sm:$0x1]  ;;  %522 = vmatpush.msra.mxu2 %v2316_v11  ;;  %v428_v20 = vld [vmem:[%s3806_s2 + $0x10] sm:$0xff]  ;;  %v429_v21 = vld [vmem:[%s3806_s2 + $0x18] sm:$0xff]  ;;  %s3375_s15 = scalar_lea.vmem %s3810_s6, %s2614_s14  ;;  %vm2172_vm5 = vcmask 8192  }
  0x17   : > { %v306_v1 = vld [vmem:[%s294_s20 + $0x18] sm:$0x3]  ;;  %v308_v2 = vmax.f32 %v307_v0, 0.0001  ;;  %v305_v3 = vld [vmem:[%s294_s20 + $0x10] sm:$0xff]  ;;  %v304_v4 = vld [vmem:[%s294_s20 + $0x8] sm:$0xff]  ;;  %542 = vmatpush.msra.mxu3 %v2317_v16  ;;  %s2191_s13 = scalar_lea.hbm %s3811_s7, %s2782_s28 }
  0x18   : > { %2300 = vmatpush.xpose.msk.msra.mxu1 %vm316_vm0, %v306_v1  ;;  %2292 = vmatpush.xpose.msk.msra.mxu0 %vm316_vm0, %v306_v1  ;;  %v303_v9 = vld [vmem:[%s294_s20] sm:$0xff]  ;;  %v427_v29 = vld [vmem:[%s3806_s2 + $0x8] sm:$0xff]  ;;  %v2314_v30 = vld [vmem:[%s3806_s2 + $0x50] sm:$0xff]  ;;  %s288_s17 = sand.u32 1, %s2711_s25   ;;  %s2195_s22 = sshll.u32 %s2191_s13, 4  ;;  %s2196_s22 = int_to_ptr.hbm [resolvable:$true] %s2195_s22 }
  0x19   : > { %2655 = vlog2.f32 %v308_v2  ;;  %v310_v6 = vperm.slane %v308_v2, 0  ;;  %v426_v28 = vld [vmem:[%s3806_s2] sm:$0xff]  ;;  %v2315_v31 = vld [vmem:[%s3806_s2 + $0x58] sm:$0xff]  ;;  %523 = vmatpush.msra.mxu2 %v2314_v30  ;;  %v2313_v33 = vld [vmem:[%s3806_s2 + $0x48] sm:$0xff]  ;;  %s289_s20 = scalar_lea.vmem [#allocation2], %s288_s17  ;;  %s2180_s23 = scalar_lea.sflag [#allocation3], %s288_s17 }
  0x1a   : > { %543 = vmatpush.msra.mxu3 %v2315_v31  ;;  %v2312_v32 = vld [vmem:[%s3806_s2 + $0x40] sm:$0xff]  ;;  %v2366_v34 = vld [vmem:[%s3806_s2 + $0x170] sm:$0x3]  ;;  %v2367_v35 = vld [vmem:[%s3806_s2 + $0x178] sm:$0x3]  ;;  %s2193_s21 = sshll.u32 %s289_s20, 4  ;;  %s2194_s21 = int_to_ptr.vmem [resolvable:$true] %s2193_s21 }
  0x1b   : > { %v312_v15 = vmul.f32 %v310_v6, %v303_v9  ;;  %v313_v23 = vmul.f32 %v310_v6, %v304_v4  ;;  %v314_v25 = vmul.f32 %v310_v6, %v305_v3  ;;  %v315_v27 = vmul.f32 %v310_v6, %v306_v1  ;;  %524 = vmatpush.msra.mxu2 %v2312_v32  ;;  %v2331_v36 = vld [vmem:[%s3806_s2 + $0xb8] sm:$0x3]  ;;  %v2330_v37 = vld [vmem:[%s3806_s2 + $0xb0] sm:$0x3]  ;;  %v2364_v38 = vld [vmem:[%s3806_s2 + $0x160] sm:$0xff]  ;;  %s2671_s29 = sshra.s32 %s2196_s22, 4  ;;  %s2672_s29 = int_to_ptr.hbm [resolvable:$true] %s2671_s29 }
  0x1c   : > { %2301 = vmatpush.xpose.msk.msra.mxu1 %vm316_vm0, %v305_v3  ;;  %2293 = vmatpush.xpose.msk.msra.mxu0 %vm316_vm0, %v305_v3  ;;  %v2365_v39 = vld [vmem:[%s3806_s2 + $0x168] sm:$0xff]  ;;  %v2328_v41 = vld [vmem:[%s3806_s2 + $0xa0] sm:$0xff]  ;;  %v2362_v42 = vld [vmem:[%s3806_s2 + $0x150] sm:$0xff]  ;;  %s2673_s28 = scalar_lea.hbm %s2672_s29, 1  ;;  %p2678_p0 = scmp.lt.s32.totalorder %s2672_s29, %s3811_s7 }
  0x1d   : > { %544 = vmatpush.msra.mxu3 %v2313_v33  ;;  %v2329_v40 = vld [vmem:[%s3806_s2 + $0xa8] sm:$0xff]  ;;  %2332 = vmatpush.msk.msrb.mxu2 %vm437_vm1, %v2330_v37  ;;  %v2363_v43 = vld [vmem:[%s3806_s2 + $0x158] sm:$0xff]  ;;  %v2326_v45 = vld [vmem:[%s3806_s2 + $0x90] sm:$0xff]  ;;  %p2674_p11 = scmp.ne.s32.totalorder %s2672_s29, %s2673_s28  ;;  %p2679_p1 = scmp.lt.s32.totalorder %s2677_s16, %s2673_s28 }
  0x1e   : > { %v2327_v44 = vld [vmem:[%s3806_s2 + $0x98] sm:$0xff]  ;;  %v2360_v46 = vld [vmem:[%s3806_s2 + $0x140] sm:$0xff]  ;;  %v2361_v47 = vld [vmem:[%s3806_s2 + $0x148] sm:$0xff] }
  0x1f   : > { %v2656_v5 = vpop.eup %2655  ;;  %2334 = vmatpush.msk.msrb.mxu3 %vm437_vm1, %v2331_v36  ;;  %586 = vmatpush.msrb.mxu2 %v2328_v41  ;;  %v2325_v48 = vld [vmem:[%s3806_s2 + $0x88] sm:$0xff]  ;;  %v2324_v49 = vld [vmem:[%s3806_s2 + $0x80] sm:$0xff]  ;;  %v2390_v50 = vld [vmem:[%s3806_s2 + $0x1f0] sm:$0x3]  ;;  %p2675_p12 = pnand %p2674_p11, %p2799_p5  ;;  %p2680_p2 = por %p2679_p1, %p2678_p0 }
  0x20   : > { %2302 = vmatpush.xpose.msk.msra.mxu1 %vm316_vm0, %v304_v4  ;;  %v376_v7 = vmul.f32 0.6931472, %v2656_v5  ;;  %2294 = vmatpush.xpose.msk.msra.mxu0 %vm316_vm0, %v304_v4  ;;  %v2391_v51 = vld [vmem:[%s3806_s2 + $0x1f8] sm:$0x3]  ;;  %v2342_v55 = vld [vmem:[%s3806_s2 + $0xf0] sm:$0x3] }
  0x21   : > { %606 = vmatpush.msrb.mxu3 %v2329_v40  ;;  %587 = vmatpush.msrb.mxu2 %v2326_v45  ;;  %v2343_v54 = vld [vmem:[%s3806_s2 + $0xf8] sm:$0x3]  ;;  %v2388_v56 = vld [vmem:[%s3806_s2 + $0x1e0] sm:$0xff]  ;;  %v2389_v57 = vld [vmem:[%s3806_s2 + $0x1e8] sm:$0xff]  ;;  %p2676_p13 = pneg %p2675_p12 }
  0x22   : > { %v378_v12 = vperm.slane %v376_v7, 0  ;;  %v2341_v58 = vld [vmem:[%s3806_s2 + $0xe8] sm:$0xff]  ;;  %v2340_v59 = vld [vmem:[%s3806_s2 + $0xe0] sm:$0xff]  ;;  %v2386_v60 = vld [vmem:[%s3806_s2 + $0x1d0] sm:$0xff] }
  0x23   : > { %607 = vmatpush.msrb.mxu3 %v2327_v44  ;;  %588 = vmatpush.msrb.mxu2 %v2324_v49  ;;  %v2387_v61 = vld [vmem:[%s3806_s2 + $0x1d8] sm:$0xff]  ;;  %v2338_v63 = vld [vmem:[%s3806_s2 + $0xd0] sm:$0xff]  ;;  %v2385_v2 = vld [vmem:[%s3806_s2 + $0x1c8] sm:$0xff]  ;;  %p2681_p3 = pnand %p2680_p2, %p2676_p13 }
  0x24   : > { %2303 = vmatpush.xpose.msk.msra.mxu1 %vm316_vm0, %v303_v9  ;;  %v380_v17 = vmul.f32 %v378_v12, %v303_v9  ;;  %2295 = vmatpush.xpose.msk.msra.mxu0 %vm316_vm0, %v303_v9  ;;  %v381_v22 = vmul.f32 %v378_v12, %v304_v4  ;;  %v382_v24 = vmul.f32 %v378_v12, %v305_v3  ;;  %v2339_v62 = vld [vmem:[%s3806_s2 + $0xd8] sm:$0xff]  ;;  %v2337_v4 = vld [vmem:[%s3806_s2 + $0xc8] sm:$0xff]  ;;  %v2336_v5 = vld [vmem:[%s3806_s2 + $0xc0] sm:$0xff] }
  0x25   : > { %v383_v26 = vmul.f32 %v378_v12, %v306_v1  ;;  %608 = vmatpush.msrb.mxu3 %v2325_v48  ;;  %v2384_v1 = vld [vmem:[%s3806_s2 + $0x1c0] sm:$0xff]  ;;  %v2414_v6 = vld [vmem:[%s3806_s2 + $0x270] sm:$0x3]  ;;  %v2415_v7 = vld [vmem:[%s3806_s2 + $0x278] sm:$0x3] }
  0x26   : > { %v2355_v8 = vld [vmem:[%s3806_s2 + $0x138] sm:$0x3]  ;;  %v2354_v9 = vld [vmem:[%s3806_s2 + $0x130] sm:$0x3]  ;;  %v2412_v10 = vld [vmem:[%s3806_s2 + $0x260] sm:$0xff] }
  0x27   : > { %2304 = vmatmul.msk.f32.vlgmr.msra.gmra.mxu1 %vm316_vm0, %v380_v17  ;;  %2296 = vmatmul.msk.f32.vlgmr.msra.gmra.mxu0 %vm316_vm0, %v312_v15  ;;  %v2413_v11 = vld [vmem:[%s3806_s2 + $0x268] sm:$0xff]  ;;  %v2410_v15 = vld [vmem:[%s3806_s2 + $0x250] sm:$0xff]  ;;  %v2411_v16 = vld [vmem:[%s3806_s2 + $0x258] sm:$0xff] }
  0x28   : > { %2308 = vmatpush.msk.msrb.mxu0 %vm437_vm1, %v432_v13  ;;  %2310 = vmatpush.msk.msrb.mxu1 %vm437_vm1, %v433_v14  ;;  %v2353_v12 = vld [vmem:[%s3806_s2 + $0x128] sm:$0xff]  ;;  %v2352_v13 = vld [vmem:[%s3806_s2 + $0x120] sm:$0xff]  ;;  %v2435_v36 = vld [vmem:[%s3806_s2 + $0x2d8] sm:$0xff] }
  0x29   : > { %v2436_v30 = vld [vmem:[%s3806_s2 + $0x2e0] sm:$0xff]  ;;  %v2437_v31 = vld [vmem:[%s3806_s2 + $0x2e8] sm:$0xff]  ;;  %v2375_v37 = vld [vmem:[%s3806_s2 + $0x198] sm:$0xff] }
  0x2a   : > { %457 = vmatpush.msrb.mxu0 %v430_v18  ;;  %477 = vmatpush.msrb.mxu1 %v431_v19  ;;  %v2351_v18 = vld [vmem:[%s3806_s2 + $0x118] sm:$0xff]  ;;  %v2350_v19 = vld [vmem:[%s3806_s2 + $0x110] sm:$0xff]  ;;  %v2377_v33 = vld [vmem:[%s3806_s2 + $0x1a8] sm:$0xff] }
  0x2b   : > { %v2433_v40 = vld [vmem:[%s3806_s2 + $0x2c8] sm:$0xff]  ;;  %v2462_v44 = vld [vmem:[%s3806_s2 + $0x370] sm:$0x3]  ;;  %v2463_v45 = vld [vmem:[%s3806_s2 + $0x378] sm:$0x3] }
  0x2c   : > { %458 = vmatpush.msrb.mxu0 %v428_v20  ;;  %478 = vmatpush.msrb.mxu1 %v429_v21  ;;  %v2408_v21 = vld [vmem:[%s3806_s2 + $0x240] sm:$0xff]  ;;  %v2373_v41 = vld [vmem:[%s3806_s2 + $0x188] sm:$0xff]  ;;  %v2402_v48 = vld [vmem:[%s3806_s2 + $0x230] sm:$0x3] }
  0x2d   : > { %v2460_v49 = vld [vmem:[%s3806_s2 + $0x360] sm:$0xff] }
  0x2e   : > { %459 = vmatpush.msrb.mxu0 %v426_v28  ;;  %479 = vmatpush.msrb.mxu1 %v427_v29  ;;  %v2379_v28 = vld [vmem:[%s3806_s2 + $0x1b8] sm:$0x3]  ;;  %v2378_v29 = vld [vmem:[%s3806_s2 + $0x1b0] sm:$0x3] }
  0x2f   : > { %2305 = vmatmul.msk.f32.gmra.mxu1 %vm316_vm0, %v381_v22  ;;  %2297 = vmatmul.msk.f32.gmra.mxu0 %vm316_vm0, %v313_v23  ;;  %v2409_v22 = vld [vmem:[%s3806_s2 + $0x248] sm:$0xff] }
  0x30   : > { %2368 = vmatpush.msk.msra.mxu0 %vm437_vm1, %v2366_v34  ;;  %2370 = vmatpush.msk.msra.mxu1 %vm437_vm1, %v2367_v35  ;;  %v2349_v23 = vld [vmem:[%s3806_s2 + $0x108] sm:$0xff]  ;;  %v2376_v34 = vld [vmem:[%s3806_s2 + $0x1a0] sm:$0xff]  ;;  %v2434_v35 = vld [vmem:[%s3806_s2 + $0x2d0] sm:$0xff] }
  0x32   : > { %778 = vmatpush.msra.mxu0 %v2364_v38  ;;  %798 = vmatpush.msra.mxu1 %v2365_v39  ;;  %v2374_v38 = vld [vmem:[%s3806_s2 + $0x190] sm:$0xff]  ;;  %v2432_v39 = vld [vmem:[%s3806_s2 + $0x2c0] sm:$0xff] }
  0x34   : > { %779 = vmatpush.msra.mxu0 %v2362_v42  ;;  %799 = vmatpush.msra.mxu1 %v2363_v43  ;;  %v2372_v43 = vld [vmem:[%s3806_s2 + $0x180] sm:$0xff] }
  0x36   : > { %780 = vmatpush.msra.mxu0 %v2360_v46  ;;  %800 = vmatpush.msra.mxu1 %v2361_v47  ;;  %v2403_v47 = vld [vmem:[%s3806_s2 + $0x238] sm:$0x3] }
  0x37   : > { %2306 = vmatmul.msk.f32.gmra.mxu1 %vm316_vm0, %v382_v24  ;;  %2298 = vmatmul.msk.f32.gmra.mxu0 %vm316_vm0, %v314_v25  ;;  %v2348_v24 = vld [vmem:[%s3806_s2 + $0x100] sm:$0xff]  ;;  %v2438_v25 = vld [vmem:[%s3806_s2 + $0x2f0] sm:$0x3] }
  0x3f   : > { %2307 = vmatmul.msk.f32.gmra.mxu1 %vm316_vm0, %v383_v26  ;;  %2299 = vmatmul.msk.f32.gmra.mxu0 %vm316_vm0, %v315_v27  ;;  %v2439_v26 = vld [vmem:[%s3806_s2 + $0x2f8] sm:$0x3] }
  0xa4   : > { %v2949_v52 = vpop.f32.mrf.mxu1 }
  0xa5   : > { %2309 = vmatmul.msk.f32.vlgmr.msrb.gmra.mxu0 %vm316_vm0, %v2949_v52  ;;  %2311 = vmatmul.msk.f32.vlgmr.msrb.gmra.mxu1 %vm316_vm0, %v2949_v52  ;;  %v500_v53 = vrot.slane %v2949_v52, 1  ;;  %v756_v0 = vrot.slane %v2949_v52, 5  ;;  %v564_v3 = vrot.slane %v2949_v52, 2  ;;  %v884_v14 = vrot.slane %v2949_v52, 7 }
  0xa6   : > { %2392 = vmatpush.msk.msrb.mxu0 %vm437_vm1, %v2390_v50  ;;  %2394 = vmatpush.msk.msrb.mxu1 %vm437_vm1, %v2391_v51  ;;  %v628_v17 = vrot.slane %v2949_v52, 3  ;;  %v692_v32 = vrot.slane %v2949_v52, 4  ;;  %v820_v46 = vrot.slane %v2949_v52, 6  ;;  %v2461_v50 = vld [vmem:[%s3806_s2 + $0x368] sm:$0xff]  ;;  %v2400_v52 = vld [vmem:[%s3806_s2 + $0x220] sm:$0xff] }
  0xa7   : > { %2321 = vmatmul.msk.f32.vlgmr.msra.gmra.mxu2 %vm316_vm0, %v500_v53  ;;  %2323 = vmatmul.msk.f32.vlgmr.msra.gmra.mxu3 %vm316_vm0, %v500_v53  ;;  %v2401_v51 = vld [vmem:[%s3806_s2 + $0x228] sm:$0xff]  ;;  %v2458_v53 = vld [vmem:[%s3806_s2 + $0x350] sm:$0xff] }
  0xa8   : > { %2346 = vmatpush.msk.msra.mxu3 %vm437_vm1, %v2343_v54  ;;  %2344 = vmatpush.msk.msra.mxu2 %vm437_vm1, %v2342_v55  ;;  %v2459_v54 = vld [vmem:[%s3806_s2 + $0x358] sm:$0xff] }
  0xa9   : > { %906 = vmatpush.msrb.mxu0 %v2388_v56  ;;  %926 = vmatpush.msrb.mxu1 %v2389_v57  ;;  %v2399_v55 = vld [vmem:[%s3806_s2 + $0x218] sm:$0xff]  ;;  %v2398_v56 = vld [vmem:[%s3806_s2 + $0x210] sm:$0xff]  ;;  %v2456_v57 = vld [vmem:[%s3806_s2 + $0x340] sm:$0xff] }
  0xaa   : > { %670 = vmatpush.msra.mxu3 %v2341_v58  ;;  %650 = vmatpush.msra.mxu2 %v2340_v59  ;;  %v2457_v58 = vld [vmem:[%s3806_s2 + $0x348] sm:$0xff] }
  0xab   : > { %907 = vmatpush.msrb.mxu0 %v2386_v60  ;;  %927 = vmatpush.msrb.mxu1 %v2387_v61  ;;  %v2397_v60 = vld [vmem:[%s3806_s2 + $0x208] sm:$0xff]  ;;  %v2396_v61 = vld [vmem:[%s3806_s2 + $0x200] sm:$0xff] }
  0xac   : > { %671 = vmatpush.msra.mxu3 %v2339_v62  ;;  %651 = vmatpush.msra.mxu2 %v2338_v63  ;;  %v3054_v20 = vpop.f32.mrf.mxu1  ;;  %v2486_v62 = vld [vmem:[%s3806_s2 + $0x3f0] sm:$0x3]  ;;  %v2487_v63 = vld [vmem:[%s3806_s2 + $0x3f8] sm:$0x3] }
  0xad   : > { %2369 = vmatmul.msk.f32.vlgmr.msra.gmra.mxu0 %vm316_vm0, %v756_v0  ;;  %2371 = vmatmul.msk.f32.vlgmr.msra.gmra.mxu1 %vm316_vm0, %v756_v0  ;;  %v1012_v27 = vrot.slane %v3054_v20, 1  ;;  %v1140_v42 = vrot.slane %v3054_v20, 3  ;;  %v1268_v59 = vrot.slane %v3054_v20, 5  ;;  %v2427_v0 = vld [vmem:[%s3806_s2 + $0x2b8] sm:$0x3] }
  0xae   : > { %908 = vmatpush.msrb.mxu0 %v2384_v1  ;;  %928 = vmatpush.msrb.mxu1 %v2385_v2  ;;  %v2426_v1 = vld [vmem:[%s3806_s2 + $0x2b0] sm:$0x3]  ;;  %v2484_v2 = vld [vmem:[%s3806_s2 + $0x3e0] sm:$0xff] }
  0xaf   : > { %2333 = vmatmul.msk.f32.vlgmr.msrb.gmra.mxu2 %vm316_vm0, %v564_v3  ;;  %2335 = vmatmul.msk.f32.vlgmr.msrb.gmra.mxu3 %vm316_vm0, %v564_v3  ;;  %v2485_v3 = vld [vmem:[%s3806_s2 + $0x3e8] sm:$0xff] }
  0xb0   : > { %672 = vmatpush.msra.mxu3 %v2337_v4  ;;  %652 = vmatpush.msra.mxu2 %v2336_v5  ;;  %v2425_v4 = vld [vmem:[%s3806_s2 + $0x2a8] sm:$0xff]  ;;  %v2424_v5 = vld [vmem:[%s3806_s2 + $0x2a0] sm:$0xff] }
  0xb1   : > { %2416 = vmatpush.msk.msra.mxu0 %vm437_vm1, %v2414_v6  ;;  %2418 = vmatpush.msk.msra.mxu1 %vm437_vm1, %v2415_v7  ;;  %v2482_v6 = vld [vmem:[%s3806_s2 + $0x3d0] sm:$0xff]  ;;  %v2483_v7 = vld [vmem:[%s3806_s2 + $0x3d8] sm:$0xff] }
  0xb2   : > { %2358 = vmatpush.msk.msrb.mxu3 %vm437_vm1, %v2355_v8  ;;  %2356 = vmatpush.msk.msrb.mxu2 %vm437_vm1, %v2354_v9  ;;  %v2423_v8 = vld [vmem:[%s3806_s2 + $0x298] sm:$0xff]  ;;  %v2422_v9 = vld [vmem:[%s3806_s2 + $0x290] sm:$0xff] }
  0xb3   : > { %1034 = vmatpush.msra.mxu0 %v2412_v10  ;;  %1054 = vmatpush.msra.mxu1 %v2413_v11  ;;  %v2480_v10 = vld [vmem:[%s3806_s2 + $0x3c0] sm:$0xff]  ;;  %v2481_v11 = vld [vmem:[%s3806_s2 + $0x3c8] sm:$0xff] }
  0xb4   : > { %734 = vmatpush.msrb.mxu3 %v2353_v12  ;;  %714 = vmatpush.msrb.mxu2 %v2352_v13  ;;  %v2421_v12 = vld [vmem:[%s3806_s2 + $0x288] sm:$0xff]  ;;  %v1396_v13 = vrot.slane %v3054_v20, 7 }
  0xb5   : > { %2393 = vmatmul.msk.f32.vlgmr.msrb.gmra.mxu0 %vm316_vm0, %v884_v14  ;;  %2395 = vmatmul.msk.f32.vlgmr.msrb.gmra.mxu1 %vm316_vm0, %v884_v14  ;;  %v2420_v14 = vld [vmem:[%s3806_s2 + $0x280] sm:$0xff] }
  0xb6   : > { %1035 = vmatpush.msra.mxu0 %v2410_v15  ;;  %1055 = vmatpush.msra.mxu1 %v2411_v16  ;;  %v2510_v15 = vld [vmem:[%s3806_s2 + $0x470] sm:$0x3]  ;;  %v2511_v16 = vld [vmem:[%s3806_s2 + $0x478] sm:$0x3] }
  0xb7   : > { %2345 = vmatmul.msk.f32.vlgmr.msra.gmra.mxu2 %vm316_vm0, %v628_v17  ;;  %2347 = vmatmul.msk.f32.vlgmr.msra.gmra.mxu3 %vm316_vm0, %v628_v17  ;;  %v1076_v17 = vrot.slane %v3054_v20, 2 }
  0xb8   : > { %735 = vmatpush.msrb.mxu3 %v2351_v18  ;;  %715 = vmatpush.msrb.mxu2 %v2350_v19  ;;  %v2451_v18 = vld [vmem:[%s3806_s2 + $0x338] sm:$0x3]  ;;  %v2450_v19 = vld [vmem:[%s3806_s2 + $0x330] sm:$0x3] }
  0xb9   : > { %1036 = vmatpush.msra.mxu0 %v2408_v21  ;;  %1056 = vmatpush.msra.mxu1 %v2409_v22  ;;  %v2508_v21 = vld [vmem:[%s3806_s2 + $0x460] sm:$0xff]  ;;  %v2509_v22 = vld [vmem:[%s3806_s2 + $0x468] sm:$0xff] }
  0xba   : > { %736 = vmatpush.msrb.mxu3 %v2349_v23  ;;  %716 = vmatpush.msrb.mxu2 %v2348_v24  ;;  %v2449_v23 = vld [vmem:[%s3806_s2 + $0x328] sm:$0xff]  ;;  %v3274_v24 = vpop.f32.mrf.mxu1 }
  0xbb   : > { %2440 = vmatpush.msk.msrb.mxu0 %vm437_vm1, %v2438_v25  ;;  %2442 = vmatpush.msk.msrb.mxu1 %vm437_vm1, %v2439_v26  ;;  %v2448_v25 = vld [vmem:[%s3806_s2 + $0x320] sm:$0xff]  ;;  %v2506_v26 = vld [vmem:[%s3806_s2 + $0x450] sm:$0xff] }
  0xbc   : > { %2382 = vmatpush.msk.msra.mxu3 %vm437_vm1, %v2379_v28  ;;  %2380 = vmatpush.msk.msra.mxu2 %vm437_vm1, %v2378_v29  ;;  %v2447_v28 = vld [vmem:[%s3806_s2 + $0x318] sm:$0xff]  ;;  %v2446_v29 = vld [vmem:[%s3806_s2 + $0x310] sm:$0xff] }
  0xbd   : > { %2417 = vmatmul.msk.f32.vlgmr.msra.gmra.mxu0 %vm316_vm0, %v1012_v27  ;;  %2419 = vmatmul.msk.f32.vlgmr.msra.gmra.mxu1 %vm316_vm0, %v1012_v27  ;;  %v2507_v27 = vld [vmem:[%s3806_s2 + $0x458] sm:$0xff] }
  0xbe   : > { %1162 = vmatpush.msrb.mxu0 %v2436_v30  ;;  %1182 = vmatpush.msrb.mxu1 %v2437_v31  ;;  %v2504_v30 = vld [vmem:[%s3806_s2 + $0x440] sm:$0xff]  ;;  %v2505_v31 = vld [vmem:[%s3806_s2 + $0x448] sm:$0xff] }
  0xbf   : > { %2357 = vmatmul.msk.f32.vlgmr.msrb.gmra.mxu2 %vm316_vm0, %v692_v32  ;;  %2359 = vmatmul.msk.f32.vlgmr.msrb.gmra.mxu3 %vm316_vm0, %v692_v32  ;;  %v1524_v32 = vrot.slane %v3274_v24, 1 }
  0xc0   : > { %862 = vmatpush.msra.mxu3 %v2377_v33  ;;  %842 = vmatpush.msra.mxu2 %v2376_v34  ;;  %v2445_v33 = vld [vmem:[%s3806_s2 + $0x308] sm:$0xff]  ;;  %v2444_v34 = vld [vmem:[%s3806_s2 + $0x300] sm:$0xff] }
  0xc1   : > { %1163 = vmatpush.msrb.mxu0 %v2434_v35  ;;  %1183 = vmatpush.msrb.mxu1 %v2435_v36  ;;  %v2534_v35 = vld [vmem:[%s3806_s2 + $0x4f0] sm:$0x3]  ;;  %v2535_v36 = vld [vmem:[%s3806_s2 + $0x4f8] sm:$0x3] }
  0xc2   : > { %863 = vmatpush.msra.mxu3 %v2375_v37  ;;  %843 = vmatpush.msra.mxu2 %v2374_v38  ;;  %v1204_v37 = vrot.slane %v3054_v20, 4  ;;  %v2475_v38 = vld [vmem:[%s3806_s2 + $0x3b8] sm:$0x3] }
  0xc3   : > { %1164 = vmatpush.msrb.mxu0 %v2432_v39  ;;  %1184 = vmatpush.msrb.mxu1 %v2433_v40  ;;  %v2474_v39 = vld [vmem:[%s3806_s2 + $0x3b0] sm:$0x3]  ;;  %v2532_v40 = vld [vmem:[%s3806_s2 + $0x4e0] sm:$0xff] }
  0xc4   : > { %864 = vmatpush.msra.mxu3 %v2373_v41  ;;  %844 = vmatpush.msra.mxu2 %v2372_v43  ;;  %v2533_v41 = vld [vmem:[%s3806_s2 + $0x4e8] sm:$0xff]  ;;  %v2472_v43 = vld [vmem:[%s3806_s2 + $0x3a0] sm:$0xff] }
  0xc5   : > { %2441 = vmatmul.msk.f32.vlgmr.msrb.gmra.mxu0 %vm316_vm0, %v1140_v42  ;;  %2443 = vmatmul.msk.f32.vlgmr.msrb.gmra.mxu1 %vm316_vm0, %v1140_v42  ;;  %v2473_v42 = vld [vmem:[%s3806_s2 + $0x3a8] sm:$0xff] }
  0xc6   : > { %2464 = vmatpush.msk.msra.mxu0 %vm437_vm1, %v2462_v44  ;;  %2466 = vmatpush.msk.msra.mxu1 %vm437_vm1, %v2463_v45  ;;  %v2530_v44 = vld [vmem:[%s3806_s2 + $0x4d0] sm:$0xff]  ;;  %v2531_v45 = vld [vmem:[%s3806_s2 + $0x4d8] sm:$0xff] }
  0xc7   : > { %2381 = vmatmul.msk.f32.vlgmr.msra.gmra.mxu2 %vm316_vm0, %v820_v46  ;;  %2383 = vmatmul.msk.f32.vlgmr.msra.gmra.mxu3 %vm316_vm0, %v820_v46  ;;  %v2471_v46 = vld [vmem:[%s3806_s2 + $0x398] sm:$0xff] }
  0xc8   : > { %2406 = vmatpush.msk.msrb.mxu3 %vm437_vm1, %v2403_v47  ;;  %2404 = vmatpush.msk.msrb.mxu2 %vm437_vm1, %v2402_v48  ;;  %v2470_v47 = vld [vmem:[%s3806_s2 + $0x390] sm:$0xff]  ;;  %v2528_v48 = vld [vmem:[%s3806_s2 + $0x4c0] sm:$0xff] }
  0xc9   : > { %1290 = vmatpush.msra.mxu0 %v2460_v49  ;;  %1310 = vmatpush.msra.mxu1 %v2461_v50  ;;  %v2529_v49 = vld [vmem:[%s3806_s2 + $0x4c8] sm:$0xff]  ;;  %v1652_v50 = vrot.slane %v3274_v24, 3 }
  0xca   : > { %990 = vmatpush.msrb.mxu3 %v2401_v51  ;;  %970 = vmatpush.msrb.mxu2 %v2400_v52  ;;  %v2469_v51 = vld [vmem:[%s3806_s2 + $0x388] sm:$0xff]  ;;  %v2468_v52 = vld [vmem:[%s3806_s2 + $0x380] sm:$0xff] }
  0xcb   : > { %1291 = vmatpush.msra.mxu0 %v2458_v53  ;;  %1311 = vmatpush.msra.mxu1 %v2459_v54  ;;  %v2558_v53 = vld [vmem:[%s3806_s2 + $0x570] sm:$0x3]  ;;  %v2559_v54 = vld [vmem:[%s3806_s2 + $0x578] sm:$0x3] }
  0xcc   : > { %991 = vmatpush.msrb.mxu3 %v2399_v55  ;;  %971 = vmatpush.msrb.mxu2 %v2398_v56  ;;  %v1332_v55 = vrot.slane %v3054_v20, 6  ;;  %v2499_v56 = vld [vmem:[%s3806_s2 + $0x438] sm:$0x3] }
  0xcd   : > { %1292 = vmatpush.msra.mxu0 %v2456_v57  ;;  %1312 = vmatpush.msra.mxu1 %v2457_v58  ;;  %v2498_v57 = vld [vmem:[%s3806_s2 + $0x430] sm:$0x3]  ;;  %v358_v58 = vpop.f32.mrf.mxu0 }
  0xce   : > { %992 = vmatpush.msrb.mxu3 %v2397_v60  ;;  %2465 = vmatmul.msk.f32.vlgmr.msra.gmra.mxu0 %vm316_vm0, %v1268_v59  ;;  %370 = vst.msk [vmem:[%s3375_s15] sm:$0xff] %vm316_vm0, %v358_v58  ;;  %v2497_v60 = vld [vmem:[%s3806_s2 + $0x428] sm:$0xff]  ;;  %v2595_v58 = vld [vmem:[%s3806_s2 + $0x638] sm:$0x3] }
  0xcf   : > { %2467 = vmatmul.msk.f32.vlgmr.msra.gmra.mxu1 %vm316_vm0, %v1268_v59  ;;  %972 = vmatpush.msrb.mxu2 %v2396_v61  ;;  %v2556_v59 = vld [vmem:[%s3806_s2 + $0x560] sm:$0xff] }
  0xd0   : > { %2488 = vmatpush.msk.msrb.mxu0 %vm437_vm1, %v2486_v62  ;;  %2490 = vmatpush.msk.msrb.mxu1 %vm437_vm1, %v2487_v63  ;;  %v2496_v61 = vld [vmem:[%s3806_s2 + $0x420] sm:$0xff]  ;;  %v2554_v62 = vld [vmem:[%s3806_s2 + $0x550] sm:$0xff]  ;;  %v2555_v63 = vld [vmem:[%s3806_s2 + $0x558] sm:$0xff] }
  0xd1   : > { %2405 = vmatmul.msk.f32.vlgmr.msrb.gmra.mxu2 %vm316_vm0, %v3054_v20  ;;  %2407 = vmatmul.msk.f32.vlgmr.msrb.gmra.mxu3 %vm316_vm0, %v3054_v20  ;;  %v2557_v20 = vld [vmem:[%s3806_s2 + $0x568] sm:$0xff] }
  0xd2   : > { %2430 = vmatpush.msk.msra.mxu3 %vm437_vm1, %v2427_v0  ;;  %2428 = vmatpush.msk.msra.mxu2 %vm437_vm1, %v2426_v1  ;;  %v2495_v0 = vld [vmem:[%s3806_s2 + $0x418] sm:$0xff]  ;;  %v2494_v1 = vld [vmem:[%s3806_s2 + $0x410] sm:$0xff] }
  0xd3   : > { %1418 = vmatpush.msrb.mxu0 %v2484_v2  ;;  %1438 = vmatpush.msrb.mxu1 %v2485_v3  ;;  %v2552_v2 = vld [vmem:[%s3806_s2 + $0x540] sm:$0xff]  ;;  %v2553_v3 = vld [vmem:[%s3806_s2 + $0x548] sm:$0xff] }
  0xd4   : > { %1118 = vmatpush.msra.mxu3 %v2425_v4  ;;  %1098 = vmatpush.msra.mxu2 %v2424_v5  ;;  %v1780_v4 = vrot.slane %v3274_v24, 5  ;;  %v2493_v5 = vld [vmem:[%s3806_s2 + $0x408] sm:$0xff] }
  0xd5   : > { %1419 = vmatpush.msrb.mxu0 %v2482_v6  ;;  %1439 = vmatpush.msrb.mxu1 %v2483_v7  ;;  %v2492_v6 = vld [vmem:[%s3806_s2 + $0x400] sm:$0xff]  ;;  %v2582_v7 = vld [vmem:[%s3806_s2 + $0x5f0] sm:$0x3] }
  0xd6   : > { %1119 = vmatpush.msra.mxu3 %v2423_v8  ;;  %1099 = vmatpush.msra.mxu2 %v2422_v9  ;;  %v2583_v8 = vld [vmem:[%s3806_s2 + $0x5f8] sm:$0x3]  ;;  %v361_v9 = vpop.f32.mrf.mxu0 }
  0xd7   : > { %1420 = vmatpush.msrb.mxu0 %v2480_v10  ;;  %1440 = vmatpush.msrb.mxu1 %v2481_v11  ;;  %371 = vst.msk [vmem:[%s3375_s15 + $0x8] sm:$0xff] %vm316_vm0, %v361_v9  ;;  %v2523_v10 = vld [vmem:[%s3806_s2 + $0x4b8] sm:$0x3]  ;;  %v2522_v11 = vld [vmem:[%s3806_s2 + $0x4b0] sm:$0x3] }
  0xd8   : > { %1120 = vmatpush.msra.mxu3 %v2421_v12  ;;  %2489 = vmatmul.msk.f32.vlgmr.msrb.gmra.mxu0 %vm316_vm0, %v1396_v13  ;;  %v2580_v12 = vld [vmem:[%s3806_s2 + $0x5e0] sm:$0xff] }
  0xd9   : > { %2491 = vmatmul.msk.f32.vlgmr.msrb.gmra.mxu1 %vm316_vm0, %v1396_v13  ;;  %1100 = vmatpush.msra.mxu2 %v2420_v14  ;;  %v2581_v13 = vld [vmem:[%s3806_s2 + $0x5e8] sm:$0xff] }
  0xda   : > { %2512 = vmatpush.msk.msra.mxu0 %vm437_vm1, %v2510_v15  ;;  %2514 = vmatpush.msk.msra.mxu1 %vm437_vm1, %v2511_v16  ;;  %v2521_v14 = vld [vmem:[%s3806_s2 + $0x4a8] sm:$0xff]  ;;  %v2520_v15 = vld [vmem:[%s3806_s2 + $0x4a0] sm:$0xff]  ;;  %v2578_v16 = vld [vmem:[%s3806_s2 + $0x5d0] sm:$0xff] }
  0xdb   : > { %2429 = vmatmul.msk.f32.vlgmr.msra.gmra.mxu2 %vm316_vm0, %v1076_v17  ;;  %2431 = vmatmul.msk.f32.vlgmr.msra.gmra.mxu3 %vm316_vm0, %v1076_v17  ;;  %v2579_v17 = vld [vmem:[%s3806_s2 + $0x5d8] sm:$0xff] }
  0xdc   : > { %2454 = vmatpush.msk.msrb.mxu3 %vm437_vm1, %v2451_v18  ;;  %2452 = vmatpush.msk.msrb.mxu2 %vm437_vm1, %v2450_v19  ;;  %v2519_v18 = vld [vmem:[%s3806_s2 + $0x498] sm:$0xff]  ;;  %v2518_v19 = vld [vmem:[%s3806_s2 + $0x490] sm:$0xff] }
  0xdd   : > { %1546 = vmatpush.msra.mxu0 %v2508_v21  ;;  %1566 = vmatpush.msra.mxu1 %v2509_v22  ;;  %v2576_v21 = vld [vmem:[%s3806_s2 + $0x5c0] sm:$0xff]  ;;  %v2577_v22 = vld [vmem:[%s3806_s2 + $0x5c8] sm:$0xff] }
  0xde   : > { %1246 = vmatpush.msrb.mxu3 %v2449_v23  ;;  %1226 = vmatpush.msrb.mxu2 %v2448_v25  ;;  %v2517_v23 = vld [vmem:[%s3806_s2 + $0x488] sm:$0xff]  ;;  %v364_v25 = vpop.f32.mrf.mxu0 }
  0xdf   : > { %1547 = vmatpush.msra.mxu0 %v2506_v26  ;;  %1567 = vmatpush.msra.mxu1 %v2507_v27  ;;  %v1908_v26 = vrot.slane %v3274_v24, 7  ;;  %v2516_v27 = vld [vmem:[%s3806_s2 + $0x480] sm:$0xff]  ;;  %372 = vst.msk [vmem:[%s3375_s15 + $0x10] sm:$0xff] %vm316_vm0, %v364_v25 }
  0xe0   : > { %1247 = vmatpush.msrb.mxu3 %v2447_v28  ;;  %1227 = vmatpush.msrb.mxu2 %v2446_v29  ;;  %v1588_v28 = vrot.slane %v3274_v24, 2  ;;  %v2547_v29 = vld [vmem:[%s3806_s2 + $0x538] sm:$0x3]  ;;  %v425_v25 = vld [vmem:[%s3807_s3] sm:$0x3] }
  0xe1   : > { %1548 = vmatpush.msra.mxu0 %v2504_v30  ;;  %1568 = vmatpush.msra.mxu1 %v2505_v31  ;;  %v2546_v30 = vld [vmem:[%s3806_s2 + $0x530] sm:$0x3]  ;;  %v2607_v31 = vld [vmem:[%s3806_s2 + $0x678] sm:$0x3] }
  0xe2   : > { %1248 = vmatpush.msrb.mxu3 %v2445_v33  ;;  %2513 = vmatmul.msk.f32.vlgmr.msra.gmra.mxu0 %vm316_vm0, %v1524_v32  ;;  %v2545_v33 = vld [vmem:[%s3806_s2 + $0x528] sm:$0xff] }
  0xe3   : > { %2515 = vmatmul.msk.f32.vlgmr.msra.gmra.mxu1 %vm316_vm0, %v1524_v32  ;;  %1228 = vmatpush.msrb.mxu2 %v2444_v34  ;;  %v2606_v32 = vld [vmem:[%s3806_s2 + $0x670] sm:$0x3]  ;;  %v2544_v34 = vld [vmem:[%s3806_s2 + $0x520] sm:$0xff] }
  0xe4   : > { %2536 = vmatpush.msk.msrb.mxu0 %vm437_vm1, %v2534_v35  ;;  %2538 = vmatpush.msk.msrb.mxu1 %vm437_vm1, %v2535_v36  ;;  %v2605_v35 = vld [vmem:[%s3806_s2 + $0x668] sm:$0xff]  ;;  %v2604_v36 = vld [vmem:[%s3806_s2 + $0x660] sm:$0xff] }
  0xe5   : > { %2453 = vmatmul.msk.f32.vlgmr.msrb.gmra.mxu2 %vm316_vm0, %v1204_v37  ;;  %2455 = vmatmul.msk.f32.vlgmr.msrb.gmra.mxu3 %vm316_vm0, %v1204_v37  ;;  %v2543_v37 = vld [vmem:[%s3806_s2 + $0x518] sm:$0xff] }
  0xe6   : > { %2478 = vmatpush.msk.msra.mxu3 %vm437_vm1, %v2475_v38  ;;  %2476 = vmatpush.msk.msra.mxu2 %vm437_vm1, %v2474_v39  ;;  %v2542_v38 = vld [vmem:[%s3806_s2 + $0x510] sm:$0xff]  ;;  %v2603_v39 = vld [vmem:[%s3806_s2 + $0x658] sm:$0xff] }
  0xe7   : > { %1674 = vmatpush.msrb.mxu0 %v2532_v40  ;;  %1694 = vmatpush.msrb.mxu1 %v2533_v41  ;;  %v2602_v40 = vld [vmem:[%s3806_s2 + $0x650] sm:$0xff]  ;;  %v367_v41 = vpop.f32.mrf.mxu0 }
  0xe8   : > { %1374 = vmatpush.msra.mxu3 %v2473_v42  ;;  %1354 = vmatpush.msra.mxu2 %v2472_v43  ;;  %v2541_v42 = vld [vmem:[%s3806_s2 + $0x508] sm:$0xff]  ;;  %v2540_v43 = vld [vmem:[%s3806_s2 + $0x500] sm:$0xff]  ;;  %374 = vst.msk [vmem:[%s3375_s15 + $0x18] sm:$0x3] %vm373_vm2, %v367_v41 }
  0xe9   : > { %1675 = vmatpush.msrb.mxu0 %v2530_v44  ;;  %1695 = vmatpush.msrb.mxu1 %v2531_v45  ;;  %v422_v44 = vpop.f32.mrf.mxu1  ;;  %v1716_v45 = vrot.slane %v3274_v24, 4 }
  0xea   : > { %1375 = vmatpush.msra.mxu3 %v2471_v46  ;;  %1355 = vmatpush.msra.mxu2 %v2470_v47  ;;  %v2571_v46 = vld [vmem:[%s3806_s2 + $0x5b8] sm:$0x3]  ;;  %v2570_v47 = vld [vmem:[%s3806_s2 + $0x5b0] sm:$0x3] }
  0xeb   : > { %1676 = vmatpush.msrb.mxu0 %v2528_v48  ;;  %1696 = vmatpush.msrb.mxu1 %v2529_v49  ;;  %v2601_v48 = vld [vmem:[%s3806_s2 + $0x648] sm:$0xff]  ;;  %v2600_v49 = vld [vmem:[%s3806_s2 + $0x640] sm:$0xff] }
  0xec   : > { %1376 = vmatpush.msra.mxu3 %v2469_v51  ;;  %2537 = vmatmul.msk.f32.vlgmr.msrb.gmra.mxu0 %vm316_vm0, %v1652_v50  ;;  %v2568_v51 = vld [vmem:[%s3806_s2 + $0x5a0] sm:$0xff] }
  0xed   : > { %2539 = vmatmul.msk.f32.vlgmr.msrb.gmra.mxu1 %vm316_vm0, %v1652_v50  ;;  %1356 = vmatpush.msra.mxu2 %v2468_v52  ;;  %v2569_v50 = vld [vmem:[%s3806_s2 + $0x5a8] sm:$0xff]  ;;  %v2036_v52 = vrot.slane %v422_v44, 1 }
  0xee   : > { %2560 = vmatpush.msk.msra.mxu0 %vm437_vm1, %v2558_v53  ;;  %2562 = vmatpush.msk.msra.mxu1 %vm437_vm1, %v2559_v54  ;;  %v2567_v53 = vld [vmem:[%s3806_s2 + $0x598] sm:$0xff]  ;;  %v2566_v54 = vld [vmem:[%s3806_s2 + $0x590] sm:$0xff] }
  0xef   : > { %2477 = vmatmul.msk.f32.vlgmr.msra.gmra.mxu2 %vm316_vm0, %v1332_v55  ;;  %2479 = vmatmul.msk.f32.vlgmr.msra.gmra.mxu3 %vm316_vm0, %v1332_v55  ;;  %v2565_v55 = vld [vmem:[%s3806_s2 + $0x588] sm:$0xff] }
  0xf0   : > { %2502 = vmatpush.msk.msrb.mxu3 %vm437_vm1, %v2499_v56  ;;  %2500 = vmatpush.msk.msrb.mxu2 %vm437_vm1, %v2498_v57  ;;  %v2564_v56 = vld [vmem:[%s3806_s2 + $0x580] sm:$0xff]  ;;  %v1844_v57 = vrot.slane %v3274_v24, 6 }
  0xf1   : > { %1802 = vmatpush.msra.mxu0 %v2556_v59  ;;  %1822 = vmatpush.msra.mxu1 %v2557_v20  ;;  %v2594_v59 = vld [vmem:[%s3806_s2 + $0x630] sm:$0x3]  ;;  %v2593_v20 = vld [vmem:[%s3806_s2 + $0x628] sm:$0xff] }
  0xf2   : > { %1502 = vmatpush.msrb.mxu3 %v2497_v60  ;;  %1482 = vmatpush.msrb.mxu2 %v2496_v61  ;;  %v2591_v60 = vld [vmem:[%s3806_s2 + $0x618] sm:$0xff]  ;;  %v2590_v61 = vld [vmem:[%s3806_s2 + $0x610] sm:$0xff] }
  0xf3   : > { %1803 = vmatpush.msra.mxu0 %v2554_v62  ;;  %1823 = vmatpush.msra.mxu1 %v2555_v63  ;;  %v2589_v62 = vld [vmem:[%s3806_s2 + $0x608] sm:$0xff]  ;;  %v2588_v63 = vld [vmem:[%s3806_s2 + $0x600] sm:$0xff] }
  0xf4   : > { %1503 = vmatpush.msrb.mxu3 %v2495_v0  ;;  %1483 = vmatpush.msrb.mxu2 %v2494_v1 }
  0xf5   : > { %1804 = vmatpush.msra.mxu0 %v2552_v2  ;;  %1824 = vmatpush.msra.mxu1 %v2553_v3 }
  0xf6   : > { %1504 = vmatpush.msrb.mxu3 %v2493_v5  ;;  %2561 = vmatmul.msk.f32.vlgmr.msra.gmra.mxu0 %vm316_vm0, %v1780_v4 }
  0xf7   : > { %2563 = vmatmul.msk.f32.vlgmr.msra.gmra.mxu1 %vm316_vm0, %v1780_v4  ;;  %1484 = vmatpush.msrb.mxu2 %v2492_v6 }
  0xf8   : > { %2584 = vmatpush.msk.msrb.mxu0 %vm437_vm1, %v2582_v7  ;;  %2586 = vmatpush.msk.msrb.mxu1 %vm437_vm1, %v2583_v8 }
  0xf9   : > { %2501 = vmatmul.msk.f32.vlgmr.msrb.gmra.mxu2 %vm316_vm0, %v3274_v24  ;;  %2503 = vmatmul.msk.f32.vlgmr.msrb.gmra.mxu3 %vm316_vm0, %v3274_v24  ;;  %v2592_v24 = vld [vmem:[%s3806_s2 + $0x620] sm:$0xff] }
  0xfa   : > { %2526 = vmatpush.msk.msra.mxu3 %vm437_vm1, %v2523_v10  ;;  %2524 = vmatpush.msk.msra.mxu2 %vm437_vm1, %v2522_v11 }
  0xfb   : > { %1930 = vmatpush.msrb.mxu0 %v2580_v12  ;;  %1950 = vmatpush.msrb.mxu1 %v2581_v13 }
  0xfc   : > { %1630 = vmatpush.msra.mxu3 %v2521_v14  ;;  %1610 = vmatpush.msra.mxu2 %v2520_v15 }
  0xfd   : > { %1931 = vmatpush.msrb.mxu0 %v2578_v16  ;;  %1951 = vmatpush.msrb.mxu1 %v2579_v17 }
  0xfe   : > { %1631 = vmatpush.msra.mxu3 %v2519_v18  ;;  %1611 = vmatpush.msra.mxu2 %v2518_v19 }
  0xff   : > { %1932 = vmatpush.msrb.mxu0 %v2576_v21  ;;  %1952 = vmatpush.msrb.mxu1 %v2577_v22 }
 0x100   : > { %1632 = vmatpush.msra.mxu3 %v2517_v23  ;;  %2585 = vmatmul.msk.f32.vlgmr.msrb.gmra.mxu0 %vm316_vm0, %v1908_v26 }
 0x101   : > { %2587 = vmatmul.msk.f32.vlgmr.msrb.gmra.mxu1 %vm316_vm0, %v1908_v26  ;;  %1612 = vmatpush.msra.mxu2 %v2516_v27 }
 0x102   : > { %2525 = vmatmul.msk.f32.vlgmr.msra.gmra.mxu2 %vm316_vm0, %v1588_v28  ;;  %2527 = vmatmul.msk.f32.vlgmr.msra.gmra.mxu3 %vm316_vm0, %v1588_v28 }
 0x103   : > { %2550 = vmatpush.msk.msrb.mxu3 %vm437_vm1, %v2547_v29  ;;  %2548 = vmatpush.msk.msrb.mxu2 %vm437_vm1, %v2546_v30 }
 0x104   : > { %2610 = vmatpush.msk.msra.mxu1 %vm437_vm1, %v2607_v31  ;;  %2608 = vmatpush.msk.msra.mxu0 %vm437_vm1, %v2606_v32 }
 0x105   : > { %1758 = vmatpush.msrb.mxu3 %v2545_v33  ;;  %1738 = vmatpush.msrb.mxu2 %v2544_v34 }
 0x106   : > { %2078 = vmatpush.msra.mxu1 %v2605_v35  ;;  %2058 = vmatpush.msra.mxu0 %v2604_v36 }
 0x107   : > { %1759 = vmatpush.msrb.mxu3 %v2543_v37  ;;  %1739 = vmatpush.msrb.mxu2 %v2542_v38 }
 0x108   : > { %2079 = vmatpush.msra.mxu1 %v2603_v39  ;;  %2059 = vmatpush.msra.mxu0 %v2602_v40 }
 0x109   : > { %1760 = vmatpush.msrb.mxu3 %v2541_v42  ;;  %1740 = vmatpush.msrb.mxu2 %v2540_v43 }
 0x10a   : > { %2549 = vmatmul.msk.f32.vlgmr.msrb.gmra.mxu2 %vm316_vm0, %v1716_v45  ;;  %2551 = vmatmul.msk.f32.vlgmr.msrb.gmra.mxu3 %vm316_vm0, %v1716_v45 }
 0x10b   : > { %2574 = vmatpush.msk.msra.mxu3 %vm437_vm1, %v2571_v46  ;;  %2572 = vmatpush.msk.msra.mxu2 %vm437_vm1, %v2570_v47 }
 0x10c   : > { %2080 = vmatpush.msra.mxu1 %v2601_v48  ;;  %2060 = vmatpush.msra.mxu0 %v2600_v49 }
 0x10d   : > { %1886 = vmatpush.msra.mxu3 %v2569_v50  ;;  %1866 = vmatpush.msra.mxu2 %v2568_v51  ;;  %v2109_v51 = vld [vmem:[%s3808_s4 + $0x78] sm:$0xff] }
 0x10e   : > { %2611 = vmatmul.msk.f32.vlgmr.msra.gmra.mxu1 %vm316_vm0, %v2036_v52  ;;  %2609 = vmatmul.msk.f32.vlgmr.msra.gmra.mxu0 %vm316_vm0, %v2036_v52  ;;  %v2125_v52 = vld [vmem:[%s3808_s4 + $0xf8] sm:$0xff] }
 0x10f   : > { %1887 = vmatpush.msra.mxu3 %v2567_v53  ;;  %1867 = vmatpush.msra.mxu2 %v2566_v54 }
 0x111   : > { %1888 = vmatpush.msra.mxu3 %v2565_v55  ;;  %1868 = vmatpush.msra.mxu2 %v2564_v56 }
 0x112   : > { %2573 = vmatmul.msk.f32.vlgmr.msra.gmra.mxu2 %vm316_vm0, %v1844_v57  ;;  %2575 = vmatmul.msk.f32.vlgmr.msra.gmra.mxu3 %vm316_vm0, %v1844_v57  ;;  %v2108_v57 = vld [vmem:[%s3808_s4 + $0x70] sm:$0xff] }
 0x113   : > { %2598 = vmatpush.msk.msrb.mxu3 %vm437_vm1, %v2595_v58  ;;  %2596 = vmatpush.msk.msrb.mxu2 %vm437_vm1, %v2594_v59  ;;  %v2124_v58 = vld [vmem:[%s3808_s4 + $0xf0] sm:$0xff] }
 0x115   : > { %2014 = vmatpush.msrb.mxu3 %v2593_v20  ;;  %1994 = vmatpush.msrb.mxu2 %v2592_v24 }
 0x117   : > { %2015 = vmatpush.msrb.mxu3 %v2591_v60  ;;  %1995 = vmatpush.msrb.mxu2 %v2590_v61  ;;  %v2107_v61 = vld [vmem:[%s3808_s4 + $0x68] sm:$0xff] }
 0x119   : > { %2016 = vmatpush.msrb.mxu3 %v2589_v62  ;;  %1996 = vmatpush.msrb.mxu2 %v2588_v63  ;;  %v2123_v62 = vld [vmem:[%s3808_s4 + $0xe8] sm:$0xff] }
 0x11a   : > { %2597 = vmatmul.msk.f32.vlgmr.msrb.gmra.mxu2 %vm316_vm0, %v422_v44  ;;  %2599 = vmatmul.msk.f32.vlgmr.msrb.gmra.mxu3 %vm316_vm0, %v422_v44 }
 0x11b   : > { %2132 = vmatpush.msra.mxu2 %v2109_v51  ;;  %2152 = vmatpush.msra.mxu3 %v2125_v52  ;;  %v2096_v52 = vld [vmem:[%s3808_s4 + $0x10] sm:$0xff] }
 0x11d   : > { %2133 = vmatpush.msra.mxu2 %v2108_v57  ;;  %2153 = vmatpush.msra.mxu3 %v2124_v58  ;;  %v2111_v57 = vld [vmem:[%s3808_s4 + $0x88] sm:$0xff] }
 0x11f   : > { %2134 = vmatpush.msra.mxu2 %v2107_v61  ;;  %2154 = vmatpush.msra.mxu3 %v2123_v62 }
 0x122   : > { %v481_v2 = vpop.f32.mrf.mxu1  ;;  %v461_v3 = vpop.f32.mrf.mxu0 }
 0x123   : > { %v486_v21 = vrot.slane %v481_v2, 7  ;;  %v2106_v2 = vld [vmem:[%s3808_s4 + $0x60] sm:$0xff] }
 0x124   : > { %2135 = vmatpush.msra.mxu2 %v2106_v2 }
 0x125   : > { %v488_v26 = vsel %vm487_vm3, %v461_v3, %v486_v21  ;;  %v2122_v3 = vld [vmem:[%s3808_s4 + $0xe0] sm:$0xff] }
 0x126   : > { %v490_v31 = vadd.f32 %v488_v26, %v425_v25  ;;  %2155 = vmatpush.msra.mxu3 %v2122_v3  ;;  %v2102_v21 = vld [vmem:[%s3808_s4 + $0x40] sm:$0xff] }
 0x12a   : > { %v526_v0 = vpop.f32.mrf.mxu2  ;;  %v546_v1 = vpop.f32.mrf.mxu3 }
 0x12b   : > { %v802_v6 = vpop.f32.mrf.mxu1  ;;  %v782_v9 = vpop.f32.mrf.mxu0  ;;  %v551_v23 = vrot.slane %v546_v1, 7 }
 0x12c   : > { %v807_v42 = vrot.slane %v802_v6, 7 }
 0x12d   : > { %v552_v29 = vsel %vm487_vm3, %v526_v0, %v551_v23  ;;  %v2101_v23 = vld [vmem:[%s3808_s4 + $0x38] sm:$0xff] }
 0x12e   : > { %v554_v36 = vadd.f32 %v552_v29, %v490_v31  ;;  %v808_v46 = vsel %vm487_vm3, %v782_v9, %v807_v42  ;;  %v2098_v42 = vld [vmem:[%s3808_s4 + $0x20] sm:$0xff] }
 0x132   : > { %v590_v4 = vpop.f32.mrf.mxu2  ;;  %v610_v5 = vpop.f32.mrf.mxu3 }
 0x133   : > { %v930_v12 = vpop.f32.mrf.mxu1  ;;  %v910_v13 = vpop.f32.mrf.mxu0  ;;  %v615_v27 = vrot.slane %v610_v5, 7 }
 0x134   : > { %v935_v53 = vrot.slane %v930_v12, 7  ;;  %v2104_v12 = vld [vmem:[%s3808_s4 + $0x50] sm:$0xff] }
 0x135   : > { %v616_v32 = vsel %vm487_vm3, %v590_v4, %v615_v27  ;;  %v2105_v4 = vld [vmem:[%s3808_s4 + $0x58] sm:$0xff] }
 0x136   : > { %v618_v38 = vadd.f32 %v616_v32, %v554_v36  ;;  %v936_v59 = vsel %vm487_vm3, %v910_v13, %v935_v53  ;;  %2136 = vmatpush.msra.mxu2 %v2105_v4  ;;  %v2120_v13 = vld [vmem:[%s3808_s4 + $0xd0] sm:$0xff]  ;;  %v2117_v27 = vld [vmem:[%s3808_s4 + $0xb8] sm:$0xff] }
 0x137   : > { %v2112_v53 = vld [vmem:[%s3808_s4 + $0x90] sm:$0xff] }
 0x138   : > { %2137 = vmatpush.msra.mxu2 %v2104_v12 }
 0x13a   : > { %v654_v7 = vpop.f32.mrf.mxu2  ;;  %v674_v8 = vpop.f32.mrf.mxu3 }
 0x13b   : > { %v3614_v16 = vpop.f32.mrf.mxu1  ;;  %v3616_v17 = vpop.f32.mrf.mxu0  ;;  %v679_v30 = vrot.slane %v674_v8, 7 }
 0x13c   : > { %v1063_v63 = vrot.slane %v3614_v16, 7 }
 0x13d   : > { %v680_v37 = vsel %vm487_vm3, %v654_v7, %v679_v30  ;;  %v2121_v7 = vld [vmem:[%s3808_s4 + $0xd8] sm:$0xff] }
 0x13e   : > { %v682_v41 = vadd.f32 %v680_v37, %v618_v38  ;;  %v1064_v8 = vsel %vm487_vm3, %v3616_v17, %v1063_v63  ;;  %2156 = vmatpush.msra.mxu3 %v2121_v7  ;;  %v2103_v17 = vld [vmem:[%s3808_s4 + $0x48] sm:$0xff] }
 0x13f   : > { %2138 = vmatpush.msra.mxu2 %v2103_v17  ;;  %v2099_v37 = vld [vmem:[%s3808_s4 + $0x28] sm:$0xff] }
 0x140   : > { %2157 = vmatpush.msra.mxu3 %v2120_v13  ;;  %v2115_v38 = vld [vmem:[%s3808_s4 + $0xa8] sm:$0xff] }
 0x141   : > { %2139 = vmatpush.msra.mxu2 %v2102_v21 }
 0x142   : > { %v718_v10 = vpop.f32.mrf.mxu2  ;;  %v738_v11 = vpop.f32.mrf.mxu3 }
 0x143   : > { %v3618_v22 = vpop.f32.mrf.mxu1  ;;  %v3624_v28 = vpop.f32.mrf.mxu0  ;;  %v743_v33 = vrot.slane %v738_v11, 7  ;;  %2140 = vmatpush.msra.mxu2 %v2101_v23 }
 0x145   : > { %v744_v40 = vsel %vm487_vm3, %v718_v10, %v743_v33 }
 0x146   : > { %v746_v45 = vadd.f32 %v744_v40, %v682_v41 }
 0x148   : > { %v810_v50 = vadd.f32 %v808_v46, %v746_v45 }
 0x14a   : > { %v846_v14 = vpop.f32.mrf.mxu2  ;;  %v866_v15 = vpop.f32.mrf.mxu3 }
 0x14b   : > { %v871_v43 = vrot.slane %v866_v15, 7  ;;  %v3632_v44 = vpop.f32.mrf.mxu0 }
 0x14c   : > { %v3629_v39 = vpop.f32.mrf.mxu1 }
 0x14d   : > { %v872_v47 = vsel %vm487_vm3, %v846_v14, %v871_v43  ;;  %v1191_v14 = vrot.slane %v3618_v22, 7  ;;  %v2118_v22 = vld [vmem:[%s3808_s4 + $0xc0] sm:$0xff]  ;;  %v1319_v30 = vrot.slane %v3629_v39, 7 }
 0x14e   : > { %v874_v55 = vadd.f32 %v872_v47, %v810_v50  ;;  %v2114_v43 = vld [vmem:[%s3808_s4 + $0xa0] sm:$0xff] }
 0x14f   : > { %v1192_v25 = vsel %vm487_vm3, %v3624_v28, %v1191_v14  ;;  %v2100_v28 = vld [vmem:[%s3808_s4 + $0x30] sm:$0xff]  ;;  %v1320_v39 = vsel %vm487_vm3, %v3632_v44, %v1319_v30 }
 0x150   : > { %v938_v60 = vadd.f32 %v936_v59, %v874_v55  ;;  %2141 = vmatpush.msra.mxu2 %v2100_v28  ;;  %v2094_v59 = vld [vmem:[%s3808_s4] sm:$0xff] }
 0x152   : > { %2142 = vmatpush.msra.mxu2 %v2099_v37 }
 0x154   : > { %v974_v18 = vpop.f32.mrf.mxu2  ;;  %v994_v19 = vpop.f32.mrf.mxu3  ;;  %2143 = vmatpush.msra.mxu2 %v2098_v42 }
 0x155   : > { %v999_v54 = vrot.slane %v994_v19, 7  ;;  %v3652_v24 = vpop.f32.mrf.mxu0 }
 0x156   : > { %v3642_v56 = vpop.f32.mrf.mxu1 }
 0x157   : > { %v1000_v20 = vsel %vm487_vm3, %v974_v18, %v999_v54  ;;  %v2119_v18 = vld [vmem:[%s3808_s4 + $0xc8] sm:$0xff]  ;;  %v1447_v45 = vrot.slane %v3642_v56, 7 }
 0x158   : > { %v1002_v1 = vadd.f32 %v1000_v20, %v938_v60  ;;  %2158 = vmatpush.msra.mxu3 %v2119_v18  ;;  %v2095_v54 = vld [vmem:[%s3808_s4 + $0x8] sm:$0xff]  ;;  %v2110_v20 = vld [vmem:[%s3808_s4 + $0x80] sm:$0xff] }
 0x159   : > { %v1448_v55 = vsel %vm487_vm3, %v3652_v24, %v1447_v45 }
 0x15a   : > { %v1066_v10 = vadd.f32 %v1064_v8, %v1002_v1  ;;  %2159 = vmatpush.msra.mxu3 %v2118_v22 }
 0x15c   : > { %2160 = vmatpush.msra.mxu3 %v2117_v27 }
 0x15e   : > { %v1102_v34 = vpop.f32.mrf.mxu2  ;;  %v1122_v35 = vpop.f32.mrf.mxu3 }
 0x15f   : > { %v1127_v0 = vrot.slane %v1122_v35, 7  ;;  %v3691_v19 = vpop.f32.mrf.mxu0  ;;  %v2116_v35 = vld [vmem:[%s3808_s4 + $0xb0] sm:$0xff] }
 0x160   : > { %v3676_v11 = vpop.f32.mrf.mxu1  ;;  %2161 = vmatpush.msra.mxu3 %v2116_v35 }
 0x161   : > { %v1128_v9 = vsel %vm487_vm3, %v1102_v34, %v1127_v0  ;;  %v1575_v60 = vrot.slane %v3676_v11, 7 }
 0x162   : > { %v1130_v16 = vadd.f32 %v1128_v9, %v1066_v10  ;;  %2162 = vmatpush.msra.mxu3 %v2115_v38 }
 0x163   : > { %v1576_v63 = vsel %vm487_vm3, %v3691_v19, %v1575_v60 }
 0x164   : > { %v1194_v29 = vadd.f32 %v1192_v25, %v1130_v16  ;;  %2163 = vmatpush.msra.mxu3 %v2114_v43 }
 0x168   : > { %v1230_v48 = vpop.f32.mrf.mxu2  ;;  %v1250_v49 = vpop.f32.mrf.mxu3 }
 0x169   : > { %v1255_v15 = vrot.slane %v1250_v49, 7  ;;  %v1678_v46 = vpop.f32.mrf.mxu0  ;;  %v2113_v49 = vld [vmem:[%s3808_s4 + $0x98] sm:$0xff] }
 0x16a   : > { %v1698_v36 = vpop.f32.mrf.mxu1  ;;  %2164 = vmatpush.msra.mxu3 %v2113_v49 }
 0x16b   : > { %v1256_v26 = vsel %vm487_vm3, %v1230_v48, %v1255_v15  ;;  %v2097_v48 = vld [vmem:[%s3808_s4 + $0x18] sm:$0xff] }
 0x16c   : > { %v1258_v34 = vadd.f32 %v1256_v26, %v1194_v29  ;;  %2144 = vmatpush.msra.mxu2 %v2097_v48  ;;  %2165 = vmatpush.msra.mxu3 %v2112_v53 }
 0x16e   : > { %v1322_v41 = vadd.f32 %v1320_v39, %v1258_v34  ;;  %2145 = vmatpush.msra.mxu2 %v2096_v52  ;;  %2166 = vmatpush.msra.mxu3 %v2111_v57 }
 0x170   : > { %2146 = vmatpush.msra.mxu2 %v2095_v54  ;;  %2167 = vmatpush.msra.mxu3 %v2110_v20 }
 0x172   : > { %v1358_v5 = vpop.f32.mrf.mxu2  ;;  %v1378_v6 = vpop.f32.mrf.mxu3  ;;  %2147 = vmatpush.msra.mxu2 %v2094_v59 }
 0x173   : > { %v1383_v31 = vrot.slane %v1378_v6, 7  ;;  %v1806_v0 = vpop.f32.mrf.mxu0 }
 0x174   : > { %v1826_v61 = vpop.f32.mrf.mxu1 }
 0x175   : > { %v1384_v40 = vsel %vm487_vm3, %v1358_v5, %v1383_v31  ;;  %v1703_v5 = vrot.slane %v1698_v36, 7  ;;  %v1831_v12 = vrot.slane %v1826_v61, 7 }
 0x176   : > { %v1386_v44 = vadd.f32 %v1384_v40, %v1322_v41  ;;  %v2126_v41 = vld [vmem:[%s3809_s5] sm:$0x1] }
 0x177   : > { %v1704_v8 = vsel %vm487_vm3, %v1678_v46, %v1703_v5  ;;  %v1832_v18 = vsel %vm487_vm3, %v1806_v0, %v1831_v12 }
 0x178   : > { %v1450_v58 = vadd.f32 %v1448_v55, %v1386_v44 }
 0x17c   : > { %v1486_v32 = vpop.f32.mrf.mxu2  ;;  %v1506_v33 = vpop.f32.mrf.mxu3 }
 0x17d   : > { %v1511_v47 = vrot.slane %v1506_v33, 7  ;;  %v1934_v17 = vpop.f32.mrf.mxu0 }
 0x17e   : > { %v1954_v10 = vpop.f32.mrf.mxu1 }
 0x17f   : > { %v1512_v56 = vsel %vm487_vm3, %v1486_v32, %v1511_v47  ;;  %v1959_v22 = vrot.slane %v1954_v10, 7 }
 0x180   : > { %v1514_v62 = vadd.f32 %v1512_v56, %v1450_v58 }
 0x181   : > { %v1960_v27 = vsel %vm487_vm3, %v1934_v17, %v1959_v22 }
 0x182   : > { %v1578_v2 = vadd.f32 %v1576_v63, %v1514_v62 }
 0x185   : > { %v1614_v50 = vpop.f32.mrf.mxu2  ;;  %v1634_v51 = vpop.f32.mrf.mxu3 }
 0x186   : > { %v1639_v24 = vrot.slane %v1634_v51, 7 }
 0x188   : > { %v1640_v1 = vsel %vm487_vm3, %v1614_v50, %v1639_v24 }
 0x189   : > { %v1642_v7 = vadd.f32 %v1640_v1, %v1578_v2 }
 0x18b   : > { %v1706_v11 = vadd.f32 %v1704_v8, %v1642_v7  ;;  %v2082_v25 = vpop.f32.mrf.mxu1  ;;  %v2062_v31 = vpop.f32.mrf.mxu0 }
 0x18c   : > { %v2087_v29 = vrot.slane %v2082_v25, 7 }
 0x18d   : > { %v1742_v3 = vpop.f32.mrf.mxu2  ;;  %v1762_v4 = vpop.f32.mrf.mxu3 }
 0x18e   : > { %v1767_v6 = vrot.slane %v1762_v4, 7  ;;  %v2088_v35 = vsel %vm487_vm3, %v2062_v31, %v2087_v29 }
 0x190   : > { %v1768_v9 = vsel %vm487_vm3, %v1742_v3, %v1767_v6 }
 0x191   : > { %v1770_v13 = vadd.f32 %v1768_v9, %v1706_v11 }
 0x193   : > { %v1834_v21 = vadd.f32 %v1832_v18, %v1770_v13 }
 0x195   : > { %v1870_v14 = vpop.f32.mrf.mxu2  ;;  %v1890_v15 = vpop.f32.mrf.mxu3 }
 0x196   : > { %v1895_v16 = vrot.slane %v1890_v15, 7 }
 0x198   : > { %v1896_v19 = vsel %vm487_vm3, %v1870_v14, %v1895_v16 }
 0x199   : > { %v1898_v23 = vadd.f32 %v1896_v19, %v1834_v21 }
 0x19b   : > { %v1962_v33 = vadd.f32 %v1960_v27, %v1898_v23 }
 0x19d   : > { %v2018_v26 = vpop.f32.mrf.mxu3  ;;  %v1998_v32 = vpop.f32.mrf.mxu2 }
 0x19e   : > { %v2023_v30 = vrot.slane %v2018_v26, 7 }
 0x1a0   : > { %v2024_v34 = vsel %vm487_vm3, %v1998_v32, %v2023_v30 }
 0x1a1   : > { %v2026_v28 = vadd.f32 %v2024_v34, %v1962_v33 }
 0x1a3   : > { %v2090_v36 = vadd.f32 %v2088_v35, %v2026_v28 }
 0x1a5   : > { %v2092_v37 = vmul.f32 0.01, %v2090_v36  ;;  %vm2091_vm4 = vcmp.gt.f32.partialorder %v2090_v36, 0.0 }
 0x1a7   : > { %v2093_v38 = vsel %vm2091_vm4, %v2090_v36, %v2092_v37 }
 0x1a8   : > { %v2128_v39 = vperm.slane %v2093_v38, 0  ;;  %v2129_v40 = vperm.slane %v2093_v38, 1 }
 0x1aa   : > { %2148 = vmatmul.f32.vlgmr.msra.gmra.mxu2 %v2128_v39  ;;  %2168 = vmatmul.f32.vlgmr.msra.gmra.mxu3 %v2129_v40 }
 0x22d   : > { %v2149_v42 = vpop.f32.mrf.mxu2  ;;  %v2169_v45 = vpop.f32.mrf.mxu3 }
 0x22e   : > { %v2150_v43 = vadd.f32 %v2149_v42, %v2126_v41 }
 0x230   : > { %v2170_v46 = vadd.f32 %v2169_v45, %v2150_v43 }
 0x232   : > { %2173 = vst.msk [vmem:[%s289_s20] sm:$0x1] %vm2172_vm5, %v2170_v46 }
 0x233   : > { %2684 = shalt.err (!%p2681_p3)
}
 0x234   : > { %2616 = dma.vmem_to_hbm [thread:$0]  (%p2799_p5), %s2194_s21, 16, %s2196_s22, %s2180_s23  }
 0x235 PF: > { %p2622_p4 = scmp.ge.s32.totalorder %s2719_s27, 2  ;;  %s2215_s17 = sand.u32 1, %s2707_s24  }
 0x236   : > { %s2216_s13 = scalar_lea.sflag [#allocation3], %s2215_s17 }
 0x237   : > { %p2619_p7 = pnand %p2622_p4, %p2803_p6 }
 0x239   : > { %p2620_p8 = pneg %p2619_p7 }
 0x23b   : > { %2702 = dma.done.wait (%p2620_p8), %s2216_s13, 16  }
 0x23c   : > { %2704 = vsyncadd (%p2620_p8), %s2216_s13, 4294967280  ;;  %p18_p9 = scmp.ge.s32.totalorder %s2786_s30, 4   ;;  %s3814_s24 = smov %s2711_s25 }
 0x23d   : > { %s3815_s25 = smov %s2715_s26  ;;  %s3816_s26 = smov %s2797_s10 }
 0x23e   : > { %s3817_s27 = smov %s2786_s30  ;;  %20 = sbr.rel (!%p18_p9) target bundleno = 3 (0x3), region = 119 }
 0x243   :  { %2221 = vsyncpa [#allocation3], 1 }
 0x244   :  { %2223 = vsyncpa [#allocation3 + $0x1], 1 }

</bundles_post_ra>
